<compile_context>
chip_gen: v6e
topology: v6e:2x2x1
jax: 0.10.0
libtpu: 0.0.40
codegen_flags: <defaults>
</compile_context>

<pallas_src>
import math
from functools import partial

import numpy as np
import jax
import jax.numpy as jnp
from jax import lax
from jax.experimental import pallas as pl
from jax.experimental.pallas import tpu as pltpu

# ---------------- configuration (small shapes, consistent with the module) ---
DIM = 128                      # model dim
HEADS = 8
DHEAD = DIM // HEADS           # per-head dim of v / output (16)
QHEAD = 2 * DHEAD              # per-head dim of q/k before the differential split
SEQ = 32
BATCH = 2
LAYER_NUM = 1
EPS = 1e-6


def lambda_init_fn(depth):
    return 0.8 - 0.6 * math.exp(-0.3 * depth)


L_INIT = lambda_init_fn(LAYER_NUM)


# ---------------- fused Pallas kernel -----------------------------------------
def _fused_diff_attn_kernel(lmbda_ref, x_ref, wq_ref, wk_ref, wv_ref, wo_ref,
                            mask_ref, gmean_ref, o_ref, out_acc,
                            *, seq, dim, heads, dhead, eps, out_scale, mxu_dtype):
    m = x_ref.shape[0]                  # rows in this block (= nb * seq)
    nb = m // seq
    lmbda = lmbda_ref[0, 0]             # SMEM scalar

    # Fused projections: M = nb*seq rows per MXU pass, f32 accumulation.
    xm = x_ref[...]
    q = jnp.dot(xm, wq_ref[...], preferred_element_type=jnp.float32)   # (m, 2*dim)
    k = jnp.dot(xm, wk_ref[...], preferred_element_type=jnp.float32)   # (m, 2*dim)
    v = jnp.dot(xm, wv_ref[...], preferred_element_type=jnp.float32)   # (m, dim)
    q = q * (1.0 / math.sqrt(dhead))    # fold attention scale in once (f32)

    mask = mask_ref[...]                # (2*seq, seq) additive causal mask
    qhead = 2 * dhead

    for bb in range(nb):                # static; nb is B (folded) or 1 (core split)
        r0 = bb * seq
        qb = q[r0:r0 + seq, :].astype(mxu_dtype)       # (seq, 2*dim)
        vb = v[r0:r0 + seq, :].astype(mxu_dtype)       # (seq, dim)
        # ONE (seq, 2*dim) -> (2*dim, seq) transpose per sequence; per-head k
        # tiles below are free sublane slices.
        kbT = k[r0:r0 + seq, :].astype(mxu_dtype).T    # (2*dim, seq)
        for h in range(heads):
            # Reference prep_qkv channel layout:
            #   channel h         -> lanes [c1, c1 + dhead)
            #   channel h + heads -> lanes [dim + c1, dim + c1 + dhead)
            c1 = (h // 2) * qhead + (h % 2) * dhead
            c2 = dim + c1
            s1 = jnp.dot(qb[:, c1:c1 + dhead], kbT[c1:c1 + dhead, :],
                         preferred_element_type=jnp.float32)           # (seq, seq)
            s2 = jnp.dot(qb[:, c2:c2 + dhead], kbT[c2:c2 + dhead, :],
                         preferred_element_type=jnp.float32)
            # Fused softmax over both score sets: one mask/max/exp/sum pass.
            s = jnp.concatenate([s1, s2], axis=0) + mask               # (2*seq, seq)
            e = jnp.exp(s - jnp.max(s, axis=-1, keepdims=True))
            p = e / jnp.sum(e, axis=-1, keepdims=True)                 # exact divide
            attn = p[:seq, :] - lmbda * p[seq:, :]                     # (seq, seq)
            out_acc[r0:r0 + seq, h * dhead:(h + 1) * dhead] = jnp.dot(
                attn.astype(mxu_dtype), vb[:, h * dhead:(h + 1) * dhead],
                preferred_element_type=jnp.float32)

    # GroupRMSNorm on the dense (m, dim) slab: per-lane group mean of x^2 via
    # one matmul with a precomputed block-diagonal matrix (entries 1/group_size).
    out = out_acc[...]                                                 # (m, dim) f32
    ms = jnp.dot(out * out, gmean_ref[...], preferred_element_type=jnp.float32)
    y = out * lax.rsqrt(ms + eps) * out_scale                          # * (1 - l_init)

    # Output projection; lane-dense (m, dim) store.
    o_ref[...] = jnp.dot(y.astype(mxu_dtype), wo_ref[...],
                         preferred_element_type=jnp.float32).astype(o_ref.dtype)


def differential_attention_forward(params, x, *, mxu_dtype=jnp.float32,
                                   split_batch_across_cores=False):
    """Fused differential-attention forward (a single pallas_call).

    mxu_dtype: dtype of MXU operands (accumulation stays f32). Use
      jnp.bfloat16 on v6e/v7x for native MXU throughput at production shapes.
    split_batch_across_cores: keep a (B,) grid with CORE_PARALLEL semantics so
      the two v7x TensorCores each take one batch. Default (False) folds the
      batch into the matmul M dimension -> single grid step (best on
      single-TensorCore v5e/v6e at these shapes).
    """
    B, S, d = x.shape
    assert d == DIM and DIM % HEADS == 0
    out_dtype = x.dtype
    Mtot = B * S

    lambda_1 = jnp.exp(jnp.sum(params["l_q1"] * params["l_k1"]))
    lambda_2 = jnp.exp(jnp.sum(params["l_q2"] * params["l_k2"]))
    lmbda = (lambda_1 - lambda_2 + L_INIT).reshape(1, 1).astype(jnp.float32)

    # Host-side (trace-time) constants -> resident VMEM inputs; no per-step
    # iota/compare work inside the kernel.
    causal = np.triu(np.full((S, S), -1e30, np.float32), 1)
    mask2 = jnp.asarray(np.concatenate([causal, causal], axis=0))      # (2S, S)
    gsize = DHEAD // HEADS
    grp = np.arange(DIM) // gsize
    gmean = jnp.asarray((grp[:, None] == grp[None, :]).astype(np.float32) / gsize)

    x2 = x.reshape(Mtot, DIM).astype(mxu_dtype)
    wq = params["wq"].astype(mxu_dtype)
    wk = params["wk"].astype(mxu_dtype)
    wv = params["wv"].astype(mxu_dtype)
    wo = params["wo"].astype(mxu_dtype)

    if split_batch_across_cores:
        grid = (B,)
        m_blk = S
        xo_map = lambda b: (b, 0)
        dim_sem = (pltpu.CORE_PARALLEL,)     # explicit 2-TC split on v7x
    else:
        grid = (1,)
        m_blk = Mtot
        xo_map = lambda i: (0, 0)
        dim_sem = ("arbitrary",)
    const2 = lambda i: (0, 0)

    # Advisory cost for XLA's scheduler (kernel is launch-bound at toy shapes).
    flops = int(2 * Mtot * DIM * (2 * DIM) * 2            # wq, wk
                + 2 * Mtot * DIM * DIM * 3                # wv, group-mean, wo
                + B * 2 * S * S * DHEAD * (2 * HEADS)     # q @ k^T (2H channels)
                + B * 2 * S * S * DHEAD * HEADS)          # attn @ v
    transcendentals = int(B * 2 * HEADS * S * S + Mtot * DIM)
    operands = (lmbda, x2, wq, wk, wv, wo, mask2, gmean)
    bytes_accessed = int(sum(a.size * np.dtype(a.dtype).itemsize for a in operands)
                         + Mtot * DIM * np.dtype(out_dtype).itemsize)

    kern = partial(_fused_diff_attn_kernel, seq=S, dim=DIM, heads=HEADS,
                   dhead=DHEAD, eps=EPS, out_scale=(1.0 - L_INIT),
                   mxu_dtype=mxu_dtype)

    out = pl.pallas_call(
        kern,
        out_shape=jax.ShapeDtypeStruct((Mtot, DIM), out_dtype),
        grid=grid,
        in_specs=[
            pl.BlockSpec(memory_space=pltpu.MemorySpace.SMEM),   # lmbda scalar
            pl.BlockSpec((m_blk, DIM), xo_map),                  # x slab
            pl.BlockSpec((DIM, 2 * DIM), const2),                # wq
            pl.BlockSpec((DIM, 2 * DIM), const2),                # wk
            pl.BlockSpec((DIM, DIM), const2),                    # wv
            pl.BlockSpec((DIM, DIM), const2),                    # wo
            pl.BlockSpec((2 * S, S), const2),                    # stacked causal mask
            pl.BlockSpec((DIM, DIM), const2),                    # group-mean matrix
        ],
        out_specs=pl.BlockSpec((m_blk, DIM), xo_map),
        scratch_shapes=[pltpu.VMEM((m_blk, DIM), jnp.float32)],  # head-output slab
        compiler_params=pltpu.CompilerParams(dimension_semantics=dim_sem),
        cost_estimate=pl.CostEstimate(flops=flops, transcendentals=transcendentals,
                                      bytes_accessed=bytes_accessed),
    )(lmbda, x2, wq, wk, wv, wo, mask2, gmean)
    return out.reshape(B, S, DIM)


# ---------------- params ------------------------------------------------------
def init_params(key):
    ks = jax.random.split(key, 8)
    w_scale = 1.0 / math.sqrt(DIM)
    return {
        "l_q1": jax.random.normal(ks[0], (HEADS,), jnp.float32) * 0.1,
        "l_k1": jax.random.normal(ks[1], (HEADS,), jnp.float32) * 0.1,
        "l_q2": jax.random.normal(ks[2], (HEADS,), jnp.float32) * 0.1,
        "l_k2": jax.random.normal(ks[3], (HEADS,), jnp.float32) * 0.1,
        # stored as (in, out) = transposed PyTorch nn.Linear weights
        "wq": jax.random.normal(ks[4], (DIM, 2 * DIM), jnp.float32) * w_scale,
        "wk": jax.random.normal(ks[5], (DIM, 2 * DIM), jnp.float32) * w_scale,
        "wv": jax.random.normal(ks[6], (DIM, DIM), jnp.float32) * w_scale,
        "wo": jax.random.normal(ks[7], (DIM, DIM), jnp.float32) * w_scale,
    }


# ---------------- pure-JAX reference (literal PyTorch semantics) --------------
def _prep_qkv(t, B, S):
    # 'b nh seq (n d) -> b (nh n) seq d' with n=2
    t = t.reshape(B, HEADS, S, 2, DHEAD).transpose(0, 1, 3, 2, 4)
    return t.reshape(B, 2 * HEADS, S, DHEAD)


def reference_forward(params, x):
    B, S, _ = x.shape
    lambda_1 = jnp.exp(jnp.sum(params["l_q1"] * params["l_k1"]))
    lambda_2 = jnp.exp(jnp.sum(params["l_q2"] * params["l_k2"]))
    lmbda = lambda_1 - lambda_2 + L_INIT
    q = x @ params["wq"]
    k = x @ params["wk"]
    v = x @ params["wv"]
    q = q.reshape(B, S, HEADS, QHEAD).transpose(0, 2, 1, 3)
    k = k.reshape(B, S, HEADS, QHEAD).transpose(0, 2, 1, 3)
    v = v.reshape(B, S, HEADS, DHEAD).transpose(0, 2, 1, 3)
    qc, kc = _prep_qkv(q, B, S), _prep_qkv(k, B, S)
    scores = jnp.einsum("bhqd,bhkd->bhqk", qc, kc) / math.sqrt(DHEAD)
    cmask = jnp.triu(jnp.full((S, S), -jnp.inf, jnp.float32), 1)
    scores = scores + cmask[None, None]
    attn = jax.nn.softmax(scores, axis=-1)
    attn = attn[:, :HEADS] - attn[:, HEADS:] * lmbda
    out = jnp.einsum("bhqk,bhkd->bhqd", attn, v)
    g = out.reshape(B, HEADS, S, HEADS, DHEAD // HEADS)
    g = g * lax.rsqrt(jnp.mean(g * g, axis=-1, keepdims=True) + EPS)
    out = g.reshape(B, HEADS, S, DHEAD) * (1.0 - L_INIT)
    out = out.transpose(0, 2, 1, 3).reshape(B, S, DIM)
    return out @ params["wo"]


if __name__ == "__main__":
    key = jax.random.PRNGKey(0)
    pkey, xkey = jax.random.split(key)
    params = init_params(pkey)
    x = jax.random.normal(xkey, (BATCH, SEQ, DIM), jnp.float32)

    ref = reference_forward(params, x)

    # Default path: f32 MXU operands (exact; kernel is launch-bound here).
    out = jax.block_until_ready(jax.jit(differential_attention_forward)(params, x))
    assert out.shape == (BATCH, SEQ, DIM)
    if not jnp.allclose(out, ref, rtol=1e-2, atol=1e-2):
        raise AssertionError("Pallas (f32 MXU) output mismatch vs pure-JAX reference")

    # bf16-MXU path (native MXU dtype on v6e/v7x, f32 accumulation) — sanity check
    # against the f32 reference at a tolerance appropriate for bf16 inputs.
    out_bf16 = jax.block_until_ready(
        jax.jit(partial(differential_attention_forward,
                        mxu_dtype=jnp.bfloat16))(params, x))
    if not jnp.allclose(out_bf16, ref, rtol=1e-1, atol=1e-1):
        raise AssertionError("Pallas (bf16 MXU) output mismatch vs pure-JAX reference")

    print("KERNEL_OK")
</pallas_src>

<mosaic_0001>
module attributes {stable_mosaic.version = 11 : i64} {
  func.func @_fused_diff_attn_kernel(%arg0: i32, %arg1: memref<1x1xf32, #tpu.memory_space<smem>>, %arg2: memref<64x128xf32, #tpu.memory_space<vmem>>, %arg3: memref<128x256xf32, #tpu.memory_space<vmem>>, %arg4: memref<128x256xf32, #tpu.memory_space<vmem>>, %arg5: memref<128x128xf32, #tpu.memory_space<vmem>>, %arg6: memref<128x128xf32, #tpu.memory_space<vmem>>, %arg7: memref<64x32xf32, #tpu.memory_space<vmem>>, %arg8: memref<128x128xf32, #tpu.memory_space<vmem>>, %arg9: memref<64x128xf32, #tpu.memory_space<vmem>>, %arg10: memref<64x128xf32, #tpu.memory_space<vmem>>) attributes {dimension_semantics = [#tpu.dimension_semantics<arbitrary>], iteration_bounds = array<i64: 1>, scalar_prefetch = 0 : i64, scratch_operands = 1 : i64, tpu.core_type = #tpu.core_type<tc>, window_params = [{transform_indices = @transform_0, window_bounds = array<i64: 1, 1>}, {pipeline_mode = #tpu.pipeline_mode<synchronous>, transform_indices = @transform_1, window_bounds = array<i64: 64, 128>}, {pipeline_mode = #tpu.pipeline_mode<synchronous>, transform_indices = @transform_2, window_bounds = array<i64: 128, 256>}, {pipeline_mode = #tpu.pipeline_mode<synchronous>, transform_indices = @transform_3, window_bounds = array<i64: 128, 256>}, {pipeline_mode = #tpu.pipeline_mode<synchronous>, transform_indices = @transform_4, window_bounds = array<i64: 128, 128>}, {pipeline_mode = #tpu.pipeline_mode<synchronous>, transform_indices = @transform_5, window_bounds = array<i64: 128, 128>}, {pipeline_mode = #tpu.pipeline_mode<synchronous>, transform_indices = @transform_6, window_bounds = array<i64: 64, 32>}, {pipeline_mode = #tpu.pipeline_mode<synchronous>, transform_indices = @transform_7, window_bounds = array<i64: 128, 128>}, {pipeline_mode = #tpu.pipeline_mode<synchronous>, transform_indices = @transform_8, window_bounds = array<i64: 64, 128>}]} {
    %c0 = arith.constant 0 : index
    %c0_0 = arith.constant 0 : index
    %0 = memref.load %arg1[%c0, %c0_0] : memref<1x1xf32, #tpu.memory_space<smem>>
    %c0_1 = arith.constant 0 : index
    %c0_2 = arith.constant 0 : index
    %1 = vector.load %arg2[%c0_1, %c0_2] : memref<64x128xf32, #tpu.memory_space<vmem>>, vector<64x128xf32>
    %c0_3 = arith.constant 0 : index
    %c0_4 = arith.constant 0 : index
    %2 = vector.load %arg3[%c0_3, %c0_4] : memref<128x256xf32, #tpu.memory_space<vmem>>, vector<128x256xf32>
    %cst = arith.constant dense<0.000000e+00> : vector<64x256xf32>
    %3 = tpu.matmul %1, %2, %cst {dimension_numbers = #tpu.dot_dimension_numbers<[1], [0], [0], [1], [0, 0, 1, 1], [], []>} : vector<64x128xf32>, vector<128x256xf32>, vector<64x256xf32> -> vector<64x256xf32>
    %c0_5 = arith.constant 0 : index
    %c0_6 = arith.constant 0 : index
    %4 = vector.load %arg4[%c0_5, %c0_6] : memref<128x256xf32, #tpu.memory_space<vmem>>, vector<128x256xf32>
    %cst_7 = arith.constant dense<0.000000e+00> : vector<64x256xf32>
    %5 = tpu.matmul %1, %4, %cst_7 {dimension_numbers = #tpu.dot_dimension_numbers<[1], [0], [0], [1], [0, 0, 1, 1], [], []>} : vector<64x128xf32>, vector<128x256xf32>, vector<64x256xf32> -> vector<64x256xf32>
    %c0_8 = arith.constant 0 : index
    %c0_9 = arith.constant 0 : index
    %6 = vector.load %arg5[%c0_8, %c0_9] : memref<128x128xf32, #tpu.memory_space<vmem>>, vector<128x128xf32>
    %cst_10 = arith.constant dense<0.000000e+00> : vector<64x128xf32>
    %7 = tpu.matmul %1, %6, %cst_10 {dimension_numbers = #tpu.dot_dimension_numbers<[1], [0], [0], [1], [0, 0, 1, 1], [], []>} : vector<64x128xf32>, vector<128x128xf32>, vector<64x128xf32> -> vector<64x128xf32>
    %cst_11 = arith.constant 2.500000e-01 : f32
    %8 = vector.broadcast %cst_11 : f32 to vector<64x256xf32>
    %9 = arith.mulf %3, %8 : vector<64x256xf32>
    %c0_12 = arith.constant 0 : index
    %c0_13 = arith.constant 0 : index
    %10 = vector.load %arg7[%c0_12, %c0_13] : memref<64x32xf32, #tpu.memory_space<vmem>>, vector<64x32xf32>
    %11 = vector.extract_strided_slice %9 {offsets = [0, 0], sizes = [32, 256], strides = [1, 1]} : vector<64x256xf32> to vector<32x256xf32>
    %12 = vector.extract_strided_slice %7 {offsets = [0, 0], sizes = [32, 128], strides = [1, 1]} : vector<64x128xf32> to vector<32x128xf32>
    %13 = vector.extract_strided_slice %5 {offsets = [0, 0], sizes = [32, 256], strides = [1, 1]} : vector<64x256xf32> to vector<32x256xf32>
    %14 = tpu.transpose %13, [1, 0] : vector<32x256xf32> -> vector<256x32xf32>
    %15 = vector.extract_strided_slice %11 {offsets = [0, 0], sizes = [32, 16], strides = [1, 1]} : vector<32x256xf32> to vector<32x16xf32>
    %16 = vector.extract_strided_slice %14 {offsets = [0, 0], sizes = [16, 32], strides = [1, 1]} : vector<256x32xf32> to vector<16x32xf32>
    %cst_14 = arith.constant dense<0.000000e+00> : vector<32x32xf32>
    %17 = tpu.matmul %15, %16, %cst_14 {dimension_numbers = #tpu.dot_dimension_numbers<[1], [0], [0], [1], [0, 0, 1, 1], [], []>} : vector<32x16xf32>, vector<16x32xf32>, vector<32x32xf32> -> vector<32x32xf32>
    %18 = vector.extract_strided_slice %11 {offsets = [0, 128], sizes = [32, 16], strides = [1, 1]} : vector<32x256xf32> to vector<32x16xf32>
    %19 = vector.extract_strided_slice %14 {offsets = [128, 0], sizes = [16, 32], strides = [1, 1]} : vector<256x32xf32> to vector<16x32xf32>
    %cst_15 = arith.constant dense<0.000000e+00> : vector<32x32xf32>
    %20 = tpu.matmul %18, %19, %cst_15 {dimension_numbers = #tpu.dot_dimension_numbers<[1], [0], [0], [1], [0, 0, 1, 1], [], []>} : vector<32x16xf32>, vector<16x32xf32>, vector<32x32xf32> -> vector<32x32xf32>
    %21 = tpu.concatenate %17, %20 in 0 : vector<32x32xf32>, vector<32x32xf32> -> vector<64x32xf32>
    %22 = arith.addf %21, %10 : vector<64x32xf32>
    %cst_16 = arith.constant dense<0xFF800000> : vector<64xf32>
    %23 = vector.multi_reduction <maximumf>, %22, %cst_16 [1] : vector<64x32xf32> to vector<64xf32>
    %24 = vector.shape_cast %23 : vector<64xf32> to vector<64x1xf32>
    %25 = vector.broadcast %24 : vector<64x1xf32> to vector<64x32xf32>
    %26 = arith.subf %22, %25 : vector<64x32xf32>
    %27 = math.exp %26 : vector<64x32xf32>
    %cst_17 = arith.constant dense<0.000000e+00> : vector<64xf32>
    %28 = vector.multi_reduction <add>, %27, %cst_17 [1] : vector<64x32xf32> to vector<64xf32>
    %29 = vector.shape_cast %28 : vector<64xf32> to vector<64x1xf32>
    %30 = vector.broadcast %29 : vector<64x1xf32> to vector<64x32xf32>
    %31 = arith.divf %27, %30 : vector<64x32xf32>
    %32 = vector.extract_strided_slice %31 {offsets = [0, 0], sizes = [32, 32], strides = [1, 1]} : vector<64x32xf32> to vector<32x32xf32>
    %33 = vector.extract_strided_slice %31 {offsets = [32, 0], sizes = [32, 32], strides = [1, 1]} : vector<64x32xf32> to vector<32x32xf32>
    %34 = vector.broadcast %0 : f32 to vector<32x32xf32>
    %35 = arith.mulf %34, %33 : vector<32x32xf32>
    %36 = arith.subf %32, %35 : vector<32x32xf32>
    %37 = vector.extract_strided_slice %12 {offsets = [0, 0], sizes = [32, 16], strides = [1, 1]} : vector<32x128xf32> to vector<32x16xf32>
    %cst_18 = arith.constant dense<0.000000e+00> : vector<32x16xf32>
    %38 = tpu.matmul %36, %37, %cst_18 {dimension_numbers = #tpu.dot_dimension_numbers<[1], [0], [0], [1], [0, 0, 1, 1], [], []>} : vector<32x32xf32>, vector<32x16xf32>, vector<32x16xf32> -> vector<32x16xf32>
    %c0_19 = arith.constant 0 : index
    %c0_20 = arith.constant 0 : index
    %39 = vector.load %arg10[%c0_19, %c0_20] : memref<64x128xf32, #tpu.memory_space<vmem>>, vector<32x16xf32>
    tpu.vector_store %arg10[%c0_19, %c0_20], %38 {strides = array<i32>} : memref<64x128xf32, #tpu.memory_space<vmem>>, vector<32x16xf32>,
    %40 = vector.extract_strided_slice %11 {offsets = [0, 16], sizes = [32, 16], strides = [1, 1]} : vector<32x256xf32> to vector<32x16xf32>
    %41 = vector.extract_strided_slice %14 {offsets = [16, 0], sizes = [16, 32], strides = [1, 1]} : vector<256x32xf32> to vector<16x32xf32>
    %cst_21 = arith.constant dense<0.000000e+00> : vector<32x32xf32>
    %42 = tpu.matmul %40, %41, %cst_21 {dimension_numbers = #tpu.dot_dimension_numbers<[1], [0], [0], [1], [0, 0, 1, 1], [], []>} : vector<32x16xf32>, vector<16x32xf32>, vector<32x32xf32> -> vector<32x32xf32>
    %43 = vector.extract_strided_slice %11 {offsets = [0, 144], sizes = [32, 16], strides = [1, 1]} : vector<32x256xf32> to vector<32x16xf32>
    %44 = vector.extract_strided_slice %14 {offsets = [144, 0], sizes = [16, 32], strides = [1, 1]} : vector<256x32xf32> to vector<16x32xf32>
    %cst_22 = arith.constant dense<0.000000e+00> : vector<32x32xf32>
    %45 = tpu.matmul %43, %44, %cst_22 {dimension_numbers = #tpu.dot_dimension_numbers<[1], [0], [0], [1], [0, 0, 1, 1], [], []>} : vector<32x16xf32>, vector<16x32xf32>, vector<32x32xf32> -> vector<32x32xf32>
    %46 = tpu.concatenate %42, %45 in 0 : vector<32x32xf32>, vector<32x32xf32> -> vector<64x32xf32>
    %47 = arith.addf %46, %10 : vector<64x32xf32>
    %cst_23 = arith.constant dense<0xFF800000> : vector<64xf32>
    %48 = vector.multi_reduction <maximumf>, %47, %cst_23 [1] : vector<64x32xf32> to vector<64xf32>
    %49 = vector.shape_cast %48 : vector<64xf32> to vector<64x1xf32>
    %50 = vector.broadcast %49 : vector<64x1xf32> to vector<64x32xf32>
    %51 = arith.subf %47, %50 : vector<64x32xf32>
    %52 = math.exp %51 : vector<64x32xf32>
    %cst_24 = arith.constant dense<0.000000e+00> : vector<64xf32>
    %53 = vector.multi_reduction <add>, %52, %cst_24 [1] : vector<64x32xf32> to vector<64xf32>
    %54 = vector.shape_cast %53 : vector<64xf32> to vector<64x1xf32>
    %55 = vector.broadcast %54 : vector<64x1xf32> to vector<64x32xf32>
    %56 = arith.divf %52, %55 : vector<64x32xf32>
    %57 = vector.extract_strided_slice %56 {offsets = [0, 0], sizes = [32, 32], strides = [1, 1]} : vector<64x32xf32> to vector<32x32xf32>
    %58 = vector.extract_strided_slice %56 {offsets = [32, 0], sizes = [32, 32], strides = [1, 1]} : vector<64x32xf32> to vector<32x32xf32>
    %59 = vector.broadcast %0 : f32 to vector<32x32xf32>
    %60 = arith.mulf %59, %58 : vector<32x32xf32>
    %61 = arith.subf %57, %60 : vector<32x32xf32>
    %62 = vector.extract_strided_slice %12 {offsets = [0, 16], sizes = [32, 16], strides = [1, 1]} : vector<32x128xf32> to vector<32x16xf32>
    %cst_25 = arith.constant dense<0.000000e+00> : vector<32x16xf32>
    %63 = tpu.matmul %61, %62, %cst_25 {dimension_numbers = #tpu.dot_dimension_numbers<[1], [0], [0], [1], [0, 0, 1, 1], [], []>} : vector<32x32xf32>, vector<32x16xf32>, vector<32x16xf32> -> vector<32x16xf32>
    %c0_26 = arith.constant 0 : index
    %c16 = arith.constant 16 : index
    %64 = vector.load %arg10[%c0_26, %c16] : memref<64x128xf32, #tpu.memory_space<vmem>>, vector<32x16xf32>
    tpu.vector_store %arg10[%c0_26, %c16], %63 {strides = array<i32>} : memref<64x128xf32, #tpu.memory_space<vmem>>, vector<32x16xf32>,
    %65 = vector.extract_strided_slice %11 {offsets = [0, 32], sizes = [32, 16], strides = [1, 1]} : vector<32x256xf32> to vector<32x16xf32>
    %66 = vector.extract_strided_slice %14 {offsets = [32, 0], sizes = [16, 32], strides = [1, 1]} : vector<256x32xf32> to vector<16x32xf32>
    %cst_27 = arith.constant dense<0.000000e+00> : vector<32x32xf32>
    %67 = tpu.matmul %65, %66, %cst_27 {dimension_numbers = #tpu.dot_dimension_numbers<[1], [0], [0], [1], [0, 0, 1, 1], [], []>} : vector<32x16xf32>, vector<16x32xf32>, vector<32x32xf32> -> vector<32x32xf32>
    %68 = vector.extract_strided_slice %11 {offsets = [0, 160], sizes = [32, 16], strides = [1, 1]} : vector<32x256xf32> to vector<32x16xf32>
    %69 = vector.extract_strided_slice %14 {offsets = [160, 0], sizes = [16, 32], strides = [1, 1]} : vector<256x32xf32> to vector<16x32xf32>
    %cst_28 = arith.constant dense<0.000000e+00> : vector<32x32xf32>
    %70 = tpu.matmul %68, %69, %cst_28 {dimension_numbers = #tpu.dot_dimension_numbers<[1], [0], [0], [1], [0, 0, 1, 1], [], []>} : vector<32x16xf32>, vector<16x32xf32>, vector<32x32xf32> -> vector<32x32xf32>
    %71 = tpu.concatenate %67, %70 in 0 : vector<32x32xf32>, vector<32x32xf32> -> vector<64x32xf32>
    %72 = arith.addf %71, %10 : vector<64x32xf32>
    %cst_29 = arith.constant dense<0xFF800000> : vector<64xf32>
    %73 = vector.multi_reduction <maximumf>, %72, %cst_29 [1] : vector<64x32xf32> to vector<64xf32>
    %74 = vector.shape_cast %73 : vector<64xf32> to vector<64x1xf32>
    %75 = vector.broadcast %74 : vector<64x1xf32> to vector<64x32xf32>
    %76 = arith.subf %72, %75 : vector<64x32xf32>
    %77 = math.exp %76 : vector<64x32xf32>
    %cst_30 = arith.constant dense<0.000000e+00> : vector<64xf32>
    %78 = vector.multi_reduction <add>, %77, %cst_30 [1] : vector<64x32xf32> to vector<64xf32>
    %79 = vector.shape_cast %78 : vector<64xf32> to vector<64x1xf32>
    %80 = vector.broadcast %79 : vector<64x1xf32> to vector<64x32xf32>
    %81 = arith.divf %77, %80 : vector<64x32xf32>
    %82 = vector.extract_strided_slice %81 {offsets = [0, 0], sizes = [32, 32], strides = [1, 1]} : vector<64x32xf32> to vector<32x32xf32>
    %83 = vector.extract_strided_slice %81 {offsets = [32, 0], sizes = [32, 32], strides = [1, 1]} : vector<64x32xf32> to vector<32x32xf32>
    %84 = vector.broadcast %0 : f32 to vector<32x32xf32>
    %85 = arith.mulf %84, %83 : vector<32x32xf32>
    %86 = arith.subf %82, %85 : vector<32x32xf32>
    %87 = vector.extract_strided_slice %12 {offsets = [0, 32], sizes = [32, 16], strides = [1, 1]} : vector<32x128xf32> to vector<32x16xf32>
    %cst_31 = arith.constant dense<0.000000e+00> : vector<32x16xf32>
    %88 = tpu.matmul %86, %87, %cst_31 {dimension_numbers = #tpu.dot_dimension_numbers<[1], [0], [0], [1], [0, 0, 1, 1], [], []>} : vector<32x32xf32>, vector<32x16xf32>, vector<32x16xf32> -> vector<32x16xf32>
    %c0_32 = arith.constant 0 : index
    %c32 = arith.constant 32 : index
    %89 = vector.load %arg10[%c0_32, %c32] : memref<64x128xf32, #tpu.memory_space<vmem>>, vector<32x16xf32>
    tpu.vector_store %arg10[%c0_32, %c32], %88 {strides = array<i32>} : memref<64x128xf32, #tpu.memory_space<vmem>>, vector<32x16xf32>,
    %90 = vector.extract_strided_slice %11 {offsets = [0, 48], sizes = [32, 16], strides = [1, 1]} : vector<32x256xf32> to vector<32x16xf32>
    %91 = vector.extract_strided_slice %14 {offsets = [48, 0], sizes = [16, 32], strides = [1, 1]} : vector<256x32xf32> to vector<16x32xf32>
    %cst_33 = arith.constant dense<0.000000e+00> : vector<32x32xf32>
    %92 = tpu.matmul %90, %91, %cst_33 {dimension_numbers = #tpu.dot_dimension_numbers<[1], [0], [0], [1], [0, 0, 1, 1], [], []>} : vector<32x16xf32>, vector<16x32xf32>, vector<32x32xf32> -> vector<32x32xf32>
    %93 = vector.extract_strided_slice %11 {offsets = [0, 176], sizes = [32, 16], strides = [1, 1]} : vector<32x256xf32> to vector<32x16xf32>
    %94 = vector.extract_strided_slice %14 {offsets = [176, 0], sizes = [16, 32], strides = [1, 1]} : vector<256x32xf32> to vector<16x32xf32>
    %cst_34 = arith.constant dense<0.000000e+00> : vector<32x32xf32>
    %95 = tpu.matmul %93, %94, %cst_34 {dimension_numbers = #tpu.dot_dimension_numbers<[1], [0], [0], [1], [0, 0, 1, 1], [], []>} : vector<32x16xf32>, vector<16x32xf32>, vector<32x32xf32> -> vector<32x32xf32>
    %96 = tpu.concatenate %92, %95 in 0 : vector<32x32xf32>, vector<32x32xf32> -> vector<64x32xf32>
    %97 = arith.addf %96, %10 : vector<64x32xf32>
    %cst_35 = arith.constant dense<0xFF800000> : vector<64xf32>
    %98 = vector.multi_reduction <maximumf>, %97, %cst_35 [1] : vector<64x32xf32> to vector<64xf32>
    %99 = vector.shape_cast %98 : vector<64xf32> to vector<64x1xf32>
    %100 = vector.broadcast %99 : vector<64x1xf32> to vector<64x32xf32>
    %101 = arith.subf %97, %100 : vector<64x32xf32>
    %102 = math.exp %101 : vector<64x32xf32>
    %cst_36 = arith.constant dense<0.000000e+00> : vector<64xf32>
    %103 = vector.multi_reduction <add>, %102, %cst_36 [1] : vector<64x32xf32> to vector<64xf32>
    %104 = vector.shape_cast %103 : vector<64xf32> to vector<64x1xf32>
    %105 = vector.broadcast %104 : vector<64x1xf32> to vector<64x32xf32>
    %106 = arith.divf %102, %105 : vector<64x32xf32>
    %107 = vector.extract_strided_slice %106 {offsets = [0, 0], sizes = [32, 32], strides = [1, 1]} : vector<64x32xf32> to vector<32x32xf32>
    %108 = vector.extract_strided_slice %106 {offsets = [32, 0], sizes = [32, 32], strides = [1, 1]} : vector<64x32xf32> to vector<32x32xf32>
    %109 = vector.broadcast %0 : f32 to vector<32x32xf32>
    %110 = arith.mulf %109, %108 : vector<32x32xf32>
    %111 = arith.subf %107, %110 : vector<32x32xf32>
    %112 = vector.extract_strided_slice %12 {offsets = [0, 48], sizes = [32, 16], strides = [1, 1]} : vector<32x128xf32> to vector<32x16xf32>
    %cst_37 = arith.constant dense<0.000000e+00> : vector<32x16xf32>
    %113 = tpu.matmul %111, %112, %cst_37 {dimension_numbers = #tpu.dot_dimension_numbers<[1], [0], [0], [1], [0, 0, 1, 1], [], []>} : vector<32x32xf32>, vector<32x16xf32>, vector<32x16xf32> -> vector<32x16xf32>
    %c0_38 = arith.constant 0 : index
    %c48 = arith.constant 48 : index
    %114 = vector.load %arg10[%c0_38, %c48] : memref<64x128xf32, #tpu.memory_space<vmem>>, vector<32x16xf32>
    tpu.vector_store %arg10[%c0_38, %c48], %113 {strides = array<i32>} : memref<64x128xf32, #tpu.memory_space<vmem>>, vector<32x16xf32>,
    %115 = vector.extract_strided_slice %11 {offsets = [0, 64], sizes = [32, 16], strides = [1, 1]} : vector<32x256xf32> to vector<32x16xf32>
    %116 = vector.extract_strided_slice %14 {offsets = [64, 0], sizes = [16, 32], strides = [1, 1]} : vector<256x32xf32> to vector<16x32xf32>
    %cst_39 = arith.constant dense<0.000000e+00> : vector<32x32xf32>
    %117 = tpu.matmul %115, %116, %cst_39 {dimension_numbers = #tpu.dot_dimension_numbers<[1], [0], [0], [1], [0, 0, 1, 1], [], []>} : vector<32x16xf32>, vector<16x32xf32>, vector<32x32xf32> -> vector<32x32xf32>
    %118 = vector.extract_strided_slice %11 {offsets = [0, 192], sizes = [32, 16], strides = [1, 1]} : vector<32x256xf32> to vector<32x16xf32>
    %119 = vector.extract_strided_slice %14 {offsets = [192, 0], sizes = [16, 32], strides = [1, 1]} : vector<256x32xf32> to vector<16x32xf32>
    %cst_40 = arith.constant dense<0.000000e+00> : vector<32x32xf32>
    %120 = tpu.matmul %118, %119, %cst_40 {dimension_numbers = #tpu.dot_dimension_numbers<[1], [0], [0], [1], [0, 0, 1, 1], [], []>} : vector<32x16xf32>, vector<16x32xf32>, vector<32x32xf32> -> vector<32x32xf32>
    %121 = tpu.concatenate %117, %120 in 0 : vector<32x32xf32>, vector<32x32xf32> -> vector<64x32xf32>
    %122 = arith.addf %121, %10 : vector<64x32xf32>
    %cst_41 = arith.constant dense<0xFF800000> : vector<64xf32>
    %123 = vector.multi_reduction <maximumf>, %122, %cst_41 [1] : vector<64x32xf32> to vector<64xf32>
    %124 = vector.shape_cast %123 : vector<64xf32> to vector<64x1xf32>
    %125 = vector.broadcast %124 : vector<64x1xf32> to vector<64x32xf32>
    %126 = arith.subf %122, %125 : vector<64x32xf32>
    %127 = math.exp %126 : vector<64x32xf32>
    %cst_42 = arith.constant dense<0.000000e+00> : vector<64xf32>
    %128 = vector.multi_reduction <add>, %127, %cst_42 [1] : vector<64x32xf32> to vector<64xf32>
    %129 = vector.shape_cast %128 : vector<64xf32> to vector<64x1xf32>
    %130 = vector.broadcast %129 : vector<64x1xf32> to vector<64x32xf32>
    %131 = arith.divf %127, %130 : vector<64x32xf32>
    %132 = vector.extract_strided_slice %131 {offsets = [0, 0], sizes = [32, 32], strides = [1, 1]} : vector<64x32xf32> to vector<32x32xf32>
    %133 = vector.extract_strided_slice %131 {offsets = [32, 0], sizes = [32, 32], strides = [1, 1]} : vector<64x32xf32> to vector<32x32xf32>
    %134 = vector.broadcast %0 : f32 to vector<32x32xf32>
    %135 = arith.mulf %134, %133 : vector<32x32xf32>
    %136 = arith.subf %132, %135 : vector<32x32xf32>
    %137 = vector.extract_strided_slice %12 {offsets = [0, 64], sizes = [32, 16], strides = [1, 1]} : vector<32x128xf32> to vector<32x16xf32>
    %cst_43 = arith.constant dense<0.000000e+00> : vector<32x16xf32>
    %138 = tpu.matmul %136, %137, %cst_43 {dimension_numbers = #tpu.dot_dimension_numbers<[1], [0], [0], [1], [0, 0, 1, 1], [], []>} : vector<32x32xf32>, vector<32x16xf32>, vector<32x16xf32> -> vector<32x16xf32>
    %c0_44 = arith.constant 0 : index
    %c64 = arith.constant 64 : index
    %139 = vector.load %arg10[%c0_44, %c64] : memref<64x128xf32, #tpu.memory_space<vmem>>, vector<32x16xf32>
    tpu.vector_store %arg10[%c0_44, %c64], %138 {strides = array<i32>} : memref<64x128xf32, #tpu.memory_space<vmem>>, vector<32x16xf32>,
    %140 = vector.extract_strided_slice %11 {offsets = [0, 80], sizes = [32, 16], strides = [1, 1]} : vector<32x256xf32> to vector<32x16xf32>
    %141 = vector.extract_strided_slice %14 {offsets = [80, 0], sizes = [16, 32], strides = [1, 1]} : vector<256x32xf32> to vector<16x32xf32>
    %cst_45 = arith.constant dense<0.000000e+00> : vector<32x32xf32>
    %142 = tpu.matmul %140, %141, %cst_45 {dimension_numbers = #tpu.dot_dimension_numbers<[1], [0], [0], [1], [0, 0, 1, 1], [], []>} : vector<32x16xf32>, vector<16x32xf32>, vector<32x32xf32> -> vector<32x32xf32>
    %143 = vector.extract_strided_slice %11 {offsets = [0, 208], sizes = [32, 16], strides = [1, 1]} : vector<32x256xf32> to vector<32x16xf32>
    %144 = vector.extract_strided_slice %14 {offsets = [208, 0], sizes = [16, 32], strides = [1, 1]} : vector<256x32xf32> to vector<16x32xf32>
    %cst_46 = arith.constant dense<0.000000e+00> : vector<32x32xf32>
    %145 = tpu.matmul %143, %144, %cst_46 {dimension_numbers = #tpu.dot_dimension_numbers<[1], [0], [0], [1], [0, 0, 1, 1], [], []>} : vector<32x16xf32>, vector<16x32xf32>, vector<32x32xf32> -> vector<32x32xf32>
    %146 = tpu.concatenate %142, %145 in 0 : vector<32x32xf32>, vector<32x32xf32> -> vector<64x32xf32>
    %147 = arith.addf %146, %10 : vector<64x32xf32>
    %cst_47 = arith.constant dense<0xFF800000> : vector<64xf32>
    %148 = vector.multi_reduction <maximumf>, %147, %cst_47 [1] : vector<64x32xf32> to vector<64xf32>
    %149 = vector.shape_cast %148 : vector<64xf32> to vector<64x1xf32>
    %150 = vector.broadcast %149 : vector<64x1xf32> to vector<64x32xf32>
    %151 = arith.subf %147, %150 : vector<64x32xf32>
    %152 = math.exp %151 : vector<64x32xf32>
    %cst_48 = arith.constant dense<0.000000e+00> : vector<64xf32>
    %153 = vector.multi_reduction <add>, %152, %cst_48 [1] : vector<64x32xf32> to vector<64xf32>
    %154 = vector.shape_cast %153 : vector<64xf32> to vector<64x1xf32>
    %155 = vector.broadcast %154 : vector<64x1xf32> to vector<64x32xf32>
    %156 = arith.divf %152, %155 : vector<64x32xf32>
    %157 = vector.extract_strided_slice %156 {offsets = [0, 0], sizes = [32, 32], strides = [1, 1]} : vector<64x32xf32> to vector<32x32xf32>
    %158 = vector.extract_strided_slice %156 {offsets = [32, 0], sizes = [32, 32], strides = [1, 1]} : vector<64x32xf32> to vector<32x32xf32>
    %159 = vector.broadcast %0 : f32 to vector<32x32xf32>
    %160 = arith.mulf %159, %158 : vector<32x32xf32>
    %161 = arith.subf %157, %160 : vector<32x32xf32>
    %162 = vector.extract_strided_slice %12 {offsets = [0, 80], sizes = [32, 16], strides = [1, 1]} : vector<32x128xf32> to vector<32x16xf32>
    %cst_49 = arith.constant dense<0.000000e+00> : vector<32x16xf32>
    %163 = tpu.matmul %161, %162, %cst_49 {dimension_numbers = #tpu.dot_dimension_numbers<[1], [0], [0], [1], [0, 0, 1, 1], [], []>} : vector<32x32xf32>, vector<32x16xf32>, vector<32x16xf32> -> vector<32x16xf32>
    %c0_50 = arith.constant 0 : index
    %c80 = arith.constant 80 : index
    %164 = vector.load %arg10[%c0_50, %c80] : memref<64x128xf32, #tpu.memory_space<vmem>>, vector<32x16xf32>
    tpu.vector_store %arg10[%c0_50, %c80], %163 {strides = array<i32>} : memref<64x128xf32, #tpu.memory_space<vmem>>, vector<32x16xf32>,
    %165 = vector.extract_strided_slice %11 {offsets = [0, 96], sizes = [32, 16], strides = [1, 1]} : vector<32x256xf32> to vector<32x16xf32>
    %166 = vector.extract_strided_slice %14 {offsets = [96, 0], sizes = [16, 32], strides = [1, 1]} : vector<256x32xf32> to vector<16x32xf32>
    %cst_51 = arith.constant dense<0.000000e+00> : vector<32x32xf32>
    %167 = tpu.matmul %165, %166, %cst_51 {dimension_numbers = #tpu.dot_dimension_numbers<[1], [0], [0], [1], [0, 0, 1, 1], [], []>} : vector<32x16xf32>, vector<16x32xf32>, vector<32x32xf32> -> vector<32x32xf32>
    %168 = vector.extract_strided_slice %11 {offsets = [0, 224], sizes = [32, 16], strides = [1, 1]} : vector<32x256xf32> to vector<32x16xf32>
    %169 = vector.extract_strided_slice %14 {offsets = [224, 0], sizes = [16, 32], strides = [1, 1]} : vector<256x32xf32> to vector<16x32xf32>
    %cst_52 = arith.constant dense<0.000000e+00> : vector<32x32xf32>
    %170 = tpu.matmul %168, %169, %cst_52 {dimension_numbers = #tpu.dot_dimension_numbers<[1], [0], [0], [1], [0, 0, 1, 1], [], []>} : vector<32x16xf32>, vector<16x32xf32>, vector<32x32xf32> -> vector<32x32xf32>
    %171 = tpu.concatenate %167, %170 in 0 : vector<32x32xf32>, vector<32x32xf32> -> vector<64x32xf32>
    %172 = arith.addf %171, %10 : vector<64x32xf32>
    %cst_53 = arith.constant dense<0xFF800000> : vector<64xf32>
    %173 = vector.multi_reduction <maximumf>, %172, %cst_53 [1] : vector<64x32xf32> to vector<64xf32>
    %174 = vector.shape_cast %173 : vector<64xf32> to vector<64x1xf32>
    %175 = vector.broadcast %174 : vector<64x1xf32> to vector<64x32xf32>
    %176 = arith.subf %172, %175 : vector<64x32xf32>
    %177 = math.exp %176 : vector<64x32xf32>
    %cst_54 = arith.constant dense<0.000000e+00> : vector<64xf32>
    %178 = vector.multi_reduction <add>, %177, %cst_54 [1] : vector<64x32xf32> to vector<64xf32>
    %179 = vector.shape_cast %178 : vector<64xf32> to vector<64x1xf32>
    %180 = vector.broadcast %179 : vector<64x1xf32> to vector<64x32xf32>
    %181 = arith.divf %177, %180 : vector<64x32xf32>
    %182 = vector.extract_strided_slice %181 {offsets = [0, 0], sizes = [32, 32], strides = [1, 1]} : vector<64x32xf32> to vector<32x32xf32>
    %183 = vector.extract_strided_slice %181 {offsets = [32, 0], sizes = [32, 32], strides = [1, 1]} : vector<64x32xf32> to vector<32x32xf32>
    %184 = vector.broadcast %0 : f32 to vector<32x32xf32>
    %185 = arith.mulf %184, %183 : vector<32x32xf32>
    %186 = arith.subf %182, %185 : vector<32x32xf32>
    %187 = vector.extract_strided_slice %12 {offsets = [0, 96], sizes = [32, 16], strides = [1, 1]} : vector<32x128xf32> to vector<32x16xf32>
    %cst_55 = arith.constant dense<0.000000e+00> : vector<32x16xf32>
    %188 = tpu.matmul %186, %187, %cst_55 {dimension_numbers = #tpu.dot_dimension_numbers<[1], [0], [0], [1], [0, 0, 1, 1], [], []>} : vector<32x32xf32>, vector<32x16xf32>, vector<32x16xf32> -> vector<32x16xf32>
    %c0_56 = arith.constant 0 : index
    %c96 = arith.constant 96 : index
    %189 = vector.load %arg10[%c0_56, %c96] : memref<64x128xf32, #tpu.memory_space<vmem>>, vector<32x16xf32>
    tpu.vector_store %arg10[%c0_56, %c96], %188 {strides = array<i32>} : memref<64x128xf32, #tpu.memory_space<vmem>>, vector<32x16xf32>,
    %190 = vector.extract_strided_slice %11 {offsets = [0, 112], sizes = [32, 16], strides = [1, 1]} : vector<32x256xf32> to vector<32x16xf32>
    %191 = vector.extract_strided_slice %14 {offsets = [112, 0], sizes = [16, 32], strides = [1, 1]} : vector<256x32xf32> to vector<16x32xf32>
    %cst_57 = arith.constant dense<0.000000e+00> : vector<32x32xf32>
    %192 = tpu.matmul %190, %191, %cst_57 {dimension_numbers = #tpu.dot_dimension_numbers<[1], [0], [0], [1], [0, 0, 1, 1], [], []>} : vector<32x16xf32>, vector<16x32xf32>, vector<32x32xf32> -> vector<32x32xf32>
    %193 = vector.extract_strided_slice %11 {offsets = [0, 240], sizes = [32, 16], strides = [1, 1]} : vector<32x256xf32> to vector<32x16xf32>
    %194 = vector.extract_strided_slice %14 {offsets = [240, 0], sizes = [16, 32], strides = [1, 1]} : vector<256x32xf32> to vector<16x32xf32>
    %cst_58 = arith.constant dense<0.000000e+00> : vector<32x32xf32>
    %195 = tpu.matmul %193, %194, %cst_58 {dimension_numbers = #tpu.dot_dimension_numbers<[1], [0], [0], [1], [0, 0, 1, 1], [], []>} : vector<32x16xf32>, vector<16x32xf32>, vector<32x32xf32> -> vector<32x32xf32>
    %196 = tpu.concatenate %192, %195 in 0 : vector<32x32xf32>, vector<32x32xf32> -> vector<64x32xf32>
    %197 = arith.addf %196, %10 : vector<64x32xf32>
    %cst_59 = arith.constant dense<0xFF800000> : vector<64xf32>
    %198 = vector.multi_reduction <maximumf>, %197, %cst_59 [1] : vector<64x32xf32> to vector<64xf32>
    %199 = vector.shape_cast %198 : vector<64xf32> to vector<64x1xf32>
    %200 = vector.broadcast %199 : vector<64x1xf32> to vector<64x32xf32>
    %201 = arith.subf %197, %200 : vector<64x32xf32>
    %202 = math.exp %201 : vector<64x32xf32>
    %cst_60 = arith.constant dense<0.000000e+00> : vector<64xf32>
    %203 = vector.multi_reduction <add>, %202, %cst_60 [1] : vector<64x32xf32> to vector<64xf32>
    %204 = vector.shape_cast %203 : vector<64xf32> to vector<64x1xf32>
    %205 = vector.broadcast %204 : vector<64x1xf32> to vector<64x32xf32>
    %206 = arith.divf %202, %205 : vector<64x32xf32>
    %207 = vector.extract_strided_slice %206 {offsets = [0, 0], sizes = [32, 32], strides = [1, 1]} : vector<64x32xf32> to vector<32x32xf32>
    %208 = vector.extract_strided_slice %206 {offsets = [32, 0], sizes = [32, 32], strides = [1, 1]} : vector<64x32xf32> to vector<32x32xf32>
    %209 = vector.broadcast %0 : f32 to vector<32x32xf32>
    %210 = arith.mulf %209, %208 : vector<32x32xf32>
    %211 = arith.subf %207, %210 : vector<32x32xf32>
    %212 = vector.extract_strided_slice %12 {offsets = [0, 112], sizes = [32, 16], strides = [1, 1]} : vector<32x128xf32> to vector<32x16xf32>
    %cst_61 = arith.constant dense<0.000000e+00> : vector<32x16xf32>
    %213 = tpu.matmul %211, %212, %cst_61 {dimension_numbers = #tpu.dot_dimension_numbers<[1], [0], [0], [1], [0, 0, 1, 1], [], []>} : vector<32x32xf32>, vector<32x16xf32>, vector<32x16xf32> -> vector<32x16xf32>
    %c0_62 = arith.constant 0 : index
    %c112 = arith.constant 112 : index
    %214 = vector.load %arg10[%c0_62, %c112] : memref<64x128xf32, #tpu.memory_space<vmem>>, vector<32x16xf32>
    tpu.vector_store %arg10[%c0_62, %c112], %213 {strides = array<i32>} : memref<64x128xf32, #tpu.memory_space<vmem>>, vector<32x16xf32>,
    %215 = vector.extract_strided_slice %9 {offsets = [32, 0], sizes = [32, 256], strides = [1, 1]} : vector<64x256xf32> to vector<32x256xf32>
    %216 = vector.extract_strided_slice %7 {offsets = [32, 0], sizes = [32, 128], strides = [1, 1]} : vector<64x128xf32> to vector<32x128xf32>
    %217 = vector.extract_strided_slice %5 {offsets = [32, 0], sizes = [32, 256], strides = [1, 1]} : vector<64x256xf32> to vector<32x256xf32>
    %218 = tpu.transpose %217, [1, 0] : vector<32x256xf32> -> vector<256x32xf32>
    %219 = vector.extract_strided_slice %215 {offsets = [0, 0], sizes = [32, 16], strides = [1, 1]} : vector<32x256xf32> to vector<32x16xf32>
    %220 = vector.extract_strided_slice %218 {offsets = [0, 0], sizes = [16, 32], strides = [1, 1]} : vector<256x32xf32> to vector<16x32xf32>
    %cst_63 = arith.constant dense<0.000000e+00> : vector<32x32xf32>
    %221 = tpu.matmul %219, %220, %cst_63 {dimension_numbers = #tpu.dot_dimension_numbers<[1], [0], [0], [1], [0, 0, 1, 1], [], []>} : vector<32x16xf32>, vector<16x32xf32>, vector<32x32xf32> -> vector<32x32xf32>
    %222 = vector.extract_strided_slice %215 {offsets = [0, 128], sizes = [32, 16], strides = [1, 1]} : vector<32x256xf32> to vector<32x16xf32>
    %223 = vector.extract_strided_slice %218 {offsets = [128, 0], sizes = [16, 32], strides = [1, 1]} : vector<256x32xf32> to vector<16x32xf32>
    %cst_64 = arith.constant dense<0.000000e+00> : vector<32x32xf32>
    %224 = tpu.matmul %222, %223, %cst_64 {dimension_numbers = #tpu.dot_dimension_numbers<[1], [0], [0], [1], [0, 0, 1, 1], [], []>} : vector<32x16xf32>, vector<16x32xf32>, vector<32x32xf32> -> vector<32x32xf32>
    %225 = tpu.concatenate %221, %224 in 0 : vector<32x32xf32>, vector<32x32xf32> -> vector<64x32xf32>
    %226 = arith.addf %225, %10 : vector<64x32xf32>
    %cst_65 = arith.constant dense<0xFF800000> : vector<64xf32>
    %227 = vector.multi_reduction <maximumf>, %226, %cst_65 [1] : vector<64x32xf32> to vector<64xf32>
    %228 = vector.shape_cast %227 : vector<64xf32> to vector<64x1xf32>
    %229 = vector.broadcast %228 : vector<64x1xf32> to vector<64x32xf32>
    %230 = arith.subf %226, %229 : vector<64x32xf32>
    %231 = math.exp %230 : vector<64x32xf32>
    %cst_66 = arith.constant dense<0.000000e+00> : vector<64xf32>
    %232 = vector.multi_reduction <add>, %231, %cst_66 [1] : vector<64x32xf32> to vector<64xf32>
    %233 = vector.shape_cast %232 : vector<64xf32> to vector<64x1xf32>
    %234 = vector.broadcast %233 : vector<64x1xf32> to vector<64x32xf32>
    %235 = arith.divf %231, %234 : vector<64x32xf32>
    %236 = vector.extract_strided_slice %235 {offsets = [0, 0], sizes = [32, 32], strides = [1, 1]} : vector<64x32xf32> to vector<32x32xf32>
    %237 = vector.extract_strided_slice %235 {offsets = [32, 0], sizes = [32, 32], strides = [1, 1]} : vector<64x32xf32> to vector<32x32xf32>
    %238 = vector.broadcast %0 : f32 to vector<32x32xf32>
    %239 = arith.mulf %238, %237 : vector<32x32xf32>
    %240 = arith.subf %236, %239 : vector<32x32xf32>
    %241 = vector.extract_strided_slice %216 {offsets = [0, 0], sizes = [32, 16], strides = [1, 1]} : vector<32x128xf32> to vector<32x16xf32>
    %cst_67 = arith.constant dense<0.000000e+00> : vector<32x16xf32>
    %242 = tpu.matmul %240, %241, %cst_67 {dimension_numbers = #tpu.dot_dimension_numbers<[1], [0], [0], [1], [0, 0, 1, 1], [], []>} : vector<32x32xf32>, vector<32x16xf32>, vector<32x16xf32> -> vector<32x16xf32>
    %c32_68 = arith.constant 32 : index
    %c0_69 = arith.constant 0 : index
    %243 = vector.load %arg10[%c32_68, %c0_69] : memref<64x128xf32, #tpu.memory_space<vmem>>, vector<32x16xf32>
    tpu.vector_store %arg10[%c32_68, %c0_69], %242 {strides = array<i32>} : memref<64x128xf32, #tpu.memory_space<vmem>>, vector<32x16xf32>,
    %244 = vector.extract_strided_slice %215 {offsets = [0, 16], sizes = [32, 16], strides = [1, 1]} : vector<32x256xf32> to vector<32x16xf32>
    %245 = vector.extract_strided_slice %218 {offsets = [16, 0], sizes = [16, 32], strides = [1, 1]} : vector<256x32xf32> to vector<16x32xf32>
    %cst_70 = arith.constant dense<0.000000e+00> : vector<32x32xf32>
    %246 = tpu.matmul %244, %245, %cst_70 {dimension_numbers = #tpu.dot_dimension_numbers<[1], [0], [0], [1], [0, 0, 1, 1], [], []>} : vector<32x16xf32>, vector<16x32xf32>, vector<32x32xf32> -> vector<32x32xf32>
    %247 = vector.extract_strided_slice %215 {offsets = [0, 144], sizes = [32, 16], strides = [1, 1]} : vector<32x256xf32> to vector<32x16xf32>
    %248 = vector.extract_strided_slice %218 {offsets = [144, 0], sizes = [16, 32], strides = [1, 1]} : vector<256x32xf32> to vector<16x32xf32>
    %cst_71 = arith.constant dense<0.000000e+00> : vector<32x32xf32>
    %249 = tpu.matmul %247, %248, %cst_71 {dimension_numbers = #tpu.dot_dimension_numbers<[1], [0], [0], [1], [0, 0, 1, 1], [], []>} : vector<32x16xf32>, vector<16x32xf32>, vector<32x32xf32> -> vector<32x32xf32>
    %250 = tpu.concatenate %246, %249 in 0 : vector<32x32xf32>, vector<32x32xf32> -> vector<64x32xf32>
    %251 = arith.addf %250, %10 : vector<64x32xf32>
    %cst_72 = arith.constant dense<0xFF800000> : vector<64xf32>
    %252 = vector.multi_reduction <maximumf>, %251, %cst_72 [1] : vector<64x32xf32> to vector<64xf32>
    %253 = vector.shape_cast %252 : vector<64xf32> to vector<64x1xf32>
    %254 = vector.broadcast %253 : vector<64x1xf32> to vector<64x32xf32>
    %255 = arith.subf %251, %254 : vector<64x32xf32>
    %256 = math.exp %255 : vector<64x32xf32>
    %cst_73 = arith.constant dense<0.000000e+00> : vector<64xf32>
    %257 = vector.multi_reduction <add>, %256, %cst_73 [1] : vector<64x32xf32> to vector<64xf32>
    %258 = vector.shape_cast %257 : vector<64xf32> to vector<64x1xf32>
    %259 = vector.broadcast %258 : vector<64x1xf32> to vector<64x32xf32>
    %260 = arith.divf %256, %259 : vector<64x32xf32>
    %261 = vector.extract_strided_slice %260 {offsets = [0, 0], sizes = [32, 32], strides = [1, 1]} : vector<64x32xf32> to vector<32x32xf32>
    %262 = vector.extract_strided_slice %260 {offsets = [32, 0], sizes = [32, 32], strides = [1, 1]} : vector<64x32xf32> to vector<32x32xf32>
    %263 = vector.broadcast %0 : f32 to vector<32x32xf32>
    %264 = arith.mulf %263, %262 : vector<32x32xf32>
    %265 = arith.subf %261, %264 : vector<32x32xf32>
    %266 = vector.extract_strided_slice %216 {offsets = [0, 16], sizes = [32, 16], strides = [1, 1]} : vector<32x128xf32> to vector<32x16xf32>
    %cst_74 = arith.constant dense<0.000000e+00> : vector<32x16xf32>
    %267 = tpu.matmul %265, %266, %cst_74 {dimension_numbers = #tpu.dot_dimension_numbers<[1], [0], [0], [1], [0, 0, 1, 1], [], []>} : vector<32x32xf32>, vector<32x16xf32>, vector<32x16xf32> -> vector<32x16xf32>
    %c32_75 = arith.constant 32 : index
    %c16_76 = arith.constant 16 : index
    %268 = vector.load %arg10[%c32_75, %c16_76] : memref<64x128xf32, #tpu.memory_space<vmem>>, vector<32x16xf32>
    tpu.vector_store %arg10[%c32_75, %c16_76], %267 {strides = array<i32>} : memref<64x128xf32, #tpu.memory_space<vmem>>, vector<32x16xf32>,
    %269 = vector.extract_strided_slice %215 {offsets = [0, 32], sizes = [32, 16], strides = [1, 1]} : vector<32x256xf32> to vector<32x16xf32>
    %270 = vector.extract_strided_slice %218 {offsets = [32, 0], sizes = [16, 32], strides = [1, 1]} : vector<256x32xf32> to vector<16x32xf32>
    %cst_77 = arith.constant dense<0.000000e+00> : vector<32x32xf32>
    %271 = tpu.matmul %269, %270, %cst_77 {dimension_numbers = #tpu.dot_dimension_numbers<[1], [0], [0], [1], [0, 0, 1, 1], [], []>} : vector<32x16xf32>, vector<16x32xf32>, vector<32x32xf32> -> vector<32x32xf32>
    %272 = vector.extract_strided_slice %215 {offsets = [0, 160], sizes = [32, 16], strides = [1, 1]} : vector<32x256xf32> to vector<32x16xf32>
    %273 = vector.extract_strided_slice %218 {offsets = [160, 0], sizes = [16, 32], strides = [1, 1]} : vector<256x32xf32> to vector<16x32xf32>
    %cst_78 = arith.constant dense<0.000000e+00> : vector<32x32xf32>
    %274 = tpu.matmul %272, %273, %cst_78 {dimension_numbers = #tpu.dot_dimension_numbers<[1], [0], [0], [1], [0, 0, 1, 1], [], []>} : vector<32x16xf32>, vector<16x32xf32>, vector<32x32xf32> -> vector<32x32xf32>
    %275 = tpu.concatenate %271, %274 in 0 : vector<32x32xf32>, vector<32x32xf32> -> vector<64x32xf32>
    %276 = arith.addf %275, %10 : vector<64x32xf32>
    %cst_79 = arith.constant dense<0xFF800000> : vector<64xf32>
    %277 = vector.multi_reduction <maximumf>, %276, %cst_79 [1] : vector<64x32xf32> to vector<64xf32>
    %278 = vector.shape_cast %277 : vector<64xf32> to vector<64x1xf32>
    %279 = vector.broadcast %278 : vector<64x1xf32> to vector<64x32xf32>
    %280 = arith.subf %276, %279 : vector<64x32xf32>
    %281 = math.exp %280 : vector<64x32xf32>
    %cst_80 = arith.constant dense<0.000000e+00> : vector<64xf32>
    %282 = vector.multi_reduction <add>, %281, %cst_80 [1] : vector<64x32xf32> to vector<64xf32>
    %283 = vector.shape_cast %282 : vector<64xf32> to vector<64x1xf32>
    %284 = vector.broadcast %283 : vector<64x1xf32> to vector<64x32xf32>
    %285 = arith.divf %281, %284 : vector<64x32xf32>
    %286 = vector.extract_strided_slice %285 {offsets = [0, 0], sizes = [32, 32], strides = [1, 1]} : vector<64x32xf32> to vector<32x32xf32>
    %287 = vector.extract_strided_slice %285 {offsets = [32, 0], sizes = [32, 32], strides = [1, 1]} : vector<64x32xf32> to vector<32x32xf32>
    %288 = vector.broadcast %0 : f32 to vector<32x32xf32>
    %289 = arith.mulf %288, %287 : vector<32x32xf32>
    %290 = arith.subf %286, %289 : vector<32x32xf32>
    %291 = vector.extract_strided_slice %216 {offsets = [0, 32], sizes = [32, 16], strides = [1, 1]} : vector<32x128xf32> to vector<32x16xf32>
    %cst_81 = arith.constant dense<0.000000e+00> : vector<32x16xf32>
    %292 = tpu.matmul %290, %291, %cst_81 {dimension_numbers = #tpu.dot_dimension_numbers<[1], [0], [0], [1], [0, 0, 1, 1], [], []>} : vector<32x32xf32>, vector<32x16xf32>, vector<32x16xf32> -> vector<32x16xf32>
    %c32_82 = arith.constant 32 : index
    %c32_83 = arith.constant 32 : index
    %293 = vector.load %arg10[%c32_82, %c32_83] : memref<64x128xf32, #tpu.memory_space<vmem>>, vector<32x16xf32>
    tpu.vector_store %arg10[%c32_82, %c32_83], %292 {strides = array<i32>} : memref<64x128xf32, #tpu.memory_space<vmem>>, vector<32x16xf32>,
    %294 = vector.extract_strided_slice %215 {offsets = [0, 48], sizes = [32, 16], strides = [1, 1]} : vector<32x256xf32> to vector<32x16xf32>
    %295 = vector.extract_strided_slice %218 {offsets = [48, 0], sizes = [16, 32], strides = [1, 1]} : vector<256x32xf32> to vector<16x32xf32>
    %cst_84 = arith.constant dense<0.000000e+00> : vector<32x32xf32>
    %296 = tpu.matmul %294, %295, %cst_84 {dimension_numbers = #tpu.dot_dimension_numbers<[1], [0], [0], [1], [0, 0, 1, 1], [], []>} : vector<32x16xf32>, vector<16x32xf32>, vector<32x32xf32> -> vector<32x32xf32>
    %297 = vector.extract_strided_slice %215 {offsets = [0, 176], sizes = [32, 16], strides = [1, 1]} : vector<32x256xf32> to vector<32x16xf32>
    %298 = vector.extract_strided_slice %218 {offsets = [176, 0], sizes = [16, 32], strides = [1, 1]} : vector<256x32xf32> to vector<16x32xf32>
    %cst_85 = arith.constant dense<0.000000e+00> : vector<32x32xf32>
    %299 = tpu.matmul %297, %298, %cst_85 {dimension_numbers = #tpu.dot_dimension_numbers<[1], [0], [0], [1], [0, 0, 1, 1], [], []>} : vector<32x16xf32>, vector<16x32xf32>, vector<32x32xf32> -> vector<32x32xf32>
    %300 = tpu.concatenate %296, %299 in 0 : vector<32x32xf32>, vector<32x32xf32> -> vector<64x32xf32>
    %301 = arith.addf %300, %10 : vector<64x32xf32>
    %cst_86 = arith.constant dense<0xFF800000> : vector<64xf32>
    %302 = vector.multi_reduction <maximumf>, %301, %cst_86 [1] : vector<64x32xf32> to vector<64xf32>
    %303 = vector.shape_cast %302 : vector<64xf32> to vector<64x1xf32>
    %304 = vector.broadcast %303 : vector<64x1xf32> to vector<64x32xf32>
    %305 = arith.subf %301, %304 : vector<64x32xf32>
    %306 = math.exp %305 : vector<64x32xf32>
    %cst_87 = arith.constant dense<0.000000e+00> : vector<64xf32>
    %307 = vector.multi_reduction <add>, %306, %cst_87 [1] : vector<64x32xf32> to vector<64xf32>
    %308 = vector.shape_cast %307 : vector<64xf32> to vector<64x1xf32>
    %309 = vector.broadcast %308 : vector<64x1xf32> to vector<64x32xf32>
    %310 = arith.divf %306, %309 : vector<64x32xf32>
    %311 = vector.extract_strided_slice %310 {offsets = [0, 0], sizes = [32, 32], strides = [1, 1]} : vector<64x32xf32> to vector<32x32xf32>
    %312 = vector.extract_strided_slice %310 {offsets = [32, 0], sizes = [32, 32], strides = [1, 1]} : vector<64x32xf32> to vector<32x32xf32>
    %313 = vector.broadcast %0 : f32 to vector<32x32xf32>
    %314 = arith.mulf %313, %312 : vector<32x32xf32>
    %315 = arith.subf %311, %314 : vector<32x32xf32>
    %316 = vector.extract_strided_slice %216 {offsets = [0, 48], sizes = [32, 16], strides = [1, 1]} : vector<32x128xf32> to vector<32x16xf32>
    %cst_88 = arith.constant dense<0.000000e+00> : vector<32x16xf32>
    %317 = tpu.matmul %315, %316, %cst_88 {dimension_numbers = #tpu.dot_dimension_numbers<[1], [0], [0], [1], [0, 0, 1, 1], [], []>} : vector<32x32xf32>, vector<32x16xf32>, vector<32x16xf32> -> vector<32x16xf32>
    %c32_89 = arith.constant 32 : index
    %c48_90 = arith.constant 48 : index
    %318 = vector.load %arg10[%c32_89, %c48_90] : memref<64x128xf32, #tpu.memory_space<vmem>>, vector<32x16xf32>
    tpu.vector_store %arg10[%c32_89, %c48_90], %317 {strides = array<i32>} : memref<64x128xf32, #tpu.memory_space<vmem>>, vector<32x16xf32>,
    %319 = vector.extract_strided_slice %215 {offsets = [0, 64], sizes = [32, 16], strides = [1, 1]} : vector<32x256xf32> to vector<32x16xf32>
    %320 = vector.extract_strided_slice %218 {offsets = [64, 0], sizes = [16, 32], strides = [1, 1]} : vector<256x32xf32> to vector<16x32xf32>
    %cst_91 = arith.constant dense<0.000000e+00> : vector<32x32xf32>
    %321 = tpu.matmul %319, %320, %cst_91 {dimension_numbers = #tpu.dot_dimension_numbers<[1], [0], [0], [1], [0, 0, 1, 1], [], []>} : vector<32x16xf32>, vector<16x32xf32>, vector<32x32xf32> -> vector<32x32xf32>
    %322 = vector.extract_strided_slice %215 {offsets = [0, 192], sizes = [32, 16], strides = [1, 1]} : vector<32x256xf32> to vector<32x16xf32>
    %323 = vector.extract_strided_slice %218 {offsets = [192, 0], sizes = [16, 32], strides = [1, 1]} : vector<256x32xf32> to vector<16x32xf32>
    %cst_92 = arith.constant dense<0.000000e+00> : vector<32x32xf32>
    %324 = tpu.matmul %322, %323, %cst_92 {dimension_numbers = #tpu.dot_dimension_numbers<[1], [0], [0], [1], [0, 0, 1, 1], [], []>} : vector<32x16xf32>, vector<16x32xf32>, vector<32x32xf32> -> vector<32x32xf32>
    %325 = tpu.concatenate %321, %324 in 0 : vector<32x32xf32>, vector<32x32xf32> -> vector<64x32xf32>
    %326 = arith.addf %325, %10 : vector<64x32xf32>
    %cst_93 = arith.constant dense<0xFF800000> : vector<64xf32>
    %327 = vector.multi_reduction <maximumf>, %326, %cst_93 [1] : vector<64x32xf32> to vector<64xf32>
    %328 = vector.shape_cast %327 : vector<64xf32> to vector<64x1xf32>
    %329 = vector.broadcast %328 : vector<64x1xf32> to vector<64x32xf32>
    %330 = arith.subf %326, %329 : vector<64x32xf32>
    %331 = math.exp %330 : vector<64x32xf32>
    %cst_94 = arith.constant dense<0.000000e+00> : vector<64xf32>
    %332 = vector.multi_reduction <add>, %331, %cst_94 [1] : vector<64x32xf32> to vector<64xf32>
    %333 = vector.shape_cast %332 : vector<64xf32> to vector<64x1xf32>
    %334 = vector.broadcast %333 : vector<64x1xf32> to vector<64x32xf32>
    %335 = arith.divf %331, %334 : vector<64x32xf32>
    %336 = vector.extract_strided_slice %335 {offsets = [0, 0], sizes = [32, 32], strides = [1, 1]} : vector<64x32xf32> to vector<32x32xf32>
    %337 = vector.extract_strided_slice %335 {offsets = [32, 0], sizes = [32, 32], strides = [1, 1]} : vector<64x32xf32> to vector<32x32xf32>
    %338 = vector.broadcast %0 : f32 to vector<32x32xf32>
    %339 = arith.mulf %338, %337 : vector<32x32xf32>
    %340 = arith.subf %336, %339 : vector<32x32xf32>
    %341 = vector.extract_strided_slice %216 {offsets = [0, 64], sizes = [32, 16], strides = [1, 1]} : vector<32x128xf32> to vector<32x16xf32>
    %cst_95 = arith.constant dense<0.000000e+00> : vector<32x16xf32>
    %342 = tpu.matmul %340, %341, %cst_95 {dimension_numbers = #tpu.dot_dimension_numbers<[1], [0], [0], [1], [0, 0, 1, 1], [], []>} : vector<32x32xf32>, vector<32x16xf32>, vector<32x16xf32> -> vector<32x16xf32>
    %c32_96 = arith.constant 32 : index
    %c64_97 = arith.constant 64 : index
    %343 = vector.load %arg10[%c32_96, %c64_97] : memref<64x128xf32, #tpu.memory_space<vmem>>, vector<32x16xf32>
    tpu.vector_store %arg10[%c32_96, %c64_97], %342 {strides = array<i32>} : memref<64x128xf32, #tpu.memory_space<vmem>>, vector<32x16xf32>,
    %344 = vector.extract_strided_slice %215 {offsets = [0, 80], sizes = [32, 16], strides = [1, 1]} : vector<32x256xf32> to vector<32x16xf32>
    %345 = vector.extract_strided_slice %218 {offsets = [80, 0], sizes = [16, 32], strides = [1, 1]} : vector<256x32xf32> to vector<16x32xf32>
    %cst_98 = arith.constant dense<0.000000e+00> : vector<32x32xf32>
    %346 = tpu.matmul %344, %345, %cst_98 {dimension_numbers = #tpu.dot_dimension_numbers<[1], [0], [0], [1], [0, 0, 1, 1], [], []>} : vector<32x16xf32>, vector<16x32xf32>, vector<32x32xf32> -> vector<32x32xf32>
    %347 = vector.extract_strided_slice %215 {offsets = [0, 208], sizes = [32, 16], strides = [1, 1]} : vector<32x256xf32> to vector<32x16xf32>
    %348 = vector.extract_strided_slice %218 {offsets = [208, 0], sizes = [16, 32], strides = [1, 1]} : vector<256x32xf32> to vector<16x32xf32>
    %cst_99 = arith.constant dense<0.000000e+00> : vector<32x32xf32>
    %349 = tpu.matmul %347, %348, %cst_99 {dimension_numbers = #tpu.dot_dimension_numbers<[1], [0], [0], [1], [0, 0, 1, 1], [], []>} : vector<32x16xf32>, vector<16x32xf32>, vector<32x32xf32> -> vector<32x32xf32>
    %350 = tpu.concatenate %346, %349 in 0 : vector<32x32xf32>, vector<32x32xf32> -> vector<64x32xf32>
    %351 = arith.addf %350, %10 : vector<64x32xf32>
    %cst_100 = arith.constant dense<0xFF800000> : vector<64xf32>
    %352 = vector.multi_reduction <maximumf>, %351, %cst_100 [1] : vector<64x32xf32> to vector<64xf32>
    %353 = vector.shape_cast %352 : vector<64xf32> to vector<64x1xf32>
    %354 = vector.broadcast %353 : vector<64x1xf32> to vector<64x32xf32>
    %355 = arith.subf %351, %354 : vector<64x32xf32>
    %356 = math.exp %355 : vector<64x32xf32>
    %cst_101 = arith.constant dense<0.000000e+00> : vector<64xf32>
    %357 = vector.multi_reduction <add>, %356, %cst_101 [1] : vector<64x32xf32> to vector<64xf32>
    %358 = vector.shape_cast %357 : vector<64xf32> to vector<64x1xf32>
    %359 = vector.broadcast %358 : vector<64x1xf32> to vector<64x32xf32>
    %360 = arith.divf %356, %359 : vector<64x32xf32>
    %361 = vector.extract_strided_slice %360 {offsets = [0, 0], sizes = [32, 32], strides = [1, 1]} : vector<64x32xf32> to vector<32x32xf32>
    %362 = vector.extract_strided_slice %360 {offsets = [32, 0], sizes = [32, 32], strides = [1, 1]} : vector<64x32xf32> to vector<32x32xf32>
    %363 = vector.broadcast %0 : f32 to vector<32x32xf32>
    %364 = arith.mulf %363, %362 : vector<32x32xf32>
    %365 = arith.subf %361, %364 : vector<32x32xf32>
    %366 = vector.extract_strided_slice %216 {offsets = [0, 80], sizes = [32, 16], strides = [1, 1]} : vector<32x128xf32> to vector<32x16xf32>
    %cst_102 = arith.constant dense<0.000000e+00> : vector<32x16xf32>
    %367 = tpu.matmul %365, %366, %cst_102 {dimension_numbers = #tpu.dot_dimension_numbers<[1], [0], [0], [1], [0, 0, 1, 1], [], []>} : vector<32x32xf32>, vector<32x16xf32>, vector<32x16xf32> -> vector<32x16xf32>
    %c32_103 = arith.constant 32 : index
    %c80_104 = arith.constant 80 : index
    %368 = vector.load %arg10[%c32_103, %c80_104] : memref<64x128xf32, #tpu.memory_space<vmem>>, vector<32x16xf32>
    tpu.vector_store %arg10[%c32_103, %c80_104], %367 {strides = array<i32>} : memref<64x128xf32, #tpu.memory_space<vmem>>, vector<32x16xf32>,
    %369 = vector.extract_strided_slice %215 {offsets = [0, 96], sizes = [32, 16], strides = [1, 1]} : vector<32x256xf32> to vector<32x16xf32>
    %370 = vector.extract_strided_slice %218 {offsets = [96, 0], sizes = [16, 32], strides = [1, 1]} : vector<256x32xf32> to vector<16x32xf32>
    %cst_105 = arith.constant dense<0.000000e+00> : vector<32x32xf32>
    %371 = tpu.matmul %369, %370, %cst_105 {dimension_numbers = #tpu.dot_dimension_numbers<[1], [0], [0], [1], [0, 0, 1, 1], [], []>} : vector<32x16xf32>, vector<16x32xf32>, vector<32x32xf32> -> vector<32x32xf32>
    %372 = vector.extract_strided_slice %215 {offsets = [0, 224], sizes = [32, 16], strides = [1, 1]} : vector<32x256xf32> to vector<32x16xf32>
    %373 = vector.extract_strided_slice %218 {offsets = [224, 0], sizes = [16, 32], strides = [1, 1]} : vector<256x32xf32> to vector<16x32xf32>
    %cst_106 = arith.constant dense<0.000000e+00> : vector<32x32xf32>
    %374 = tpu.matmul %372, %373, %cst_106 {dimension_numbers = #tpu.dot_dimension_numbers<[1], [0], [0], [1], [0, 0, 1, 1], [], []>} : vector<32x16xf32>, vector<16x32xf32>, vector<32x32xf32> -> vector<32x32xf32>
    %375 = tpu.concatenate %371, %374 in 0 : vector<32x32xf32>, vector<32x32xf32> -> vector<64x32xf32>
    %376 = arith.addf %375, %10 : vector<64x32xf32>
    %cst_107 = arith.constant dense<0xFF800000> : vector<64xf32>
    %377 = vector.multi_reduction <maximumf>, %376, %cst_107 [1] : vector<64x32xf32> to vector<64xf32>
    %378 = vector.shape_cast %377 : vector<64xf32> to vector<64x1xf32>
    %379 = vector.broadcast %378 : vector<64x1xf32> to vector<64x32xf32>
    %380 = arith.subf %376, %379 : vector<64x32xf32>
    %381 = math.exp %380 : vector<64x32xf32>
    %cst_108 = arith.constant dense<0.000000e+00> : vector<64xf32>
    %382 = vector.multi_reduction <add>, %381, %cst_108 [1] : vector<64x32xf32> to vector<64xf32>
    %383 = vector.shape_cast %382 : vector<64xf32> to vector<64x1xf32>
    %384 = vector.broadcast %383 : vector<64x1xf32> to vector<64x32xf32>
    %385 = arith.divf %381, %384 : vector<64x32xf32>
    %386 = vector.extract_strided_slice %385 {offsets = [0, 0], sizes = [32, 32], strides = [1, 1]} : vector<64x32xf32> to vector<32x32xf32>
    %387 = vector.extract_strided_slice %385 {offsets = [32, 0], sizes = [32, 32], strides = [1, 1]} : vector<64x32xf32> to vector<32x32xf32>
    %388 = vector.broadcast %0 : f32 to vector<32x32xf32>
    %389 = arith.mulf %388, %387 : vector<32x32xf32>
    %390 = arith.subf %386, %389 : vector<32x32xf32>
    %391 = vector.extract_strided_slice %216 {offsets = [0, 96], sizes = [32, 16], strides = [1, 1]} : vector<32x128xf32> to vector<32x16xf32>
    %cst_109 = arith.constant dense<0.000000e+00> : vector<32x16xf32>
    %392 = tpu.matmul %390, %391, %cst_109 {dimension_numbers = #tpu.dot_dimension_numbers<[1], [0], [0], [1], [0, 0, 1, 1], [], []>} : vector<32x32xf32>, vector<32x16xf32>, vector<32x16xf32> -> vector<32x16xf32>
    %c32_110 = arith.constant 32 : index
    %c96_111 = arith.constant 96 : index
    %393 = vector.load %arg10[%c32_110, %c96_111] : memref<64x128xf32, #tpu.memory_space<vmem>>, vector<32x16xf32>
    tpu.vector_store %arg10[%c32_110, %c96_111], %392 {strides = array<i32>} : memref<64x128xf32, #tpu.memory_space<vmem>>, vector<32x16xf32>,
    %394 = vector.extract_strided_slice %215 {offsets = [0, 112], sizes = [32, 16], strides = [1, 1]} : vector<32x256xf32> to vector<32x16xf32>
    %395 = vector.extract_strided_slice %218 {offsets = [112, 0], sizes = [16, 32], strides = [1, 1]} : vector<256x32xf32> to vector<16x32xf32>
    %cst_112 = arith.constant dense<0.000000e+00> : vector<32x32xf32>
    %396 = tpu.matmul %394, %395, %cst_112 {dimension_numbers = #tpu.dot_dimension_numbers<[1], [0], [0], [1], [0, 0, 1, 1], [], []>} : vector<32x16xf32>, vector<16x32xf32>, vector<32x32xf32> -> vector<32x32xf32>
    %397 = vector.extract_strided_slice %215 {offsets = [0, 240], sizes = [32, 16], strides = [1, 1]} : vector<32x256xf32> to vector<32x16xf32>
    %398 = vector.extract_strided_slice %218 {offsets = [240, 0], sizes = [16, 32], strides = [1, 1]} : vector<256x32xf32> to vector<16x32xf32>
    %cst_113 = arith.constant dense<0.000000e+00> : vector<32x32xf32>
    %399 = tpu.matmul %397, %398, %cst_113 {dimension_numbers = #tpu.dot_dimension_numbers<[1], [0], [0], [1], [0, 0, 1, 1], [], []>} : vector<32x16xf32>, vector<16x32xf32>, vector<32x32xf32> -> vector<32x32xf32>
    %400 = tpu.concatenate %396, %399 in 0 : vector<32x32xf32>, vector<32x32xf32> -> vector<64x32xf32>
    %401 = arith.addf %400, %10 : vector<64x32xf32>
    %cst_114 = arith.constant dense<0xFF800000> : vector<64xf32>
    %402 = vector.multi_reduction <maximumf>, %401, %cst_114 [1] : vector<64x32xf32> to vector<64xf32>
    %403 = vector.shape_cast %402 : vector<64xf32> to vector<64x1xf32>
    %404 = vector.broadcast %403 : vector<64x1xf32> to vector<64x32xf32>
    %405 = arith.subf %401, %404 : vector<64x32xf32>
    %406 = math.exp %405 : vector<64x32xf32>
    %cst_115 = arith.constant dense<0.000000e+00> : vector<64xf32>
    %407 = vector.multi_reduction <add>, %406, %cst_115 [1] : vector<64x32xf32> to vector<64xf32>
    %408 = vector.shape_cast %407 : vector<64xf32> to vector<64x1xf32>
    %409 = vector.broadcast %408 : vector<64x1xf32> to vector<64x32xf32>
    %410 = arith.divf %406, %409 : vector<64x32xf32>
    %411 = vector.extract_strided_slice %410 {offsets = [0, 0], sizes = [32, 32], strides = [1, 1]} : vector<64x32xf32> to vector<32x32xf32>
    %412 = vector.extract_strided_slice %410 {offsets = [32, 0], sizes = [32, 32], strides = [1, 1]} : vector<64x32xf32> to vector<32x32xf32>
    %413 = vector.broadcast %0 : f32 to vector<32x32xf32>
    %414 = arith.mulf %413, %412 : vector<32x32xf32>
    %415 = arith.subf %411, %414 : vector<32x32xf32>
    %416 = vector.extract_strided_slice %216 {offsets = [0, 112], sizes = [32, 16], strides = [1, 1]} : vector<32x128xf32> to vector<32x16xf32>
    %cst_116 = arith.constant dense<0.000000e+00> : vector<32x16xf32>
    %417 = tpu.matmul %415, %416, %cst_116 {dimension_numbers = #tpu.dot_dimension_numbers<[1], [0], [0], [1], [0, 0, 1, 1], [], []>} : vector<32x32xf32>, vector<32x16xf32>, vector<32x16xf32> -> vector<32x16xf32>
    %c32_117 = arith.constant 32 : index
    %c112_118 = arith.constant 112 : index
    %418 = vector.load %arg10[%c32_117, %c112_118] : memref<64x128xf32, #tpu.memory_space<vmem>>, vector<32x16xf32>
    tpu.vector_store %arg10[%c32_117, %c112_118], %417 {strides = array<i32>} : memref<64x128xf32, #tpu.memory_space<vmem>>, vector<32x16xf32>,
    %c0_119 = arith.constant 0 : index
    %c0_120 = arith.constant 0 : index
    %419 = vector.load %arg10[%c0_119, %c0_120] : memref<64x128xf32, #tpu.memory_space<vmem>>, vector<64x128xf32>
    %420 = arith.mulf %419, %419 : vector<64x128xf32>
    %c0_121 = arith.constant 0 : index
    %c0_122 = arith.constant 0 : index
    %421 = vector.load %arg8[%c0_121, %c0_122] : memref<128x128xf32, #tpu.memory_space<vmem>>, vector<128x128xf32>
    %cst_123 = arith.constant dense<0.000000e+00> : vector<64x128xf32>
    %422 = tpu.matmul %420, %421, %cst_123 {dimension_numbers = #tpu.dot_dimension_numbers<[1], [0], [0], [1], [0, 0, 1, 1], [], []>} : vector<64x128xf32>, vector<128x128xf32>, vector<64x128xf32> -> vector<64x128xf32>
    %cst_124 = arith.constant 9.99999997E-7 : f32
    %423 = vector.broadcast %cst_124 : f32 to vector<64x128xf32>
    %424 = arith.addf %422, %423 : vector<64x128xf32>
    %425 = math.rsqrt %424 : vector<64x128xf32>
    %426 = arith.mulf %419, %425 : vector<64x128xf32>
    %cst_125 = arith.constant 0.644490957 : f32
    %427 = vector.broadcast %cst_125 : f32 to vector<64x128xf32>
    %428 = arith.mulf %426, %427 : vector<64x128xf32>
    %c0_126 = arith.constant 0 : index
    %c0_127 = arith.constant 0 : index
    %429 = vector.load %arg6[%c0_126, %c0_127] : memref<128x128xf32, #tpu.memory_space<vmem>>, vector<128x128xf32>
    %cst_128 = arith.constant dense<0.000000e+00> : vector<64x128xf32>
    %430 = tpu.matmul %428, %429, %cst_128 {dimension_numbers = #tpu.dot_dimension_numbers<[1], [0], [0], [1], [0, 0, 1, 1], [], []>} : vector<64x128xf32>, vector<128x128xf32>, vector<64x128xf32> -> vector<64x128xf32>
    %c0_129 = arith.constant 0 : index
    %c0_130 = arith.constant 0 : index
    %431 = vector.load %arg9[%c0_129, %c0_130] : memref<64x128xf32, #tpu.memory_space<vmem>>, vector<64x128xf32>
    tpu.vector_store %arg9[%c0_129, %c0_130], %430 {strides = array<i32>} : memref<64x128xf32, #tpu.memory_space<vmem>>, vector<64x128xf32>,
    return
  }
  func.func @transform_0(%arg0: i32) -> (i32, i32) {
    %c0_i32 = arith.constant 0 : i32
    %c0_i32_0 = arith.constant 0 : i32
    %c0_i32_1 = arith.constant 0 : i32
    return %c0_i32, %c0_i32_0 : i32, i32
  }
  func.func @transform_1(%arg0: i32) -> (i32, i32) {
    %c0_i32 = arith.constant 0 : i32
    %c0_i32_0 = arith.constant 0 : i32
    %c0_i32_1 = arith.constant 0 : i32
    return %c0_i32, %c0_i32_0 : i32, i32
  }
  func.func @transform_2(%arg0: i32) -> (i32, i32) {
    %c0_i32 = arith.constant 0 : i32
    %c0_i32_0 = arith.constant 0 : i32
    %c0_i32_1 = arith.constant 0 : i32
    return %c0_i32, %c0_i32_0 : i32, i32
  }
  func.func @transform_3(%arg0: i32) -> (i32, i32) {
    %c0_i32 = arith.constant 0 : i32
    %c0_i32_0 = arith.constant 0 : i32
    %c0_i32_1 = arith.constant 0 : i32
    return %c0_i32, %c0_i32_0 : i32, i32
  }
  func.func @transform_4(%arg0: i32) -> (i32, i32) {
    %c0_i32 = arith.constant 0 : i32
    %c0_i32_0 = arith.constant 0 : i32
    %c0_i32_1 = arith.constant 0 : i32
    return %c0_i32, %c0_i32_0 : i32, i32
  }
  func.func @transform_5(%arg0: i32) -> (i32, i32) {
    %c0_i32 = arith.constant 0 : i32
    %c0_i32_0 = arith.constant 0 : i32
    %c0_i32_1 = arith.constant 0 : i32
    return %c0_i32, %c0_i32_0 : i32, i32
  }
  func.func @transform_6(%arg0: i32) -> (i32, i32) {
    %c0_i32 = arith.constant 0 : i32
    %c0_i32_0 = arith.constant 0 : i32
    %c0_i32_1 = arith.constant 0 : i32
    return %c0_i32, %c0_i32_0 : i32, i32
  }
  func.func @transform_7(%arg0: i32) -> (i32, i32) {
    %c0_i32 = arith.constant 0 : i32
    %c0_i32_0 = arith.constant 0 : i32
    %c0_i32_1 = arith.constant 0 : i32
    return %c0_i32, %c0_i32_0 : i32, i32
  }
  func.func @transform_8(%arg0: i32) -> (i32, i32) {
    %c0_i32 = arith.constant 0 : i32
    %c0_i32_0 = arith.constant 0 : i32
    %c0_i32_1 = arith.constant 0 : i32
    return %c0_i32, %c0_i32_0 : i32, i32
  }
}

</mosaic_0001>

<bundles_post_ra>
// kernel: differential_attention_forward.1
= control target key start
LH: loop header
LB: loop body
LE: loop exit
PB: predicated region body
PF: predicated region fallthrough
CT: control target
= control target key end

     0   :  { %14 = vsyncpa [#allocation5], 0  ;;  %s13316_s0 = inlined_call_operand.<no memory space> [shape: f32[1,1], index: 0, kind: input, shape index: {}]   ;;  %s13317_s1 = inlined_call_operand.hbm [shape: f32[64,128], index: 1, kind: input, shape index: {}]   ;;  %s13318_s2 = inlined_call_operand.hbm [shape: f32[128,256], index: 2, kind: input, shape index: {}]   ;;  %s13319_s3 = inlined_call_operand.hbm [shape: f32[128,256], index: 3, kind: input, shape index: {}]   ;;  %s13320_s4 = inlined_call_operand.hbm [shape: f32[128,128], index: 4, kind: input, shape index: {}]   ;;  %s13321_s5 = inlined_call_operand.hbm [shape: f32[128,128], index: 5, kind: input, shape index: {}]   ;;  %s13322_s6 = inlined_call_operand.hbm [shape: f32[64,32], index: 6, kind: input, shape index: {}]   ;;  %s13323_s7 = inlined_call_operand.hbm [shape: f32[128,128], index: 7, kind: input, shape index: {}]   ;;  %s13324_s8 = inlined_call_operand.hbm [shape: f32[64,128], index: 8, kind: output, shape index: {}]  }
   0x1   :  { %15 = vsyncpa [#allocation8], 0 }
   0x2   :  { %16 = vsyncpa [#allocation11], 0 }
   0x3   :  { %17 = vsyncpa [#allocation14], 0 }
   0x4   :  { %18 = vsyncpa [#allocation6], 0  ;;  %s10619_s27 = smov [#allocation7]  }
   0x5   :  { %s38_s28 = sshll.u32 %s10619_s27, 4  ;;  %s39_s28 = int_to_ptr.vmem [resolvable:$true] %s38_s28 }
   0x6   :  { %s10457_s29 = scalar_lea.vmem %s39_s28, 4096  ;;  %p10462_p1 = scmp.lt.s32.totalorder %s39_s28, %s39_s28 }
   0x7   :  { %p10458_p0 = scmp.ne.s32.totalorder %s39_s28, %s10457_s29  ;;  %p10463_p2 = scmp.lt.s32.totalorder %s10457_s29, %s10457_s29 }
   0x9   :  { %p10464_p3 = por %p10463_p2, %p10462_p1 }
   0xb   :  { %p10465_p4 = pnand %p10464_p3, %p10458_p0 }
   0xd   :  { %10468 = shalt.err (!%p10465_p4)
}
   0xe   :  { %s10620_s30 = smov 256   ;;  %s10621_s9 = smov 16  }
   0xf   :  { %44 = dma.hbm_to_vmem [thread:$0]  %s13318_s2, 4096, %s39_s28, [#allocation8], %s10620_s30, %s10620_s30, %s10621_s9  }
  0x10   :  { %s10622_s12 = smov [#allocation10]   ;;  %s10623_s14 = smov [#allocation13]  }
  0x11   :  { %s62_s13 = sshll.u32 %s10622_s12, 4  ;;  %s86_s15 = sshll.u32 %s10623_s14, 4  ;;  %s63_s13 = int_to_ptr.vmem [resolvable:$true] %s62_s13  ;;  %s87_s15 = int_to_ptr.vmem [resolvable:$true] %s86_s15 }
  0x12   :  { %s10477_s16 = scalar_lea.vmem %s63_s13, 2048  ;;  %p10482_p6 = scmp.lt.s32.totalorder %s63_s13, %s63_s13 }
  0x13   :  { %p10478_p5 = scmp.ne.s32.totalorder %s63_s13, %s10477_s16  ;;  %p10483_p7 = scmp.lt.s32.totalorder %s10477_s16, %s10477_s16 }
  0x15   :  { %p10484_p8 = por %p10483_p7, %p10482_p6 }
  0x17   :  { %p10485_p9 = pnand %p10484_p8, %p10478_p5 }
  0x19   :  { %10488 = shalt.err (!%p10485_p9)
}
  0x1a   :  { %s10624_s17 = smov 128   ;;  %s10625_s18 = smov 8  }
  0x1b   :  { %68 = dma.hbm_to_vmem [thread:$0]  %s13320_s4, 2048, %s63_s13, [#allocation11], %s10624_s17, %s10624_s17, %s10625_s18  }
  0x1c   :  { %s10497_s2 = scalar_lea.vmem %s87_s15, 1024  ;;  %p10502_p11 = scmp.lt.s32.totalorder %s87_s15, %s87_s15 }
  0x1d   :  { %p10498_p10 = scmp.ne.s32.totalorder %s87_s15, %s10497_s2  ;;  %p10503_p12 = scmp.lt.s32.totalorder %s10497_s2, %s10497_s2 }
  0x1f   :  { %p10504_p13 = por %p10503_p12, %p10502_p11 }
  0x21   :  { %p10505_p0 = pnand %p10504_p13, %p10498_p10 }
  0x23   :  { %10508 = shalt.err (!%p10505_p0)
}
  0x24   :  { %92 = dma.hbm_to_vmem [thread:$0]  %s13322_s6, 1024, %s87_s15, [#allocation14], %s10624_s17, %s10624_s17, %s10625_s18  }
  0x25   :  { %s10626_s23 = smov [#allocation4]   ;;  %s10627_s25 = smov [#allocation9]  }
  0x26   :  { %s26_s24 = sshll.u32 %s10626_s23, 4  ;;  %s50_s4 = sshll.u32 %s10627_s25, 4  ;;  %s27_s24 = int_to_ptr.vmem [resolvable:$true] %s26_s24  ;;  %s51_s4 = int_to_ptr.vmem [resolvable:$true] %s50_s4 }
  0x27   :  { %s10517_s26 = scalar_lea.vmem %s27_s24, 1024  ;;  %p10522_p2 = scmp.lt.s32.totalorder %s27_s24, %s27_s24 }
  0x28   :  { %p10518_p1 = scmp.ne.s32.totalorder %s27_s24, %s10517_s26  ;;  %p10523_p3 = scmp.lt.s32.totalorder %s10517_s26, %s10517_s26 }
  0x2a   :  { %p10524_p4 = por %p10523_p3, %p10522_p2 }
  0x2c   :  { %p10525_p5 = pnand %p10524_p4, %p10518_p1 }
  0x2e   :  { %10528 = shalt.err (!%p10525_p5)
}
  0x2f   :  { %32 = dma.hbm_to_vmem [thread:$0]  %s13317_s1, 1024, %s27_s24, [#allocation5], %s10624_s17, %s10624_s17, %s10625_s18  }
  0x30   :  { %s10537_s6 = scalar_lea.vmem %s51_s4, 4096  ;;  %p10542_p7 = scmp.lt.s32.totalorder %s51_s4, %s51_s4 }
  0x31   :  { %p10538_p6 = scmp.ne.s32.totalorder %s51_s4, %s10537_s6  ;;  %p10543_p8 = scmp.lt.s32.totalorder %s10537_s6, %s10537_s6 }
  0x33   :  { %p10544_p9 = por %p10543_p8, %p10542_p7 }
  0x35   :  { %p10545_p10 = pnand %p10544_p9, %p10538_p6 }
  0x37   :  { %10548 = shalt.err (!%p10545_p10)
}
  0x38   :  { %56 = dma.hbm_to_vmem [thread:$0]  %s13319_s3, 4096, %s51_s4, [#allocation8], %s10620_s30, %s10620_s30, %s10621_s9  }
  0x39   :  { %s10628_s11 = smov [#allocation12]   ;;  %s10629_s13 = smov [#allocation15]  }
  0x3a   :  { %s74_s12 = sshll.u32 %s10628_s11, 4  ;;  %s98_s1 = sshll.u32 %s10629_s13, 4  ;;  %s75_s12 = int_to_ptr.vmem [resolvable:$true] %s74_s12  ;;  %s99_s1 = int_to_ptr.vmem [resolvable:$true] %s98_s1 }
  0x3b   :  { %s10557_s14 = scalar_lea.vmem %s75_s12, 2048  ;;  %p10562_p12 = scmp.lt.s32.totalorder %s75_s12, %s75_s12 }
  0x3c   :  { %p10558_p11 = scmp.ne.s32.totalorder %s75_s12, %s10557_s14  ;;  %p10563_p13 = scmp.lt.s32.totalorder %s10557_s14, %s10557_s14 }
  0x3e   :  { %p10564_p0 = por %p10563_p13, %p10562_p12 }
  0x40   :  { %p10565_p1 = pnand %p10564_p0, %p10558_p11 }
  0x42   :  { %10568 = shalt.err (!%p10565_p1)
}
  0x43   :  { %80 = dma.hbm_to_vmem [thread:$0]  %s13321_s5, 2048, %s75_s12, [#allocation11], %s10624_s17, %s10624_s17, %s10625_s18  }
  0x44   :  { %s10577_s3 = scalar_lea.vmem %s99_s1, 2048  ;;  %p10582_p3 = scmp.lt.s32.totalorder %s99_s1, %s99_s1 }
  0x45   :  { %p10578_p2 = scmp.ne.s32.totalorder %s99_s1, %s10577_s3  ;;  %p10583_p4 = scmp.lt.s32.totalorder %s10577_s3, %s10577_s3 }
  0x47   :  { %p10584_p5 = por %p10583_p4, %p10582_p3 }
  0x49   :  { %p10585_p6 = pnand %p10584_p5, %p10578_p2 }
  0x4b   :  { %10588 = shalt.err (!%p10585_p6)
}
  0x4c   :  { %104 = dma.hbm_to_vmem [thread:$0]  %s13323_s7, 2048, %s99_s1, [#allocation14], %s10624_s17, %s10624_s17, %s10625_s18  }
  0x4d   :  { %10609 = dma.done.wait [#allocation5], 1024  }
  0x4e   :  { %10610 = vsyncadd [#allocation5], 4294966272 }
  0x4f   :  { %10611 = dma.done.wait [#allocation8], 8192  }
  0x50   :  { %10612 = vsyncadd [#allocation8], 4294959104 }
  0x51   :  { %10613 = dma.done.wait [#allocation11], 4096  }
  0x52   :  { %10614 = vsyncadd [#allocation11], 4294963200 }
  0x53   :  { %10615 = dma.done.wait [#allocation14], 3072  }
  0x54   :  { %10616 = vsyncadd [#allocation14], 4294964224  ;;  %v10630_v0 = vmov 0.0   ;;  %v311_v1 = vld [vmem:[#allocation9 + $0xf8] sm:$0xff]  ;;  %v310_v2 = vld [vmem:[#allocation9 + $0xf0] sm:$0xff]  ;;  %vm570_vm0 = vcmask 130048  }
  0x55   :  { %376 = vmatprep.mubr.f32.mxu1 %v10630_v0  ;;  %231 = vmatprep.mubr.f32.mxu0 %v10630_v0  ;;  %v309_v3 = vld [vmem:[#allocation9 + $0xe8] sm:$0xff]  ;;  %v308_v4 = vld [vmem:[#allocation9 + $0xe0] sm:$0xff]  ;;  %v307_v5 = vld [vmem:[#allocation9 + $0xd8] sm:$0xff]  ;;  %vm797_vm1 = vcmask 261120   ;;  %s10631_s5 = smov 112   ;;  %s10633_s2 = smov 80  }
  0x56   :  { %312 = vmatprep.subr.mxu1 %v311_v1  ;;  %v306_v6 = vld [vmem:[#allocation9 + $0xd0] sm:$0xff]  ;;  %v305_v7 = vld [vmem:[#allocation9 + $0xc8] sm:$0xff]  ;;  %v304_v8 = vld [vmem:[#allocation9 + $0xc0] sm:$0xff]  ;;  %s10634_s21 = smov 64   ;;  %s10635_s22 = smov 48   ;;  %vm1463_vm2 = vcmask 261248  }
  0x57   :  { %313 = vmatpush1.msra.mxu1 %v310_v2  ;;  %v303_v9 = vld [vmem:[#allocation9 + $0xb8] sm:$0xff]  ;;  %v302_v10 = vld [vmem:[#allocation9 + $0xb0] sm:$0xff]  ;;  %v301_v12 = vld [vmem:[#allocation9 + $0xa8] sm:$0xff]  ;;  %s10636_s23 = smov 32   ;;  %vm1931_vm3 = vcmask 392448   ;;  %vm2399_vm4 = vcmask 523648  }
  0x58   :  { %314 = vmatprep.subr.mxu1 %v309_v3  ;;  %v166_v11 = vld [vmem:[#allocation7 + $0xf8] sm:$0xff]  ;;  %v165_v13 = vld [vmem:[#allocation7 + $0xf0] sm:$0xff]  ;;  %v164_v14 = vld [vmem:[#allocation7 + $0xe8] sm:$0xff]  ;;  %vm2867_vm5 = vcmask 654848   ;;  %vm3335_vm6 = vcmask 786048   ;;  %vm3803_vm7 = vcmask 917248  }
  0x59   :  { %315 = vmatpush1.msra.mxu1 %v308_v4  ;;  %167 = vmatprep.subr.mxu0 %v166_v11  ;;  %v300_v15 = vld [vmem:[#allocation9 + $0xa0] sm:$0xff]  ;;  %v299_v17 = vld [vmem:[#allocation9 + $0x98] sm:$0xff]  ;;  %v161_v19 = vld [vmem:[#allocation7 + $0xd0] sm:$0xff]  ;;  %vm4271_vm8 = vcmask 1048448  }
  0x5a   :  { %316 = vmatprep.subr.mxu1 %v307_v5  ;;  %168 = vmatpush1.msra.mxu0 %v165_v13  ;;  %v163_v16 = vld [vmem:[#allocation7 + $0xe0] sm:$0xff]  ;;  %v162_v18 = vld [vmem:[#allocation7 + $0xd8] sm:$0xff]  ;;  %v298_v20 = vld [vmem:[#allocation9 + $0x90] sm:$0xff] }
  0x5b   :  { %317 = vmatpush1.msra.mxu1 %v306_v6  ;;  %169 = vmatprep.subr.mxu0 %v164_v14  ;;  %v160_v21 = vld [vmem:[#allocation7 + $0xc8] sm:$0xff]  ;;  %v159_v23 = vld [vmem:[#allocation7 + $0xc0] sm:$0xff]  ;;  %v158_v25 = vld [vmem:[#allocation7 + $0xb8] sm:$0xff] }
  0x5c   :  { %318 = vmatprep.subr.mxu1 %v305_v7  ;;  %170 = vmatpush1.msra.mxu0 %v163_v16  ;;  %v297_v22 = vld [vmem:[#allocation9 + $0x88] sm:$0xff]  ;;  %v296_v24 = vld [vmem:[#allocation9 + $0x80] sm:$0xff]  ;;  %v295_v26 = vld [vmem:[#allocation9 + $0x78] sm:$0xff] }
  0x5d   :  { %319 = vmatpush1.msra.mxu1 %v304_v8  ;;  %171 = vmatprep.subr.mxu0 %v162_v18  ;;  %v157_v27 = vld [vmem:[#allocation7 + $0xb0] sm:$0xff]  ;;  %v156_v29 = vld [vmem:[#allocation7 + $0xa8] sm:$0xff]  ;;  %v155_v31 = vld [vmem:[#allocation7 + $0xa0] sm:$0xff] }
  0x5e   :  { %320 = vmatprep.subr.mxu1 %v303_v9  ;;  %172 = vmatpush1.msra.mxu0 %v161_v19  ;;  %v294_v28 = vld [vmem:[#allocation9 + $0x70] sm:$0xff]  ;;  %v293_v30 = vld [vmem:[#allocation9 + $0x68] sm:$0xff]  ;;  %v292_v32 = vld [vmem:[#allocation9 + $0x60] sm:$0xff] }
  0x5f   :  { %321 = vmatpush1.msra.mxu1 %v302_v10  ;;  %173 = vmatprep.subr.mxu0 %v160_v21  ;;  %v154_v33 = vld [vmem:[#allocation7 + $0x98] sm:$0xff]  ;;  %v153_v35 = vld [vmem:[#allocation7 + $0x90] sm:$0xff]  ;;  %v152_v37 = vld [vmem:[#allocation7 + $0x88] sm:$0xff] }
  0x60   :  { %322 = vmatprep.subr.mxu1 %v301_v12  ;;  %174 = vmatpush1.msra.mxu0 %v159_v23  ;;  %v291_v34 = vld [vmem:[#allocation9 + $0x58] sm:$0xff]  ;;  %v290_v36 = vld [vmem:[#allocation9 + $0x50] sm:$0xff]  ;;  %v289_v38 = vld [vmem:[#allocation9 + $0x48] sm:$0xff] }
  0x61   :  { %323 = vmatpush1.msra.mxu1 %v300_v15  ;;  %175 = vmatprep.subr.mxu0 %v158_v25  ;;  %v151_v39 = vld [vmem:[#allocation7 + $0x80] sm:$0xff]  ;;  %v150_v41 = vld [vmem:[#allocation7 + $0x78] sm:$0xff]  ;;  %v149_v43 = vld [vmem:[#allocation7 + $0x70] sm:$0xff] }
  0x62   :  { %324 = vmatprep.subr.mxu1 %v299_v17  ;;  %176 = vmatpush1.msra.mxu0 %v157_v27  ;;  %v288_v40 = vld [vmem:[#allocation9 + $0x40] sm:$0xff]  ;;  %v287_v42 = vld [vmem:[#allocation9 + $0x38] sm:$0xff]  ;;  %v286_v44 = vld [vmem:[#allocation9 + $0x30] sm:$0xff] }
  0x63   :  { %325 = vmatpush1.msra.mxu1 %v298_v20  ;;  %177 = vmatprep.subr.mxu0 %v156_v29  ;;  %v148_v45 = vld [vmem:[#allocation7 + $0x68] sm:$0xff]  ;;  %v147_v47 = vld [vmem:[#allocation7 + $0x60] sm:$0xff]  ;;  %v146_v49 = vld [vmem:[#allocation7 + $0x58] sm:$0xff] }
  0x64   :  { %326 = vmatprep.subr.mxu1 %v297_v22  ;;  %178 = vmatpush1.msra.mxu0 %v155_v31  ;;  %v285_v46 = vld [vmem:[#allocation9 + $0x28] sm:$0xff]  ;;  %v284_v48 = vld [vmem:[#allocation9 + $0x20] sm:$0xff]  ;;  %v283_v50 = vld [vmem:[#allocation9 + $0x18] sm:$0xff] }
  0x65   :  { %327 = vmatpush1.msra.mxu1 %v296_v24  ;;  %179 = vmatprep.subr.mxu0 %v154_v33  ;;  %v145_v51 = vld [vmem:[#allocation7 + $0x50] sm:$0xff]  ;;  %v144_v53 = vld [vmem:[#allocation7 + $0x48] sm:$0xff]  ;;  %v143_v55 = vld [vmem:[#allocation7 + $0x40] sm:$0xff] }
  0x66   :  { %328 = vmatprep.subr.mxu1 %v295_v26  ;;  %180 = vmatpush1.msra.mxu0 %v153_v35  ;;  %v282_v52 = vld [vmem:[#allocation9 + $0x10] sm:$0xff]  ;;  %v281_v54 = vld [vmem:[#allocation9 + $0x8] sm:$0xff]  ;;  %v280_v56 = vld [vmem:[#allocation9] sm:$0xff] }
  0x67   :  { %329 = vmatpush1.msra.mxu1 %v294_v28  ;;  %181 = vmatprep.subr.mxu0 %v152_v37  ;;  %v142_v57 = vld [vmem:[#allocation7 + $0x38] sm:$0xff]  ;;  %v10727_v58 = vld [vmem:[#allocation4] sm:$0xff]  ;;  %v141_v59 = vld [vmem:[#allocation7 + $0x30] sm:$0xff] }
  0x68   :  { %330 = vmatprep.subr.mxu1 %v293_v30  ;;  %182 = vmatpush1.msra.mxu0 %v151_v39  ;;  %v140_v60 = vld [vmem:[#allocation7 + $0x28] sm:$0xff]  ;;  %v139_v61 = vld [vmem:[#allocation7 + $0x20] sm:$0xff]  ;;  %v138_v62 = vld [vmem:[#allocation7 + $0x18] sm:$0xff] }
  0x69   :  { %331 = vmatpush1.msra.mxu1 %v292_v32  ;;  %183 = vmatprep.subr.mxu0 %v150_v41  ;;  %v10731_v63 = vld [vmem:[#allocation4 + $0x8] sm:$0xff]  ;;  %v137_v1 = vld [vmem:[#allocation7 + $0x10] sm:$0xff]  ;;  %v135_v3 = vld [vmem:[#allocation7] sm:$0xff] }
  0x6a   :  { %332 = vmatprep.subr.mxu1 %v291_v34  ;;  %184 = vmatpush1.msra.mxu0 %v149_v43  ;;  %v136_v2 = vld [vmem:[#allocation7 + $0x8] sm:$0xff]  ;;  %v440_v4 = vld [vmem:[#allocation10 + $0x78] sm:$0xff]  ;;  %v10735_v5 = vld [vmem:[#allocation4 + $0x10] sm:$0xff] }
  0x6b   :  { %333 = vmatpush1.msra.mxu1 %v290_v36  ;;  %185 = vmatprep.subr.mxu0 %v148_v45  ;;  %v439_v6 = vld [vmem:[#allocation10 + $0x70] sm:$0xff]  ;;  %v10741_v7 = vld [vmem:[#allocation4 + $0x18] sm:$0xff]  ;;  %v438_v8 = vld [vmem:[#allocation10 + $0x68] sm:$0xff] }
  0x6c   :  { %334 = vmatprep.subr.mxu1 %v289_v38  ;;  %186 = vmatpush1.msra.mxu0 %v147_v47  ;;  %v437_v9 = vld [vmem:[#allocation10 + $0x60] sm:$0xff]  ;;  %v436_v10 = vld [vmem:[#allocation10 + $0x58] sm:$0xff]  ;;  %v435_v12 = vld [vmem:[#allocation10 + $0x50] sm:$0xff] }
  0x6d   :  { %335 = vmatpush1.msra.mxu1 %v288_v40  ;;  %187 = vmatprep.subr.mxu0 %v146_v49  ;;  %v131_v11 = vld [vmem:[#allocation4 + $0x20] sm:$0xff]  ;;  %v434_v13 = vld [vmem:[#allocation10 + $0x48] sm:$0xff]  ;;  %v432_v15 = vld [vmem:[#allocation10 + $0x38] sm:$0xff] }
  0x6e   :  { %336 = vmatprep.subr.mxu1 %v287_v42  ;;  %188 = vmatpush1.msra.mxu0 %v145_v51  ;;  %v433_v14 = vld [vmem:[#allocation10 + $0x40] sm:$0xff]  ;;  %v431_v16 = vld [vmem:[#allocation10 + $0x30] sm:$0xff]  ;;  %v132_v17 = vld [vmem:[#allocation4 + $0x28] sm:$0xff] }
  0x6f   :  { %337 = vmatpush1.msra.mxu1 %v286_v44  ;;  %189 = vmatprep.subr.mxu0 %v144_v53  ;;  %v430_v18 = vld [vmem:[#allocation10 + $0x28] sm:$0xff]  ;;  %v429_v19 = vld [vmem:[#allocation10 + $0x20] sm:$0xff]  ;;  %v133_v20 = vld [vmem:[#allocation4 + $0x30] sm:$0xff] }
  0x70   :  { %338 = vmatprep.subr.mxu1 %v285_v46  ;;  %190 = vmatpush1.msra.mxu0 %v143_v55  ;;  %v428_v21 = vld [vmem:[#allocation10 + $0x18] sm:$0xff]  ;;  %v427_v22 = vld [vmem:[#allocation10 + $0x10] sm:$0xff]  ;;  %v426_v24 = vld [vmem:[#allocation10 + $0x8] sm:$0xff] }
  0x71   :  { %339 = vmatpush1.msra.mxu1 %v284_v48  ;;  %191 = vmatprep.subr.mxu0 %v142_v57  ;;  %v134_v23 = vld [vmem:[#allocation4 + $0x38] sm:$0xff]  ;;  %v425_v25 = vld [vmem:[#allocation10] sm:$0xff] }
  0x72   :  { %340 = vmatprep.subr.mxu1 %v283_v50  ;;  %192 = vmatpush1.msra.mxu0 %v141_v59 }
  0x73   :  { %341 = vmatpush1.msra.mxu1 %v282_v52  ;;  %193 = vmatprep.subr.mxu0 %v140_v60 }
  0x74   :  { %342 = vmatprep.subr.mxu1 %v281_v54  ;;  %194 = vmatpush1.msra.mxu0 %v139_v61 }
  0x75   :  { %343 = vmatpush1.msra.mxu1 %v280_v56  ;;  %195 = vmatprep.subr.mxu0 %v138_v62 }
  0x76   :  { %377 = vmatmul.mubr.f32.vlgmr.msra.gmra.mxu1 %v10727_v58  ;;  %196 = vmatpush1.msra.mxu0 %v137_v1 }
  0x77   :  { %382 = vmatprep.mubr.f32.mxu1 %v10630_v0  ;;  %197 = vmatprep.subr.mxu0 %v136_v2 }
  0x78   :  { %198 = vmatpush1.msra.mxu0 %v135_v3 }
  0x79   :  { %232 = vmatmul.mubr.f32.vlgmr.msra.gmra.mxu0 %v10727_v58  ;;  %9058 = vmatprep.subr.mxu0 %v440_v4 }
  0x7a   :  { %383 = vmatmul.mubr.f32.gmra.mxu1 %v10731_v63  ;;  %237 = vmatprep.mubr.f32.mxu0 %v10630_v0 }
  0x7b   :  { %388 = vmatprep.mubr.f32.mxu1 %v10630_v0  ;;  %9059 = vmatpush3.msra.mxu0 %v440_v4 }
  0x7c   :  { %9060 = vmatprep.subr.mxu0 %v439_v6 }
  0x7d   :  { %238 = vmatmul.mubr.f32.gmra.mxu0 %v10731_v63 }
  0x7e   :  { %389 = vmatmul.mubr.f32.gmra.mxu1 %v10735_v5  ;;  %243 = vmatprep.mubr.f32.mxu0 %v10630_v0 }
  0x7f   :  { %394 = vmatprep.mubr.f32.mxu1 %v10630_v0  ;;  %9061 = vmatpush3.msra.mxu0 %v439_v6 }
  0x80   :  { %9062 = vmatprep.subr.mxu0 %v438_v8 }
  0x81   :  { %244 = vmatmul.mubr.f32.gmra.mxu0 %v10735_v5 }
  0x82   :  { %395 = vmatmul.mubr.f32.gmra.mxu1 %v10741_v7  ;;  %249 = vmatprep.mubr.f32.mxu0 %v10630_v0 }
  0x83   :  { %400 = vmatprep.mubr.f32.mxu1 %v10630_v0  ;;  %9063 = vmatpush3.msra.mxu0 %v438_v8 }
  0x84   :  { %9064 = vmatprep.subr.mxu0 %v437_v9 }
  0x85   :  { %9065 = vmatpush3.msra.mxu0 %v437_v9 }
  0x86   :  { %401 = vmatmul.mubr.f32.gmra.mxu1 %v131_v11  ;;  %250 = vmatmul.mubr.f32.gmra.mxu0 %v10741_v7 }
  0x87   :  { %406 = vmatprep.mubr.f32.mxu1 %v10630_v0  ;;  %9066 = vmatprep.subr.mxu0 %v436_v10 }
  0x88   :  { %9067 = vmatpush3.msra.mxu0 %v436_v10  ;;  %255 = vmatprep.mubr.f32.mxu0 %v10630_v0 }
  0x89   :  { %9068 = vmatprep.subr.mxu0 %v435_v12 }
  0x8a   :  { %9069 = vmatpush3.msra.mxu0 %v435_v12  ;;  %407 = vmatmul.mubr.f32.gmra.mxu1 %v132_v17  ;;  %v10899_v12 = vld [vmem:[#allocation13 + $0x8] sm:$0xff] }
  0x8b   :  { %9070 = vmatprep.subr.mxu0 %v434_v13  ;;  %256 = vmatmul.mubr.f32.gmra.mxu0 %v131_v11 }
  0x8c   :  { %9071 = vmatpush3.msra.mxu0 %v434_v13  ;;  %261 = vmatprep.mubr.f32.mxu0 %v10630_v0 }
  0x8d   :  { %9072 = vmatprep.subr.mxu0 %v433_v14  ;;  %412 = vmatprep.mubr.f32.mxu1 %v10630_v0 }
  0x8e   :  { %9073 = vmatpush3.msra.mxu0 %v433_v14  ;;  %413 = vmatmul.mubr.f32.gmra.mxu1 %v133_v20 }
  0x8f   :  { %9074 = vmatprep.subr.mxu0 %v432_v15  ;;  %262 = vmatmul.mubr.f32.gmra.mxu0 %v132_v17 }
  0x90   :  { %9075 = vmatpush3.msra.mxu0 %v432_v15  ;;  %267 = vmatprep.mubr.f32.mxu0 %v10630_v0  ;;  %v10901_v15 = vld [vmem:[#allocation13 + $0x20] sm:$0xff] }
  0x91   :  { %9076 = vmatprep.subr.mxu0 %v431_v16  ;;  %418 = vmatprep.mubr.f32.mxu1 %v10630_v0 }
  0x92   :  { %9077 = vmatpush3.msra.mxu0 %v431_v16  ;;  %419 = vmatmul.mubr.f32.gmra.mxu1 %v134_v23 }
  0x93   :  { %9078 = vmatprep.subr.mxu0 %v430_v18  ;;  %268 = vmatmul.mubr.f32.gmra.mxu0 %v133_v20 }
  0x94   :  { %9079 = vmatpush3.msra.mxu0 %v430_v18  ;;  %273 = vmatprep.mubr.f32.mxu0 %v10630_v0 }
  0x95   :  { %9080 = vmatprep.subr.mxu0 %v429_v19 }
  0x96   :  { %9081 = vmatpush3.msra.mxu0 %v429_v19 }
  0x97   :  { %9082 = vmatprep.subr.mxu0 %v428_v21  ;;  %274 = vmatmul.mubr.f32.gmra.mxu0 %v134_v23 }
  0x98   :  { %9083 = vmatpush3.msra.mxu0 %v428_v21  ;;  %9090 = vmatprep.mubr.f32.mxu0 %v10727_v58 }
  0x99   :  { %9084 = vmatprep.subr.mxu0 %v427_v22 }
  0x9a   :  { %9085 = vmatpush3.msra.mxu0 %v427_v22  ;;  %v10909_v22 = vld [vmem:[#allocation13 + $0x38] sm:$0xff] }
  0x9b   :  { %9086 = vmatprep.subr.mxu0 %v426_v24 }
  0x9c   :  { %9087 = vmatpush3.msra.mxu0 %v426_v24 }
  0x9d   :  { %9088 = vmatprep.subr.mxu0 %v425_v25 }
  0x9e   :  { %9089 = vmatpush3.msra.mxu0 %v425_v25 }
  0x9f   :  { %9091 = vmatmul.mubr.f32.vlgmr.msra.gmra.mxu0 %v10731_v63 }
  0xa0   :  { %9093 = vmatprep.mubr.f32.mxu0 %v10735_v5 }
  0xa3   :  { %9094 = vmatmul.mubr.f32.gmra.mxu0 %v10741_v7 }
  0xa4   :  { %9096 = vmatprep.mubr.f32.mxu0 %v131_v11  ;;  %v10897_v11 = vld [vmem:[#allocation13] sm:$0xff] }
  0xa7   :  { %9097 = vmatmul.mubr.f32.gmra.mxu0 %v132_v17  ;;  %v10904_v17 = vld [vmem:[#allocation13 + $0x28] sm:$0xff] }
  0xa8   :  { %9099 = vmatprep.mubr.f32.mxu0 %v133_v20 }
  0xab   :  { %9100 = vmatmul.mubr.f32.gmra.mxu0 %v134_v23 }
 0x136   :  { %v10761_v0 = vpop.f32.mrf.mxu1 }
 0x138   :  { %v10763_v26 = vpop.f32.mrf.mxu1 }
 0x139   :  { %v233_v29 = vpop.f32.mrf.mxu0 }
 0x13a   :  { %v10765_v27 = vpop.f32.mrf.mxu1  ;;  %v10771_v31 = vmul.f32 0.25, %v233_v29  ;;  %v10913_v29 = vld [vmem:[#allocation13 + $0x30] sm:$0xff] }
 0x13b   :  { %v235_v32 = vpop.f32.mrf.mxu0 }
 0x13c   :  { %v10767_v28 = vpop.f32.mrf.mxu1  ;;  %v10775_v34 = vmul.f32 0.25, %v235_v32  ;;  %9110 = vmatprep.mubr.msk.f32.mxu1 %vm570_vm0, %v10771_v31 }
 0x13d   :  { %v239_v35 = vpop.f32.mrf.mxu0 }
 0x13e   :  { %v10769_v30 = vpop.f32.mrf.mxu1  ;;  %9124 = vmatprep.mubr.msk.f32.mxu0 %vm570_vm0, %v10775_v34  ;;  %v10813_v42 = vmul.f32 0.25, %v239_v35 }
 0x13f   :  { %v241_v37 = vpop.f32.mrf.mxu0 }
 0x140   :  { %v10773_v33 = vpop.f32.mrf.mxu1  ;;  %v10823_v46 = vmul.f32 0.25, %v241_v37 }
 0x141   :  { %v245_v39 = vpop.f32.mrf.mxu0 }
 0x142   :  { %v10779_v36 = vpop.f32.mrf.mxu1  ;;  %v10817_v43 = vmul.f32 0.25, %v245_v39 }
 0x143   :  { %9102 = vmatprep.subr.msk.mxu1 %vm570_vm0, %v10779_v36  ;;  %v247_v40 = vpop.f32.mrf.mxu0 }
 0x144   :  { %v10785_v38 = vpop.f32.mrf.mxu1  ;;  %9103 = vmatpush3.xpose.msk.msra.mxu1 %vm570_vm0, %v10779_v36  ;;  %v10821_v44 = vmul.f32 0.25, %v247_v40  ;;  %v10917_v40 = vld [vmem:[#allocation13 + $0x18] sm:$0xff] }
 0x145   :  { %9104 = vmatprep.subr.msk.mxu1 %vm570_vm0, %v10769_v30  ;;  %9116 = vmatprep.subr.msk.mxu0 %vm570_vm0, %v10785_v38 }
 0x146   :  { %9117 = vmatpush3.xpose.msk.msra.mxu0 %vm570_vm0, %v10785_v38  ;;  %v251_v41 = vpop.f32.mrf.mxu0  ;;  %v10873_v61 = vpop.f32.mrf.mxu1 }
 0x147   :  { %9118 = vmatprep.subr.msk.mxu0 %vm570_vm0, %v10773_v33  ;;  %v10827_v47 = vmul.f32 0.25, %v251_v41 }
 0x148   :  { %9105 = vmatpush3.xpose.msk.msra.mxu1 %vm570_vm0, %v10769_v30  ;;  %v253_v45 = vpop.f32.mrf.mxu0  ;;  %v10875_v62 = vpop.f32.mrf.mxu1 }
 0x149   :  { %9106 = vmatprep.subr.msk.mxu1 %vm570_vm0, %v10765_v27  ;;  %v10833_v48 = vmul.f32 0.25, %v253_v45  ;;  %13336 = vst [vmem:[#allocation26_spill] sm:$0xff] %v10875_v62 }
 0x14a   :  { %9119 = vmatpush3.xpose.msk.msra.mxu0 %vm570_vm0, %v10773_v33  ;;  %v10877_v63 = vpop.f32.mrf.mxu1 }
 0x14b   :  { %9120 = vmatprep.subr.msk.mxu0 %vm570_vm0, %v10767_v28  ;;  %v10841_v49 = vpop.f32.mrf.mxu0 }
 0x14c   :  { %9107 = vmatpush3.xpose.msk.msra.mxu1 %vm570_vm0, %v10765_v27  ;;  %v10879_v1 = vpop.f32.mrf.mxu1 }
 0x14d   :  { %9108 = vmatprep.subr.msk.mxu1 %vm570_vm0, %v10761_v0  ;;  %v10843_v50 = vpop.f32.mrf.mxu0  ;;  %13337 = vst [vmem:[#allocation27_spill] sm:$0xff] %v10879_v1 }
 0x14e   :  { %9121 = vmatpush3.xpose.msk.msra.mxu0 %vm570_vm0, %v10767_v28  ;;  %13332 = vst [vmem:[#allocation22_spill] sm:$0xff] %v10843_v50  ;;  %v10881_v2 = vpop.f32.mrf.mxu1 }
 0x14f   :  { %9122 = vmatprep.subr.msk.mxu0 %vm570_vm0, %v10763_v26  ;;  %v10845_v51 = vpop.f32.mrf.mxu0 }
 0x150   :  { %9109 = vmatpush3.xpose.msk.msra.mxu1 %vm570_vm0, %v10761_v0  ;;  %v10883_v3 = vpop.f32.mrf.mxu1 }
 0x151   :  { %v10847_v52 = vpop.f32.mrf.mxu0  ;;  %13338 = vst [vmem:[#allocation28_spill] sm:$0xff] %v10883_v3 }
 0x152   :  { %9123 = vmatpush3.xpose.msk.msra.mxu0 %vm570_vm0, %v10763_v26  ;;  %13333 = vst [vmem:[#allocation23_spill] sm:$0xff] %v10847_v52  ;;  %v10887_v5 = vpop.f32.mrf.mxu1 }
 0x153   :  { %9111 = vmatmul.mubr.msk.f32.vlgmr.msra.gmra.mxu1 %vm570_vm0, %v10813_v42  ;;  %v10849_v53 = vpop.f32.mrf.mxu0 }
 0x154   :  { %9113 = vmatprep.mubr.msk.f32.mxu1 %vm570_vm0, %v10817_v43  ;;  %v10891_v7 = vpop.f32.mrf.mxu1 }
 0x155   :  { %9125 = vmatmul.mubr.msk.f32.vlgmr.msra.gmra.mxu0 %vm570_vm0, %v10823_v46  ;;  %v10851_v54 = vpop.f32.mrf.mxu0  ;;  %13341 = vst [vmem:[#allocation31_spill] sm:$0xff] %v10891_v7 }
 0x156   :  { %9127 = vmatprep.mubr.msk.f32.mxu0 %vm570_vm0, %v10821_v44  ;;  %13334 = vst [vmem:[#allocation24_spill] sm:$0xff] %v10851_v54 }
 0x157   :  { %9114 = vmatmul.mubr.msk.f32.gmra.mxu1 %vm570_vm0, %v10827_v47  ;;  %v10853_v55 = vpop.f32.mrf.mxu0 }
 0x159   :  { %9128 = vmatmul.mubr.msk.f32.gmra.mxu0 %vm570_vm0, %v10833_v48  ;;  %v10855_v56 = vpop.f32.mrf.mxu0 }
 0x15a   :  { %13335 = vst [vmem:[#allocation25_spill] sm:$0xff] %v10855_v56 }
 0x15f   :  { %v10857_v57 = vpop.f32.mrf.mxu0 }
 0x161   :  { %v10859_v58 = vpop.f32.mrf.mxu0 }
 0x163   :  { %v10861_v59 = vpop.f32.mrf.mxu0 }
 0x164   :  { %9130 = vmatprep.subr.mxu1 %v10861_v59 }
 0x165   :  { %v10864_v60 = vpop.f32.mrf.mxu0  ;;  %9131 = vmatpush3.msra.mxu1 %v10861_v59 }
 0x166   :  { %9132 = vmatprep.subr.mxu1 %v10864_v60 }
 0x167   :  { %9133 = vmatpush3.msra.mxu1 %v10864_v60  ;;  %v10885_v4 = vpop.f32.mrf.mxu0 }
 0x168   :  { %9134 = vmatprep.subr.mxu1 %v10857_v57  ;;  %13339 = vst [vmem:[#allocation29_spill] sm:$0xff] %v10885_v4 }
 0x169   :  { %9135 = vmatpush3.msra.mxu1 %v10857_v57  ;;  %v10889_v6 = vpop.f32.mrf.mxu0 }
 0x16a   :  { %9136 = vmatprep.subr.mxu1 %v10859_v58  ;;  %13340 = vst [vmem:[#allocation30_spill] sm:$0xff] %v10889_v6 }
 0x16b   :  { %9137 = vmatpush3.msra.mxu1 %v10859_v58  ;;  %v10893_v8 = vpop.f32.mrf.mxu0 }
 0x16d   :  { %v10895_v9 = vpop.f32.mrf.mxu0 }
 0x16e   :  { %13342 = vst [vmem:[#allocation32_spill] sm:$0xff] %v10895_v9 }
 0x213   :  { %v9112_v10 = vpop.f32.mrf.mxu1 }
 0x214   :  { %v790_v19 = vadd.f32 %v9112_v10, %v10899_v12  ;;  %v10921_v10 = vld [vmem:[#allocation13 + $0x10] sm:$0xff] }
 0x215   :  { %v661_v13 = vpop.f32.mrf.mxu1  ;;  %v9126_v14 = vpop.f32.mrf.mxu0 }
 0x216   :  { %v789_v16 = vadd.f32 %v661_v13, %v10897_v11  ;;  %v794_v24 = vadd.f32 %v9126_v14, %v10904_v17  ;;  %v801_v37 = vsel %vm797_vm1, %v790_v19, -inf }
 0x217   :  { %v770_v18 = vpop.f32.mrf.mxu0  ;;  %v9115_v35 = vpop.f32.mrf.mxu1 }
 0x218   :  { %v793_v20 = vadd.f32 %v770_v18, %v10901_v15  ;;  %v798_v21 = vsel %vm797_vm1, %v789_v16, -inf  ;;  %v813_v41 = vsel %vm797_vm1, %v794_v24, -inf  ;;  %v792_v14 = vadd.f32 %v9115_v35, %v10917_v40 }
 0x219   :  { %799 = vmax.xlane.f32.xlu1 %v798_v21  ;;  %v9129_v23 = vpop.f32.mrf.mxu0  ;;  %v671_v13 = vpop.f32.mrf.mxu1 }
 0x21a   :  { %v810_v25 = vsel %vm797_vm1, %v793_v20, -inf  ;;  %v796_v39 = vadd.f32 %v9129_v23, %v10909_v22  ;;  %v791_v21 = vadd.f32 %v671_v13, %v10921_v10 }
 0x21b   :  { %811 = vmax.xlane.f32.xlu0 %v810_v25  ;;  %v780_v32 = vpop.f32.mrf.mxu0  ;;  %v807_v25 = vsel %vm797_vm1, %v792_v14, -inf }
 0x21c   :  { %v795_v45 = vadd.f32 %v780_v32, %v10913_v29  ;;  %v819_v18 = vsel %vm797_vm1, %v796_v39, -inf }
 0x21d   :  { %802 = vmax.xlane.f32.xlu1 %v801_v37  ;;  %v804_v37 = vsel %vm797_vm1, %v791_v21, -inf }
 0x21e   :  { %v816_v23 = vsel %vm797_vm1, %v795_v45, -inf }
 0x21f   :  { %814 = vmax.xlane.f32.xlu0 %v813_v41 }
 0x221   :  { %820 = vmax.xlane.f32.xlu1 %v819_v18 }
 0x223   :  { %817 = vmax.xlane.f32.xlu0 %v816_v23 }
 0x225   :  { %808 = vmax.xlane.f32.xlu1 %v807_v25 }
 0x227   :  { %805 = vmax.xlane.f32.xlu0 %v804_v37 }
 0x236   :  { %1010 = vrot.lane.b32.xlu1 %v10779_v36, %s10631_s5 }
 0x23a   :  { %1125 = vrot.lane.b32.xlu1 %v10773_v33, %s10631_s5 }
 0x23d   :  { %1127 = vrot.lane.b32.xlu0 %v10785_v38, %s10631_s5 }
 0x23e   :  { %1008 = vrot.lane.b32.xlu1 %v10769_v30, %s10631_s5 }
 0x241   :  { %1123 = vrot.lane.b32.xlu0 %v10767_v28, %s10631_s5 }
 0x242   :  { %1006 = vrot.lane.b32.xlu1 %v10765_v27, %s10631_s5 }
 0x2a2   :  { %v800_v32 = vpop.xlane.xlu1 %799 }
 0x2a3   :  { %v822_v35 = vsub.f32 %v789_v16, %v800_v32 }
 0x2a4   :  { %v812_v41 = vpop.xlane.xlu0 %811 }
 0x2a5   :  { %v830_v13 = vmul.f32 1.442695, %v822_v35  ;;  %v826_v18 = vsub.f32 %v793_v20, %v812_v41 }
 0x2a6   :  { %v803_v23 = vpop.xlane.xlu1 %802 }
 0x2a7   :  { %9881 = vpow2.f32 %v830_v13  ;;  %v838_v25 = vmul.f32 1.442695, %v826_v18  ;;  %v823_v37 = vsub.f32 %v790_v19, %v803_v23 }
 0x2a8   :  { %v815_v56 = vpop.xlane.xlu0 %814 }
 0x2a9   :  { %9883 = vpow2.f32 %v838_v25  ;;  %v832_v54 = vmul.f32 1.442695, %v823_v37  ;;  %v827_v52 = vsub.f32 %v794_v24, %v815_v56 }
 0x2aa   :  { %v821_v62 = vpop.xlane.xlu1 %820 }
 0x2ab   :  { %9885 = vpow2.f32 %v832_v54  ;;  %v840_v1 = vmul.f32 1.442695, %v827_v52  ;;  %v829_v50 = vsub.f32 %v796_v39, %v821_v62 }
 0x2ac   :  { %v818_v3 = vpop.xlane.xlu0 %817 }
 0x2ad   :  { %9887 = vpow2.f32 %v840_v1  ;;  %v828_v6 = vsub.f32 %v795_v45, %v818_v3  ;;  %v844_v32 = vmul.f32 1.442695, %v829_v50 }
 0x2ae   :  { %v809_v7 = vpop.xlane.xlu1 %808 }
 0x2af   :  { %v825_v16 = vsub.f32 %v792_v14, %v809_v7  ;;  %v842_v19 = vmul.f32 1.442695, %v828_v6 }
 0x2b0   :  { %v806_v35 = vpop.xlane.xlu0 %805 }
 0x2b1   :  { %v836_v20 = vmul.f32 1.442695, %v825_v16  ;;  %v824_v41 = vsub.f32 %v791_v21, %v806_v35 }
 0x2b2   :  { %v10941_v13 = vpop.permute.xlu1 %1010 }
 0x2b3   :  { %9889 = vpow2.f32 %v836_v20  ;;  %v834_v18 = vmul.f32 1.442695, %v824_v41  ;;  %9144 = vmatprep.subr.msk.mxu1 %vm570_vm0, %v10941_v13 }
 0x2b4   :  { %v10945_v54 = vpop.eup %9881  ;;  %9891 = vpow2.f32 %v844_v32  ;;  %v1128_v52 = vpop.permute.xlu0 %1127 }
 0x2b5   :  { %9893 = vpow2.f32 %v834_v18  ;;  %9158 = vmatprep.subr.msk.mxu0 %vm570_vm0, %v1128_v52  ;;  %v846_v50 = vsel %vm797_vm1, %v10945_v54, 0.0 }
 0x2b6   :  { %v9884_v56 = vpop.eup %9883  ;;  %v1126_v62 = vpop.permute.xlu1 %1125  ;;  %847 = vadd.xlane.f32.xlu0 %v846_v50  ;;  %9159 = vmatpush3.xpose.msk.msra.mxu0 %vm570_vm0, %v1128_v52  ;;  %9895 = vpow2.f32 %v842_v19 }
 0x2b7   :  { %9160 = vmatprep.subr.msk.mxu0 %vm570_vm0, %v1126_v62  ;;  %v858_v6 = vsel %vm797_vm1, %v9884_v56, 0.0 }
 0x2b8   :  { %v10952_v1 = vpop.eup %9885  ;;  %v1124_v24 = vpop.permute.xlu0 %1123 }
 0x2b9   :  { %v849_v3 = vsel %vm797_vm1, %v10952_v1, 0.0 }
 0x2ba   :  { %v9888_v7 = vpop.eup %9887  ;;  %850 = vadd.xlane.f32.xlu1 %v849_v3  ;;  %859 = vadd.xlane.f32.xlu0 %v858_v6  ;;  %v1009_v35 = vpop.permute.xlu1 %1008 }
 0x2bb   :  { %9161 = vmatpush3.xpose.msk.msra.mxu0 %vm570_vm0, %v1126_v62  ;;  %v861_v39 = vsel %vm797_vm1, %v9888_v7, 0.0 }
 0x2bc   :  { %9162 = vmatprep.subr.msk.mxu0 %vm570_vm0, %v1124_v24 }
 0x2be   :  { %862 = vadd.xlane.f32.xlu1 %v861_v39  ;;  %v1007_v20 = vpop.permute.xlu1 %1006 }
 0x2bf   :  { %9163 = vmatpush3.xpose.msk.msra.mxu0 %vm570_vm0, %v1124_v24 }
 0x2c0   :  { %v10961_v45 = vpop.eup %9889 }
 0x2c1   :  { %v10963_v14 = vpop.eup %9891  ;;  %v855_v21 = vsel %vm797_vm1, %v10961_v45, 0.0 }
 0x2c2   :  { %v10967_v23 = vpop.eup %9893  ;;  %856 = vadd.xlane.f32.xlu1 %v855_v21  ;;  %v867_v16 = vsel %vm797_vm1, %v10963_v14, 0.0  ;;  %v11000_v21 = vstv %s13316_s0  ;;  %s10632_s0 = smov 96  }
 0x2c3   :  { %v852_v25 = vsel %vm797_vm1, %v10967_v23, 0.0  ;;  %v10971_v37 = vpop.eup %9895 }
 0x2c4   :  { %853 = vadd.xlane.f32.xlu0 %v852_v25  ;;  %v864_v32 = vsel %vm797_vm1, %v10971_v37, 0.0 }
 0x2c6   :  { %868 = vadd.xlane.f32.xlu1 %v867_v16 }
 0x2c8   :  { %865 = vadd.xlane.f32.xlu0 %v864_v32 }
 0x2d7   :  { %1004 = vrot.lane.b32.xlu1 %v10761_v0, %s10631_s5 }
 0x2db   :  { %1115 = vrot.lane.b32.xlu1 %v10823_v46, %s10631_s5 }
 0x2de   :  { %1121 = vrot.lane.b32.xlu0 %v10763_v26, %s10631_s5 }
 0x2df   :  { %998 = vrot.lane.b32.xlu1 %v10813_v42, %s10631_s5 }
 0x2e2   :  { %1113 = vrot.lane.b32.xlu0 %v10775_v34, %s10631_s5 }
 0x2e3   :  { %1119 = vrot.lane.b32.xlu1 %v10833_v48, %s10631_s5 }
 0x2e6   :  { %996 = vrot.lane.b32.xlu0 %v10771_v31, %s10631_s5 }
 0x2e7   :  { %1002 = vrot.lane.b32.xlu1 %v10827_v47, %s10631_s5 }
 0x2ea   :  { %1117 = vrot.lane.b32.xlu0 %v10821_v44, %s10631_s5 }
 0x2ee   :  { %1000 = vrot.lane.b32.xlu0 %v10817_v43, %s10631_s5 }
 0x33f   :  { %v848_v41 = vpop.xlane.xlu0 %847 }
 0x340   :  { %9897 = vrcp.f32 %v848_v41 }
 0x343   :  { %v851_v19 = vpop.xlane.xlu1 %850  ;;  %v860_v18 = vpop.xlane.xlu0 %859 }
 0x344   :  { %9899 = vrcp.f32 %v860_v18 }
 0x345   :  { %9901 = vrcp.f32 %v851_v19 }
 0x347   :  { %v863_v52 = vpop.xlane.xlu1 %862 }
 0x348   :  { %9903 = vrcp.f32 %v863_v52 }
 0x34b   :  { %v857_v50 = vpop.xlane.xlu1 %856 }
 0x34d   :  { %v854_v62 = vpop.xlane.xlu0 %853  ;;  %v9898_v6 = vpop.eup %9897 }
 0x34e   :  { %v871_v18 = vmul.f32 %v9898_v6, %v10945_v54 }
 0x34f   :  { %v869_v3 = vpop.xlane.xlu1 %868 }
 0x350   :  { %9905 = vrcp.f32 %v869_v3 }
 0x351   :  { %9907 = vrcp.f32 %v854_v62  ;;  %v866_v24 = vpop.xlane.xlu0 %865  ;;  %v9900_v39 = vpop.eup %9899 }
 0x352   :  { %9909 = vrcp.f32 %v866_v24  ;;  %v879_v16 = vmul.f32 %v9900_v39, %v9884_v56  ;;  %v9902_v32 = vpop.eup %9901 }
 0x353   :  { %9911 = vrcp.f32 %v857_v50  ;;  %v1005_v25 = vpop.permute.xlu1 %1004  ;;  %v873_v9 = vmul.f32 %v9902_v32, %v10952_v1 }
 0x354   :  { %v887_v52 = vmul.f32 %v11000_v21, %v879_v16 }
 0x355   :  { %v9904_v41 = vpop.eup %9903  ;;  %v1122_v19 = vpop.permute.xlu0 %1121 }
 0x356   :  { %v881_v3 = vmul.f32 %v9904_v41, %v9888_v7  ;;  %9164 = vmatprep.subr.msk.mxu0 %vm570_vm0, %v1122_v19  ;;  %v891_v4 = vsub.f32 %v871_v18, %v887_v52 }
 0x357   :  { %v1116_v62 = vpop.permute.xlu1 %1115  ;;  %9165 = vmatpush3.xpose.msk.msra.mxu0 %vm570_vm0, %v1122_v19 }
 0x358   :  { %v888_v50 = vmul.f32 %v11000_v21, %v881_v3  ;;  %9138 = vmatprep.mubr.msk.f32.mxu1 %vm797_vm1, %v891_v4 }
 0x359   :  { %v1114_v56 = vpop.permute.xlu0 %1113 }
 0x35a   :  { %9166 = vmatprep.mubr.msk.f32.mxu0 %vm570_vm0, %v1114_v56  ;;  %v892_v24 = vsub.f32 %v873_v9, %v888_v50 }
 0x35b   :  { %9167 = vmatmul.mubr.msk.f32.vlgmr.msra.gmra.mxu0 %vm570_vm0, %v1116_v62  ;;  %v999_v54 = vpop.permute.xlu1 %998 }
 0x35c   :  { %9139 = vmatmul.mubr.msk.f32.vlgmr.msra.gmra.mxu1 %vm797_vm1, %v892_v24 }
 0x35d   :  { %v9906_v7 = vpop.eup %9905  ;;  %9145 = vmatpush3.xpose.msk.msra.mxu1 %vm570_vm0, %v10941_v13  ;;  %v997_v6 = vpop.permute.xlu0 %996 }
 0x35e   :  { %v9908_v39 = vpop.eup %9907  ;;  %9146 = vmatprep.subr.msk.mxu1 %vm570_vm0, %v1009_v35  ;;  %v885_v1 = vmul.f32 %v9906_v7, %v10963_v14 }
 0x35f   :  { %v9910_v4 = vpop.eup %9909  ;;  %v1120_v19 = vpop.permute.xlu1 %1119  ;;  %v875_v13 = vmul.f32 %v9908_v39, %v10967_v23 }
 0x360   :  { %v9912_v16 = vpop.eup %9911  ;;  %v883_v32 = vmul.f32 %v9910_v4, %v10971_v37  ;;  %v890_v41 = vmul.f32 %v11000_v21, %v885_v1 }
 0x361   :  { %9147 = vmatpush3.xpose.msk.msra.mxu1 %vm570_vm0, %v1009_v35  ;;  %v1118_v9 = vpop.permute.xlu0 %1117  ;;  %v877_v14 = vmul.f32 %v9912_v16, %v10961_v45 }
 0x362   :  { %9148 = vmatprep.subr.msk.mxu1 %vm570_vm0, %v1007_v20  ;;  %9169 = vmatprep.mubr.msk.f32.mxu0 %vm570_vm0, %v1118_v9  ;;  %v889_v18 = vmul.f32 %v11000_v21, %v883_v32 }
 0x363   :  { %9170 = vmatmul.mubr.msk.f32.gmra.mxu0 %vm570_vm0, %v1120_v19  ;;  %v894_v37 = vsub.f32 %v877_v14, %v890_v41  ;;  %v1003_v45 = vpop.permute.xlu1 %1002 }
 0x364   :  { %v893_v52 = vsub.f32 %v875_v13, %v889_v18 }
 0x365   :  { %9149 = vmatpush3.xpose.msk.msra.mxu1 %vm570_vm0, %v1007_v20  ;;  %v1001_v23 = vpop.permute.xlu0 %1000 }
 0x366   :  { %9150 = vmatprep.subr.msk.mxu1 %vm570_vm0, %v1005_v25  ;;  %9141 = vmatprep.mubr.msk.f32.mxu1 %vm797_vm1, %v893_v52 }
 0x367   :  { %9142 = vmatmul.mubr.msk.f32.gmra.mxu1 %vm797_vm1, %v894_v37 }
 0x368   :  { %9152 = vmatprep.mubr.msk.f32.mxu1 %vm570_vm0, %v997_v6 }
 0x369   :  { %9151 = vmatpush3.xpose.msk.msra.mxu1 %vm570_vm0, %v1005_v25 }
 0x36c   :  { %9153 = vmatmul.mubr.msk.f32.vlgmr.msra.gmra.mxu1 %vm570_vm0, %v999_v54 }
 0x36d   :  { %9155 = vmatprep.mubr.msk.f32.mxu1 %vm570_vm0, %v1001_v23 }
 0x370   :  { %9156 = vmatmul.mubr.msk.f32.gmra.mxu1 %vm570_vm0, %v1003_v45 }
 0x41b   :  { %v9168_v35 = vpop.f32.mrf.mxu0 }
 0x41c   :  { %v1235_v20 = vadd.f32 %v9168_v35, %v10904_v17  ;;  %v9140_v3 = vpop.f32.mrf.mxu1 }
 0x41d   :  { %993 = vst.msk [vmem:[#allocation2 + $0x8] sm:$0xff] %vm570_vm0, %v9140_v3  ;;  %v1211_v62 = vpop.f32.mrf.mxu0 }
 0x41e   :  { %v1234_v50 = vadd.f32 %v1211_v62, %v10901_v15  ;;  %v973_v56 = vpop.f32.mrf.mxu1  ;;  %v1253_v25 = vsel %vm797_vm1, %v1235_v20, -inf }
 0x41f   :  { %992 = vst.msk [vmem:[#allocation2] sm:$0xff] %vm570_vm0, %v973_v56  ;;  %1254 = vmax.xlane.f32.xlu1 %v1253_v25 }
 0x420   :  { %v1250_v24 = vsel %vm797_vm1, %v1234_v50, -inf }
 0x421   :  { %1251 = vmax.xlane.f32.xlu0 %v1250_v24 }
 0x423   :  { %v9171_v54 = vpop.f32.mrf.mxu0 }
 0x424   :  { %v1237_v7 = vadd.f32 %v9171_v54, %v10909_v22 }
 0x425   :  { %v1221_v6 = vpop.f32.mrf.mxu0 }
 0x426   :  { %v1236_v39 = vadd.f32 %v1221_v6, %v10913_v29  ;;  %v1259_v1 = vsel %vm797_vm1, %v1237_v7, -inf }
 0x427   :  { %v9143_v4 = vpop.f32.mrf.mxu1  ;;  %1260 = vmax.xlane.f32.xlu1 %v1259_v1 }
 0x428   :  { %995 = vst.msk [vmem:[#allocation2 + $0x18] sm:$0xff] %vm570_vm0, %v9143_v4  ;;  %v1256_v16 = vsel %vm797_vm1, %v1236_v39, -inf }
 0x429   :  { %v983_v32 = vpop.f32.mrf.mxu1  ;;  %1257 = vmax.xlane.f32.xlu0 %v1256_v16 }
 0x42a   :  { %994 = vst.msk [vmem:[#allocation2 + $0x10] sm:$0xff] %vm570_vm0, %v983_v32 }
 0x42c   :  { %v9154_v25 = vpop.f32.mrf.mxu1 }
 0x438   :  { %1342 = vrot.lane.b32.xlu1 %v10864_v60, %s10631_s5 }
 0x43c   :  { %1340 = vrot.lane.b32.xlu1 %v10857_v57, %s10631_s5 }
 0x43f   :  { %1344 = vrot.lane.b32.xlu0 %v10861_v59, %s10631_s5 }
 0x440   :  { %1338 = vrot.lane.b32.xlu1 %v10859_v58, %s10631_s5 }
 0x443   :  { %1599 = vrot.lane.b32.xlu0 %v10785_v38, %s10632_s0 }
 0x444   :  { %1482 = vrot.lane.b32.xlu1 %v10779_v36, %s10632_s0 }
 0x4a8   :  { %v1255_v9 = vpop.xlane.xlu1 %1254 }
 0x4a9   :  { %v1267_v41 = vsub.f32 %v1235_v20, %v1255_v9 }
 0x4aa   :  { %v1252_v19 = vpop.xlane.xlu0 %1251 }
 0x4ab   :  { %v1280_v13 = vmul.f32 1.442695, %v1267_v41  ;;  %v1266_v18 = vsub.f32 %v1234_v50, %v1252_v19 }
 0x4ad   :  { %9913 = vpow2.f32 %v1280_v13  ;;  %v1278_v14 = vmul.f32 1.442695, %v1266_v18  ;;  %v1231_v13 = vadd.f32 %v9154_v25, %v10899_v12 }
 0x4af   :  { %9915 = vpow2.f32 %v1278_v14 }
 0x4b0   :  { %v1261_v52 = vpop.xlane.xlu1 %1260 }
 0x4b1   :  { %v1269_v37 = vsub.f32 %v1237_v7, %v1261_v52  ;;  %v1094_v7 = vpop.f32.mrf.mxu1 }
 0x4b2   :  { %v1258_v23 = vpop.xlane.xlu0 %1257  ;;  %v1230_v52 = vadd.f32 %v1094_v7, %v10897_v11 }
 0x4b3   :  { %v1284_v45 = vmul.f32 1.442695, %v1269_v37  ;;  %v1268_v35 = vsub.f32 %v1236_v39, %v1258_v23  ;;  %v9157_v4 = vpop.f32.mrf.mxu1  ;;  %v1241_v37 = vsel %vm797_vm1, %v1231_v13, -inf }
 0x4b4   :  { %v1343_v3 = vpop.permute.xlu1 %1342  ;;  %v1233_v9 = vadd.f32 %v9157_v4, %v10917_v40 }
 0x4b5   :  { %9917 = vpow2.f32 %v1284_v45  ;;  %v1282_v62 = vmul.f32 1.442695, %v1268_v35  ;;  %v1104_v23 = vpop.f32.mrf.mxu1  ;;  %v1238_v35 = vsel %vm797_vm1, %v1230_v52, -inf }
 0x4b6   :  { %v1345_v56 = vpop.permute.xlu0 %1344  ;;  %v1247_v14 = vsel %vm797_vm1, %v1233_v9, -inf  ;;  %v1232_v45 = vadd.f32 %v1104_v23, %v10921_v10 }
 0x4b7   :  { %9919 = vpow2.f32 %v1282_v62  ;;  %9172 = vmatprep.subr.mxu1 %v1345_v56 }
 0x4b8   :  { %v1341_v24 = vpop.permute.xlu1 %1340  ;;  %9173 = vmatpush3.msra.mxu1 %v1345_v56 }
 0x4b9   :  { %9174 = vmatprep.subr.mxu1 %v1343_v3 }
 0x4ba   :  { %v11058_v20 = vpop.eup %9913  ;;  %9175 = vmatpush3.msra.mxu1 %v1343_v3  ;;  %v11066_v1 = vpop.permute.xlu0 %1599  ;;  %v1244_v3 = vsel %vm797_vm1, %v1232_v45, -inf }
 0x4bb   :  { %9176 = vmatprep.subr.mxu1 %v1341_v24  ;;  %v1301_v50 = vsel %vm797_vm1, %v11058_v20, 0.0 }
 0x4bc   :  { %v11062_v54 = vpop.eup %9915  ;;  %1302 = vadd.xlane.f32.xlu1 %v1301_v50  ;;  %v1339_v6 = vpop.permute.xlu1 %1338  ;;  %9177 = vmatpush3.msra.mxu1 %v1341_v24 }
 0x4bd   :  { %9178 = vmatprep.subr.mxu1 %v1339_v6  ;;  %v1298_v39 = vsel %vm797_vm1, %v11062_v54, 0.0 }
 0x4be   :  { %1299 = vadd.xlane.f32.xlu0 %v1298_v39  ;;  %9179 = vmatpush3.msra.mxu1 %v1339_v6 }
 0x4bf   :  { %9200 = vmatprep.subr.msk.mxu1 %vm570_vm0, %v11066_v1 }
 0x4c0   :  { %v1483_v16 = vpop.permute.xlu1 %1482 }
 0x4c1   :  { %9186 = vmatprep.subr.msk.mxu0 %vm570_vm0, %v1483_v16 }
 0x4c2   :  { %v11071_v32 = vpop.eup %9917  ;;  %9187 = vmatpush3.xpose.msk.msra.mxu0 %vm570_vm0, %v1483_v16 }
 0x4c3   :  { %v1307_v41 = vsel %vm797_vm1, %v11071_v32, 0.0 }
 0x4c4   :  { %v11077_v19 = vpop.eup %9919  ;;  %1308 = vadd.xlane.f32.xlu1 %v1307_v41 }
 0x4c5   :  { %v1304_v18 = vsel %vm797_vm1, %v11077_v19, 0.0 }
 0x4c6   :  { %1305 = vadd.xlane.f32.xlu0 %v1304_v18 }
 0x4c8   :  { %1248 = vmax.xlane.f32.xlu1 %v1247_v14 }
 0x4ca   :  { %1242 = vmax.xlane.f32.xlu0 %v1241_v37 }
 0x4ce   :  { %1239 = vmax.xlane.f32.xlu0 %v1238_v35 }
 0x4d2   :  { %1245 = vmax.xlane.f32.xlu0 %v1244_v3 }
 0x4d9   :  { %1480 = vrot.lane.b32.xlu1 %v10769_v30, %s10632_s0 }
 0x4e8   :  { %1597 = vrot.lane.b32.xlu0 %v10773_v33, %s10632_s0 }
 0x545   :  { %v1303_v62 = vpop.xlane.xlu1 %1302 }
 0x547   :  { %v1300_v56 = vpop.xlane.xlu0 %1299 }
 0x54d   :  { %v11092_v25 = vpop.xlane.xlu1 %1308 }
 0x54f   :  { %v11094_v24 = vpop.xlane.xlu0 %1305 }
 0x551   :  { %v1249_v50 = vpop.xlane.xlu1 %1248 }
 0x553   :  { %v1243_v7 = vpop.xlane.xlu0 %1242 }
 0x554   :  { %v1263_v6 = vsub.f32 %v1231_v13, %v1243_v7  ;;  %v1265_v13 = vsub.f32 %v1233_v9, %v1249_v50 }
 0x555   :  { %v1481_v39 = vpop.permute.xlu1 %1480 }
 0x556   :  { %v1272_v4 = vmul.f32 1.442695, %v1263_v6  ;;  %9188 = vmatprep.subr.msk.mxu0 %vm570_vm0, %v1481_v39  ;;  %v1276_v7 = vmul.f32 1.442695, %v1265_v13 }
 0x557   :  { %9189 = vmatpush3.xpose.msk.msra.mxu0 %vm570_vm0, %v1481_v39  ;;  %v1240_v16 = vpop.xlane.xlu0 %1239 }
 0x558   :  { %9921 = vpow2.f32 %v1272_v4  ;;  %v1262_v41 = vsub.f32 %v1230_v52, %v1240_v16 }
 0x55a   :  { %v1270_v18 = vmul.f32 1.442695, %v1262_v41 }
 0x55b   :  { %v1246_v3 = vpop.xlane.xlu0 %1245 }
 0x55c   :  { %9923 = vpow2.f32 %v1270_v18  ;;  %v1264_v52 = vsub.f32 %v1232_v45, %v1246_v3 }
 0x55d   :  { %9925 = vpow2.f32 %v1276_v7 }
 0x55e   :  { %v1274_v6 = vmul.f32 1.442695, %v1264_v52 }
 0x55f   :  { %v1598_v9 = vpop.permute.xlu0 %1597 }
 0x560   :  { %9927 = vpow2.f32 %v1274_v6 }
 0x561   :  { %9929 = vrcp.f32 %v1300_v56 }
 0x562   :  { %9931 = vrcp.f32 %v1303_v62 }
 0x565   :  { %v9922_v14 = vpop.eup %9921 }
 0x566   :  { %v1289_v37 = vsel %vm797_vm1, %v9922_v14, 0.0 }
 0x567   :  { %1290 = vadd.xlane.f32.xlu1 %v1289_v37 }
 0x569   :  { %v9924_v23 = vpop.eup %9923 }
 0x56a   :  { %v1286_v35 = vsel %vm797_vm1, %v9924_v23, 0.0  ;;  %v11104_v39 = vpop.eup %9925 }
 0x56b   :  { %1287 = vadd.xlane.f32.xlu0 %v1286_v35  ;;  %v1295_v4 = vsel %vm797_vm1, %v11104_v39, 0.0 }
 0x56d   :  { %v11108_v16 = vpop.eup %9927 }
 0x56e   :  { %v1292_v41 = vsel %vm797_vm1, %v11108_v16, 0.0  ;;  %v9930_v37 = vpop.eup %9929 }
 0x56f   :  { %v9932_v35 = vpop.eup %9931  ;;  %v1319_v3 = vmul.f32 %v9930_v37, %v11062_v54 }
 0x570   :  { %v1321_v7 = vmul.f32 %v9932_v35, %v11058_v20 }
 0x571   :  { %v1326_v6 = vmul.f32 %v1319_v3, %v11000_v21 }
 0x578   :  { %1478 = vrot.lane.b32.xlu1 %v10765_v27, %s10632_s0 }
 0x581   :  { %1595 = vrot.lane.b32.xlu0 %v10767_v28, %s10632_s0 }
 0x59c   :  { %1296 = vadd.xlane.f32.xlu1 %v1295_v4  ;;  %v1327_v4 = vmul.f32 %v1321_v7, %v11000_v21 }
 0x5a0   :  { %1293 = vadd.xlane.f32.xlu0 %v1292_v41 }
 0x5ad   :  { %1476 = vrot.lane.b32.xlu1 %v10761_v0, %s10632_s0 }
 0x5b1   :  { %1587 = vrot.lane.b32.xlu1 %v10823_v46, %s10632_s0 }
 0x5b5   :  { %1470 = vrot.lane.b32.xlu1 %v10813_v42, %s10632_s0 }
 0x5b6   :  { %1593 = vrot.lane.b32.xlu0 %v10763_v26, %s10632_s0 }
 0x5b9   :  { %1591 = vrot.lane.b32.xlu1 %v10833_v48, %s10632_s0 }
 0x5ba   :  { %1585 = vrot.lane.b32.xlu0 %v10775_v34, %s10632_s0 }
 0x5bd   :  { %1474 = vrot.lane.b32.xlu1 %v10827_v47, %s10632_s0 }
 0x5be   :  { %1468 = vrot.lane.b32.xlu0 %v10771_v31, %s10632_s0 }
 0x5c2   :  { %1589 = vrot.lane.b32.xlu0 %v10821_v44, %s10632_s0 }
 0x5c6   :  { %1472 = vrot.lane.b32.xlu0 %v10817_v43, %s10632_s0 }
 0x5f0   :  { %v1291_v45 = vpop.xlane.xlu1 %1290 }
 0x5f1   :  { %9933 = vrcp.f32 %v1291_v45 }
 0x5f4   :  { %v1479_v50 = vpop.permute.xlu1 %1478  ;;  %v1288_v18 = vpop.xlane.xlu0 %1287 }
 0x5f5   :  { %9935 = vrcp.f32 %v1288_v18  ;;  %9190 = vmatprep.subr.msk.mxu0 %vm570_vm0, %v1479_v50 }
 0x5f6   :  { %9191 = vmatpush3.xpose.msk.msra.mxu0 %vm570_vm0, %v1479_v50  ;;  %9937 = vrcp.f32 %v11094_v24 }
 0x5f7   :  { %9939 = vrcp.f32 %v11092_v25 }
 0x5f8   :  { %v1596_v54 = vpop.permute.xlu0 %1595 }
 0x5fe   :  { %v9934_v13 = vpop.eup %9933 }
 0x5ff   :  { %v1313_v56 = vmul.f32 %v9934_v13, %v9922_v14 }
 0x601   :  { %v1331_v45 = vsub.f32 %v1313_v56, %v1327_v4 }
 0x602   :  { %v9936_v52 = vpop.eup %9935 }
 0x603   :  { %v1311_v62 = vmul.f32 %v9936_v52, %v9924_v23 }
 0x605   :  { %v1330_v41 = vsub.f32 %v1311_v62, %v1326_v6 }
 0x607   :  { %9180 = vmatprep.mubr.msk.f32.mxu1 %vm797_vm1, %v1330_v41 }
 0x608   :  { %9181 = vmatmul.mubr.msk.f32.vlgmr.msra.gmra.mxu1 %vm797_vm1, %v1331_v45 }
 0x609   :  { %9201 = vmatpush3.xpose.msk.msra.mxu1 %vm570_vm0, %v11066_v1 }
 0x60a   :  { %9202 = vmatprep.subr.msk.mxu1 %vm570_vm0, %v1598_v9 }
 0x60d   :  { %9203 = vmatpush3.xpose.msk.msra.mxu1 %vm570_vm0, %v1598_v9  ;;  %v9938_v9 = vpop.eup %9937 }
 0x60e   :  { %9204 = vmatprep.subr.msk.mxu1 %vm570_vm0, %v1596_v54  ;;  %v9940_v24 = vpop.eup %9939  ;;  %v1323_v35 = vmul.f32 %v9938_v9, %v11077_v19 }
 0x60f   :  { %v1325_v3 = vmul.f32 %v9940_v24, %v11071_v32 }
 0x610   :  { %v1328_v6 = vmul.f32 %v1323_v35, %v11000_v21 }
 0x611   :  { %9205 = vmatpush3.xpose.msk.msra.mxu1 %vm570_vm0, %v1596_v54  ;;  %v1329_v41 = vmul.f32 %v1325_v3, %v11000_v21 }
 0x625   :  { %v1297_v20 = vpop.xlane.xlu1 %1296 }
 0x626   :  { %9941 = vrcp.f32 %v1297_v20 }
 0x629   :  { %v1477_v14 = vpop.permute.xlu1 %1476  ;;  %v1294_v23 = vpop.xlane.xlu0 %1293 }
 0x62a   :  { %9943 = vrcp.f32 %v1294_v23  ;;  %9192 = vmatprep.subr.msk.mxu0 %vm570_vm0, %v1477_v14 }
 0x62b   :  { %9193 = vmatpush3.xpose.msk.msra.mxu0 %vm570_vm0, %v1477_v14 }
 0x62d   :  { %v1588_v1 = vpop.permute.xlu1 %1587  ;;  %v1594_v50 = vpop.permute.xlu0 %1593 }
 0x62e   :  { %9206 = vmatprep.subr.msk.mxu1 %vm570_vm0, %v1594_v50 }
 0x62f   :  { %9207 = vmatpush3.xpose.msk.msra.mxu1 %vm570_vm0, %v1594_v50 }
 0x631   :  { %v1586_v18 = vpop.permute.xlu0 %1585  ;;  %v1471_v37 = vpop.permute.xlu1 %1470 }
 0x633   :  { %v9942_v25 = vpop.eup %9941 }
 0x634   :  { %v1317_v52 = vmul.f32 %v9942_v25, %v11104_v39 }
 0x635   :  { %v1469_v13 = vpop.permute.xlu0 %1468  ;;  %v1592_v56 = vpop.permute.xlu1 %1591 }
 0x636   :  { %9194 = vmatprep.mubr.msk.f32.mxu0 %vm570_vm0, %v1469_v13  ;;  %v1333_v19 = vsub.f32 %v1317_v52, %v1329_v41 }
 0x637   :  { %v9944_v7 = vpop.eup %9943  ;;  %9195 = vmatmul.mubr.msk.f32.vlgmr.msra.gmra.mxu0 %vm570_vm0, %v1471_v37 }
 0x638   :  { %v1315_v62 = vmul.f32 %v9944_v7, %v11108_v16 }
 0x639   :  { %v1590_v4 = vpop.permute.xlu0 %1589  ;;  %v1475_v54 = vpop.permute.xlu1 %1474 }
 0x63a   :  { %v1332_v45 = vsub.f32 %v1315_v62, %v1328_v6 }
 0x63c   :  { %9183 = vmatprep.mubr.msk.f32.mxu1 %vm797_vm1, %v1332_v45 }
 0x63d   :  { %9184 = vmatmul.mubr.msk.f32.gmra.mxu1 %vm797_vm1, %v1333_v19  ;;  %v1473_v32 = vpop.permute.xlu0 %1472 }
 0x63e   :  { %9197 = vmatprep.mubr.msk.f32.mxu0 %vm570_vm0, %v1473_v32  ;;  %9208 = vmatprep.mubr.msk.f32.mxu1 %vm570_vm0, %v1586_v18 }
 0x63f   :  { %9198 = vmatmul.mubr.msk.f32.gmra.mxu0 %vm570_vm0, %v1475_v54 }
 0x641   :  { %9209 = vmatmul.mubr.msk.f32.vlgmr.msra.gmra.mxu1 %vm570_vm0, %v1588_v1 }
 0x642   :  { %9211 = vmatprep.mubr.msk.f32.mxu1 %vm570_vm0, %v1590_v4 }
 0x645   :  { %9212 = vmatmul.mubr.msk.f32.gmra.mxu1 %vm570_vm0, %v1592_v56 }
 0x6f7   :  { %v9196_v39 = vpop.f32.mrf.mxu0 }
 0x6f8   :  { %v1703_v14 = vadd.f32 %v9196_v39, %v10899_v12 }
 0x6f9   :  { %v1566_v16 = vpop.f32.mrf.mxu0 }
 0x6fa   :  { %v1702_v20 = vadd.f32 %v1566_v16, %v10897_v11  ;;  %v1713_v18 = vsel %vm797_vm1, %v1703_v14, -inf }
 0x6fc   :  { %v1710_v23 = vsel %vm797_vm1, %v1702_v20, -inf }
 0x6fd   :  { %1711 = vmax.xlane.f32.xlu0 %v1710_v23 }
 0x6ff   :  { %v9199_v50 = vpop.f32.mrf.mxu0 }
 0x700   :  { %v1705_v9 = vadd.f32 %v9199_v50, %v10917_v40 }
 0x701   :  { %1714 = vmax.xlane.f32.xlu0 %v1713_v18  ;;  %v1576_v1 = vpop.f32.mrf.mxu0 }
 0x702   :  { %v1704_v24 = vadd.f32 %v1576_v1, %v10921_v10  ;;  %v1719_v37 = vsel %vm797_vm1, %v1705_v9, -inf }
 0x703   :  { %1720 = vmax.xlane.f32.xlu1 %v1719_v37 }
 0x704   :  { %v1716_v25 = vsel %vm797_vm1, %v1704_v24, -inf }
 0x705   :  { %1717 = vmax.xlane.f32.xlu0 %v1716_v25 }
 0x786   :  { %v1712_v11 = vpop.xlane.xlu0 %1711 }
 0x787   :  { %v1734_v12 = vsub.f32 %v1702_v20, %v1712_v11  ;;  %v11202_v20 = vpop.f32.mrf.mxu1 }
 0x788   :  { %13343 = vst [vmem:[#allocation33_spill] sm:$0xff] %v11202_v20 }
 0x789   :  { %v1742_v35 = vmul.f32 1.442695, %v1734_v12 }
 0x78a   :  { %v1715_v13 = vpop.xlane.xlu0 %1714 }
 0x78b   :  { %9945 = vpow2.f32 %v1742_v35  ;;  %v1735_v3 = vsub.f32 %v1703_v14, %v1715_v13  ;;  %v11206_v14 = vpop.f32.mrf.mxu1 }
 0x78c   :  { %v1721_v7 = vpop.xlane.xlu1 %1720 }
 0x78d   :  { %v1744_v40 = vmul.f32 1.442695, %v1735_v3  ;;  %v1737_v52 = vsub.f32 %v1705_v9, %v1721_v7  ;;  %v11208_v23 = vpop.f32.mrf.mxu1 }
 0x78e   :  { %v1718_v56 = vpop.xlane.xlu0 %1717  ;;  %13344 = vst [vmem:[#allocation34_spill] sm:$0xff] %v11208_v23 }
 0x78f   :  { %9947 = vpow2.f32 %v1744_v40  ;;  %v1748_v62 = vmul.f32 1.442695, %v1737_v52  ;;  %v1736_v6 = vsub.f32 %v1704_v24, %v1718_v56  ;;  %v11210_v50 = vpop.f32.mrf.mxu1 }
 0x790   :  { %13345 = vst [vmem:[#allocation35_spill] sm:$0xff] %v11210_v50 }
 0x791   :  { %9949 = vpow2.f32 %v1748_v62  ;;  %v1746_v10 = vmul.f32 1.442695, %v1736_v6  ;;  %v9210_v9 = vpop.f32.mrf.mxu1 }
 0x792   :  { %v1707_v12 = vadd.f32 %v9210_v9, %v10904_v17 }
 0x793   :  { %9951 = vpow2.f32 %v1746_v10  ;;  %v1683_v18 = vpop.f32.mrf.mxu1 }
 0x794   :  { %v1706_v24 = vadd.f32 %v1683_v18, %v10901_v15  ;;  %v1725_v3 = vsel %vm797_vm1, %v1707_v12, -inf }
 0x795   :  { %v9213_v1 = vpop.f32.mrf.mxu1 }
 0x796   :  { %v1722_v11 = vsel %vm797_vm1, %v1706_v24, -inf  ;;  %v1709_v13 = vadd.f32 %v9213_v1, %v10909_v22 }
 0x797   :  { %v1693_v37 = vpop.f32.mrf.mxu1 }
 0x798   :  { %v11176_v4 = vpop.eup %9945  ;;  %v1708_v25 = vadd.f32 %v1693_v37, %v10913_v29  ;;  %v1731_v7 = vsel %vm797_vm1, %v1709_v13, -inf }
 0x799   :  { %v1758_v41 = vsel %vm797_vm1, %v11176_v4, 0.0 }
 0x79a   :  { %1759 = vadd.xlane.f32.xlu0 %v1758_v41  ;;  %v1728_v35 = vsel %vm797_vm1, %v1708_v25, -inf }
 0x79c   :  { %v11180_v45 = vpop.eup %9947 }
 0x79d   :  { %v1761_v19 = vsel %vm797_vm1, %v11180_v45, 0.0 }
 0x79e   :  { %v11184_v32 = vpop.eup %9949  ;;  %1762 = vadd.xlane.f32.xlu1 %v1761_v19 }
 0x79f   :  { %v1767_v39 = vsel %vm797_vm1, %v11184_v32, 0.0 }
 0x7a0   :  { %v11186_v54 = vpop.eup %9951 }
 0x7a1   :  { %v1764_v16 = vsel %vm797_vm1, %v11186_v54, 0.0 }
 0x7a2   :  { %1768 = vadd.xlane.f32.xlu1 %v1767_v39  ;;  %1765 = vadd.xlane.f32.xlu0 %v1764_v16 }
 0x7b3   :  { %1810 = vrot.lane.b32.xlu1 %v10864_v60, %s10632_s0 }
 0x7b7   :  { %1808 = vrot.lane.b32.xlu1 %v10857_v57, %s10632_s0 }
 0x7b8   :  { %1812 = vrot.lane.b32.xlu0 %v10861_v59, %s10632_s0 }
 0x7bb   :  { %1806 = vrot.lane.b32.xlu1 %v10859_v58, %s10632_s0 }
 0x7bc   :  { %2067 = vrot.lane.b32.xlu0 %v10785_v38, %s10633_s2 }
 0x7bf   :  { %1950 = vrot.lane.b32.xlu1 %v10779_v36, %s10633_s2 }
 0x7db   :  { %1723 = vmax.xlane.f32.xlu0 %v1722_v11 }
 0x7df   :  { %1729 = vmax.xlane.f32.xlu0 %v1728_v35 }
 0x7e3   :  { %1726 = vmax.xlane.f32.xlu1 %v1725_v3 }
 0x7e7   :  { %1732 = vmax.xlane.f32.xlu1 %v1731_v7 }
 0x7f5   :  { %2065 = vrot.lane.b32.xlu0 %v10773_v33, %s10633_s2 }
 0x7f8   :  { %1948 = vrot.lane.b32.xlu1 %v10769_v30, %s10633_s2 }
 0x823   :  { %v11224_v15 = vpop.xlane.xlu0 %1759 }
 0x827   :  { %v11226_v17 = vpop.xlane.xlu1 %1762 }
 0x82b   :  { %v11228_v29 = vpop.xlane.xlu1 %1768  ;;  %v11230_v40 = vpop.xlane.xlu0 %1765 }
 0x82f   :  { %v1811_v22 = vpop.permute.xlu1 %1810  ;;  %v1813_v52 = vpop.permute.xlu0 %1812 }
 0x830   :  { %9214 = vmatprep.subr.mxu0 %v1813_v52 }
 0x831   :  { %9215 = vmatpush3.msra.mxu0 %v1813_v52 }
 0x832   :  { %9216 = vmatprep.subr.mxu0 %v1811_v22 }
 0x833   :  { %v1809_v56 = vpop.permute.xlu1 %1808  ;;  %9217 = vmatpush3.msra.mxu0 %v1811_v22  ;;  %v11232_v6 = vpop.permute.xlu0 %2067 }
 0x834   :  { %9218 = vmatprep.subr.mxu0 %v1809_v56 }
 0x835   :  { %9219 = vmatpush3.msra.mxu0 %v1809_v56 }
 0x837   :  { %v1807_v62 = vpop.permute.xlu1 %1806 }
 0x838   :  { %9220 = vmatprep.subr.mxu0 %v1807_v62 }
 0x839   :  { %9221 = vmatpush3.msra.mxu0 %v1807_v62 }
 0x83a   :  { %9242 = vmatprep.subr.msk.mxu0 %vm570_vm0, %v11232_v6 }
 0x83b   :  { %v1951_v10 = vpop.permute.xlu1 %1950 }
 0x83c   :  { %9228 = vmatprep.subr.msk.mxu1 %vm570_vm0, %v1951_v10 }
 0x83d   :  { %9229 = vmatpush3.xpose.msk.msra.mxu1 %vm570_vm0, %v1951_v10 }
 0x864   :  { %v1724_v41 = vpop.xlane.xlu0 %1723 }
 0x865   :  { %v1738_v19 = vsub.f32 %v1706_v24, %v1724_v41 }
 0x867   :  { %v1750_v39 = vmul.f32 1.442695, %v1738_v19 }
 0x868   :  { %v1730_v24 = vpop.xlane.xlu0 %1729 }
 0x869   :  { %9953 = vpow2.f32 %v1750_v39 }
 0x86c   :  { %v1727_v16 = vpop.xlane.xlu1 %1726 }
 0x86d   :  { %v1739_v9 = vsub.f32 %v1707_v12, %v1727_v16  ;;  %v1740_v12 = vsub.f32 %v1708_v25, %v1730_v24  ;;  %v2066_v25 = vpop.permute.xlu0 %2065 }
 0x86f   :  { %v1752_v18 = vmul.f32 1.442695, %v1739_v9  ;;  %v1754_v22 = vmul.f32 1.442695, %v1740_v12 }
 0x870   :  { %v1733_v1 = vpop.xlane.xlu1 %1732 }
 0x871   :  { %9955 = vpow2.f32 %v1752_v18  ;;  %v1741_v52 = vsub.f32 %v1709_v13, %v1733_v1 }
 0x872   :  { %9957 = vpow2.f32 %v1754_v22 }
 0x873   :  { %v1756_v56 = vmul.f32 1.442695, %v1741_v52 }
 0x874   :  { %v1949_v37 = vpop.permute.xlu1 %1948 }
 0x875   :  { %9230 = vmatprep.subr.msk.mxu1 %vm570_vm0, %v1949_v37  ;;  %9959 = vpow2.f32 %v1756_v56 }
 0x876   :  { %v9954_v11 = vpop.eup %9953  ;;  %9231 = vmatpush3.xpose.msk.msra.mxu1 %vm570_vm0, %v1949_v37  ;;  %9961 = vrcp.f32 %v11224_v15 }
 0x877   :  { %v1770_v35 = vsel %vm797_vm1, %v9954_v11, 0.0 }
 0x878   :  { %1771 = vadd.xlane.f32.xlu0 %v1770_v35 }
 0x87e   :  { %v9956_v3 = vpop.eup %9955 }
 0x87f   :  { %v1773_v7 = vsel %vm797_vm1, %v9956_v3, 0.0  ;;  %v11246_v62 = vpop.eup %9957 }
 0x880   :  { %1774 = vadd.xlane.f32.xlu1 %v1773_v7  ;;  %v1776_v10 = vsel %vm797_vm1, %v11246_v62, 0.0 }
 0x882   :  { %v11250_v41 = vpop.eup %9959 }
 0x883   :  { %v1779_v19 = vsel %vm797_vm1, %v11250_v41, 0.0  ;;  %v9962_v9 = vpop.eup %9961 }
 0x884   :  { %v1783_v37 = vmul.f32 %v9962_v9, %v11176_v4 }
 0x88e   :  { %2063 = vrot.lane.b32.xlu0 %v10767_v28, %s10633_s2 }
 0x891   :  { %1946 = vrot.lane.b32.xlu1 %v10765_v27, %s10633_s2 }
 0x8ad   :  { %1777 = vadd.xlane.f32.xlu0 %v1776_v10 }
 0x8b5   :  { %1780 = vadd.xlane.f32.xlu1 %v1779_v19 }
 0x8c3   :  { %2061 = vrot.lane.b32.xlu0 %v10763_v26, %s10633_s2 }
 0x8c6   :  { %1944 = vrot.lane.b32.xlu1 %v10761_v0, %s10633_s2 }
 0x8c7   :  { %2053 = vrot.lane.b32.xlu0 %v10775_v34, %s10633_s2 }
 0x8ca   :  { %2055 = vrot.lane.b32.xlu1 %v10823_v46, %s10633_s2 }
 0x8cb   :  { %1936 = vrot.lane.b32.xlu0 %v10771_v31, %s10633_s2 }
 0x8ce   :  { %1938 = vrot.lane.b32.xlu1 %v10813_v42, %s10633_s2 }
 0x8cf   :  { %2057 = vrot.lane.b32.xlu0 %v10821_v44, %s10633_s2 }
 0x8d2   :  { %2059 = vrot.lane.b32.xlu1 %v10833_v48, %s10633_s2 }
 0x8d3   :  { %1940 = vrot.lane.b32.xlu0 %v10817_v43, %s10633_s2 }
 0x8d6   :  { %1942 = vrot.lane.b32.xlu1 %v10827_v47, %s10633_s2 }
 0x901   :  { %v1772_v13 = vpop.xlane.xlu0 %1771 }
 0x902   :  { %9963 = vrcp.f32 %v1772_v13 }
 0x903   :  { %9965 = vrcp.f32 %v11226_v17 }
 0x905   :  { %v2064_v4 = vpop.permute.xlu0 %2063 }
 0x909   :  { %v1775_v39 = vpop.xlane.xlu1 %1774 }
 0x90a   :  { %9967 = vrcp.f32 %v1775_v39 }
 0x90b   :  { %9969 = vrcp.f32 %v11230_v40 }
 0x90d   :  { %v1947_v16 = vpop.permute.xlu1 %1946 }
 0x90e   :  { %9232 = vmatprep.subr.msk.mxu1 %vm570_vm0, %v1947_v16 }
 0x90f   :  { %v9964_v18 = vpop.eup %9963  ;;  %9233 = vmatpush3.xpose.msk.msra.mxu1 %vm570_vm0, %v1947_v16 }
 0x910   :  { %v1791_v1 = vmul.f32 %v9964_v18, %v9954_v11  ;;  %v9966_v15 = vpop.eup %9965 }
 0x911   :  { %v1785_v12 = vmul.f32 %v9966_v15, %v11180_v45 }
 0x912   :  { %v1798_v35 = vmul.f32 %v1791_v1, %v11000_v21 }
 0x914   :  { %v1802_v7 = vsub.f32 %v1783_v37, %v1798_v35 }
 0x916   :  { %9222 = vmatprep.mubr.msk.f32.mxu0 %vm797_vm1, %v1802_v7 }
 0x917   :  { %v9968_v24 = vpop.eup %9967 }
 0x918   :  { %v1793_v17 = vmul.f32 %v9968_v24, %v9956_v3  ;;  %v9970_v19 = vpop.eup %9969 }
 0x919   :  { %v1787_v16 = vmul.f32 %v9970_v19, %v11186_v54  ;;  %v11323_v19 = vld [vmem:[#allocation13 + $0x10] sm:$0xff] }
 0x91a   :  { %v1799_v22 = vmul.f32 %v1793_v17, %v11000_v21 }
 0x91c   :  { %v1803_v52 = vsub.f32 %v1785_v12, %v1799_v22  ;;  %v11312_v22 = vld [vmem:[#allocation13] sm:$0xff] }
 0x91e   :  { %9223 = vmatmul.mubr.msk.f32.vlgmr.msra.gmra.mxu0 %vm797_vm1, %v1803_v52  ;;  %v11315_v52 = vld [vmem:[#allocation13 + $0x8] sm:$0xff] }
 0x91f   :  { %9243 = vmatpush3.xpose.msk.msra.mxu0 %vm570_vm0, %v11232_v6 }
 0x920   :  { %9244 = vmatprep.subr.msk.mxu0 %vm570_vm0, %v2066_v25 }
 0x923   :  { %9245 = vmatpush3.xpose.msk.msra.mxu0 %vm570_vm0, %v2066_v25 }
 0x924   :  { %9246 = vmatprep.subr.msk.mxu0 %vm570_vm0, %v2064_v4 }
 0x927   :  { %9247 = vmatpush3.xpose.msk.msra.mxu0 %vm570_vm0, %v2064_v4 }
 0x936   :  { %v1778_v45 = vpop.xlane.xlu0 %1777 }
 0x937   :  { %9971 = vrcp.f32 %v1778_v45 }
 0x938   :  { %9973 = vrcp.f32 %v11228_v29 }
 0x93a   :  { %v2062_v11 = vpop.permute.xlu0 %2061 }
 0x93b   :  { %9248 = vmatprep.subr.msk.mxu0 %vm570_vm0, %v2062_v11 }
 0x93c   :  { %9249 = vmatpush3.xpose.msk.msra.mxu0 %vm570_vm0, %v2062_v11 }
 0x93e   :  { %v1781_v6 = vpop.xlane.xlu1 %1780  ;;  %v2054_v3 = vpop.permute.xlu0 %2053 }
 0x93f   :  { %9975 = vrcp.f32 %v1781_v6  ;;  %v11319_v6 = vld [vmem:[#allocation13 + $0x18] sm:$0xff] }
 0x942   :  { %v1945_v56 = vpop.permute.xlu1 %1944  ;;  %v1937_v10 = vpop.permute.xlu0 %1936 }
 0x943   :  { %9234 = vmatprep.subr.msk.mxu1 %vm570_vm0, %v1945_v56  ;;  %9236 = vmatprep.mubr.msk.f32.mxu1 %vm570_vm0, %v1937_v10 }
 0x944   :  { %v9972_v40 = vpop.eup %9971  ;;  %9235 = vmatpush3.xpose.msk.msra.mxu1 %vm570_vm0, %v1945_v56 }
 0x945   :  { %v1795_v25 = vmul.f32 %v9972_v40, %v11246_v62  ;;  %v9974_v37 = vpop.eup %9973 }
 0x946   :  { %v2056_v13 = vpop.permute.xlu1 %2055  ;;  %v2058_v39 = vpop.permute.xlu0 %2057  ;;  %v1789_v15 = vmul.f32 %v9974_v37, %v11184_v32 }
 0x947   :  { %v1800_v29 = vmul.f32 %v1795_v25, %v11000_v21 }
 0x949   :  { %v1804_v9 = vsub.f32 %v1787_v16, %v1800_v29 }
 0x94a   :  { %v1939_v18 = vpop.permute.xlu1 %1938  ;;  %v1941_v1 = vpop.permute.xlu0 %1940 }
 0x94b   :  { %9225 = vmatprep.mubr.msk.f32.mxu0 %vm797_vm1, %v1804_v9  ;;  %9237 = vmatmul.mubr.msk.f32.vlgmr.msra.gmra.mxu1 %vm570_vm0, %v1939_v18 }
 0x94c   :  { %v9976_v35 = vpop.eup %9975  ;;  %9239 = vmatprep.mubr.msk.f32.mxu1 %vm570_vm0, %v1941_v1 }
 0x94d   :  { %v1797_v7 = vmul.f32 %v9976_v35, %v11250_v41 }
 0x94e   :  { %v2060_v62 = vpop.permute.xlu1 %2059 }
 0x94f   :  { %v1801_v54 = vmul.f32 %v1797_v7, %v11000_v21 }
 0x951   :  { %v1805_v24 = vsub.f32 %v1789_v15, %v1801_v54 }
 0x952   :  { %v1943_v17 = vpop.permute.xlu1 %1942 }
 0x953   :  { %9226 = vmatmul.mubr.msk.f32.gmra.mxu0 %vm797_vm1, %v1805_v24  ;;  %9240 = vmatmul.mubr.msk.f32.gmra.mxu1 %vm570_vm0, %v1943_v17 }
 0x954   :  { %9250 = vmatprep.mubr.msk.f32.mxu0 %vm570_vm0, %v2054_v3 }
 0x957   :  { %9251 = vmatmul.mubr.msk.f32.vlgmr.msra.gmra.mxu0 %vm570_vm0, %v2056_v13 }
 0x958   :  { %9253 = vmatprep.mubr.msk.f32.mxu0 %vm570_vm0, %v2058_v39 }
 0x95b   :  { %9254 = vmatmul.mubr.msk.f32.gmra.mxu0 %vm570_vm0, %v2060_v62 }
 0x9de   :  { %v11340_v29 = vpop.f32.mrf.mxu0 }
 0x9df   :  { %13346 = vst [vmem:[#allocation36_spill] sm:$0xff] %v11340_v29 }
 0x9e0   :  { %v11342_v37 = vpop.f32.mrf.mxu0 }
 0x9e1   :  { %13347 = vst [vmem:[#allocation37_spill] sm:$0xff] %v11342_v37 }
 0xa0b   :  { %v9238_v41 = vpop.f32.mrf.mxu1 }
 0xa0c   :  { %v2171_v4 = vadd.f32 %v11315_v52, %v9238_v41 }
 0xa0d   :  { %v2034_v12 = vpop.f32.mrf.mxu1 }
 0xa0e   :  { %v2170_v32 = vadd.f32 %v11312_v22, %v2034_v12  ;;  %v2181_v56 = vsel %vm797_vm1, %v2171_v4, -inf }
 0xa10   :  { %v2178_v45 = vsel %vm797_vm1, %v2170_v32, -inf }
 0xa11   :  { %2179 = vmax.xlane.f32.xlu0 %v2178_v45 }
 0xa13   :  { %v9241_v11 = vpop.f32.mrf.mxu1  ;;  %v11344_v15 = vpop.f32.mrf.mxu0 }
 0xa14   :  { %v2173_v3 = vadd.f32 %v11319_v6, %v9241_v11  ;;  %13348 = vst [vmem:[#allocation38_spill] sm:$0xff] %v11344_v15 }
 0xa15   :  { %2182 = vmax.xlane.f32.xlu0 %v2181_v56  ;;  %v2044_v10 = vpop.f32.mrf.mxu1 }
 0xa16   :  { %v2172_v40 = vadd.f32 %v11323_v19, %v2044_v10  ;;  %v2187_v25 = vsel %vm797_vm1, %v2173_v3, -inf }
 0xa17   :  { %2188 = vmax.xlane.f32.xlu1 %v2187_v25 }
 0xa18   :  { %v2184_v13 = vsel %vm797_vm1, %v2172_v40, -inf }
 0xa19   :  { %2185 = vmax.xlane.f32.xlu0 %v2184_v13 }
 0xa28   :  { %2278 = vrot.lane.b32.xlu1 %v10864_v60, %s10633_s2 }
 0xa2c   :  { %2276 = vrot.lane.b32.xlu1 %v10857_v57, %s10633_s2 }
 0xa2f   :  { %2280 = vrot.lane.b32.xlu0 %v10861_v59, %s10633_s2 }
 0xa30   :  { %2274 = vrot.lane.b32.xlu1 %v10859_v58, %s10633_s2 }
 0xa33   :  { %2535 = vrot.lane.b32.xlu0 %v10785_v38, %s10634_s21 }
 0xa34   :  { %2418 = vrot.lane.b32.xlu1 %v10779_v36, %s10634_s21 }
 0xa9a   :  { %v2180_v39 = vpop.xlane.xlu0 %2179 }
 0xa9b   :  { %v2202_v16 = vsub.f32 %v2170_v32, %v2180_v39  ;;  %v11346_v32 = vpop.f32.mrf.mxu0 }
 0xa9c   :  { %13349 = vst [vmem:[#allocation39_spill] sm:$0xff] %v11346_v32 }
 0xa9d   :  { %v2210_v9 = vmul.f32 1.442695, %v2202_v16  ;;  %v9252_v11 = vpop.f32.mrf.mxu0 }
 0xa9e   :  { %v2183_v18 = vpop.xlane.xlu0 %2182 }
 0xa9f   :  { %9977 = vpow2.f32 %v2210_v9  ;;  %v2203_v1 = vsub.f32 %v2171_v4, %v2183_v18 }
 0xaa0   :  { %v2189_v35 = vpop.xlane.xlu1 %2188 }
 0xaa1   :  { %v2212_v7 = vmul.f32 1.442695, %v2203_v1  ;;  %v2205_v62 = vsub.f32 %v2173_v3, %v2189_v35  ;;  %v11366_v35 = vld [vmem:[#allocation13 + $0x28] sm:$0xff] }
 0xaa2   :  { %v2186_v54 = vpop.xlane.xlu0 %2185 }
 0xaa3   :  { %9979 = vpow2.f32 %v2212_v7  ;;  %v2216_v24 = vmul.f32 1.442695, %v2205_v62  ;;  %v2204_v17 = vsub.f32 %v2172_v40, %v2186_v54  ;;  %v2151_v40 = vpop.f32.mrf.mxu0  ;;  %v2175_v7 = vadd.f32 %v11366_v35, %v9252_v11  ;;  %v11369_v62 = vld [vmem:[#allocation13 + $0x20] sm:$0xff] }
 0xaa4   :  { %v2279_v41 = vpop.permute.xlu1 %2278  ;;  %v2174_v54 = vadd.f32 %v11369_v62, %v2151_v40 }
 0xaa5   :  { %9981 = vpow2.f32 %v2216_v24  ;;  %v2214_v12 = vmul.f32 1.442695, %v2204_v17  ;;  %v9255_v18 = vpop.f32.mrf.mxu0 }
 0xaa6   :  { %v2281_v45 = vpop.permute.xlu0 %2280 }
 0xaa7   :  { %9983 = vpow2.f32 %v2214_v12  ;;  %9256 = vmatprep.subr.mxu1 %v2281_v45  ;;  %v11376_v12 = vld [vmem:[#allocation13 + $0x38] sm:$0xff] }
 0xaa8   :  { %v2277_v4 = vpop.permute.xlu1 %2276  ;;  %9257 = vmatpush3.msra.mxu1 %v2281_v45  ;;  %v2177_v45 = vadd.f32 %v11376_v12, %v9255_v18 }
 0xaa9   :  { %9258 = vmatprep.subr.mxu1 %v2279_v41 }
 0xaaa   :  { %9259 = vmatpush3.msra.mxu1 %v2279_v41  ;;  %v11352_v25 = vpop.permute.xlu0 %2535  ;;  %v2161_v41 = vpop.f32.mrf.mxu0  ;;  %v2199_v40 = vsel %vm797_vm1, %v2177_v45, -inf }
 0xaab   :  { %9260 = vmatprep.subr.mxu1 %v2277_v4 }
 0xaac   :  { %v11348_v3 = vpop.eup %9977  ;;  %v2275_v56 = vpop.permute.xlu1 %2274  ;;  %9261 = vmatpush3.msra.mxu1 %v2277_v4  ;;  %v11379_v4 = vld [vmem:[#allocation13 + $0x30] sm:$0xff] }
 0xaad   :  { %9262 = vmatprep.subr.mxu1 %v2275_v56  ;;  %v2226_v10 = vsel %vm797_vm1, %v11348_v3, 0.0  ;;  %v2176_v11 = vadd.f32 %v11379_v4, %v2161_v41 }
 0xaae   :  { %2227 = vadd.xlane.f32.xlu0 %v2226_v10  ;;  %9263 = vmatpush3.msra.mxu1 %v2275_v56  ;;  %v2193_v56 = vsel %vm797_vm1, %v2175_v7, -inf  ;;  %v2190_v10 = vsel %vm797_vm1, %v2174_v54, -inf }
 0xaaf   :  { %9284 = vmatprep.subr.msk.mxu1 %vm570_vm0, %v11352_v25 }
 0xab0   :  { %v11356_v13 = vpop.eup %9979  ;;  %v2419_v39 = vpop.permute.xlu1 %2418 }
 0xab1   :  { %9270 = vmatprep.subr.msk.mxu0 %vm570_vm0, %v2419_v39  ;;  %v2229_v16 = vsel %vm797_vm1, %v11356_v13, 0.0 }
 0xab2   :  { %v11361_v9 = vpop.eup %9981  ;;  %9271 = vmatpush3.xpose.msk.msra.mxu0 %vm570_vm0, %v2419_v39  ;;  %2230 = vadd.xlane.f32.xlu1 %v2229_v16  ;;  %v2196_v39 = vsel %vm797_vm1, %v2176_v11, -inf }
 0xab3   :  { %v2235_v24 = vsel %vm797_vm1, %v11361_v9, 0.0 }
 0xab4   :  { %v11364_v1 = vpop.eup %9983 }
 0xab5   :  { %v2232_v17 = vsel %vm797_vm1, %v11364_v1, 0.0 }
 0xab6   :  { %2236 = vadd.xlane.f32.xlu1 %v2235_v24  ;;  %2233 = vadd.xlane.f32.xlu0 %v2232_v17 }
 0xaba   :  { %2194 = vmax.xlane.f32.xlu1 %v2193_v56  ;;  %2191 = vmax.xlane.f32.xlu0 %v2190_v10 }
 0xabe   :  { %2200 = vmax.xlane.f32.xlu1 %v2199_v40  ;;  %2197 = vmax.xlane.f32.xlu0 %v2196_v39 }
 0xacf   :  { %2416 = vrot.lane.b32.xlu1 %v10769_v30, %s10634_s21 }
 0xad4   :  { %2533 = vrot.lane.b32.xlu0 %v10773_v33, %s10634_s21 }
 0xb37   :  { %v2228_v16 = vpop.xlane.xlu0 %2227 }
 0xb3b   :  { %v2231_v18 = vpop.xlane.xlu1 %2230 }
 0xb3f   :  { %v11390_v24 = vpop.xlane.xlu1 %2236  ;;  %v11392_v17 = vpop.xlane.xlu0 %2233 }
 0xb43   :  { %v2195_v41 = vpop.xlane.xlu1 %2194  ;;  %v2192_v56 = vpop.xlane.xlu0 %2191 }
 0xb44   :  { %v2207_v10 = vsub.f32 %v2175_v7, %v2195_v41  ;;  %v2206_v15 = vsub.f32 %v2174_v54, %v2192_v56 }
 0xb46   :  { %v2220_v32 = vmul.f32 1.442695, %v2207_v10  ;;  %v2218_v23 = vmul.f32 1.442695, %v2206_v15 }
 0xb47   :  { %v2201_v40 = vpop.xlane.xlu1 %2200 }
 0xb48   :  { %9985 = vpow2.f32 %v2220_v32  ;;  %v2209_v15 = vsub.f32 %v2177_v45, %v2201_v40 }
 0xb49   :  { %9987 = vpow2.f32 %v2218_v23  ;;  %v2198_v23 = vpop.xlane.xlu0 %2197 }
 0xb4a   :  { %v2208_v32 = vsub.f32 %v2176_v11, %v2198_v23  ;;  %v2224_v7 = vmul.f32 1.442695, %v2209_v15 }
 0xb4b   :  { %v2417_v39 = vpop.permute.xlu1 %2416 }
 0xb4c   :  { %9272 = vmatprep.subr.msk.mxu0 %vm570_vm0, %v2417_v39  ;;  %v2222_v54 = vmul.f32 1.442695, %v2208_v32  ;;  %9989 = vpow2.f32 %v2224_v7 }
 0xb4d   :  { %9273 = vmatpush3.xpose.msk.msra.mxu0 %vm570_vm0, %v2417_v39  ;;  %v2534_v45 = vpop.permute.xlu0 %2533 }
 0xb4e   :  { %9991 = vpow2.f32 %v2222_v54 }
 0xb4f   :  { %9993 = vrcp.f32 %v2228_v16 }
 0xb50   :  { %9995 = vrcp.f32 %v2231_v18 }
 0xb55   :  { %v9986_v50 = vpop.eup %9985 }
 0xb56   :  { %v9988_v29 = vpop.eup %9987  ;;  %v2241_v37 = vsel %vm797_vm1, %v9986_v50, 0.0 }
 0xb57   :  { %2242 = vadd.xlane.f32.xlu1 %v2241_v37  ;;  %v2238_v20 = vsel %vm797_vm1, %v9988_v29, 0.0 }
 0xb58   :  { %2239 = vadd.xlane.f32.xlu0 %v2238_v20 }
 0xb59   :  { %v11402_v41 = vpop.eup %9989 }
 0xb5a   :  { %v2247_v20 = vsel %vm797_vm1, %v11402_v41, 0.0 }
 0xb5b   :  { %v11404_v56 = vpop.eup %9991 }
 0xb5c   :  { %v2244_v37 = vsel %vm797_vm1, %v11404_v56, 0.0  ;;  %v9994_v39 = vpop.eup %9993 }
 0xb5d   :  { %v9996_v23 = vpop.eup %9995  ;;  %v2251_v18 = vmul.f32 %v9994_v39, %v11348_v3 }
 0xb68   :  { %2414 = vrot.lane.b32.xlu1 %v10765_v27, %s10634_s21 }
 0xb6e   :  { %2531 = vrot.lane.b32.xlu0 %v10767_v28, %s10634_s21 }
 0xb8c   :  { %2248 = vadd.xlane.f32.xlu1 %v2247_v20  ;;  %v2253_v20 = vmul.f32 %v9996_v23, %v11356_v13 }
 0xb8d   :  { %2245 = vadd.xlane.f32.xlu0 %v2244_v37 }
 0xb9d   :  { %2412 = vrot.lane.b32.xlu1 %v10761_v0, %s10634_s21 }
 0xba1   :  { %2523 = vrot.lane.b32.xlu1 %v10823_v46, %s10634_s21 }
 0xba3   :  { %2529 = vrot.lane.b32.xlu0 %v10763_v26, %s10634_s21 }
 0xba5   :  { %2406 = vrot.lane.b32.xlu1 %v10813_v42, %s10634_s21 }
 0xba7   :  { %2521 = vrot.lane.b32.xlu0 %v10775_v34, %s10634_s21 }
 0xba9   :  { %2527 = vrot.lane.b32.xlu1 %v10833_v48, %s10634_s21 }
 0xbab   :  { %2404 = vrot.lane.b32.xlu0 %v10771_v31, %s10634_s21 }
 0xbad   :  { %2410 = vrot.lane.b32.xlu1 %v10827_v47, %s10634_s21 }
 0xbaf   :  { %2525 = vrot.lane.b32.xlu0 %v10821_v44, %s10634_s21 }
 0xbb3   :  { %2408 = vrot.lane.b32.xlu0 %v10817_v43, %s10634_s21 }
 0xbe0   :  { %v2243_v11 = vpop.xlane.xlu1 %2242 }
 0xbe1   :  { %9997 = vrcp.f32 %v2243_v11  ;;  %v2240_v10 = vpop.xlane.xlu0 %2239 }
 0xbe2   :  { %9999 = vrcp.f32 %v2240_v10 }
 0xbe3   :  { %10001 = vrcp.f32 %v11390_v24 }
 0xbe4   :  { %v2415_v40 = vpop.permute.xlu1 %2414  ;;  %10003 = vrcp.f32 %v11392_v17 }
 0xbe5   :  { %9274 = vmatprep.subr.msk.mxu0 %vm570_vm0, %v2415_v40 }
 0xbe6   :  { %9275 = vmatpush3.xpose.msk.msra.mxu0 %vm570_vm0, %v2415_v40 }
 0xbee   :  { %v9998_v15 = vpop.eup %9997 }
 0xbef   :  { %v10000_v32 = vpop.eup %9999  ;;  %v2261_v7 = vmul.f32 %v9998_v15, %v9986_v50  ;;  %v2532_v50 = vpop.permute.xlu0 %2531 }
 0xbf0   :  { %v2259_v54 = vmul.f32 %v10000_v32, %v9988_v29  ;;  %v10002_v39 = vpop.eup %10001 }
 0xbf1   :  { %v2267_v16 = vmul.f32 %v2261_v7, %v11000_v21  ;;  %v10004_v23 = vpop.eup %10003 }
 0xbf2   :  { %v2266_v37 = vmul.f32 %v2259_v54, %v11000_v21 }
 0xbf3   :  { %v2271_v11 = vsub.f32 %v2253_v20, %v2267_v16 }
 0xbf4   :  { %v2270_v10 = vsub.f32 %v2251_v18, %v2266_v37  ;;  %v2257_v18 = vmul.f32 %v10002_v39, %v11361_v9 }
 0xbf6   :  { %9264 = vmatprep.mubr.msk.f32.mxu1 %vm797_vm1, %v2270_v10 }
 0xbf7   :  { %9265 = vmatmul.mubr.msk.f32.vlgmr.msra.gmra.mxu1 %vm797_vm1, %v2271_v11  ;;  %v2255_v11 = vmul.f32 %v10004_v23, %v11364_v1 }
 0xbf8   :  { %9285 = vmatpush3.xpose.msk.msra.mxu1 %vm570_vm0, %v11352_v25 }
 0xbf9   :  { %9286 = vmatprep.subr.msk.mxu1 %vm570_vm0, %v2534_v45 }
 0xbfc   :  { %9287 = vmatpush3.xpose.msk.msra.mxu1 %vm570_vm0, %v2534_v45 }
 0xbfd   :  { %9288 = vmatprep.subr.msk.mxu1 %vm570_vm0, %v2532_v50 }
 0xc00   :  { %9289 = vmatpush3.xpose.msk.msra.mxu1 %vm570_vm0, %v2532_v50 }
 0xc15   :  { %v2249_v29 = vpop.xlane.xlu1 %2248 }
 0xc16   :  { %10005 = vrcp.f32 %v2249_v29  ;;  %v2246_v3 = vpop.xlane.xlu0 %2245 }
 0xc17   :  { %10007 = vrcp.f32 %v2246_v3 }
 0xc19   :  { %v2413_v13 = vpop.permute.xlu1 %2412 }
 0xc1a   :  { %v2530_v40 = vpop.permute.xlu0 %2529  ;;  %9276 = vmatprep.subr.msk.mxu0 %vm570_vm0, %v2413_v13 }
 0xc1b   :  { %9290 = vmatprep.subr.msk.mxu1 %vm570_vm0, %v2530_v40  ;;  %9277 = vmatpush3.xpose.msk.msra.mxu0 %vm570_vm0, %v2413_v13 }
 0xc1c   :  { %9291 = vmatpush3.xpose.msk.msra.mxu1 %vm570_vm0, %v2530_v40 }
 0xc1d   :  { %v2524_v25 = vpop.permute.xlu1 %2523 }
 0xc1e   :  { %v2522_v45 = vpop.permute.xlu0 %2521 }
 0xc21   :  { %v2407_v24 = vpop.permute.xlu1 %2406 }
 0xc22   :  { %v2405_v17 = vpop.permute.xlu0 %2404 }
 0xc23   :  { %v10006_v15 = vpop.eup %10005  ;;  %9278 = vmatprep.mubr.msk.f32.mxu0 %vm570_vm0, %v2405_v17 }
 0xc24   :  { %v10008_v32 = vpop.eup %10007  ;;  %9279 = vmatmul.mubr.msk.f32.vlgmr.msra.gmra.mxu0 %vm570_vm0, %v2407_v24  ;;  %v2265_v7 = vmul.f32 %v10006_v15, %v11402_v41 }
 0xc25   :  { %v2528_v54 = vpop.permute.xlu1 %2527  ;;  %v2263_v20 = vmul.f32 %v10008_v32, %v11404_v56 }
 0xc26   :  { %v2526_v16 = vpop.permute.xlu0 %2525  ;;  %v2269_v37 = vmul.f32 %v2265_v7, %v11000_v21 }
 0xc27   :  { %v2268_v10 = vmul.f32 %v2263_v20, %v11000_v21 }
 0xc28   :  { %v2273_v50 = vsub.f32 %v2257_v18, %v2269_v37 }
 0xc29   :  { %v2411_v29 = vpop.permute.xlu1 %2410  ;;  %v2272_v3 = vsub.f32 %v2255_v11, %v2268_v10 }
 0xc2a   :  { %v2409_v13 = vpop.permute.xlu0 %2408 }
 0xc2b   :  { %9267 = vmatprep.mubr.msk.f32.mxu1 %vm797_vm1, %v2272_v3  ;;  %9281 = vmatprep.mubr.msk.f32.mxu0 %vm570_vm0, %v2409_v13 }
 0xc2c   :  { %9268 = vmatmul.mubr.msk.f32.gmra.mxu1 %vm797_vm1, %v2273_v50  ;;  %9282 = vmatmul.mubr.msk.f32.gmra.mxu0 %vm570_vm0, %v2411_v29 }
 0xc2d   :  { %9292 = vmatprep.mubr.msk.f32.mxu1 %vm570_vm0, %v2522_v45 }
 0xc30   :  { %9293 = vmatmul.mubr.msk.f32.vlgmr.msra.gmra.mxu1 %vm570_vm0, %v2524_v25 }
 0xc31   :  { %9295 = vmatprep.mubr.msk.f32.mxu1 %vm570_vm0, %v2526_v16 }
 0xc34   :  { %9296 = vmatmul.mubr.msk.f32.gmra.mxu1 %vm570_vm0, %v2528_v54 }
 0xcb7   :  { %v11486_v54 = vpop.f32.mrf.mxu1 }
 0xcb8   :  { %13350 = vst [vmem:[#allocation40_spill] sm:$0xff] %v11486_v54 }
 0xcb9   :  { %v11488_v37 = vpop.f32.mrf.mxu1 }
 0xcba   :  { %13351 = vst [vmem:[#allocation41_spill] sm:$0xff] %v11488_v37 }
 0xce4   :  { %v9280_v9 = vpop.f32.mrf.mxu0 }
 0xce5   :  { %v2639_v56 = vadd.f32 %v11315_v52, %v9280_v9 }
 0xce6   :  { %v2502_v1 = vpop.f32.mrf.mxu0 }
 0xce7   :  { %v2638_v41 = vadd.f32 %v11312_v22, %v2502_v1  ;;  %v2649_v45 = vsel %vm797_vm1, %v2639_v56, -inf }
 0xce9   :  { %v2646_v40 = vsel %vm797_vm1, %v2638_v41, -inf }
 0xcea   :  { %2647 = vmax.xlane.f32.xlu0 %v2646_v40 }
 0xcec   :  { %v9283_v39 = vpop.f32.mrf.mxu0  ;;  %v11490_v29 = vpop.f32.mrf.mxu1 }
 0xced   :  { %v2641_v24 = vadd.f32 %v11319_v6, %v9283_v39  ;;  %13352 = vst [vmem:[#allocation42_spill] sm:$0xff] %v11490_v29 }
 0xcee   :  { %2650 = vmax.xlane.f32.xlu0 %v2649_v45  ;;  %v2512_v25 = vpop.f32.mrf.mxu0  ;;  %v11492_v40 = vpop.f32.mrf.mxu1 }
 0xcef   :  { %v2640_v23 = vadd.f32 %v11323_v19, %v2512_v25  ;;  %v2655_v17 = vsel %vm797_vm1, %v2641_v24, -inf  ;;  %13353 = vst [vmem:[#allocation43_spill] sm:$0xff] %v11492_v40 }
 0xcf0   :  { %2656 = vmax.xlane.f32.xlu1 %v2655_v17  ;;  %v9294_v45 = vpop.f32.mrf.mxu1 }
 0xcf1   :  { %v2652_v15 = vsel %vm797_vm1, %v2640_v23, -inf }
 0xcf2   :  { %2653 = vmax.xlane.f32.xlu0 %v2652_v15  ;;  %v2619_v17 = vpop.f32.mrf.mxu1 }
 0xd01   :  { %2746 = vrot.lane.b32.xlu1 %v10864_v60, %s10634_s21 }
 0xd05   :  { %2744 = vrot.lane.b32.xlu1 %v10857_v57, %s10634_s21 }
 0xd08   :  { %2748 = vrot.lane.b32.xlu0 %v10861_v59, %s10634_s21 }
 0xd09   :  { %2742 = vrot.lane.b32.xlu1 %v10859_v58, %s10634_s21 }
 0xd0c   :  { %3003 = vrot.lane.b32.xlu0 %v10785_v38, %s10635_s22 }
 0xd0d   :  { %2886 = vrot.lane.b32.xlu1 %v10779_v36, %s10635_s22 }
 0xd73   :  { %v2648_v32 = vpop.xlane.xlu0 %2647 }
 0xd74   :  { %v2670_v7 = vsub.f32 %v2638_v41, %v2648_v32 }
 0xd76   :  { %v2678_v20 = vmul.f32 1.442695, %v2670_v7 }
 0xd77   :  { %v2651_v16 = vpop.xlane.xlu0 %2650 }
 0xd78   :  { %10009 = vpow2.f32 %v2678_v20  ;;  %v2671_v18 = vsub.f32 %v2639_v56, %v2651_v16 }
 0xd79   :  { %v2657_v11 = vpop.xlane.xlu1 %2656 }
 0xd7a   :  { %v2680_v10 = vmul.f32 1.442695, %v2671_v18  ;;  %v2673_v50 = vsub.f32 %v2641_v24, %v2657_v11  ;;  %v9297_v18 = vpop.f32.mrf.mxu1 }
 0xd7b   :  { %v2654_v3 = vpop.xlane.xlu0 %2653 }
 0xd7c   :  { %10011 = vpow2.f32 %v2680_v10  ;;  %v2684_v13 = vmul.f32 1.442695, %v2673_v50  ;;  %v2672_v9 = vsub.f32 %v2640_v23, %v2654_v3  ;;  %v2643_v10 = vadd.f32 %v11366_v35, %v9294_v45 }
 0xd7d   :  { %v2747_v1 = vpop.permute.xlu1 %2746  ;;  %v2642_v50 = vadd.f32 %v11369_v62, %v2619_v17 }
 0xd7e   :  { %10013 = vpow2.f32 %v2684_v13  ;;  %v2682_v41 = vmul.f32 1.442695, %v2672_v9  ;;  %v2629_v9 = vpop.f32.mrf.mxu1 }
 0xd7f   :  { %v2749_v39 = vpop.permute.xlu0 %2748 }
 0xd80   :  { %10015 = vpow2.f32 %v2682_v41  ;;  %9298 = vmatprep.subr.mxu0 %v2749_v39  ;;  %v2644_v41 = vadd.f32 %v11379_v4, %v2629_v9 }
 0xd81   :  { %v2745_v56 = vpop.permute.xlu1 %2744  ;;  %9299 = vmatpush3.msra.mxu0 %v2749_v39  ;;  %v2661_v39 = vsel %vm797_vm1, %v2643_v10, -inf }
 0xd82   :  { %9300 = vmatprep.subr.mxu0 %v2747_v1 }
 0xd83   :  { %9301 = vmatpush3.msra.mxu0 %v2747_v1  ;;  %v11498_v15 = vpop.permute.xlu0 %3003  ;;  %v2645_v1 = vadd.f32 %v11376_v12, %v9297_v18 }
 0xd84   :  { %9302 = vmatprep.subr.mxu0 %v2745_v56 }
 0xd85   :  { %v11494_v24 = vpop.eup %10009  ;;  %v2743_v25 = vpop.permute.xlu1 %2742  ;;  %9303 = vmatpush3.msra.mxu0 %v2745_v56  ;;  %v2658_v56 = vsel %vm797_vm1, %v2642_v50, -inf  ;;  %v2667_v45 = vsel %vm797_vm1, %v2645_v1, -inf }
 0xd86   :  { %9304 = vmatprep.subr.mxu0 %v2743_v25  ;;  %v2694_v23 = vsel %vm797_vm1, %v11494_v24, 0.0 }
 0xd87   :  { %2695 = vadd.xlane.f32.xlu0 %v2694_v23  ;;  %9305 = vmatpush3.msra.mxu0 %v2743_v25  ;;  %v2664_v25 = vsel %vm797_vm1, %v2644_v41, -inf }
 0xd88   :  { %9326 = vmatprep.subr.msk.mxu0 %vm570_vm0, %v11498_v15 }
 0xd89   :  { %v11502_v32 = vpop.eup %10011  ;;  %v2887_v7 = vpop.permute.xlu1 %2886 }
 0xd8a   :  { %9312 = vmatprep.subr.msk.mxu1 %vm570_vm0, %v2887_v7  ;;  %v2697_v20 = vsel %vm797_vm1, %v11502_v32, 0.0 }
 0xd8b   :  { %v11507_v16 = vpop.eup %10013  ;;  %9313 = vmatpush3.xpose.msk.msra.mxu1 %vm570_vm0, %v2887_v7  ;;  %2698 = vadd.xlane.f32.xlu1 %v2697_v20 }
 0xd8c   :  { %v2703_v3 = vsel %vm797_vm1, %v11507_v16, 0.0 }
 0xd8d   :  { %v11510_v11 = vpop.eup %10015 }
 0xd8e   :  { %v2700_v13 = vsel %vm797_vm1, %v11510_v11, 0.0 }
 0xd8f   :  { %2704 = vadd.xlane.f32.xlu1 %v2703_v3  ;;  %2701 = vadd.xlane.f32.xlu0 %v2700_v13 }
 0xd93   :  { %2662 = vmax.xlane.f32.xlu1 %v2661_v39  ;;  %2659 = vmax.xlane.f32.xlu0 %v2658_v56 }
 0xd97   :  { %2668 = vmax.xlane.f32.xlu1 %v2667_v45  ;;  %2665 = vmax.xlane.f32.xlu0 %v2664_v25 }
 0xda8   :  { %2884 = vrot.lane.b32.xlu1 %v10769_v30, %s10635_s22 }
 0xdad   :  { %3001 = vrot.lane.b32.xlu0 %v10773_v33, %s10635_s22 }
 0xe10   :  { %v2696_v23 = vpop.xlane.xlu0 %2695 }
 0xe14   :  { %v2699_v17 = vpop.xlane.xlu1 %2698 }
 0xe18   :  { %v11528_v7 = vpop.xlane.xlu1 %2704  ;;  %v11530_v20 = vpop.xlane.xlu0 %2701 }
 0xe1c   :  { %v2663_v18 = vpop.xlane.xlu1 %2662  ;;  %v2660_v3 = vpop.xlane.xlu0 %2659 }
 0xe1d   :  { %v2675_v13 = vsub.f32 %v2643_v10, %v2663_v18  ;;  %v2674_v9 = vsub.f32 %v2642_v50, %v2660_v3 }
 0xe1f   :  { %v2688_v39 = vmul.f32 1.442695, %v2675_v13  ;;  %v2686_v56 = vmul.f32 1.442695, %v2674_v9 }
 0xe20   :  { %v2669_v45 = vpop.xlane.xlu1 %2668  ;;  %v2666_v10 = vpop.xlane.xlu0 %2665 }
 0xe21   :  { %10017 = vpow2.f32 %v2688_v39  ;;  %v2677_v50 = vsub.f32 %v2645_v1, %v2669_v45  ;;  %v2676_v18 = vsub.f32 %v2644_v41, %v2666_v10 }
 0xe22   :  { %10019 = vpow2.f32 %v2686_v56 }
 0xe23   :  { %v2692_v3 = vmul.f32 1.442695, %v2677_v50  ;;  %v2690_v13 = vmul.f32 1.442695, %v2676_v18 }
 0xe24   :  { %v2885_v25 = vpop.permute.xlu1 %2884  ;;  %v3002_v1 = vpop.permute.xlu0 %3001 }
 0xe25   :  { %9314 = vmatprep.subr.msk.mxu1 %vm570_vm0, %v2885_v25  ;;  %10021 = vpow2.f32 %v2692_v3 }
 0xe26   :  { %9315 = vmatpush3.xpose.msk.msra.mxu1 %vm570_vm0, %v2885_v25  ;;  %10023 = vpow2.f32 %v2690_v13 }
 0xe27   :  { %10025 = vrcp.f32 %v2696_v23 }
 0xe28   :  { %10027 = vrcp.f32 %v2699_v17 }
 0xe2e   :  { %v10018_v29 = vpop.eup %10017 }
 0xe2f   :  { %v10020_v40 = vpop.eup %10019  ;;  %v2709_v54 = vsel %vm797_vm1, %v10018_v29, 0.0 }
 0xe30   :  { %2710 = vadd.xlane.f32.xlu1 %v2709_v54  ;;  %v2706_v37 = vsel %vm797_vm1, %v10020_v40, 0.0 }
 0xe31   :  { %2707 = vadd.xlane.f32.xlu0 %v2706_v37 }
 0xe32   :  { %v11540_v9 = vpop.eup %10021 }
 0xe33   :  { %v11542_v39 = vpop.eup %10023  ;;  %v2715_v54 = vsel %vm797_vm1, %v11540_v9, 0.0 }
 0xe34   :  { %v2712_v37 = vsel %vm797_vm1, %v11542_v39, 0.0  ;;  %v10026_v25 = vpop.eup %10025 }
 0xe35   :  { %v10028_v10 = vpop.eup %10027  ;;  %v2719_v17 = vmul.f32 %v10026_v25, %v11494_v24 }
 0xe41   :  { %2882 = vrot.lane.b32.xlu1 %v10765_v27, %s10635_s22 }
 0xe47   :  { %2999 = vrot.lane.b32.xlu0 %v10767_v28, %s10635_s22 }
 0xe65   :  { %2716 = vadd.xlane.f32.xlu1 %v2715_v54  ;;  %v2721_v54 = vmul.f32 %v10028_v10, %v11502_v32 }
 0xe66   :  { %2713 = vadd.xlane.f32.xlu0 %v2712_v37 }
 0xe76   :  { %2880 = vrot.lane.b32.xlu1 %v10761_v0, %s10635_s22 }
 0xe7a   :  { %2991 = vrot.lane.b32.xlu1 %v10823_v46, %s10635_s22 }
 0xe7c   :  { %2997 = vrot.lane.b32.xlu0 %v10763_v26, %s10635_s22 }
 0xe7e   :  { %2874 = vrot.lane.b32.xlu1 %v10813_v42, %s10635_s22 }
 0xe80   :  { %2989 = vrot.lane.b32.xlu0 %v10775_v34, %s10635_s22 }
 0xe82   :  { %2995 = vrot.lane.b32.xlu1 %v10833_v48, %s10635_s22 }
 0xe84   :  { %2872 = vrot.lane.b32.xlu0 %v10771_v31, %s10635_s22 }
 0xe86   :  { %2878 = vrot.lane.b32.xlu1 %v10827_v47, %s10635_s22 }
 0xe88   :  { %2993 = vrot.lane.b32.xlu0 %v10821_v44, %s10635_s22 }
 0xe8c   :  { %2876 = vrot.lane.b32.xlu0 %v10817_v43, %s10635_s22 }
 0xeb9   :  { %v2711_v41 = vpop.xlane.xlu1 %2710 }
 0xeba   :  { %10029 = vrcp.f32 %v2711_v41  ;;  %v2708_v56 = vpop.xlane.xlu0 %2707 }
 0xebb   :  { %10031 = vrcp.f32 %v2708_v56 }
 0xebc   :  { %10033 = vrcp.f32 %v11528_v7 }
 0xebd   :  { %v2883_v45 = vpop.permute.xlu1 %2882  ;;  %10035 = vrcp.f32 %v11530_v20 }
 0xebe   :  { %9316 = vmatprep.subr.msk.mxu1 %vm570_vm0, %v2883_v45 }
 0xebf   :  { %9317 = vmatpush3.xpose.msk.msra.mxu1 %vm570_vm0, %v2883_v45 }
 0xec7   :  { %v10030_v50 = vpop.eup %10029 }
 0xec8   :  { %v10032_v18 = vpop.eup %10031  ;;  %v2729_v3 = vmul.f32 %v10030_v50, %v10018_v29  ;;  %v3000_v29 = vpop.permute.xlu0 %2999 }
 0xec9   :  { %v2727_v13 = vmul.f32 %v10032_v18, %v10020_v40  ;;  %v10034_v25 = vpop.eup %10033 }
 0xeca   :  { %v2735_v23 = vmul.f32 %v2729_v3, %v11000_v21  ;;  %v10036_v10 = vpop.eup %10035 }
 0xecb   :  { %v2734_v37 = vmul.f32 %v2727_v13, %v11000_v21 }
 0xecc   :  { %v2739_v41 = vsub.f32 %v2721_v54, %v2735_v23 }
 0xecd   :  { %v2738_v56 = vsub.f32 %v2719_v17, %v2734_v37  ;;  %v2725_v17 = vmul.f32 %v10034_v25, %v11507_v16 }
 0xecf   :  { %9306 = vmatprep.mubr.msk.f32.mxu0 %vm797_vm1, %v2738_v56 }
 0xed0   :  { %9307 = vmatmul.mubr.msk.f32.vlgmr.msra.gmra.mxu0 %vm797_vm1, %v2739_v41  ;;  %v2723_v41 = vmul.f32 %v10036_v10, %v11510_v11 }
 0xed1   :  { %9327 = vmatpush3.xpose.msk.msra.mxu0 %vm570_vm0, %v11498_v15 }
 0xed2   :  { %9328 = vmatprep.subr.msk.mxu0 %vm570_vm0, %v3002_v1 }
 0xed5   :  { %9329 = vmatpush3.xpose.msk.msra.mxu0 %vm570_vm0, %v3002_v1 }
 0xed6   :  { %9330 = vmatprep.subr.msk.mxu0 %vm570_vm0, %v3000_v29 }
 0xed9   :  { %9331 = vmatpush3.xpose.msk.msra.mxu0 %vm570_vm0, %v3000_v29 }
 0xeee   :  { %v2717_v40 = vpop.xlane.xlu1 %2716 }
 0xeef   :  { %10037 = vrcp.f32 %v2717_v40  ;;  %v2714_v24 = vpop.xlane.xlu0 %2713 }
 0xef0   :  { %10039 = vrcp.f32 %v2714_v24 }
 0xef2   :  { %v2881_v32 = vpop.permute.xlu1 %2880 }
 0xef3   :  { %v2998_v45 = vpop.permute.xlu0 %2997  ;;  %9318 = vmatprep.subr.msk.mxu1 %vm570_vm0, %v2881_v32 }
 0xef4   :  { %9332 = vmatprep.subr.msk.mxu0 %vm570_vm0, %v2998_v45  ;;  %9319 = vmatpush3.xpose.msk.msra.mxu1 %vm570_vm0, %v2881_v32 }
 0xef5   :  { %9333 = vmatpush3.xpose.msk.msra.mxu0 %vm570_vm0, %v2998_v45 }
 0xef6   :  { %v2992_v15 = vpop.permute.xlu1 %2991 }
 0xef7   :  { %v2990_v1 = vpop.permute.xlu0 %2989 }
 0xefa   :  { %v2875_v7 = vpop.permute.xlu1 %2874 }
 0xefb   :  { %v2873_v20 = vpop.permute.xlu0 %2872 }
 0xefc   :  { %v10038_v50 = vpop.eup %10037  ;;  %9320 = vmatprep.mubr.msk.f32.mxu1 %vm570_vm0, %v2873_v20 }
 0xefd   :  { %v10040_v18 = vpop.eup %10039  ;;  %9321 = vmatmul.mubr.msk.f32.vlgmr.msra.gmra.mxu1 %vm570_vm0, %v2875_v7  ;;  %v2733_v3 = vmul.f32 %v10038_v50, %v11540_v9 }
 0xefe   :  { %v2996_v13 = vpop.permute.xlu1 %2995  ;;  %v2731_v54 = vmul.f32 %v10040_v18, %v11542_v39 }
 0xeff   :  { %v2994_v23 = vpop.permute.xlu0 %2993  ;;  %v2737_v37 = vmul.f32 %v2733_v3, %v11000_v21 }
 0xf00   :  { %v2736_v56 = vmul.f32 %v2731_v54, %v11000_v21 }
 0xf01   :  { %v2741_v29 = vsub.f32 %v2725_v17, %v2737_v37 }
 0xf02   :  { %v2879_v40 = vpop.permute.xlu1 %2878  ;;  %v2740_v24 = vsub.f32 %v2723_v41, %v2736_v56 }
 0xf03   :  { %v2877_v32 = vpop.permute.xlu0 %2876 }
 0xf04   :  { %9309 = vmatprep.mubr.msk.f32.mxu0 %vm797_vm1, %v2740_v24  ;;  %9323 = vmatprep.mubr.msk.f32.mxu1 %vm570_vm0, %v2877_v32 }
 0xf05   :  { %9310 = vmatmul.mubr.msk.f32.gmra.mxu0 %vm797_vm1, %v2741_v29  ;;  %9324 = vmatmul.mubr.msk.f32.gmra.mxu1 %vm570_vm0, %v2879_v40 }
 0xf06   :  { %9334 = vmatprep.mubr.msk.f32.mxu0 %vm570_vm0, %v2990_v1 }
 0xf09   :  { %9335 = vmatmul.mubr.msk.f32.vlgmr.msra.gmra.mxu0 %vm570_vm0, %v2992_v15 }
 0xf0a   :  { %9337 = vmatprep.mubr.msk.f32.mxu0 %vm570_vm0, %v2994_v23 }
 0xf0d   :  { %9338 = vmatmul.mubr.msk.f32.gmra.mxu0 %vm570_vm0, %v2996_v13 }
 0xfbd   :  { %v9322_v16 = vpop.f32.mrf.mxu1 }
 0xfbe   :  { %v3107_v39 = vadd.f32 %v11315_v52, %v9322_v16 }
 0xfbf   :  { %v2970_v11 = vpop.f32.mrf.mxu1 }
 0xfc0   :  { %v3106_v9 = vadd.f32 %v11312_v22, %v2970_v11  ;;  %v3117_v1 = vsel %vm797_vm1, %v3107_v39, -inf }
 0xfc2   :  { %v3114_v45 = vsel %vm797_vm1, %v3106_v9, -inf }
 0xfc3   :  { %3115 = vmax.xlane.f32.xlu0 %v3114_v45 }
 0xfc5   :  { %v9325_v25 = vpop.f32.mrf.mxu1 }
 0xfc6   :  { %v3109_v7 = vadd.f32 %v11319_v6, %v9325_v25  ;;  %v11624_v6 = vpop.f32.mrf.mxu0 }
 0xfc7   :  { %3118 = vmax.xlane.f32.xlu0 %v3117_v1  ;;  %v2980_v15 = vpop.f32.mrf.mxu1 }
 0xfc8   :  { %v3108_v10 = vadd.f32 %v11323_v19, %v2980_v15  ;;  %v3123_v20 = vsel %vm797_vm1, %v3109_v7, -inf  ;;  %v11626_v13 = vpop.f32.mrf.mxu0 }
 0xfc9   :  { %3124 = vmax.xlane.f32.xlu1 %v3123_v20 }
 0xfca   :  { %v3120_v50 = vsel %vm797_vm1, %v3108_v10, -inf  ;;  %v11628_v37 = vpop.f32.mrf.mxu0 }
 0xfcb   :  { %3121 = vmax.xlane.f32.xlu0 %v3120_v50  ;;  %13354 = vst [vmem:[#allocation44_spill] sm:$0xff] %v11628_v37 }
 0xfcc   :  { %v11630_v32 = vpop.f32.mrf.mxu0 }
 0xfcd   :  { %13355 = vst [vmem:[#allocation45_spill] sm:$0xff] %v11630_v32 }
 0xfda   :  { %3214 = vrot.lane.b32.xlu1 %v10864_v60, %s10635_s22 }
 0xfde   :  { %3212 = vrot.lane.b32.xlu1 %v10857_v57, %s10635_s22 }
 0xfe1   :  { %3216 = vrot.lane.b32.xlu0 %v10861_v59, %s10635_s22 }
 0xfe2   :  { %3210 = vrot.lane.b32.xlu1 %v10859_v58, %s10635_s22 }
 0xfe5   :  { %3471 = vrot.lane.b32.xlu0 %v10785_v38, %s10636_s23 }
 0xfe6   :  { %3354 = vrot.lane.b32.xlu1 %v10779_v36, %s10636_s23 }
0x104c   :  { %v3116_v22 = vpop.xlane.xlu0 %3115 }
0x104d   :  { %v3138_v52 = vsub.f32 %v3106_v9, %v3116_v22  ;;  %v9336_v9 = vpop.f32.mrf.mxu0 }
0x104f   :  { %v3146_v19 = vmul.f32 1.442695, %v3138_v52 }
0x1050   :  { %v3119_v18 = vpop.xlane.xlu0 %3118 }
0x1051   :  { %10041 = vpow2.f32 %v3146_v19  ;;  %v3139_v3 = vsub.f32 %v3107_v39, %v3119_v18  ;;  %v3111_v19 = vadd.f32 %v11366_v35, %v9336_v9 }
0x1052   :  { %v3125_v54 = vpop.xlane.xlu1 %3124 }
0x1053   :  { %v3148_v23 = vmul.f32 1.442695, %v3139_v3  ;;  %v3141_v17 = vsub.f32 %v3109_v7, %v3125_v54  ;;  %v3087_v7 = vpop.f32.mrf.mxu0 }
0x1054   :  { %v3122_v41 = vpop.xlane.xlu0 %3121  ;;  %v3110_v18 = vadd.f32 %v11369_v62, %v3087_v7 }
0x1055   :  { %10043 = vpow2.f32 %v3148_v23  ;;  %v3152_v56 = vmul.f32 1.442695, %v3141_v17  ;;  %v3140_v29 = vsub.f32 %v3108_v10, %v3122_v41  ;;  %v9339_v22 = vpop.f32.mrf.mxu0 }
0x1056   :  { %v3215_v40 = vpop.permute.xlu1 %3214  ;;  %v3113_v17 = vadd.f32 %v11376_v12, %v9339_v22 }
0x1057   :  { %10045 = vpow2.f32 %v3152_v56  ;;  %v3150_v24 = vmul.f32 1.442695, %v3140_v29  ;;  %v3097_v23 = vpop.f32.mrf.mxu0  ;;  %v3129_v56 = vsel %vm797_vm1, %v3111_v19, -inf  ;;  %v3126_v29 = vsel %vm797_vm1, %v3110_v18, -inf }
0x1058   :  { %v3217_v16 = vpop.permute.xlu0 %3216  ;;  %v3112_v41 = vadd.f32 %v11379_v4, %v3097_v23  ;;  %v3135_v35 = vsel %vm797_vm1, %v3113_v17, -inf }
0x1059   :  { %10047 = vpow2.f32 %v3150_v24  ;;  %9340 = vmatprep.subr.mxu1 %v3217_v16 }
0x105a   :  { %v3213_v11 = vpop.permute.xlu1 %3212  ;;  %9341 = vmatpush3.msra.mxu1 %v3217_v16  ;;  %v3132_v62 = vsel %vm797_vm1, %v3112_v41, -inf }
0x105b   :  { %9342 = vmatprep.subr.mxu1 %v3215_v40 }
0x105c   :  { %9343 = vmatpush3.msra.mxu1 %v3215_v40  ;;  %v11636_v1 = vpop.permute.xlu0 %3471 }
0x105d   :  { %9344 = vmatprep.subr.mxu1 %v3213_v11 }
0x105e   :  { %v11632_v39 = vpop.eup %10041  ;;  %v3211_v45 = vpop.permute.xlu1 %3210  ;;  %9345 = vmatpush3.msra.mxu1 %v3213_v11 }
0x105f   :  { %9346 = vmatprep.subr.mxu1 %v3211_v45  ;;  %v3162_v25 = vsel %vm797_vm1, %v11632_v39, 0.0 }
0x1060   :  { %3163 = vadd.xlane.f32.xlu0 %v3162_v25  ;;  %9347 = vmatpush3.msra.mxu1 %v3211_v45 }
0x1061   :  { %9368 = vmatprep.subr.msk.mxu1 %vm570_vm0, %v11636_v1 }
0x1062   :  { %v11640_v15 = vpop.eup %10043  ;;  %v3355_v10 = vpop.permute.xlu1 %3354 }
0x1063   :  { %9354 = vmatprep.subr.msk.mxu0 %vm570_vm0, %v3355_v10  ;;  %v3165_v20 = vsel %vm797_vm1, %v11640_v15, 0.0 }
0x1064   :  { %v11645_v50 = vpop.eup %10045  ;;  %9355 = vmatpush3.xpose.msk.msra.mxu0 %vm570_vm0, %v3355_v10  ;;  %3166 = vadd.xlane.f32.xlu1 %v3165_v20 }
0x1065   :  { %v3171_v3 = vsel %vm797_vm1, %v11645_v50, 0.0 }
0x1066   :  { %v11648_v52 = vpop.eup %10047 }
0x1067   :  { %v3168_v54 = vsel %vm797_vm1, %v11648_v52, 0.0 }
0x1068   :  { %3172 = vadd.xlane.f32.xlu1 %v3171_v3  ;;  %3169 = vadd.xlane.f32.xlu0 %v3168_v54 }
0x106c   :  { %3130 = vmax.xlane.f32.xlu1 %v3129_v56  ;;  %3127 = vmax.xlane.f32.xlu0 %v3126_v29 }
0x1070   :  { %3136 = vmax.xlane.f32.xlu1 %v3135_v35  ;;  %3133 = vmax.xlane.f32.xlu0 %v3132_v62 }
0x1081   :  { %3352 = vrot.lane.b32.xlu1 %v10769_v30, %s10636_s23 }
0x1086   :  { %3469 = vrot.lane.b32.xlu0 %v10773_v33, %s10636_s23 }
0x10e9   :  { %v3164_v12 = vpop.xlane.xlu0 %3163 }
0x10ed   :  { %v3167_v4 = vpop.xlane.xlu1 %3166 }
0x10f1   :  { %v11666_v40 = vpop.xlane.xlu1 %3172  ;;  %v11668_v24 = vpop.xlane.xlu0 %3169 }
0x10f5   :  { %v3131_v16 = vpop.xlane.xlu1 %3130  ;;  %v3128_v11 = vpop.xlane.xlu0 %3127 }
0x10f6   :  { %v3143_v9 = vsub.f32 %v3111_v19, %v3131_v16  ;;  %v3142_v45 = vsub.f32 %v3110_v18, %v3128_v11 }
0x10f8   :  { %v3156_v25 = vmul.f32 1.442695, %v3143_v9  ;;  %v3154_v7 = vmul.f32 1.442695, %v3142_v45 }
0x10f9   :  { %v3137_v10 = vpop.xlane.xlu1 %3136  ;;  %v3134_v19 = vpop.xlane.xlu0 %3133 }
0x10fa   :  { %10049 = vpow2.f32 %v3156_v25  ;;  %v3145_v18 = vsub.f32 %v3113_v17, %v3137_v10  ;;  %v3144_v56 = vsub.f32 %v3112_v41, %v3134_v19 }
0x10fb   :  { %10051 = vpow2.f32 %v3154_v7 }
0x10fc   :  { %v3160_v29 = vmul.f32 1.442695, %v3145_v18  ;;  %v3158_v35 = vmul.f32 1.442695, %v3144_v56 }
0x10fd   :  { %v3353_v20 = vpop.permute.xlu1 %3352  ;;  %v3470_v17 = vpop.permute.xlu0 %3469 }
0x10fe   :  { %9356 = vmatprep.subr.msk.mxu0 %vm570_vm0, %v3353_v20  ;;  %10053 = vpow2.f32 %v3160_v29 }
0x10ff   :  { %9357 = vmatpush3.xpose.msk.msra.mxu0 %vm570_vm0, %v3353_v20  ;;  %10055 = vpow2.f32 %v3158_v35 }
0x1100   :  { %10057 = vrcp.f32 %v3164_v12 }
0x1101   :  { %10059 = vrcp.f32 %v3167_v4 }
0x1107   :  { %v10050_v22 = vpop.eup %10049 }
0x1108   :  { %v10052_v3 = vpop.eup %10051  ;;  %v3177_v54 = vsel %vm797_vm1, %v10050_v22, 0.0 }
0x1109   :  { %3178 = vadd.xlane.f32.xlu1 %v3177_v54  ;;  %v3174_v23 = vsel %vm797_vm1, %v10052_v3, 0.0 }
0x110a   :  { %3175 = vadd.xlane.f32.xlu0 %v3174_v23 }
0x110b   :  { %v11678_v62 = vpop.eup %10053 }
0x110c   :  { %v11680_v16 = vpop.eup %10055  ;;  %v3183_v11 = vsel %vm797_vm1, %v11678_v62, 0.0 }
0x110d   :  { %v3180_v9 = vsel %vm797_vm1, %v11680_v16, 0.0  ;;  %v10058_v7 = vpop.eup %10057 }
0x110e   :  { %v10060_v10 = vpop.eup %10059  ;;  %v3187_v4 = vmul.f32 %v10058_v7, %v11632_v39 }
0x110f   :  { %v3189_v18 = vmul.f32 %v10060_v10, %v11640_v15 }
0x111a   :  { %3350 = vrot.lane.b32.xlu1 %v10765_v27, %s10636_s23 }
0x1120   :  { %3467 = vrot.lane.b32.xlu0 %v10767_v28, %s10636_s23 }
0x113e   :  { %3184 = vadd.xlane.f32.xlu1 %v3183_v11 }
0x113f   :  { %3181 = vadd.xlane.f32.xlu0 %v3180_v9 }
0x114f   :  { %3348 = vrot.lane.b32.xlu1 %v10761_v0, %s10636_s23 }
0x1153   :  { %3459 = vrot.lane.b32.xlu1 %v10823_v46, %s10636_s23 }
0x1155   :  { %3465 = vrot.lane.b32.xlu0 %v10763_v26, %s10636_s23 }
0x1157   :  { %3342 = vrot.lane.b32.xlu1 %v10813_v42, %s10636_s23 }
0x1159   :  { %3457 = vrot.lane.b32.xlu0 %v10775_v34, %s10636_s23 }
0x115b   :  { %3463 = vrot.lane.b32.xlu1 %v10833_v48, %s10636_s23 }
0x115d   :  { %3340 = vrot.lane.b32.xlu0 %v10771_v31, %s10636_s23 }
0x115f   :  { %3346 = vrot.lane.b32.xlu1 %v10827_v47, %s10636_s23 }
0x1161   :  { %3461 = vrot.lane.b32.xlu0 %v10821_v44, %s10636_s23 }
0x1165   :  { %3344 = vrot.lane.b32.xlu0 %v10817_v43, %s10636_s23 }
0x1192   :  { %v3179_v41 = vpop.xlane.xlu1 %3178 }
0x1193   :  { %10061 = vrcp.f32 %v3179_v41  ;;  %v3176_v45 = vpop.xlane.xlu0 %3175 }
0x1194   :  { %10063 = vrcp.f32 %v3176_v45 }
0x1195   :  { %10065 = vrcp.f32 %v11666_v40 }
0x1196   :  { %v3351_v25 = vpop.permute.xlu1 %3350  ;;  %10067 = vrcp.f32 %v11668_v24 }
0x1197   :  { %9358 = vmatprep.subr.msk.mxu0 %vm570_vm0, %v3351_v25 }
0x1198   :  { %9359 = vmatpush3.xpose.msk.msra.mxu0 %vm570_vm0, %v3351_v25 }
0x11a0   :  { %v10062_v20 = vpop.eup %10061 }
0x11a1   :  { %v10064_v54 = vpop.eup %10063  ;;  %v3197_v23 = vmul.f32 %v10062_v20, %v10050_v22  ;;  %v3468_v22 = vpop.permute.xlu0 %3467 }
0x11a2   :  { %v3195_v19 = vmul.f32 %v10064_v54, %v10052_v3 }
0x11a3   :  { %v3203_v12 = vmul.f32 %v3197_v23, %v11000_v21 }
0x11a4   :  { %v3202_v56 = vmul.f32 %v3195_v19, %v11000_v21 }
0x11a5   :  { %v3207_v29 = vsub.f32 %v3189_v18, %v3203_v12 }
0x11a6   :  { %v3206_v35 = vsub.f32 %v3187_v4, %v3202_v56 }
0x11a8   :  { %9348 = vmatprep.mubr.msk.f32.mxu1 %vm797_vm1, %v3206_v35 }
0x11a9   :  { %9349 = vmatmul.mubr.msk.f32.vlgmr.msra.gmra.mxu1 %vm797_vm1, %v3207_v29 }
0x11aa   :  { %9369 = vmatpush3.xpose.msk.msra.mxu1 %vm570_vm0, %v11636_v1 }
0x11ab   :  { %9370 = vmatprep.subr.msk.mxu1 %vm570_vm0, %v3470_v17 }
0x11ae   :  { %9371 = vmatpush3.xpose.msk.msra.mxu1 %vm570_vm0, %v3470_v17  ;;  %v10066_v17 = vpop.eup %10065 }
0x11af   :  { %9372 = vmatprep.subr.msk.mxu1 %vm570_vm0, %v3468_v22  ;;  %v10068_v41 = vpop.eup %10067  ;;  %v3193_v23 = vmul.f32 %v10066_v17, %v11645_v50 }
0x11b0   :  { %v3191_v18 = vmul.f32 %v10068_v41, %v11648_v52 }
0x11b2   :  { %9373 = vmatpush3.xpose.msk.msra.mxu1 %vm570_vm0, %v3468_v22  ;;  %v11745_v22 = vld [vmem:[#allocation13 + $0x8] sm:$0xff] }
0x11c7   :  { %v3185_v39 = vpop.xlane.xlu1 %3184 }
0x11c8   :  { %10069 = vrcp.f32 %v3185_v39  ;;  %v3182_v15 = vpop.xlane.xlu0 %3181 }
0x11c9   :  { %10071 = vrcp.f32 %v3182_v15 }
0x11cb   :  { %v3349_v3 = vpop.permute.xlu1 %3348 }
0x11cc   :  { %v3466_v11 = vpop.permute.xlu0 %3465  ;;  %9360 = vmatprep.subr.msk.mxu0 %vm570_vm0, %v3349_v3 }
0x11cd   :  { %9374 = vmatprep.subr.msk.mxu1 %vm570_vm0, %v3466_v11  ;;  %9361 = vmatpush3.xpose.msk.msra.mxu0 %vm570_vm0, %v3349_v3 }
0x11ce   :  { %9375 = vmatpush3.xpose.msk.msra.mxu1 %vm570_vm0, %v3466_v11  ;;  %v11749_v11 = vld [vmem:[#allocation13 + $0x18] sm:$0xff] }
0x11cf   :  { %v3460_v1 = vpop.permute.xlu1 %3459 }
0x11d0   :  { %v3458_v9 = vpop.permute.xlu0 %3457 }
0x11d3   :  { %v3343_v40 = vpop.permute.xlu1 %3342 }
0x11d4   :  { %v3341_v24 = vpop.permute.xlu0 %3340 }
0x11d5   :  { %v10070_v45 = vpop.eup %10069  ;;  %9362 = vmatprep.mubr.msk.f32.mxu0 %vm570_vm0, %v3341_v24 }
0x11d6   :  { %v10072_v25 = vpop.eup %10071  ;;  %9363 = vmatmul.mubr.msk.f32.vlgmr.msra.gmra.mxu0 %vm570_vm0, %v3343_v40  ;;  %v3201_v7 = vmul.f32 %v10070_v45, %v11678_v62  ;;  %v11742_v62 = vld [vmem:[#allocation13] sm:$0xff]  ;;  %v11753_v40 = vld [vmem:[#allocation13 + $0x10] sm:$0xff] }
0x11d7   :  { %v3464_v10 = vpop.permute.xlu1 %3463  ;;  %v3199_v20 = vmul.f32 %v10072_v25, %v11680_v16 }
0x11d8   :  { %v3462_v54 = vpop.permute.xlu0 %3461  ;;  %v3205_v19 = vmul.f32 %v3201_v7, %v11000_v21 }
0x11d9   :  { %v3204_v12 = vmul.f32 %v3199_v20, %v11000_v21 }
0x11da   :  { %v3209_v4 = vsub.f32 %v3193_v23, %v3205_v19 }
0x11db   :  { %v3347_v56 = vpop.permute.xlu1 %3346  ;;  %v3208_v29 = vsub.f32 %v3191_v18, %v3204_v12 }
0x11dc   :  { %v3345_v35 = vpop.permute.xlu0 %3344 }
0x11dd   :  { %9351 = vmatprep.mubr.msk.f32.mxu1 %vm797_vm1, %v3208_v29  ;;  %9365 = vmatprep.mubr.msk.f32.mxu0 %vm570_vm0, %v3345_v35 }
0x11de   :  { %9352 = vmatmul.mubr.msk.f32.gmra.mxu1 %vm797_vm1, %v3209_v4  ;;  %9366 = vmatmul.mubr.msk.f32.gmra.mxu0 %vm570_vm0, %v3347_v56 }
0x11df   :  { %9376 = vmatprep.mubr.msk.f32.mxu1 %vm570_vm0, %v3458_v9 }
0x11e2   :  { %9377 = vmatmul.mubr.msk.f32.vlgmr.msra.gmra.mxu1 %vm570_vm0, %v3460_v1 }
0x11e3   :  { %9379 = vmatprep.mubr.msk.f32.mxu1 %vm570_vm0, %v3462_v54 }
0x11e6   :  { %9380 = vmatmul.mubr.msk.f32.gmra.mxu1 %vm570_vm0, %v3464_v10 }
0x1269   :  { %v11770_v10 = vpop.f32.mrf.mxu1 }
0x126b   :  { %v11772_v19 = vpop.f32.mrf.mxu1 }
0x1296   :  { %v9364_v50 = vpop.f32.mrf.mxu0 }
0x1297   :  { %v3575_v39 = vadd.f32 %v11745_v22, %v9364_v50 }
0x1298   :  { %v3438_v52 = vpop.f32.mrf.mxu0 }
0x1299   :  { %v3574_v16 = vadd.f32 %v11742_v62, %v3438_v52  ;;  %v3585_v9 = vsel %vm797_vm1, %v3575_v39, -inf }
0x129b   :  { %v3582_v15 = vsel %vm797_vm1, %v3574_v16, -inf }
0x129c   :  { %3583 = vmax.xlane.f32.xlu0 %v3582_v15 }
0x129e   :  { %v9367_v3 = vpop.f32.mrf.mxu0  ;;  %v11774_v56 = vpop.f32.mrf.mxu1 }
0x129f   :  { %v3577_v1 = vadd.f32 %v11749_v11, %v9367_v3  ;;  %13356 = vst [vmem:[#allocation46_spill] sm:$0xff] %v11774_v56 }
0x12a0   :  { %3586 = vmax.xlane.f32.xlu0 %v3585_v9  ;;  %v3448_v17 = vpop.f32.mrf.mxu0  ;;  %v11776_v52 = vpop.f32.mrf.mxu1 }
0x12a1   :  { %v3576_v41 = vadd.f32 %v11753_v40, %v3448_v17  ;;  %v3591_v24 = vsel %vm797_vm1, %v3577_v1, -inf  ;;  %13357 = vst [vmem:[#allocation47_spill] sm:$0xff] %v11776_v52 }
0x12a2   :  { %3592 = vmax.xlane.f32.xlu1 %v3591_v24  ;;  %v9378_v15 = vpop.f32.mrf.mxu1 }
0x12a3   :  { %v3588_v45 = vsel %vm797_vm1, %v3576_v41, -inf }
0x12a4   :  { %3589 = vmax.xlane.f32.xlu0 %v3588_v45  ;;  %v3555_v17 = vpop.f32.mrf.mxu1 }
0x12b3   :  { %3682 = vrot.lane.b32.xlu1 %v10864_v60, %s10636_s23 }
0x12b7   :  { %3680 = vrot.lane.b32.xlu1 %v10857_v57, %s10636_s23 }
0x12ba   :  { %3684 = vrot.lane.b32.xlu0 %v10861_v59, %s10636_s23 }
0x12bb   :  { %3678 = vrot.lane.b32.xlu1 %v10859_v58, %s10636_s23 }
0x12be   :  { %3939 = vrot.lane.b32.xlu0 %v10785_v38, %s10621_s9 }
0x12bf   :  { %3822 = vrot.lane.b32.xlu1 %v10779_v36, %s10621_s9 }
0x1325   :  { %v3584_v25 = vpop.xlane.xlu0 %3583 }
0x1326   :  { %v3606_v7 = vsub.f32 %v3574_v16, %v3584_v25 }
0x1328   :  { %v3614_v20 = vmul.f32 1.442695, %v3606_v7 }
0x1329   :  { %v3587_v54 = vpop.xlane.xlu0 %3586 }
0x132a   :  { %10073 = vpow2.f32 %v3614_v20  ;;  %v3607_v23 = vsub.f32 %v3575_v39, %v3587_v54  ;;  %v9381_v20 = vpop.f32.mrf.mxu1 }
0x132b   :  { %v3593_v18 = vpop.xlane.xlu1 %3592 }
0x132c   :  { %v3616_v12 = vmul.f32 1.442695, %v3607_v23  ;;  %v3609_v4 = vsub.f32 %v3577_v1, %v3593_v18  ;;  %v11796_v23 = vld [vmem:[#allocation13 + $0x28] sm:$0xff] }
0x132d   :  { %v3590_v29 = vpop.xlane.xlu0 %3589  ;;  %v3579_v18 = vadd.f32 %v11796_v23, %v9378_v15 }
0x132e   :  { %10075 = vpow2.f32 %v3616_v12  ;;  %v3620_v38 = vmul.f32 1.442695, %v3609_v4  ;;  %v3608_v35 = vsub.f32 %v3576_v41, %v3590_v29  ;;  %v11799_v12 = vld [vmem:[#allocation13 + $0x20] sm:$0xff] }
0x132f   :  { %v3683_v36 = vpop.permute.xlu1 %3682  ;;  %v3578_v4 = vadd.f32 %v11799_v12, %v3555_v17  ;;  %v3597_v15 = vsel %vm797_vm1, %v3579_v18, -inf }
0x1330   :  { %10077 = vpow2.f32 %v3620_v38  ;;  %v3618_v50 = vmul.f32 1.442695, %v3608_v35  ;;  %v3565_v35 = vpop.f32.mrf.mxu1 }
0x1331   :  { %v3685_v16 = vpop.permute.xlu0 %3684 }
0x1332   :  { %10079 = vpow2.f32 %v3618_v50  ;;  %9382 = vmatprep.subr.mxu0 %v3685_v16 }
0x1333   :  { %v3681_v39 = vpop.permute.xlu1 %3680  ;;  %9383 = vmatpush3.msra.mxu0 %v3685_v16  ;;  %v11809_v16 = vld [vmem:[#allocation13 + $0x30] sm:$0xff] }
0x1334   :  { %9384 = vmatprep.subr.mxu0 %v3683_v36 }
0x1335   :  { %9385 = vmatpush3.msra.mxu0 %v3683_v36  ;;  %v11782_v41 = vpop.permute.xlu0 %3939  ;;  %v11806_v36 = vld [vmem:[#allocation13 + $0x38] sm:$0xff] }
0x1336   :  { %9386 = vmatprep.subr.mxu0 %v3681_v39  ;;  %v3581_v50 = vadd.f32 %v11806_v36, %v9381_v20 }
0x1337   :  { %v11778_v3 = vpop.eup %10073  ;;  %v3679_v1 = vpop.permute.xlu1 %3678  ;;  %9387 = vmatpush3.msra.mxu0 %v3681_v39  ;;  %v3580_v39 = vadd.f32 %v11809_v16, %v3565_v35 }
0x1338   :  { %9388 = vmatprep.subr.mxu0 %v3679_v1  ;;  %v3630_v9 = vsel %vm797_vm1, %v11778_v3, 0.0 }
0x1339   :  { %3631 = vadd.xlane.f32.xlu0 %v3630_v9  ;;  %9389 = vmatpush3.msra.mxu0 %v3679_v1  ;;  %v3594_v1 = vsel %vm797_vm1, %v3578_v4, -inf  ;;  %v3603_v9 = vsel %vm797_vm1, %v3581_v50, -inf  ;;  %v3600_v17 = vsel %vm797_vm1, %v3580_v39, -inf }
0x133a   :  { %9410 = vmatprep.subr.msk.mxu0 %vm570_vm0, %v11782_v41 }
0x133b   :  { %v11786_v24 = vpop.eup %10075  ;;  %v3823_v45 = vpop.permute.xlu1 %3822 }
0x133c   :  { %9396 = vmatprep.subr.msk.mxu1 %vm570_vm0, %v3823_v45  ;;  %v3633_v25 = vsel %vm797_vm1, %v11786_v24, 0.0 }
0x133d   :  { %v11791_v7 = vpop.eup %10077  ;;  %9397 = vmatpush3.xpose.msk.msra.mxu1 %vm570_vm0, %v3823_v45  ;;  %3634 = vadd.xlane.f32.xlu1 %v3633_v25 }
0x133e   :  { %v3639_v29 = vsel %vm797_vm1, %v11791_v7, 0.0 }
0x133f   :  { %v11794_v54 = vpop.eup %10079 }
0x1340   :  { %v3636_v38 = vsel %vm797_vm1, %v11794_v54, 0.0 }
0x1341   :  { %3640 = vadd.xlane.f32.xlu1 %v3639_v29  ;;  %3637 = vadd.xlane.f32.xlu0 %v3636_v38 }
0x1345   :  { %3598 = vmax.xlane.f32.xlu1 %v3597_v15  ;;  %3595 = vmax.xlane.f32.xlu0 %v3594_v1 }
0x1349   :  { %3604 = vmax.xlane.f32.xlu1 %v3603_v9  ;;  %3601 = vmax.xlane.f32.xlu0 %v3600_v17 }
0x135a   :  { %3820 = vrot.lane.b32.xlu1 %v10769_v30, %s10621_s9 }
0x135f   :  { %3937 = vrot.lane.b32.xlu0 %v10773_v33, %s10621_s9 }
0x13c2   :  { %v3632_v45 = vpop.xlane.xlu0 %3631 }
0x13c6   :  { %v3635_v25 = vpop.xlane.xlu1 %3634 }
0x13ca   :  { %v11820_v20 = vpop.xlane.xlu1 %3640  ;;  %v11822_v29 = vpop.xlane.xlu0 %3637 }
0x13ce   :  { %v3599_v38 = vpop.xlane.xlu1 %3598  ;;  %v3596_v35 = vpop.xlane.xlu0 %3595 }
0x13cf   :  { %v3611_v15 = vsub.f32 %v3579_v18, %v3599_v38  ;;  %v3610_v1 = vsub.f32 %v3578_v4, %v3596_v35 }
0x13d1   :  { %v3624_v56 = vmul.f32 1.442695, %v3611_v15  ;;  %v3622_v52 = vmul.f32 1.442695, %v3610_v1 }
0x13d2   :  { %v3605_v9 = vpop.xlane.xlu1 %3604 }
0x13d3   :  { %10081 = vpow2.f32 %v3624_v56  ;;  %v3602_v56 = vpop.xlane.xlu0 %3601 }
0x13d4   :  { %10083 = vpow2.f32 %v3622_v52  ;;  %v3613_v52 = vsub.f32 %v3581_v50, %v3605_v9  ;;  %v3612_v18 = vsub.f32 %v3580_v39, %v3602_v56 }
0x13d6   :  { %v3821_v17 = vpop.permute.xlu1 %3820  ;;  %v3628_v4 = vmul.f32 1.442695, %v3613_v52  ;;  %v3626_v38 = vmul.f32 1.442695, %v3612_v18 }
0x13d7   :  { %9398 = vmatprep.subr.msk.mxu1 %vm570_vm0, %v3821_v17 }
0x13d8   :  { %9399 = vmatpush3.xpose.msk.msra.mxu1 %vm570_vm0, %v3821_v17  ;;  %10085 = vpow2.f32 %v3628_v4 }
0x13d9   :  { %10087 = vpow2.f32 %v3626_v38 }
0x13da   :  { %10089 = vrcp.f32 %v3632_v45 }
0x13db   :  { %10091 = vrcp.f32 %v3635_v25 }
0x13e0   :  { %v10082_v30 = vpop.eup %10081 }
0x13e1   :  { %v10084_v33 = vpop.eup %10083  ;;  %v3645_v37 = vsel %vm797_vm1, %v10082_v30, 0.0 }
0x13e2   :  { %3646 = vadd.xlane.f32.xlu1 %v3645_v37  ;;  %v3642_v32 = vsel %vm797_vm1, %v10084_v33, 0.0 }
0x13e3   :  { %3643 = vadd.xlane.f32.xlu0 %v3642_v32 }
0x13e5   :  { %v11832_v35 = vpop.eup %10085 }
0x13e6   :  { %v11834_v15 = vpop.eup %10087  ;;  %v3651_v37 = vsel %vm797_vm1, %v11832_v35, 0.0 }
0x13f3   :  { %3818 = vrot.lane.b32.xlu1 %v10765_v27, %s10621_s9  ;;  %v3648_v27 = vsel %vm797_vm1, %v11834_v15, 0.0 }
0x13f9   :  { %3935 = vrot.lane.b32.xlu0 %v10767_v28, %s10621_s9 }
0x1417   :  { %3652 = vadd.xlane.f32.xlu1 %v3651_v37 }
0x1418   :  { %3649 = vadd.xlane.f32.xlu0 %v3648_v27 }
0x1428   :  { %3816 = vrot.lane.b32.xlu1 %v10761_v0, %s10621_s9  ;;  %v3938_v0 = vpop.permute.xlu0 %3937 }
0x142c   :  { %3927 = vrot.lane.b32.xlu1 %v10823_v46, %s10621_s9 }
0x142e   :  { %3933 = vrot.lane.b32.xlu0 %v10763_v26, %s10621_s9 }
0x1430   :  { %3810 = vrot.lane.b32.xlu1 %v10813_v42, %s10621_s9 }
0x1432   :  { %3925 = vrot.lane.b32.xlu0 %v10775_v34, %s10621_s9 }
0x1434   :  { %3931 = vrot.lane.b32.xlu1 %v10833_v48, %s10621_s9 }
0x1436   :  { %3808 = vrot.lane.b32.xlu0 %v10771_v31, %s10621_s9  ;;  %v10090_v31 = vpop.eup %10089 }
0x1437   :  { %v10092_v42 = vpop.eup %10091  ;;  %v3655_v50 = vmul.f32 %v10090_v31, %v11778_v3 }
0x1438   :  { %3814 = vrot.lane.b32.xlu1 %v10827_v47, %s10621_s9 }
0x143a   :  { %3929 = vrot.lane.b32.xlu0 %v10821_v44, %s10621_s9 }
0x143e   :  { %3812 = vrot.lane.b32.xlu0 %v10817_v43, %s10621_s9  ;;  %v3657_v43 = vmul.f32 %v10092_v42, %v11786_v24 }
0x146b   :  { %v3647_v26 = vpop.xlane.xlu1 %3646 }
0x146c   :  { %10093 = vrcp.f32 %v3647_v26  ;;  %v3644_v28 = vpop.xlane.xlu0 %3643 }
0x146d   :  { %10095 = vrcp.f32 %v3644_v28 }
0x146e   :  { %10097 = vrcp.f32 %v11820_v20 }
0x146f   :  { %v3819_v34 = vpop.permute.xlu1 %3818  ;;  %10099 = vrcp.f32 %v11822_v29 }
0x1470   :  { %9400 = vmatprep.subr.msk.mxu1 %vm570_vm0, %v3819_v34  ;;  %v3936_v1 = vpop.permute.xlu0 %3935 }
0x1471   :  { %9401 = vmatpush3.xpose.msk.msra.mxu1 %vm570_vm0, %v3819_v34 }
0x1479   :  { %v10094_v46 = vpop.eup %10093 }
0x147a   :  { %v10096_v47 = vpop.eup %10095  ;;  %v3665_v44 = vmul.f32 %v10094_v46, %v10082_v30 }
0x147b   :  { %v3663_v48 = vmul.f32 %v10096_v47, %v10084_v33  ;;  %v10098_v29 = vpop.eup %10097 }
0x147c   :  { %v3671_v32 = vmul.f32 %v3665_v44, %v11000_v21  ;;  %v10100_v33 = vpop.eup %10099 }
0x147d   :  { %v3670_v39 = vmul.f32 %v3663_v48, %v11000_v21  ;;  %v3659_v28 = vmul.f32 %v10100_v33, %v11794_v54  ;;  %v11922_v54 = vmul.f32 0.25, %v10849_v53  ;;  %v13360_v53 = vld [vmem:[#allocation30_spill] sm:$0xff] }
0x147e   :  { %v3675_v45 = vsub.f32 %v3657_v43, %v3671_v32 }
0x147f   :  { %v3674_v25 = vsub.f32 %v3655_v50, %v3670_v39 }
0x1481   :  { %9390 = vmatprep.mubr.msk.f32.mxu0 %vm797_vm1, %v3674_v25 }
0x1482   :  { %9391 = vmatmul.mubr.msk.f32.vlgmr.msra.gmra.mxu0 %vm797_vm1, %v3675_v45 }
0x1483   :  { %9411 = vmatpush3.xpose.msk.msra.mxu0 %vm570_vm0, %v11782_v41 }
0x1484   :  { %9412 = vmatprep.subr.msk.mxu0 %vm570_vm0, %v3938_v0 }
0x1487   :  { %9413 = vmatpush3.xpose.msk.msra.mxu0 %vm570_vm0, %v3938_v0  ;;  %v3661_v0 = vmul.f32 %v10098_v29, %v11791_v7  ;;  %v11902_v7 = vmul.f32 0.25, %v10841_v49  ;;  %v11918_v49 = vmul.f32 0.25, %v10845_v51  ;;  %v13359_v51 = vld [vmem:[#allocation29_spill] sm:$0xff] }
0x1488   :  { %9414 = vmatprep.subr.msk.mxu0 %vm570_vm0, %v3936_v1 }
0x148b   :  { %9415 = vmatpush3.xpose.msk.msra.mxu0 %vm570_vm0, %v3936_v1 }
0x14a0   :  { %v3653_v3 = vpop.xlane.xlu1 %3652 }
0x14a1   :  { %10101 = vrcp.f32 %v3653_v3  ;;  %v3650_v24 = vpop.xlane.xlu0 %3649 }
0x14a2   :  { %10103 = vrcp.f32 %v3650_v24 }
0x14a4   :  { %v3817_v9 = vpop.permute.xlu1 %3816 }
0x14a5   :  { %v3934_v17 = vpop.permute.xlu0 %3933  ;;  %9402 = vmatprep.subr.msk.mxu1 %vm570_vm0, %v3817_v9 }
0x14a6   :  { %9416 = vmatprep.subr.msk.mxu0 %vm570_vm0, %v3934_v17  ;;  %9403 = vmatpush3.xpose.msk.msra.mxu1 %vm570_vm0, %v3817_v9 }
0x14a7   :  { %9417 = vmatpush3.xpose.msk.msra.mxu0 %vm570_vm0, %v3934_v17 }
0x14a8   :  { %9438 = vmatprep.subr.msk.mxu0 %vm570_vm0, %v10887_v5  ;;  %v3928_v41 = vpop.permute.xlu1 %3927 }
0x14a9   :  { %v3926_v20 = vpop.permute.xlu0 %3925 }
0x14ac   :  { %v3811_v30 = vpop.permute.xlu1 %3810 }
0x14ad   :  { %v3809_v56 = vpop.permute.xlu0 %3808 }
0x14ae   :  { %v10102_v52 = vpop.eup %10101  ;;  %9404 = vmatprep.mubr.msk.f32.mxu1 %vm570_vm0, %v3809_v56 }
0x14af   :  { %v10104_v18 = vpop.eup %10103  ;;  %9405 = vmatmul.mubr.msk.f32.vlgmr.msra.gmra.mxu1 %vm570_vm0, %v3811_v30  ;;  %v3669_v4 = vmul.f32 %v10102_v52, %v11832_v35  ;;  %v11930_v35 = vmul.f32 0.25, %v10853_v55 }
0x14b0   :  { %v3932_v38 = vpop.permute.xlu1 %3931  ;;  %v3667_v37 = vmul.f32 %v10104_v18, %v11834_v15  ;;  %v13358_v15 = vld [vmem:[#allocation32_spill] sm:$0xff] }
0x14b1   :  { %v3930_v27 = vpop.permute.xlu0 %3929  ;;  %v3673_v26 = vmul.f32 %v3669_v4, %v11000_v21 }
0x14b2   :  { %v3672_v34 = vmul.f32 %v3667_v37, %v11000_v21 }
0x14b3   :  { %v3677_v31 = vsub.f32 %v3661_v0, %v3673_v26 }
0x14b4   :  { %v3815_v42 = vpop.permute.xlu1 %3814  ;;  %v3676_v46 = vsub.f32 %v3659_v28, %v3672_v34 }
0x14b5   :  { %v3813_v47 = vpop.permute.xlu0 %3812 }
0x14b6   :  { %9393 = vmatprep.mubr.msk.f32.mxu0 %vm797_vm1, %v3676_v46  ;;  %9407 = vmatprep.mubr.msk.f32.mxu1 %vm570_vm0, %v3813_v47 }
0x14b7   :  { %9394 = vmatmul.mubr.msk.f32.gmra.mxu0 %vm797_vm1, %v3677_v31  ;;  %9408 = vmatmul.mubr.msk.f32.gmra.mxu1 %vm570_vm0, %v3815_v42 }
0x14b8   :  { %9418 = vmatprep.mubr.msk.f32.mxu0 %vm570_vm0, %v3926_v20 }
0x14bb   :  { %9419 = vmatmul.mubr.msk.f32.vlgmr.msra.gmra.mxu0 %vm570_vm0, %v3928_v41 }
0x14bc   :  { %9439 = vmatpush3.xpose.msk.msra.mxu0 %vm570_vm0, %v10887_v5  ;;  %9421 = vmatprep.mubr.msk.f32.mxu0 %vm570_vm0, %v3930_v27 }
0x14bd   :  { %9440 = vmatprep.subr.msk.mxu0 %vm570_vm0, %v10881_v2 }
0x14bf   :  { %9422 = vmatmul.mubr.msk.f32.gmra.mxu0 %vm570_vm0, %v3932_v38 }
0x14c0   :  { %9441 = vmatpush3.xpose.msk.msra.mxu0 %vm570_vm0, %v10881_v2  ;;  %9446 = vmatprep.mubr.msk.f32.mxu0 %vm570_vm0, %v11902_v7 }
0x14c1   :  { %9442 = vmatprep.subr.msk.mxu0 %vm570_vm0, %v10877_v63 }
0x14c4   :  { %9443 = vmatpush3.xpose.msk.msra.mxu0 %vm570_vm0, %v10877_v63 }
0x14c5   :  { %9444 = vmatprep.subr.msk.mxu0 %vm570_vm0, %v10873_v61 }
0x14c8   :  { %9445 = vmatpush3.xpose.msk.msra.mxu0 %vm570_vm0, %v10873_v61 }
0x14c9   :  { %9466 = vmatprep.subr.mxu0 %v10893_v8 }
0x14cb   :  { %9447 = vmatmul.mubr.msk.f32.vlgmr.msra.gmra.mxu0 %vm570_vm0, %v11918_v49 }
0x14cc   :  { %9449 = vmatprep.mubr.msk.f32.mxu0 %vm570_vm0, %v11922_v54  ;;  %9467 = vmatpush3.msra.mxu0 %v10893_v8 }
0x14cd   :  { %9468 = vmatprep.subr.mxu0 %v13358_v15 }
0x14ce   :  { %9469 = vmatpush3.msra.mxu0 %v13358_v15 }
0x14cf   :  { %9450 = vmatmul.mubr.msk.f32.gmra.mxu0 %vm570_vm0, %v11930_v35  ;;  %9470 = vmatprep.subr.mxu0 %v13359_v51 }
0x14d0   :  { %9471 = vmatpush3.msra.mxu0 %v13359_v51 }
0x14d1   :  { %9472 = vmatprep.subr.mxu0 %v13360_v53 }
0x14d2   :  { %9473 = vmatpush3.msra.mxu0 %v13360_v53 }
0x1542   :  { %v11940_v48 = vpop.f32.mrf.mxu0 }
0x1544   :  { %v11944_v50 = vpop.f32.mrf.mxu0 }
0x156f   :  { %v9406_v44 = vpop.f32.mrf.mxu1 }
0x1570   :  { %v4043_v20 = vadd.f32 %v11745_v22, %v9406_v44 }
0x1571   :  { %v3906_v55 = vpop.f32.mrf.mxu1 }
0x1572   :  { %v4042_v43 = vadd.f32 %v11742_v62, %v3906_v55  ;;  %v4053_v4 = vsel %vm797_vm1, %v4043_v20, -inf }
0x1574   :  { %v4050_v32 = vsel %vm797_vm1, %v4042_v43, -inf }
0x1575   :  { %4051 = vmax.xlane.f32.xlu0 %v4050_v32 }
0x1577   :  { %v11946_v39 = vpop.f32.mrf.mxu0  ;;  %v9409_v17 = vpop.f32.mrf.mxu1 }
0x1578   :  { %13361 = vst [vmem:[#allocation32_spill] sm:$0xff] %v11946_v39  ;;  %v4045_v56 = vadd.f32 %v11749_v11, %v9409_v17 }
0x1579   :  { %v11948_v45 = vpop.f32.mrf.mxu0  ;;  %v3916_v38 = vpop.f32.mrf.mxu1 }
0x157a   :  { %13362 = vst [vmem:[#allocation29_spill] sm:$0xff] %v11948_v45  ;;  %v4059_v37 = vsel %vm797_vm1, %v4045_v56, -inf  ;;  %v4044_v27 = vadd.f32 %v11753_v40, %v3916_v38 }
0x157b   :  { %v9420_v25 = vpop.f32.mrf.mxu0 }
0x157c   :  { %v4047_v1 = vadd.f32 %v11796_v23, %v9420_v25  ;;  %v4056_v26 = vsel %vm797_vm1, %v4044_v27, -inf }
0x157d   :  { %v4023_v3 = vpop.f32.mrf.mxu0 }
0x157e   :  { %v4046_v24 = vadd.f32 %v11799_v12, %v4023_v3  ;;  %v4065_v9 = vsel %vm797_vm1, %v4047_v1, -inf }
0x157f   :  { %4066 = vmax.xlane.f32.xlu1 %v4065_v9  ;;  %v9423_v41 = vpop.f32.mrf.mxu0 }
0x1580   :  { %v4049_v29 = vadd.f32 %v11806_v36, %v9423_v41  ;;  %v4062_v30 = vsel %vm797_vm1, %v4046_v24, -inf }
0x1581   :  { %4063 = vmax.xlane.f32.xlu0 %v4062_v30  ;;  %v4033_v33 = vpop.f32.mrf.mxu0 }
0x1582   :  { %v4071_v52 = vsel %vm797_vm1, %v4049_v29, -inf  ;;  %v4048_v18 = vadd.f32 %v11809_v16, %v4033_v33 }
0x1583   :  { %4072 = vmax.xlane.f32.xlu1 %v4071_v52 }
0x1584   :  { %v4068_v0 = vsel %vm797_vm1, %v4048_v18, -inf }
0x1585   :  { %4054 = vmax.xlane.f32.xlu0 %v4053_v4 }
0x1587   :  { %4060 = vmax.xlane.f32.xlu1 %v4059_v37 }
0x1589   :  { %4069 = vmax.xlane.f32.xlu0 %v4068_v0 }
0x158d   :  { %4057 = vmax.xlane.f32.xlu0 %v4056_v26 }
0x15fe   :  { %v4052_v28 = vpop.xlane.xlu0 %4051 }
0x15ff   :  { %v4074_v34 = vsub.f32 %v4042_v43, %v4052_v28 }
0x1601   :  { %v4082_v31 = vmul.f32 1.442695, %v4074_v34 }
0x1603   :  { %10105 = vpow2.f32 %v4082_v31 }
0x1608   :  { %v4067_v42 = vpop.xlane.xlu1 %4066 }
0x1609   :  { %v4079_v3 = vsub.f32 %v4047_v1, %v4067_v42 }
0x160a   :  { %v4064_v46 = vpop.xlane.xlu0 %4063 }
0x160b   :  { %v4078_v33 = vsub.f32 %v4046_v24, %v4064_v46  ;;  %v4092_v52 = vmul.f32 1.442695, %v4079_v3 }
0x160c   :  { %v4073_v47 = vpop.xlane.xlu1 %4072 }
0x160d   :  { %v4081_v4 = vsub.f32 %v4049_v29, %v4073_v47 }
0x160e   :  { %v4055_v44 = vpop.xlane.xlu0 %4054 }
0x160f   :  { %v4075_v55 = vsub.f32 %v4043_v20, %v4055_v44  ;;  %v4090_v20 = vmul.f32 1.442695, %v4078_v33  ;;  %v4096_v0 = vmul.f32 1.442695, %v4081_v4 }
0x1610   :  { %v11964_v32 = vpop.eup %10105  ;;  %v4061_v25 = vpop.xlane.xlu1 %4060 }
0x1611   :  { %v4084_v9 = vmul.f32 1.442695, %v4075_v55  ;;  %v4077_v17 = vsub.f32 %v4045_v56, %v4061_v25  ;;  %v4098_v41 = vsel %vm797_vm1, %v11964_v32, 0.0 }
0x1612   :  { %4099 = vadd.xlane.f32.xlu0 %v4098_v41  ;;  %v4070_v30 = vpop.xlane.xlu0 %4069 }
0x1613   :  { %10107 = vpow2.f32 %v4084_v9  ;;  %v4088_v43 = vmul.f32 1.442695, %v4077_v17  ;;  %v4080_v26 = vsub.f32 %v4048_v18, %v4070_v30  ;;  %v9448_v9 = vpop.f32.mrf.mxu0 }
0x1615   :  { %10109 = vpow2.f32 %v4088_v43  ;;  %v4094_v56 = vmul.f32 1.442695, %v4080_v26  ;;  %v4366_v17 = vpop.f32.mrf.mxu0  ;;  %v12005_v43 = vadd.f32 %v11745_v22, %v9448_v9 }
0x1616   :  { %v4058_v38 = vpop.xlane.xlu0 %4057  ;;  %10111 = vpow2.f32 %v4092_v52  ;;  %v12002_v41 = vadd.f32 %v11742_v62, %v4366_v17 }
0x1617   :  { %v4076_v37 = vsub.f32 %v4044_v27, %v4058_v38  ;;  %v9451_v30 = vpop.f32.mrf.mxu0  ;;  %v4505_v62 = vsel %vm797_vm1, %v12005_v43, -inf }
0x1619   :  { %v4086_v1 = vmul.f32 1.442695, %v4076_v37  ;;  %v4376_v33 = vpop.f32.mrf.mxu0 }
0x161b   :  { %10113 = vpow2.f32 %v4086_v1 }
0x161c   :  { %10115 = vpow2.f32 %v4090_v20 }
0x161d   :  { %10117 = vpow2.f32 %v4096_v0 }
0x161e   :  { %10119 = vpow2.f32 %v4094_v56 }
0x1620   :  { %v11968_v28 = vpop.eup %10107 }
0x1621   :  { %v4101_v24 = vsel %vm797_vm1, %v11968_v28, 0.0 }
0x1622   :  { %v11972_v34 = vpop.eup %10109  ;;  %4102 = vadd.xlane.f32.xlu1 %v4101_v24 }
0x1623   :  { %v4107_v29 = vsel %vm797_vm1, %v11972_v34, 0.0  ;;  %v10112_v27 = vpop.eup %10111 }
0x1624   :  { %v4113_v42 = vsel %vm797_vm1, %v10112_v27, 0.0 }
0x1626   :  { %4108 = vadd.xlane.f32.xlu1 %v4107_v29 }
0x1628   :  { %v11976_v18 = vpop.eup %10113 }
0x1629   :  { %v11978_v31 = vpop.eup %10115  ;;  %v4104_v46 = vsel %vm797_vm1, %v11976_v18, 0.0 }
0x162a   :  { %v11983_v47 = vpop.eup %10117  ;;  %4114 = vadd.xlane.f32.xlu1 %v4113_v42  ;;  %4105 = vadd.xlane.f32.xlu0 %v4104_v46  ;;  %v4110_v55 = vsel %vm797_vm1, %v11978_v31, 0.0 }
0x162b   :  { %v4119_v44 = vsel %vm797_vm1, %v11983_v47, 0.0  ;;  %v11989_v25 = vpop.eup %10119 }
0x162c   :  { %v4116_v3 = vsel %vm797_vm1, %v11989_v25, 0.0 }
0x162e   :  { %4120 = vadd.xlane.f32.xlu1 %v4119_v44  ;;  %4111 = vadd.xlane.f32.xlu0 %v4110_v55 }
0x1632   :  { %4117 = vadd.xlane.f32.xlu0 %v4116_v3 }
0x163f   :  { %4150 = vrot.lane.b32.xlu1 %v10864_v60, %s10621_s9  ;;  %v12008_v60 = vadd.f32 %v11749_v11, %v9451_v30 }
0x1643   :  { %4148 = vrot.lane.b32.xlu1 %v10857_v57, %s10621_s9  ;;  %v4502_v57 = vsel %vm797_vm1, %v12002_v41, -inf }
0x1647   :  { %4146 = vrot.lane.b32.xlu1 %v10859_v58, %s10621_s9  ;;  %v12013_v58 = vadd.f32 %v11753_v40, %v4376_v33 }
0x1648   :  { %4152 = vrot.lane.b32.xlu0 %v10861_v59, %s10621_s9  ;;  %v4511_v59 = vsel %vm797_vm1, %v12008_v60, -inf }
0x1649   :  { %v4508_v22 = vsel %vm797_vm1, %v12013_v58, -inf }
0x1667   :  { %4503 = vmax.xlane.f32.xlu0 %v4502_v57  ;;  %v13363_v57 = vld [vmem:[#allocation31_spill] sm:$0xff] }
0x166b   :  { %4512 = vmax.xlane.f32.xlu1 %v4511_v59  ;;  %4506 = vmax.xlane.f32.xlu0 %v4505_v62 }
0x166f   :  { %4509 = vmax.xlane.f32.xlu0 %v4508_v22 }
0x169b   :  { %v4100_v52 = vpop.xlane.xlu0 %4099 }
0x16ab   :  { %v4103_v11 = vpop.xlane.xlu1 %4102 }
0x16af   :  { %v4109_v4 = vpop.xlane.xlu1 %4108 }
0x16b3   :  { %v4115_v38 = vpop.xlane.xlu1 %4114  ;;  %v4106_v37 = vpop.xlane.xlu0 %4105 }
0x16b4   :  { %10121 = vrcp.f32 %v4115_v38 }
0x16b5   :  { %10123 = vrcp.f32 %v4100_v52 }
0x16b7   :  { %v4121_v40 = vpop.xlane.xlu1 %4120  ;;  %v4112_v20 = vpop.xlane.xlu0 %4111 }
0x16b8   :  { %10125 = vrcp.f32 %v4121_v40 }
0x16b9   :  { %10127 = vrcp.f32 %v4112_v20 }
0x16ba   :  { %10129 = vrcp.f32 %v4103_v11 }
0x16bb   :  { %10131 = vrcp.f32 %v4106_v37  ;;  %v4151_v0 = vpop.permute.xlu1 %4150  ;;  %v4118_v26 = vpop.xlane.xlu0 %4117 }
0x16bc   :  { %10133 = vrcp.f32 %v4118_v26  ;;  %v13368_v26 = vld [vmem:[#allocation23_spill] sm:$0xff] }
0x16bd   :  { %10135 = vrcp.f32 %v4109_v4 }
0x16bf   :  { %v4149_v1 = vpop.permute.xlu1 %4148  ;;  %v4153_v56 = vpop.permute.xlu0 %4152 }
0x16c0   :  { %9424 = vmatprep.subr.mxu1 %v4153_v56 }
0x16c1   :  { %v10122_v24 = vpop.eup %10121  ;;  %9425 = vmatpush3.msra.mxu1 %v4153_v56  ;;  %v13369_v56 = vld [vmem:[#allocation24_spill] sm:$0xff] }
0x16c2   :  { %9426 = vmatprep.subr.mxu1 %v4151_v0  ;;  %v10124_v29 = vpop.eup %10123  ;;  %v4133_v42 = vmul.f32 %v10122_v24, %v10112_v27  ;;  %v12061_v24 = vmul.f32 0.25, %v13369_v56 }
0x16c3   :  { %9427 = vmatpush3.msra.mxu1 %v4151_v0  ;;  %v4147_v44 = vpop.permute.xlu1 %4146  ;;  %v4123_v27 = vmul.f32 %v10124_v29, %v11964_v32  ;;  %v13367_v0 = vld [vmem:[#allocation26_spill] sm:$0xff]  ;;  %v13370_v29 = vld [vmem:[#allocation25_spill] sm:$0xff] }
0x16c4   :  { %9428 = vmatprep.subr.mxu1 %v4149_v1  ;;  %v4139_v30 = vmul.f32 %v4133_v42, %v11000_v21  ;;  %v12068_v42 = vmul.f32 0.25, %v13370_v29 }
0x16c5   :  { %v10126_v46 = vpop.eup %10125  ;;  %9429 = vmatpush3.msra.mxu1 %v4149_v1  ;;  %v12058_v1 = vmul.f32 0.25, %v13368_v26 }
0x16c6   :  { %v10128_v55 = vpop.eup %10127  ;;  %9430 = vmatprep.subr.mxu1 %v4147_v44  ;;  %v4137_v33 = vmul.f32 %v10126_v46, %v11983_v47 }
0x16c7   :  { %v10130_v3 = vpop.eup %10129  ;;  %9431 = vmatpush3.msra.mxu1 %v4147_v44  ;;  %v4131_v9 = vmul.f32 %v10128_v55, %v11978_v31 }
0x16c8   :  { %v10132_v17 = vpop.eup %10131  ;;  %9452 = vmatprep.subr.msk.mxu1 %vm570_vm0, %v13363_v57  ;;  %v4125_v22 = vmul.f32 %v10130_v3, %v11968_v28  ;;  %v4141_v40 = vmul.f32 %v4137_v33, %v11000_v21  ;;  %v13364_v28 = vld [vmem:[#allocation28_spill] sm:$0xff] }
0x16c9   :  { %v10134_v59 = vpop.eup %10133  ;;  %v4138_v62 = vmul.f32 %v4131_v9, %v11000_v21  ;;  %v4127_v38 = vmul.f32 %v10132_v17, %v11976_v18 }
0x16ca   :  { %v4135_v11 = vmul.f32 %v10134_v59, %v11989_v25  ;;  %v10136_v52 = vpop.eup %10135  ;;  %v4143_v31 = vsub.f32 %v4125_v22, %v4139_v30  ;;  %v13365_v25 = vld [vmem:[#allocation22_spill] sm:$0xff] }
0x16cb   :  { %v4142_v4 = vsub.f32 %v4123_v27, %v4138_v62  ;;  %v4129_v47 = vmul.f32 %v10136_v52, %v11972_v34  ;;  %v12042_v20 = vmul.f32 0.25, %v13365_v25  ;;  %v13366_v34 = vld [vmem:[#allocation27_spill] sm:$0xff] }
0x16cc   :  { %v4140_v37 = vmul.f32 %v4135_v11, %v11000_v21 }
0x16cd   :  { %9432 = vmatprep.mubr.msk.f32.mxu1 %vm797_vm1, %v4142_v4  ;;  %v4145_v18 = vsub.f32 %v4129_v47, %v4141_v40 }
0x16ce   :  { %9433 = vmatmul.mubr.msk.f32.vlgmr.msra.gmra.mxu1 %vm797_vm1, %v4143_v31  ;;  %v4144_v32 = vsub.f32 %v4127_v38, %v4140_v37 }
0x16cf   :  { %9453 = vmatpush3.xpose.msk.msra.mxu1 %vm570_vm0, %v13363_v57 }
0x16d0   :  { %9454 = vmatprep.subr.msk.mxu1 %vm570_vm0, %v13364_v28  ;;  %9435 = vmatprep.mubr.msk.f32.mxu1 %vm797_vm1, %v4144_v32 }
0x16d2   :  { %9436 = vmatmul.mubr.msk.f32.gmra.mxu1 %vm797_vm1, %v4145_v18 }
0x16d3   :  { %9455 = vmatpush3.xpose.msk.msra.mxu1 %vm570_vm0, %v13364_v28  ;;  %9460 = vmatprep.mubr.msk.f32.mxu1 %vm570_vm0, %v12042_v20 }
0x16d4   :  { %9456 = vmatprep.subr.msk.mxu1 %vm570_vm0, %v13366_v34 }
0x16d7   :  { %9457 = vmatpush3.xpose.msk.msra.mxu1 %vm570_vm0, %v13366_v34 }
0x16d8   :  { %9458 = vmatprep.subr.msk.mxu1 %vm570_vm0, %v13367_v0 }
0x16db   :  { %9459 = vmatpush3.xpose.msk.msra.mxu1 %vm570_vm0, %v13367_v0 }
0x16de   :  { %9461 = vmatmul.mubr.msk.f32.vlgmr.msra.gmra.mxu1 %vm570_vm0, %v12058_v1 }
0x16df   :  { %9463 = vmatprep.mubr.msk.f32.mxu1 %vm570_vm0, %v12061_v24 }
0x16e2   :  { %9464 = vmatmul.mubr.msk.f32.gmra.mxu1 %vm570_vm0, %v12068_v42 }
0x16f0   :  { %v4504_v46 = vpop.xlane.xlu0 %4503 }
0x16f1   :  { %v4526_v44 = vsub.f32 %v12002_v41, %v4504_v46 }
0x16f3   :  { %v4534_v55 = vmul.f32 1.442695, %v4526_v44 }
0x16f4   :  { %v4513_v3 = vpop.xlane.xlu1 %4512  ;;  %v4507_v9 = vpop.xlane.xlu0 %4506 }
0x16f5   :  { %10137 = vpow2.f32 %v4534_v55  ;;  %v4529_v17 = vsub.f32 %v12008_v60, %v4513_v3  ;;  %v4527_v30 = vsub.f32 %v12005_v43, %v4507_v9 }
0x16f7   :  { %v4536_v33 = vmul.f32 1.442695, %v4527_v30  ;;  %v4540_v59 = vmul.f32 1.442695, %v4529_v17 }
0x16f8   :  { %v4510_v27 = vpop.xlane.xlu0 %4509 }
0x16f9   :  { %v4528_v62 = vsub.f32 %v12013_v58, %v4510_v27  ;;  %10139 = vpow2.f32 %v4536_v33 }
0x16fa   :  { %10141 = vpow2.f32 %v4540_v59 }
0x16fb   :  { %v4538_v22 = vmul.f32 1.442695, %v4528_v62 }
0x16fd   :  { %10143 = vpow2.f32 %v4538_v22 }
0x1702   :  { %v12076_v11 = vpop.eup %10137 }
0x1703   :  { %v4550_v41 = vsel %vm797_vm1, %v12076_v11, 0.0 }
0x1704   :  { %4551 = vadd.xlane.f32.xlu0 %v4550_v41 }
0x1706   :  { %v12080_v52 = vpop.eup %10139 }
0x1707   :  { %v4553_v43 = vsel %vm797_vm1, %v12080_v52, 0.0  ;;  %v12084_v60 = vpop.eup %10141 }
0x1708   :  { %4554 = vadd.xlane.f32.xlu1 %v4553_v43  ;;  %v4559_v31 = vsel %vm797_vm1, %v12084_v60, 0.0 }
0x170a   :  { %v12086_v4 = vpop.eup %10143 }
0x170b   :  { %v4556_v58 = vsel %vm797_vm1, %v12086_v4, 0.0 }
0x170c   :  { %4557 = vadd.xlane.f32.xlu0 %v4556_v58  ;;  %4560 = vadd.xlane.f32.xlu1 %v4559_v31 }
0x178e   :  { %v12092_v38 = vpop.f32.mrf.mxu1 }
0x1790   :  { %v12094_v37 = vpop.f32.mrf.mxu1 }
0x1792   :  { %v12096_v40 = vpop.f32.mrf.mxu1 }
0x1793   :  { %13371 = vst [vmem:[#allocation30_spill] sm:$0xff] %v12096_v40 }
0x1794   :  { %v12098_v32 = vpop.f32.mrf.mxu1 }
0x1795   :  { %13372 = vst [vmem:[#allocation31_spill] sm:$0xff] %v12098_v32 }
0x179e   :  { %v9462_v47 = vpop.f32.mrf.mxu1 }
0x179f   :  { %v4499_v18 = vadd.f32 %v11796_v23, %v9462_v47 }
0x17a0   :  { %v4475_v25 = vpop.f32.mrf.mxu1 }
0x17a1   :  { %v4498_v26 = vadd.f32 %v11799_v12, %v4475_v25  ;;  %v4517_v56 = vsel %vm797_vm1, %v4499_v18, -inf  ;;  %v4555_v12 = vpop.xlane.xlu1 %4554 }
0x17a2   :  { %v9465_v29 = vpop.f32.mrf.mxu1  ;;  %4518 = vmax.xlane.f32.xlu1 %v4517_v56 }
0x17a3   :  { %v4501_v46 = vadd.f32 %v11806_v36, %v9465_v29  ;;  %v4514_v44 = vsel %vm797_vm1, %v4498_v26, -inf  ;;  %v4552_v36 = vpop.xlane.xlu0 %4551 }
0x17a4   :  { %v4485_v55 = vpop.f32.mrf.mxu1  ;;  %4515 = vmax.xlane.f32.xlu0 %v4514_v44 }
0x17a5   :  { %v4500_v3 = vadd.f32 %v11809_v16, %v4485_v55  ;;  %v4523_v9 = vsel %vm797_vm1, %v4501_v46, -inf  ;;  %v12116_v16 = vpop.xlane.xlu1 %4560 }
0x17a6   :  { %4524 = vmax.xlane.f32.xlu1 %v4523_v9 }
0x17a7   :  { %v4520_v23 = vsel %vm797_vm1, %v4500_v3, -inf  ;;  %v12118_v17 = vpop.xlane.xlu0 %4557 }
0x17a8   :  { %4521 = vmax.xlane.f32.xlu0 %v4520_v23 }
0x17b7   :  { %4713 = vrot.lane.b32.xlu1 %v10887_v5, %s10631_s5 }
0x17bb   :  { %4828 = vrot.lane.b32.xlu1 %v13364_v28, %s10631_s5 }
0x17be   :  { %4830 = vrot.lane.b32.xlu0 %v13363_v57, %s10631_s5 }
0x17bf   :  { %4711 = vrot.lane.b32.xlu1 %v10881_v2, %s10631_s5 }
0x182b   :  { %v4519_v30 = vpop.xlane.xlu1 %4518 }
0x182c   :  { %v4531_v33 = vsub.f32 %v4499_v18, %v4519_v30 }
0x182d   :  { %v4516_v59 = vpop.xlane.xlu0 %4515 }
0x182e   :  { %v4544_v27 = vmul.f32 1.442695, %v4531_v33  ;;  %v4530_v62 = vsub.f32 %v4498_v26, %v4516_v59 }
0x182f   :  { %v4525_v22 = vpop.xlane.xlu1 %4524 }
0x1830   :  { %10145 = vpow2.f32 %v4544_v27  ;;  %v4542_v41 = vmul.f32 1.442695, %v4530_v62  ;;  %v4533_v44 = vsub.f32 %v4501_v46, %v4525_v22 }
0x1831   :  { %v4522_v43 = vpop.xlane.xlu0 %4521 }
0x1832   :  { %10147 = vpow2.f32 %v4542_v41  ;;  %v4532_v55 = vsub.f32 %v4500_v3, %v4522_v43  ;;  %v4548_v9 = vmul.f32 1.442695, %v4533_v44 }
0x1833   :  { %v4714_v58 = vpop.permute.xlu1 %4713 }
0x1834   :  { %9480 = vmatprep.subr.msk.mxu1 %vm570_vm0, %v4714_v58  ;;  %v4546_v23 = vmul.f32 1.442695, %v4532_v55  ;;  %10149 = vpow2.f32 %v4548_v9 }
0x1835   :  { %9481 = vmatpush3.xpose.msk.msra.mxu1 %vm570_vm0, %v4714_v58  ;;  %v4831_v31 = vpop.permute.xlu0 %4830 }
0x1836   :  { %9494 = vmatprep.subr.msk.mxu0 %vm570_vm0, %v4831_v31  ;;  %10151 = vpow2.f32 %v4546_v23 }
0x1837   :  { %v4829_v47 = vpop.permute.xlu1 %4828 }
0x183b   :  { %v4712_v25 = vpop.permute.xlu1 %4711 }
0x183c   :  { %9482 = vmatprep.subr.msk.mxu1 %vm570_vm0, %v4712_v25 }
0x183d   :  { %v10146_v18 = vpop.eup %10145  ;;  %9483 = vmatpush3.xpose.msk.msra.mxu1 %vm570_vm0, %v4712_v25 }
0x183e   :  { %v4565_v26 = vsel %vm797_vm1, %v10146_v18, 0.0 }
0x183f   :  { %v10148_v56 = vpop.eup %10147  ;;  %4566 = vadd.xlane.f32.xlu1 %v4565_v26 }
0x1840   :  { %v4562_v29 = vsel %vm797_vm1, %v10148_v56, 0.0 }
0x1841   :  { %4563 = vadd.xlane.f32.xlu0 %v4562_v29  ;;  %v12131_v30 = vpop.eup %10149 }
0x1842   :  { %v4571_v59 = vsel %vm797_vm1, %v12131_v30, 0.0 }
0x1843   :  { %v12133_v33 = vpop.eup %10151 }
0x1844   :  { %v4568_v27 = vsel %vm797_vm1, %v12133_v33, 0.0 }
0x1850   :  { %4709 = vrot.lane.b32.xlu1 %v10877_v63, %s10631_s5 }
0x1857   :  { %4826 = vrot.lane.b32.xlu0 %v13366_v34, %s10631_s5 }
0x1874   :  { %4572 = vadd.xlane.f32.xlu1 %v4571_v59 }
0x1876   :  { %4569 = vadd.xlane.f32.xlu0 %v4568_v27 }
0x1885   :  { %4707 = vrot.lane.b32.xlu1 %v10873_v61, %s10631_s5 }
0x1889   :  { %4818 = vrot.lane.b32.xlu1 %v12058_v1, %s10631_s5 }
0x188c   :  { %4824 = vrot.lane.b32.xlu0 %v13367_v0, %s10631_s5 }
0x188d   :  { %4701 = vrot.lane.b32.xlu1 %v11918_v49, %s10631_s5 }
0x1890   :  { %4816 = vrot.lane.b32.xlu0 %v12042_v20, %s10631_s5 }
0x1891   :  { %4822 = vrot.lane.b32.xlu1 %v12068_v42, %s10631_s5 }
0x1894   :  { %4699 = vrot.lane.b32.xlu0 %v11902_v7, %s10631_s5 }
0x1895   :  { %4705 = vrot.lane.b32.xlu1 %v11930_v35, %s10631_s5 }
0x1898   :  { %4820 = vrot.lane.b32.xlu0 %v12061_v24, %s10631_s5 }
0x189c   :  { %4703 = vrot.lane.b32.xlu0 %v11922_v54, %s10631_s5 }
0x18c8   :  { %v4567_v46 = vpop.xlane.xlu1 %4566 }
0x18c9   :  { %10153 = vrcp.f32 %v4567_v46 }
0x18ca   :  { %10155 = vrcp.f32 %v4552_v36  ;;  %v4564_v3 = vpop.xlane.xlu0 %4563 }
0x18cb   :  { %10157 = vrcp.f32 %v4564_v3 }
0x18cc   :  { %10159 = vrcp.f32 %v4555_v12  ;;  %v4710_v62 = vpop.permute.xlu1 %4709 }
0x18cd   :  { %9484 = vmatprep.subr.msk.mxu1 %vm570_vm0, %v4710_v62 }
0x18ce   :  { %9485 = vmatpush3.xpose.msk.msra.mxu1 %vm570_vm0, %v4710_v62 }
0x18d6   :  { %v10154_v22 = vpop.eup %10153 }
0x18d7   :  { %v10156_v41 = vpop.eup %10155  ;;  %v4585_v43 = vmul.f32 %v10154_v22, %v10146_v18  ;;  %v4827_v18 = vpop.permute.xlu0 %4826 }
0x18d8   :  { %v10158_v58 = vpop.eup %10157  ;;  %v4575_v44 = vmul.f32 %v10156_v41, %v12076_v11 }
0x18d9   :  { %v10160_v25 = vpop.eup %10159  ;;  %v4583_v26 = vmul.f32 %v10158_v58, %v10148_v56  ;;  %v4591_v29 = vmul.f32 %v4585_v43, %v11000_v21 }
0x18da   :  { %v4577_v55 = vmul.f32 %v10160_v25, %v12080_v52 }
0x18db   :  { %v4590_v36 = vmul.f32 %v4583_v26, %v11000_v21 }
0x18dc   :  { %v4595_v9 = vsub.f32 %v4577_v55, %v4591_v29 }
0x18dd   :  { %v4594_v12 = vsub.f32 %v4575_v44, %v4590_v36 }
0x18df   :  { %9474 = vmatprep.mubr.msk.f32.mxu0 %vm797_vm1, %v4594_v12 }
0x18e0   :  { %9475 = vmatmul.mubr.msk.f32.vlgmr.msra.gmra.mxu0 %vm797_vm1, %v4595_v9  ;;  %v12196_v9 = vld [vmem:[#allocation13] sm:$0xff] }
0x18e1   :  { %9495 = vmatpush3.xpose.msk.msra.mxu0 %vm570_vm0, %v4831_v31 }
0x18e2   :  { %9496 = vmatprep.subr.msk.mxu0 %vm570_vm0, %v4829_v47 }
0x18e5   :  { %9497 = vmatpush3.xpose.msk.msra.mxu0 %vm570_vm0, %v4829_v47 }
0x18e6   :  { %9498 = vmatprep.subr.msk.mxu0 %vm570_vm0, %v4827_v18 }
0x18e9   :  { %9499 = vmatpush3.xpose.msk.msra.mxu0 %vm570_vm0, %v4827_v18 }
0x18fd   :  { %v4573_v11 = vpop.xlane.xlu1 %4572 }
0x18fe   :  { %10161 = vrcp.f32 %v4573_v11  ;;  %v12199_v11 = vld [vmem:[#allocation13 + $0x8] sm:$0xff] }
0x18ff   :  { %10163 = vrcp.f32 %v12118_v17  ;;  %v4570_v52 = vpop.xlane.xlu0 %4569 }
0x1900   :  { %10165 = vrcp.f32 %v4570_v52 }
0x1901   :  { %10167 = vrcp.f32 %v12116_v16  ;;  %v4708_v56 = vpop.permute.xlu1 %4707 }
0x1902   :  { %9486 = vmatprep.subr.msk.mxu1 %vm570_vm0, %v4708_v56 }
0x1903   :  { %9487 = vmatpush3.xpose.msk.msra.mxu1 %vm570_vm0, %v4708_v56  ;;  %v4825_v31 = vpop.permute.xlu0 %4824 }
0x1904   :  { %9500 = vmatprep.subr.msk.mxu0 %vm570_vm0, %v4825_v31 }
0x1905   :  { %v4819_v47 = vpop.permute.xlu1 %4818  ;;  %9501 = vmatpush3.xpose.msk.msra.mxu0 %vm570_vm0, %v4825_v31 }
0x1907   :  { %v4817_v23 = vpop.permute.xlu0 %4816 }
0x1909   :  { %v4702_v59 = vpop.permute.xlu1 %4701 }
0x190b   :  { %v10162_v27 = vpop.eup %10161  ;;  %v4700_v46 = vpop.permute.xlu0 %4699 }
0x190c   :  { %v10164_v17 = vpop.eup %10163  ;;  %9488 = vmatprep.mubr.msk.f32.mxu1 %vm570_vm0, %v4700_v46  ;;  %v4589_v16 = vmul.f32 %v10162_v27, %v12131_v30 }
0x190d   :  { %v10166_v3 = vpop.eup %10165  ;;  %9489 = vmatmul.mubr.msk.f32.vlgmr.msra.gmra.mxu1 %vm570_vm0, %v4702_v59  ;;  %v4823_v22 = vpop.permute.xlu1 %4822  ;;  %v4579_v25 = vmul.f32 %v10164_v17, %v12086_v4 }
0x190e   :  { %v10168_v62 = vpop.eup %10167  ;;  %v4587_v41 = vmul.f32 %v10166_v3, %v12133_v33  ;;  %v4593_v58 = vmul.f32 %v4589_v16, %v11000_v21  ;;  %v12209_v16 = vld [vmem:[#allocation13 + $0x10] sm:$0xff] }
0x190f   :  { %v4821_v43 = vpop.permute.xlu0 %4820  ;;  %v4581_v29 = vmul.f32 %v10168_v62, %v12084_v60 }
0x1910   :  { %v4592_v26 = vmul.f32 %v4587_v41, %v11000_v21 }
0x1911   :  { %v4597_v55 = vsub.f32 %v4581_v29, %v4593_v58  ;;  %v4706_v30 = vpop.permute.xlu1 %4705 }
0x1912   :  { %v4596_v44 = vsub.f32 %v4579_v25, %v4592_v26 }
0x1913   :  { %v4704_v36 = vpop.permute.xlu0 %4703 }
0x1914   :  { %9477 = vmatprep.mubr.msk.f32.mxu0 %vm797_vm1, %v4596_v44  ;;  %9491 = vmatprep.mubr.msk.f32.mxu1 %vm570_vm0, %v4704_v36 }
0x1915   :  { %9478 = vmatmul.mubr.msk.f32.gmra.mxu0 %vm797_vm1, %v4597_v55  ;;  %9492 = vmatmul.mubr.msk.f32.gmra.mxu1 %vm570_vm0, %v4706_v30 }
0x1916   :  { %9502 = vmatprep.mubr.msk.f32.mxu0 %vm570_vm0, %v4817_v23  ;;  %v12204_v23 = vld [vmem:[#allocation13 + $0x18] sm:$0xff] }
0x1919   :  { %9503 = vmatmul.mubr.msk.f32.vlgmr.msra.gmra.mxu0 %vm570_vm0, %v4819_v47 }
0x191a   :  { %9505 = vmatprep.mubr.msk.f32.mxu0 %vm570_vm0, %v4821_v43 }
0x191d   :  { %9506 = vmatmul.mubr.msk.f32.gmra.mxu0 %vm570_vm0, %v4823_v22 }
0x19a0   :  { %v9476_v60 = vpop.f32.mrf.mxu0 }
0x19a1   :  { %4696 = vst.msk [vmem:[#allocation2 + $0x28] sm:$0xff] %vm570_vm0, %v9476_v60 }
0x19a2   :  { %v4676_v4 = vpop.f32.mrf.mxu0 }
0x19a3   :  { %4695 = vst.msk [vmem:[#allocation2 + $0x20] sm:$0xff] %vm570_vm0, %v4676_v4 }
0x19cd   :  { %v9490_v33 = vpop.f32.mrf.mxu1 }
0x19ce   :  { %v4934_v52 = vadd.f32 %v12199_v11, %v9490_v33 }
0x19cf   :  { %v4797_v12 = vpop.f32.mrf.mxu1 }
0x19d0   :  { %v4933_v18 = vadd.f32 %v12196_v9, %v4797_v12  ;;  %v4944_v27 = vsel %vm797_vm1, %v4934_v52, -inf }
0x19d2   :  { %v4941_v56 = vsel %vm797_vm1, %v4933_v18, -inf }
0x19d3   :  { %4942 = vmax.xlane.f32.xlu0 %v4941_v56 }
0x19d5   :  { %v9479_v31 = vpop.f32.mrf.mxu0  ;;  %v9493_v47 = vpop.f32.mrf.mxu1 }
0x19d6   :  { %4698 = vst.msk [vmem:[#allocation2 + $0x38] sm:$0xff] %vm570_vm0, %v9479_v31  ;;  %v4936_v59 = vadd.f32 %v12204_v23, %v9493_v47 }
0x19d7   :  { %v4686_v46 = vpop.f32.mrf.mxu0  ;;  %4945 = vmax.xlane.f32.xlu0 %v4944_v27  ;;  %v4807_v17 = vpop.f32.mrf.mxu1 }
0x19d8   :  { %4697 = vst.msk [vmem:[#allocation2 + $0x30] sm:$0xff] %vm570_vm0, %v4686_v46  ;;  %v4935_v3 = vadd.f32 %v12209_v16, %v4807_v17  ;;  %v4950_v62 = vsel %vm797_vm1, %v4936_v59, -inf }
0x19d9   :  { %4951 = vmax.xlane.f32.xlu1 %v4950_v62 }
0x19da   :  { %v4947_v22 = vsel %vm797_vm1, %v4935_v3, -inf }
0x19db   :  { %4948 = vmax.xlane.f32.xlu0 %v4947_v22 }
0x19ea   :  { %5045 = vrot.lane.b32.xlu1 %v13358_v15, %s10631_s5 }
0x19ee   :  { %5043 = vrot.lane.b32.xlu1 %v13359_v51, %s10631_s5 }
0x19f1   :  { %5047 = vrot.lane.b32.xlu0 %v10893_v8, %s10631_s5 }
0x19f2   :  { %5041 = vrot.lane.b32.xlu1 %v13360_v53, %s10631_s5 }
0x19f5   :  { %5301 = vrot.lane.b32.xlu0 %v13363_v57, %s10632_s0 }
0x19f6   :  { %5184 = vrot.lane.b32.xlu1 %v10887_v5, %s10632_s0 }
0x1a5c   :  { %v4943_v41 = vpop.xlane.xlu0 %4942 }
0x1a5d   :  { %v4965_v43 = vsub.f32 %v4933_v18, %v4943_v41  ;;  %v9504_v18 = vpop.f32.mrf.mxu0 }
0x1a5f   :  { %v4973_v58 = vmul.f32 1.442695, %v4965_v43  ;;  %v12244_v43 = vld [vmem:[#allocation13 + $0x28] sm:$0xff] }
0x1a60   :  { %v4946_v25 = vpop.xlane.xlu0 %4945 }
0x1a61   :  { %10169 = vpow2.f32 %v4973_v58  ;;  %v4966_v26 = vsub.f32 %v4934_v52, %v4946_v25  ;;  %v4938_v58 = vadd.f32 %v12244_v43, %v9504_v18  ;;  %v12247_v25 = vld [vmem:[#allocation13 + $0x20] sm:$0xff] }
0x1a62   :  { %v4952_v29 = vpop.xlane.xlu1 %4951 }
0x1a63   :  { %v4975_v44 = vmul.f32 1.442695, %v4966_v26  ;;  %v4968_v36 = vsub.f32 %v4936_v59, %v4952_v29  ;;  %v4914_v59 = vpop.f32.mrf.mxu0 }
0x1a64   :  { %v4949_v55 = vpop.xlane.xlu0 %4948  ;;  %v4937_v26 = vadd.f32 %v12247_v25, %v4914_v59 }
0x1a65   :  { %10171 = vpow2.f32 %v4975_v44  ;;  %v4979_v30 = vmul.f32 1.442695, %v4968_v36  ;;  %v4967_v60 = vsub.f32 %v4935_v3, %v4949_v55  ;;  %v9507_v22 = vpop.f32.mrf.mxu0  ;;  %v12254_v55 = vld [vmem:[#allocation13 + $0x38] sm:$0xff] }
0x1a66   :  { %v5046_v4 = vpop.permute.xlu1 %5045 }
0x1a67   :  { %10173 = vpow2.f32 %v4979_v30  ;;  %v4977_v33 = vmul.f32 1.442695, %v4967_v60  ;;  %v4924_v36 = vpop.f32.mrf.mxu0  ;;  %v4940_v30 = vadd.f32 %v12254_v55, %v9507_v22  ;;  %v12257_v60 = vld [vmem:[#allocation13 + $0x30] sm:$0xff] }
0x1a68   :  { %v5048_v12 = vpop.permute.xlu0 %5047 }
0x1a69   :  { %10175 = vpow2.f32 %v4977_v33  ;;  %9508 = vmatprep.subr.mxu1 %v5048_v12  ;;  %v4956_v33 = vsel %vm797_vm1, %v4938_v58, -inf }
0x1a6a   :  { %v5044_v56 = vpop.permute.xlu1 %5043  ;;  %9509 = vmatpush3.msra.mxu1 %v5048_v12  ;;  %v4953_v12 = vsel %vm797_vm1, %v4937_v26, -inf }
0x1a6b   :  { %9510 = vmatprep.subr.mxu1 %v5046_v4 }
0x1a6c   :  { %9511 = vmatpush3.msra.mxu1 %v5046_v4  ;;  %v12230_v27 = vpop.permute.xlu0 %5301  ;;  %v4939_v4 = vadd.f32 %v12257_v60, %v4924_v36 }
0x1a6d   :  { %9512 = vmatprep.subr.mxu1 %v5044_v56 }
0x1a6e   :  { %v12226_v52 = vpop.eup %10169  ;;  %v5042_v31 = vpop.permute.xlu1 %5041  ;;  %9513 = vmatpush3.msra.mxu1 %v5044_v56  ;;  %v4962_v56 = vsel %vm797_vm1, %v4940_v30, -inf  ;;  %v4959_v18 = vsel %vm797_vm1, %v4939_v4, -inf }
0x1a6f   :  { %9514 = vmatprep.subr.mxu1 %v5042_v31  ;;  %v4989_v47 = vsel %vm797_vm1, %v12226_v52, 0.0 }
0x1a70   :  { %4990 = vadd.xlane.f32.xlu0 %v4989_v47  ;;  %9515 = vmatpush3.msra.mxu1 %v5042_v31 }
0x1a71   :  { %9536 = vmatprep.subr.msk.mxu1 %vm570_vm0, %v12230_v27 }
0x1a72   :  { %v12234_v46 = vpop.eup %10171  ;;  %v5185_v17 = vpop.permute.xlu1 %5184 }
0x1a73   :  { %9522 = vmatprep.subr.msk.mxu0 %vm570_vm0, %v5185_v17  ;;  %v4992_v3 = vsel %vm797_vm1, %v12234_v46, 0.0 }
0x1a74   :  { %v12239_v62 = vpop.eup %10173  ;;  %9523 = vmatpush3.xpose.msk.msra.mxu0 %vm570_vm0, %v5185_v17  ;;  %4993 = vadd.xlane.f32.xlu1 %v4992_v3 }
0x1a75   :  { %v4998_v29 = vsel %vm797_vm1, %v12239_v62, 0.0 }
0x1a76   :  { %v12242_v41 = vpop.eup %10175 }
0x1a77   :  { %v4995_v44 = vsel %vm797_vm1, %v12242_v41, 0.0 }
0x1a78   :  { %4999 = vadd.xlane.f32.xlu1 %v4998_v29  ;;  %4996 = vadd.xlane.f32.xlu0 %v4995_v44 }
0x1a7c   :  { %4957 = vmax.xlane.f32.xlu1 %v4956_v33  ;;  %4954 = vmax.xlane.f32.xlu0 %v4953_v12 }
0x1a80   :  { %4963 = vmax.xlane.f32.xlu1 %v4962_v56  ;;  %4960 = vmax.xlane.f32.xlu0 %v4959_v18 }
0x1a91   :  { %5182 = vrot.lane.b32.xlu1 %v10881_v2, %s10632_s0 }
0x1a96   :  { %5299 = vrot.lane.b32.xlu0 %v13364_v28, %s10632_s0 }
0x1af9   :  { %v4991_v31 = vpop.xlane.xlu0 %4990 }
0x1afd   :  { %v4994_v47 = vpop.xlane.xlu1 %4993 }
0x1b01   :  { %v12268_v59 = vpop.xlane.xlu1 %4999  ;;  %v12270_v17 = vpop.xlane.xlu0 %4996 }
0x1b05   :  { %v4958_v3 = vpop.xlane.xlu1 %4957  ;;  %v4955_v22 = vpop.xlane.xlu0 %4954 }
0x1b06   :  { %v4970_v29 = vsub.f32 %v4938_v58, %v4958_v3  ;;  %v4969_v44 = vsub.f32 %v4937_v26, %v4955_v22 }
0x1b08   :  { %v4983_v36 = vmul.f32 1.442695, %v4970_v29  ;;  %v4981_v33 = vmul.f32 1.442695, %v4969_v44 }
0x1b09   :  { %v4964_v12 = vpop.xlane.xlu1 %4963  ;;  %v4961_v58 = vpop.xlane.xlu0 %4960 }
0x1b0a   :  { %10177 = vpow2.f32 %v4983_v36  ;;  %v4972_v26 = vsub.f32 %v4940_v30, %v4964_v12  ;;  %v4971_v3 = vsub.f32 %v4939_v4, %v4961_v58 }
0x1b0b   :  { %10179 = vpow2.f32 %v4981_v33 }
0x1b0c   :  { %v4987_v22 = vmul.f32 1.442695, %v4972_v26  ;;  %v4985_v29 = vmul.f32 1.442695, %v4971_v3 }
0x1b0d   :  { %v5183_v56 = vpop.permute.xlu1 %5182  ;;  %v5300_v30 = vpop.permute.xlu0 %5299 }
0x1b0e   :  { %9524 = vmatprep.subr.msk.mxu0 %vm570_vm0, %v5183_v56  ;;  %10181 = vpow2.f32 %v4987_v22 }
0x1b0f   :  { %9525 = vmatpush3.xpose.msk.msra.mxu0 %vm570_vm0, %v5183_v56  ;;  %10183 = vpow2.f32 %v4985_v29 }
0x1b10   :  { %10185 = vrcp.f32 %v4991_v31 }
0x1b11   :  { %10187 = vrcp.f32 %v4994_v47 }
0x1b17   :  { %v10178_v18 = vpop.eup %10177 }
0x1b18   :  { %v10180_v40 = vpop.eup %10179  ;;  %v5004_v32 = vsel %vm797_vm1, %v10178_v18, 0.0 }
0x1b19   :  { %5005 = vadd.xlane.f32.xlu1 %v5004_v32  ;;  %v5001_v39 = vsel %vm797_vm1, %v10180_v40, 0.0 }
0x1b1a   :  { %5002 = vadd.xlane.f32.xlu0 %v5001_v39 }
0x1b1b   :  { %v12280_v44 = vpop.eup %10181 }
0x1b1c   :  { %v12282_v36 = vpop.eup %10183  ;;  %v5010_v39 = vsel %vm797_vm1, %v12280_v44, 0.0 }
0x1b1d   :  { %v5007_v32 = vsel %vm797_vm1, %v12282_v36, 0.0  ;;  %v10186_v56 = vpop.eup %10185 }
0x1b1e   :  { %v10188_v58 = vpop.eup %10187  ;;  %v5014_v47 = vmul.f32 %v10186_v56, %v12226_v52 }
0x1b2a   :  { %5180 = vrot.lane.b32.xlu1 %v10877_v63, %s10632_s0 }
0x1b30   :  { %5297 = vrot.lane.b32.xlu0 %v13366_v34, %s10632_s0 }
0x1b4e   :  { %5011 = vadd.xlane.f32.xlu1 %v5010_v39  ;;  %v5016_v39 = vmul.f32 %v10188_v58, %v12234_v46 }
0x1b4f   :  { %5008 = vadd.xlane.f32.xlu0 %v5007_v32 }
0x1b5f   :  { %5178 = vrot.lane.b32.xlu1 %v10873_v61, %s10632_s0 }
0x1b63   :  { %5289 = vrot.lane.b32.xlu1 %v12058_v1, %s10632_s0 }
0x1b65   :  { %5295 = vrot.lane.b32.xlu0 %v13367_v0, %s10632_s0 }
0x1b67   :  { %5172 = vrot.lane.b32.xlu1 %v11918_v49, %s10632_s0 }
0x1b69   :  { %5287 = vrot.lane.b32.xlu0 %v12042_v20, %s10632_s0 }
0x1b6b   :  { %5293 = vrot.lane.b32.xlu1 %v12068_v42, %s10632_s0 }
0x1b6d   :  { %5170 = vrot.lane.b32.xlu0 %v11902_v7, %s10632_s0 }
0x1b6f   :  { %5176 = vrot.lane.b32.xlu1 %v11930_v35, %s10632_s0 }
0x1b71   :  { %5291 = vrot.lane.b32.xlu0 %v12061_v24, %s10632_s0 }
0x1b75   :  { %5174 = vrot.lane.b32.xlu0 %v11922_v54, %s10632_s0 }
0x1ba2   :  { %v5006_v4 = vpop.xlane.xlu1 %5005 }
0x1ba3   :  { %10189 = vrcp.f32 %v5006_v4  ;;  %v5003_v33 = vpop.xlane.xlu0 %5002 }
0x1ba4   :  { %10191 = vrcp.f32 %v5003_v33 }
0x1ba5   :  { %10193 = vrcp.f32 %v12268_v59 }
0x1ba6   :  { %v5181_v12 = vpop.permute.xlu1 %5180  ;;  %10195 = vrcp.f32 %v12270_v17 }
0x1ba7   :  { %9526 = vmatprep.subr.msk.mxu0 %vm570_vm0, %v5181_v12 }
0x1ba8   :  { %9527 = vmatpush3.xpose.msk.msra.mxu0 %vm570_vm0, %v5181_v12 }
0x1bb0   :  { %v10190_v26 = vpop.eup %10189 }
0x1bb1   :  { %v10192_v3 = vpop.eup %10191  ;;  %v5024_v22 = vmul.f32 %v10190_v26, %v10178_v18 }
0x1bb2   :  { %v5022_v29 = vmul.f32 %v10192_v3, %v10180_v40  ;;  %v5298_v40 = vpop.permute.xlu0 %5297  ;;  %v10194_v56 = vpop.eup %10193 }
0x1bb3   :  { %v5030_v31 = vmul.f32 %v5024_v22, %v11000_v21  ;;  %v10196_v58 = vpop.eup %10195 }
0x1bb4   :  { %v5029_v32 = vmul.f32 %v5022_v29, %v11000_v21 }
0x1bb5   :  { %v5034_v4 = vsub.f32 %v5016_v39, %v5030_v31 }
0x1bb6   :  { %v5033_v33 = vsub.f32 %v5014_v47, %v5029_v32  ;;  %v5020_v47 = vmul.f32 %v10194_v56, %v12239_v62 }
0x1bb8   :  { %9516 = vmatprep.mubr.msk.f32.mxu1 %vm797_vm1, %v5033_v33 }
0x1bb9   :  { %9517 = vmatmul.mubr.msk.f32.vlgmr.msra.gmra.mxu1 %vm797_vm1, %v5034_v4  ;;  %v5018_v4 = vmul.f32 %v10196_v58, %v12242_v41 }
0x1bba   :  { %9537 = vmatpush3.xpose.msk.msra.mxu1 %vm570_vm0, %v12230_v27 }
0x1bbb   :  { %9538 = vmatprep.subr.msk.mxu1 %vm570_vm0, %v5300_v30 }
0x1bbe   :  { %9539 = vmatpush3.xpose.msk.msra.mxu1 %vm570_vm0, %v5300_v30 }
0x1bbf   :  { %9540 = vmatprep.subr.msk.mxu1 %vm570_vm0, %v5298_v40 }
0x1bc2   :  { %9541 = vmatpush3.xpose.msk.msra.mxu1 %vm570_vm0, %v5298_v40 }
0x1bd7   :  { %v5012_v52 = vpop.xlane.xlu1 %5011 }
0x1bd8   :  { %10197 = vrcp.f32 %v5012_v52  ;;  %v5009_v46 = vpop.xlane.xlu0 %5008 }
0x1bd9   :  { %10199 = vrcp.f32 %v5009_v46 }
0x1bdb   :  { %v5179_v18 = vpop.permute.xlu1 %5178 }
0x1bdc   :  { %v5296_v12 = vpop.permute.xlu0 %5295  ;;  %9528 = vmatprep.subr.msk.mxu0 %vm570_vm0, %v5179_v18 }
0x1bdd   :  { %9542 = vmatprep.subr.msk.mxu1 %vm570_vm0, %v5296_v12  ;;  %9529 = vmatpush3.xpose.msk.msra.mxu0 %vm570_vm0, %v5179_v18 }
0x1bde   :  { %9543 = vmatpush3.xpose.msk.msra.mxu1 %vm570_vm0, %v5296_v12 }
0x1bdf   :  { %v5290_v27 = vpop.permute.xlu1 %5289 }
0x1be0   :  { %v5288_v30 = vpop.permute.xlu0 %5287 }
0x1be3   :  { %v5173_v59 = vpop.permute.xlu1 %5172 }
0x1be4   :  { %v5171_v17 = vpop.permute.xlu0 %5170 }
0x1be5   :  { %v10198_v26 = vpop.eup %10197  ;;  %9530 = vmatprep.mubr.msk.f32.mxu0 %vm570_vm0, %v5171_v17 }
0x1be6   :  { %v10200_v3 = vpop.eup %10199  ;;  %9531 = vmatmul.mubr.msk.f32.vlgmr.msra.gmra.mxu0 %vm570_vm0, %v5173_v59  ;;  %v5028_v22 = vmul.f32 %v10198_v26, %v12280_v44 }
0x1be7   :  { %v5294_v29 = vpop.permute.xlu1 %5293  ;;  %v5026_v39 = vmul.f32 %v10200_v3, %v12282_v36 }
0x1be8   :  { %v5292_v31 = vpop.permute.xlu0 %5291  ;;  %v5032_v32 = vmul.f32 %v5028_v22, %v11000_v21 }
0x1be9   :  { %v5031_v33 = vmul.f32 %v5026_v39, %v11000_v21 }
0x1bea   :  { %v5036_v40 = vsub.f32 %v5020_v47, %v5032_v32 }
0x1beb   :  { %v5177_v52 = vpop.permute.xlu1 %5176  ;;  %v5035_v46 = vsub.f32 %v5018_v4, %v5031_v33 }
0x1bec   :  { %v5175_v18 = vpop.permute.xlu0 %5174 }
0x1bed   :  { %9519 = vmatprep.mubr.msk.f32.mxu1 %vm797_vm1, %v5035_v46  ;;  %9533 = vmatprep.mubr.msk.f32.mxu0 %vm570_vm0, %v5175_v18 }
0x1bee   :  { %9520 = vmatmul.mubr.msk.f32.gmra.mxu1 %vm797_vm1, %v5036_v40  ;;  %9534 = vmatmul.mubr.msk.f32.gmra.mxu0 %vm570_vm0, %v5177_v52 }
0x1bef   :  { %9544 = vmatprep.mubr.msk.f32.mxu1 %vm570_vm0, %v5288_v30 }
0x1bf2   :  { %9545 = vmatmul.mubr.msk.f32.vlgmr.msra.gmra.mxu1 %vm570_vm0, %v5290_v27 }
0x1bf3   :  { %9547 = vmatprep.mubr.msk.f32.mxu1 %vm570_vm0, %v5292_v31 }
0x1bf6   :  { %9548 = vmatmul.mubr.msk.f32.gmra.mxu1 %vm570_vm0, %v5294_v29 }
0x1c79   :  { %v12364_v29 = vpop.f32.mrf.mxu1 }
0x1c7a   :  { %13373 = vst [vmem:[#allocation28_spill] sm:$0xff] %v12364_v29 }
0x1c7b   :  { %v12366_v32 = vpop.f32.mrf.mxu1 }
0x1ca6   :  { %v9532_v62 = vpop.f32.mrf.mxu0 }
0x1ca7   :  { %v5405_v36 = vadd.f32 %v12199_v11, %v9532_v62 }
0x1ca8   :  { %v5268_v41 = vpop.f32.mrf.mxu0 }
0x1ca9   :  { %v5404_v44 = vadd.f32 %v12196_v9, %v5268_v41  ;;  %v5415_v30 = vsel %vm797_vm1, %v5405_v36, -inf }
0x1cab   :  { %v5412_v12 = vsel %vm797_vm1, %v5404_v44, -inf }
0x1cac   :  { %5413 = vmax.xlane.f32.xlu0 %v5412_v12 }
0x1cae   :  { %v9535_v56 = vpop.f32.mrf.mxu0  ;;  %v12368_v52 = vpop.f32.mrf.mxu1 }
0x1caf   :  { %v5407_v59 = vadd.f32 %v12204_v23, %v9535_v56  ;;  %13374 = vst [vmem:[#allocation22_spill] sm:$0xff] %v12368_v52 }
0x1cb0   :  { %5416 = vmax.xlane.f32.xlu0 %v5415_v30  ;;  %v5278_v27 = vpop.f32.mrf.mxu0  ;;  %v12370_v12 = vpop.f32.mrf.mxu1 }
0x1cb1   :  { %v5406_v58 = vadd.f32 %v12209_v16, %v5278_v27  ;;  %v5421_v17 = vsel %vm797_vm1, %v5407_v59, -inf  ;;  %13375 = vst [vmem:[#allocation27_spill] sm:$0xff] %v12370_v12 }
0x1cb2   :  { %5422 = vmax.xlane.f32.xlu1 %v5421_v17  ;;  %v9546_v30 = vpop.f32.mrf.mxu1 }
0x1cb3   :  { %v5418_v26 = vsel %vm797_vm1, %v5406_v58, -inf }
0x1cb4   :  { %5419 = vmax.xlane.f32.xlu0 %v5418_v26  ;;  %v5385_v17 = vpop.f32.mrf.mxu1 }
0x1cc3   :  { %5512 = vrot.lane.b32.xlu1 %v13358_v15, %s10632_s0 }
0x1cc7   :  { %5510 = vrot.lane.b32.xlu1 %v13359_v51, %s10632_s0 }
0x1cca   :  { %5514 = vrot.lane.b32.xlu0 %v10893_v8, %s10632_s0 }
0x1ccb   :  { %5508 = vrot.lane.b32.xlu1 %v13360_v53, %s10632_s0 }
0x1cce   :  { %5768 = vrot.lane.b32.xlu0 %v13363_v57, %s10633_s2 }
0x1ccf   :  { %5651 = vrot.lane.b32.xlu1 %v10887_v5, %s10633_s2 }
0x1d35   :  { %v5414_v3 = vpop.xlane.xlu0 %5413 }
0x1d36   :  { %v5436_v22 = vsub.f32 %v5404_v44, %v5414_v3 }
0x1d38   :  { %v5444_v39 = vmul.f32 1.442695, %v5436_v22 }
0x1d39   :  { %v5417_v31 = vpop.xlane.xlu0 %5416 }
0x1d3a   :  { %10201 = vpow2.f32 %v5444_v39  ;;  %v5437_v47 = vsub.f32 %v5405_v36, %v5417_v31 }
0x1d3b   :  { %v5423_v4 = vpop.xlane.xlu1 %5422 }
0x1d3c   :  { %v5446_v33 = vmul.f32 1.442695, %v5437_v47  ;;  %v5439_v40 = vsub.f32 %v5407_v59, %v5423_v4  ;;  %v9549_v47 = vpop.f32.mrf.mxu1 }
0x1d3d   :  { %v5420_v46 = vpop.xlane.xlu0 %5419 }
0x1d3e   :  { %10203 = vpow2.f32 %v5446_v33  ;;  %v5450_v18 = vmul.f32 1.442695, %v5439_v40  ;;  %v5438_v62 = vsub.f32 %v5406_v58, %v5420_v46  ;;  %v5409_v33 = vadd.f32 %v12244_v43, %v9546_v30 }
0x1d3f   :  { %v5513_v41 = vpop.permute.xlu1 %5512  ;;  %v5408_v40 = vadd.f32 %v12247_v25, %v5385_v17 }
0x1d40   :  { %10205 = vpow2.f32 %v5450_v18  ;;  %v5448_v44 = vmul.f32 1.442695, %v5438_v62  ;;  %v5395_v62 = vpop.f32.mrf.mxu1 }
0x1d41   :  { %v5515_v56 = vpop.permute.xlu0 %5514 }
0x1d42   :  { %10207 = vpow2.f32 %v5448_v44  ;;  %9550 = vmatprep.subr.mxu0 %v5515_v56  ;;  %v5410_v44 = vadd.f32 %v12257_v60, %v5395_v62 }
0x1d43   :  { %v5511_v36 = vpop.permute.xlu1 %5510  ;;  %9551 = vmatpush3.msra.mxu0 %v5515_v56  ;;  %v5427_v56 = vsel %vm797_vm1, %v5409_v33, -inf }
0x1d44   :  { %9552 = vmatprep.subr.mxu0 %v5513_v41 }
0x1d45   :  { %9553 = vmatpush3.msra.mxu0 %v5513_v41  ;;  %v12376_v26 = vpop.permute.xlu0 %5768  ;;  %v5411_v41 = vadd.f32 %v12254_v55, %v9549_v47 }
0x1d46   :  { %9554 = vmatprep.subr.mxu0 %v5511_v36 }
0x1d47   :  { %v12372_v59 = vpop.eup %10201  ;;  %v5509_v27 = vpop.permute.xlu1 %5508  ;;  %9555 = vmatpush3.msra.mxu0 %v5511_v36  ;;  %v5424_v36 = vsel %vm797_vm1, %v5408_v40, -inf  ;;  %v5433_v30 = vsel %vm797_vm1, %v5411_v41, -inf }
0x1d48   :  { %9556 = vmatprep.subr.mxu0 %v5509_v27  ;;  %v5460_v58 = vsel %vm797_vm1, %v12372_v59, 0.0 }
0x1d49   :  { %5461 = vadd.xlane.f32.xlu0 %v5460_v58  ;;  %9557 = vmatpush3.msra.mxu0 %v5509_v27  ;;  %v5430_v27 = vsel %vm797_vm1, %v5410_v44, -inf }
0x1d4a   :  { %9578 = vmatprep.subr.msk.mxu0 %vm570_vm0, %v12376_v26 }
0x1d4b   :  { %v12380_v3 = vpop.eup %10203  ;;  %v5652_v22 = vpop.permute.xlu1 %5651 }
0x1d4c   :  { %9564 = vmatprep.subr.msk.mxu1 %vm570_vm0, %v5652_v22  ;;  %v5463_v39 = vsel %vm797_vm1, %v12380_v3, 0.0 }
0x1d4d   :  { %v12385_v31 = vpop.eup %10205  ;;  %9565 = vmatpush3.xpose.msk.msra.mxu1 %vm570_vm0, %v5652_v22  ;;  %5464 = vadd.xlane.f32.xlu1 %v5463_v39 }
0x1d4e   :  { %v5469_v46 = vsel %vm797_vm1, %v12385_v31, 0.0 }
0x1d4f   :  { %v12388_v4 = vpop.eup %10207 }
0x1d50   :  { %v5466_v18 = vsel %vm797_vm1, %v12388_v4, 0.0 }
0x1d51   :  { %5470 = vadd.xlane.f32.xlu1 %v5469_v46  ;;  %5467 = vadd.xlane.f32.xlu0 %v5466_v18 }
0x1d55   :  { %5428 = vmax.xlane.f32.xlu1 %v5427_v56  ;;  %5425 = vmax.xlane.f32.xlu0 %v5424_v36 }
0x1d59   :  { %5434 = vmax.xlane.f32.xlu1 %v5433_v30  ;;  %5431 = vmax.xlane.f32.xlu0 %v5430_v27 }
0x1d6a   :  { %5649 = vrot.lane.b32.xlu1 %v10881_v2, %s10633_s2 }
0x1d6f   :  { %5766 = vrot.lane.b32.xlu0 %v13364_v28, %s10633_s2 }
0x1dd2   :  { %v5462_v58 = vpop.xlane.xlu0 %5461 }
0x1dd6   :  { %v5465_v17 = vpop.xlane.xlu1 %5464 }
0x1dda   :  { %v12406_v22 = vpop.xlane.xlu1 %5470  ;;  %v12408_v39 = vpop.xlane.xlu0 %5467 }
0x1dde   :  { %v5429_v47 = vpop.xlane.xlu1 %5428  ;;  %v5426_v46 = vpop.xlane.xlu0 %5425 }
0x1ddf   :  { %v5441_v18 = vsub.f32 %v5409_v33, %v5429_v47  ;;  %v5440_v62 = vsub.f32 %v5408_v40, %v5426_v46 }
0x1de1   :  { %v5454_v56 = vmul.f32 1.442695, %v5441_v18  ;;  %v5452_v36 = vmul.f32 1.442695, %v5440_v62 }
0x1de2   :  { %v5435_v30 = vpop.xlane.xlu1 %5434  ;;  %v5432_v33 = vpop.xlane.xlu0 %5431 }
0x1de3   :  { %10209 = vpow2.f32 %v5454_v56  ;;  %v5443_v40 = vsub.f32 %v5411_v41, %v5435_v30  ;;  %v5442_v47 = vsub.f32 %v5410_v44, %v5432_v33 }
0x1de4   :  { %10211 = vpow2.f32 %v5452_v36 }
0x1de5   :  { %v5458_v46 = vmul.f32 1.442695, %v5443_v40  ;;  %v5456_v18 = vmul.f32 1.442695, %v5442_v47 }
0x1de6   :  { %v5650_v27 = vpop.permute.xlu1 %5649  ;;  %v5767_v41 = vpop.permute.xlu0 %5766 }
0x1de7   :  { %9566 = vmatprep.subr.msk.mxu1 %vm570_vm0, %v5650_v27  ;;  %10213 = vpow2.f32 %v5458_v46 }
0x1de8   :  { %9567 = vmatpush3.xpose.msk.msra.mxu1 %vm570_vm0, %v5650_v27  ;;  %10215 = vpow2.f32 %v5456_v18 }
0x1de9   :  { %10217 = vrcp.f32 %v5462_v58 }
0x1dea   :  { %10219 = vrcp.f32 %v5465_v17 }
0x1df0   :  { %v10210_v52 = vpop.eup %10209 }
0x1df1   :  { %v10212_v12 = vpop.eup %10211  ;;  %v5475_v29 = vsel %vm797_vm1, %v10210_v52, 0.0 }
0x1df2   :  { %5476 = vadd.xlane.f32.xlu1 %v5475_v29  ;;  %v5472_v45 = vsel %vm797_vm1, %v10212_v12, 0.0 }
0x1df3   :  { %5473 = vadd.xlane.f32.xlu0 %v5472_v45 }
0x1df4   :  { %v12418_v62 = vpop.eup %10213 }
0x1df5   :  { %v12420_v56 = vpop.eup %10215  ;;  %v5481_v45 = vsel %vm797_vm1, %v12418_v62, 0.0 }
0x1df6   :  { %v5478_v29 = vsel %vm797_vm1, %v12420_v56, 0.0  ;;  %v10218_v27 = vpop.eup %10217 }
0x1df7   :  { %v10220_v33 = vpop.eup %10219  ;;  %v5485_v17 = vmul.f32 %v10218_v27, %v12372_v59 }
0x1e03   :  { %5647 = vrot.lane.b32.xlu1 %v10877_v63, %s10633_s2 }
0x1e09   :  { %5764 = vrot.lane.b32.xlu0 %v13366_v34, %s10633_s2 }
0x1e27   :  { %5482 = vadd.xlane.f32.xlu1 %v5481_v45  ;;  %v5487_v45 = vmul.f32 %v10220_v33, %v12380_v3 }
0x1e28   :  { %5479 = vadd.xlane.f32.xlu0 %v5478_v29 }
0x1e38   :  { %5645 = vrot.lane.b32.xlu1 %v10873_v61, %s10633_s2 }
0x1e3c   :  { %5756 = vrot.lane.b32.xlu1 %v12058_v1, %s10633_s2 }
0x1e3e   :  { %5762 = vrot.lane.b32.xlu0 %v13367_v0, %s10633_s2 }
0x1e40   :  { %5639 = vrot.lane.b32.xlu1 %v11918_v49, %s10633_s2 }
0x1e42   :  { %5754 = vrot.lane.b32.xlu0 %v12042_v20, %s10633_s2 }
0x1e44   :  { %5760 = vrot.lane.b32.xlu1 %v12068_v42, %s10633_s2 }
0x1e46   :  { %5637 = vrot.lane.b32.xlu0 %v11902_v7, %s10633_s2 }
0x1e48   :  { %5643 = vrot.lane.b32.xlu1 %v11930_v35, %s10633_s2 }
0x1e4a   :  { %5758 = vrot.lane.b32.xlu0 %v12061_v24, %s10633_s2 }
0x1e4e   :  { %5641 = vrot.lane.b32.xlu0 %v11922_v54, %s10633_s2 }
0x1e7b   :  { %v5477_v44 = vpop.xlane.xlu1 %5476 }
0x1e7c   :  { %10221 = vrcp.f32 %v5477_v44  ;;  %v5474_v36 = vpop.xlane.xlu0 %5473 }
0x1e7d   :  { %10223 = vrcp.f32 %v5474_v36 }
0x1e7e   :  { %10225 = vrcp.f32 %v12406_v22 }
0x1e7f   :  { %v5648_v30 = vpop.permute.xlu1 %5647  ;;  %10227 = vrcp.f32 %v12408_v39 }
0x1e80   :  { %9568 = vmatprep.subr.msk.mxu1 %vm570_vm0, %v5648_v30 }
0x1e81   :  { %9569 = vmatpush3.xpose.msk.msra.mxu1 %vm570_vm0, %v5648_v30 }
0x1e89   :  { %v10222_v40 = vpop.eup %10221 }
0x1e8a   :  { %v10224_v47 = vpop.eup %10223  ;;  %v5495_v46 = vmul.f32 %v10222_v40, %v10210_v52  ;;  %v5765_v52 = vpop.permute.xlu0 %5764 }
0x1e8b   :  { %v5493_v18 = vmul.f32 %v10224_v47, %v10212_v12  ;;  %v10226_v27 = vpop.eup %10225 }
0x1e8c   :  { %v5501_v58 = vmul.f32 %v5495_v46, %v11000_v21  ;;  %v10228_v33 = vpop.eup %10227 }
0x1e8d   :  { %v5500_v29 = vmul.f32 %v5493_v18, %v11000_v21 }
0x1e8e   :  { %v5505_v44 = vsub.f32 %v5487_v45, %v5501_v58 }
0x1e8f   :  { %v5504_v36 = vsub.f32 %v5485_v17, %v5500_v29  ;;  %v5491_v17 = vmul.f32 %v10226_v27, %v12385_v31 }
0x1e91   :  { %9558 = vmatprep.mubr.msk.f32.mxu0 %vm797_vm1, %v5504_v36 }
0x1e92   :  { %9559 = vmatmul.mubr.msk.f32.vlgmr.msra.gmra.mxu0 %vm797_vm1, %v5505_v44  ;;  %v5489_v44 = vmul.f32 %v10228_v33, %v12388_v4 }
0x1e93   :  { %9579 = vmatpush3.xpose.msk.msra.mxu0 %vm570_vm0, %v12376_v26 }
0x1e94   :  { %9580 = vmatprep.subr.msk.mxu0 %vm570_vm0, %v5767_v41 }
0x1e97   :  { %9581 = vmatpush3.xpose.msk.msra.mxu0 %vm570_vm0, %v5767_v41 }
0x1e98   :  { %9582 = vmatprep.subr.msk.mxu0 %vm570_vm0, %v5765_v52 }
0x1e9b   :  { %9583 = vmatpush3.xpose.msk.msra.mxu0 %vm570_vm0, %v5765_v52 }
0x1eb0   :  { %v5483_v12 = vpop.xlane.xlu1 %5482 }
0x1eb1   :  { %10229 = vrcp.f32 %v5483_v12  ;;  %v5480_v59 = vpop.xlane.xlu0 %5479 }
0x1eb2   :  { %10231 = vrcp.f32 %v5480_v59 }
0x1eb4   :  { %v5646_v3 = vpop.permute.xlu1 %5645 }
0x1eb5   :  { %v5763_v30 = vpop.permute.xlu0 %5762  ;;  %9570 = vmatprep.subr.msk.mxu1 %vm570_vm0, %v5646_v3 }
0x1eb6   :  { %9584 = vmatprep.subr.msk.mxu0 %vm570_vm0, %v5763_v30  ;;  %9571 = vmatpush3.xpose.msk.msra.mxu1 %vm570_vm0, %v5646_v3 }
0x1eb7   :  { %9585 = vmatpush3.xpose.msk.msra.mxu0 %vm570_vm0, %v5763_v30 }
0x1eb8   :  { %v5757_v26 = vpop.permute.xlu1 %5756 }
0x1eb9   :  { %v5755_v41 = vpop.permute.xlu0 %5754 }
0x1ebc   :  { %v5640_v22 = vpop.permute.xlu1 %5639 }
0x1ebd   :  { %v5638_v39 = vpop.permute.xlu0 %5637 }
0x1ebe   :  { %v10230_v40 = vpop.eup %10229  ;;  %9572 = vmatprep.mubr.msk.f32.mxu1 %vm570_vm0, %v5638_v39 }
0x1ebf   :  { %v10232_v47 = vpop.eup %10231  ;;  %9573 = vmatmul.mubr.msk.f32.vlgmr.msra.gmra.mxu1 %vm570_vm0, %v5640_v22  ;;  %v5499_v46 = vmul.f32 %v10230_v40, %v12418_v62 }
0x1ec0   :  { %v5761_v18 = vpop.permute.xlu1 %5760  ;;  %v5497_v45 = vmul.f32 %v10232_v47, %v12420_v56 }
0x1ec1   :  { %v5759_v58 = vpop.permute.xlu0 %5758  ;;  %v5503_v29 = vmul.f32 %v5499_v46, %v11000_v21 }
0x1ec2   :  { %v5502_v36 = vmul.f32 %v5497_v45, %v11000_v21 }
0x1ec3   :  { %v5507_v52 = vsub.f32 %v5491_v17, %v5503_v29 }
0x1ec4   :  { %v5644_v12 = vpop.permute.xlu1 %5643  ;;  %v5506_v59 = vsub.f32 %v5489_v44, %v5502_v36 }
0x1ec5   :  { %v5642_v3 = vpop.permute.xlu0 %5641 }
0x1ec6   :  { %9561 = vmatprep.mubr.msk.f32.mxu0 %vm797_vm1, %v5506_v59  ;;  %9575 = vmatprep.mubr.msk.f32.mxu1 %vm570_vm0, %v5642_v3 }
0x1ec7   :  { %9562 = vmatmul.mubr.msk.f32.gmra.mxu0 %vm797_vm1, %v5507_v52  ;;  %9576 = vmatmul.mubr.msk.f32.gmra.mxu1 %vm570_vm0, %v5644_v12 }
0x1ec8   :  { %9586 = vmatprep.mubr.msk.f32.mxu0 %vm570_vm0, %v5755_v41 }
0x1ecb   :  { %9587 = vmatmul.mubr.msk.f32.vlgmr.msra.gmra.mxu0 %vm570_vm0, %v5757_v26 }
0x1ecc   :  { %9589 = vmatprep.mubr.msk.f32.mxu0 %vm570_vm0, %v5759_v58 }
0x1ecf   :  { %9590 = vmatmul.mubr.msk.f32.gmra.mxu0 %vm570_vm0, %v5761_v18 }
0x1f7f   :  { %v9574_v31 = vpop.f32.mrf.mxu1 }
0x1f80   :  { %v5872_v56 = vadd.f32 %v12199_v11, %v9574_v31 }
0x1f81   :  { %v5735_v4 = vpop.f32.mrf.mxu1 }
0x1f82   :  { %v5871_v62 = vadd.f32 %v12196_v9, %v5735_v4  ;;  %v5882_v41 = vsel %vm797_vm1, %v5872_v56, -inf }
0x1f84   :  { %v5879_v30 = vsel %vm797_vm1, %v5871_v62, -inf }
0x1f85   :  { %5880 = vmax.xlane.f32.xlu0 %v5879_v30 }
0x1f87   :  { %v9577_v27 = vpop.f32.mrf.mxu1 }
0x1f88   :  { %v5874_v22 = vadd.f32 %v12204_v23, %v9577_v27  ;;  %v12502_v23 = vpop.f32.mrf.mxu0 }
0x1f89   :  { %5883 = vmax.xlane.f32.xlu0 %v5882_v41  ;;  %v5745_v26 = vpop.f32.mrf.mxu1  ;;  %13376 = vst [vmem:[#allocation26_spill] sm:$0xff] %v12502_v23 }
0x1f8a   :  { %v5873_v33 = vadd.f32 %v12209_v16, %v5745_v26  ;;  %v5888_v39 = vsel %vm797_vm1, %v5874_v22, -inf  ;;  %v12504_v18 = vpop.f32.mrf.mxu0 }
0x1f8b   :  { %5889 = vmax.xlane.f32.xlu1 %v5888_v39  ;;  %13377 = vst [vmem:[#allocation23_spill] sm:$0xff] %v12504_v18 }
0x1f8c   :  { %v5885_v40 = vsel %vm797_vm1, %v5873_v33, -inf  ;;  %v12506_v29 = vpop.f32.mrf.mxu0 }
0x1f8d   :  { %5886 = vmax.xlane.f32.xlu0 %v5885_v40  ;;  %13378 = vst [vmem:[#allocation24_spill] sm:$0xff] %v12506_v29 }
0x1f8e   :  { %v12508_v3 = vpop.f32.mrf.mxu0 }
0x1f8f   :  { %13379 = vst [vmem:[#allocation25_spill] sm:$0xff] %v12508_v3 }
0x1f9c   :  { %5979 = vrot.lane.b32.xlu1 %v13358_v15, %s10633_s2 }
0x1fa0   :  { %5977 = vrot.lane.b32.xlu1 %v13359_v51, %s10633_s2 }
0x1fa3   :  { %5981 = vrot.lane.b32.xlu0 %v10893_v8, %s10633_s2 }
0x1fa4   :  { %5975 = vrot.lane.b32.xlu1 %v13360_v53, %s10633_s2 }
0x1fa7   :  { %6235 = vrot.lane.b32.xlu0 %v13363_v57, %s10634_s21 }
0x1fa8   :  { %6118 = vrot.lane.b32.xlu1 %v10887_v5, %s10634_s21 }
0x200e   :  { %v5881_v9 = vpop.xlane.xlu0 %5880 }
0x200f   :  { %v5903_v11 = vsub.f32 %v5871_v62, %v5881_v9  ;;  %v9588_v62 = vpop.f32.mrf.mxu0 }
0x2011   :  { %v5911_v16 = vmul.f32 1.442695, %v5903_v11 }
0x2012   :  { %v5884_v47 = vpop.xlane.xlu0 %5883 }
0x2013   :  { %10233 = vpow2.f32 %v5911_v16  ;;  %v5904_v46 = vsub.f32 %v5872_v56, %v5884_v47  ;;  %v5876_v16 = vadd.f32 %v12244_v43, %v9588_v62 }
0x2014   :  { %v5890_v45 = vpop.xlane.xlu1 %5889 }
0x2015   :  { %v5913_v58 = vmul.f32 1.442695, %v5904_v46  ;;  %v5906_v17 = vsub.f32 %v5874_v22, %v5890_v45  ;;  %v5852_v22 = vpop.f32.mrf.mxu0 }
0x2016   :  { %v5887_v44 = vpop.xlane.xlu0 %5886  ;;  %v5875_v47 = vadd.f32 %v12247_v25, %v5852_v22 }
0x2017   :  { %10235 = vpow2.f32 %v5913_v58  ;;  %v5917_v36 = vmul.f32 1.442695, %v5906_v17  ;;  %v5905_v52 = vsub.f32 %v5873_v33, %v5887_v44  ;;  %v9591_v9 = vpop.f32.mrf.mxu0 }
0x2018   :  { %v5980_v12 = vpop.permute.xlu1 %5979  ;;  %v5878_v17 = vadd.f32 %v12254_v55, %v9591_v9 }
0x2019   :  { %10237 = vpow2.f32 %v5917_v36  ;;  %v5915_v59 = vmul.f32 1.442695, %v5905_v52  ;;  %v5862_v58 = vpop.f32.mrf.mxu0  ;;  %v5894_v36 = vsel %vm797_vm1, %v5876_v16, -inf  ;;  %v5891_v52 = vsel %vm797_vm1, %v5875_v47, -inf }
0x201a   :  { %v5982_v31 = vpop.permute.xlu0 %5981  ;;  %v5877_v44 = vadd.f32 %v12257_v60, %v5862_v58  ;;  %v5900_v43 = vsel %vm797_vm1, %v5878_v17, -inf }
0x201b   :  { %10239 = vpow2.f32 %v5915_v59  ;;  %9592 = vmatprep.subr.mxu1 %v5982_v31 }
0x201c   :  { %v5978_v4 = vpop.permute.xlu1 %5977  ;;  %9593 = vmatpush3.msra.mxu1 %v5982_v31  ;;  %v5897_v25 = vsel %vm797_vm1, %v5877_v44, -inf }
0x201d   :  { %9594 = vmatprep.subr.mxu1 %v5980_v12 }
0x201e   :  { %9595 = vmatpush3.msra.mxu1 %v5980_v12  ;;  %v12514_v41 = vpop.permute.xlu0 %6235 }
0x201f   :  { %9596 = vmatprep.subr.mxu1 %v5978_v4 }
0x2020   :  { %v12510_v56 = vpop.eup %10233  ;;  %v5976_v30 = vpop.permute.xlu1 %5975  ;;  %9597 = vmatpush3.msra.mxu1 %v5978_v4 }
0x2021   :  { %9598 = vmatprep.subr.mxu1 %v5976_v30  ;;  %v5927_v27 = vsel %vm797_vm1, %v12510_v56, 0.0 }
0x2022   :  { %5928 = vadd.xlane.f32.xlu0 %v5927_v27  ;;  %9599 = vmatpush3.msra.mxu1 %v5976_v30 }
0x2023   :  { %9620 = vmatprep.subr.msk.mxu1 %vm570_vm0, %v12514_v41 }
0x2024   :  { %v12518_v26 = vpop.eup %10235  ;;  %v6119_v33 = vpop.permute.xlu1 %6118 }
0x2025   :  { %9606 = vmatprep.subr.msk.mxu0 %vm570_vm0, %v6119_v33  ;;  %v5930_v39 = vsel %vm797_vm1, %v12518_v26, 0.0 }
0x2026   :  { %v12523_v40 = vpop.eup %10237  ;;  %9607 = vmatpush3.xpose.msk.msra.mxu0 %vm570_vm0, %v6119_v33  ;;  %5931 = vadd.xlane.f32.xlu1 %v5930_v39 }
0x2027   :  { %v5936_v46 = vsel %vm797_vm1, %v12523_v40, 0.0 }
0x2028   :  { %v12526_v11 = vpop.eup %10239 }
0x2029   :  { %v5933_v45 = vsel %vm797_vm1, %v12526_v11, 0.0 }
0x202a   :  { %5937 = vadd.xlane.f32.xlu1 %v5936_v46  ;;  %5934 = vadd.xlane.f32.xlu0 %v5933_v45 }
0x202e   :  { %5895 = vmax.xlane.f32.xlu1 %v5894_v36  ;;  %5892 = vmax.xlane.f32.xlu0 %v5891_v52 }
0x2032   :  { %5901 = vmax.xlane.f32.xlu1 %v5900_v43  ;;  %5898 = vmax.xlane.f32.xlu0 %v5897_v25 }
0x2043   :  { %6116 = vrot.lane.b32.xlu1 %v10881_v2, %s10634_s21 }
0x2048   :  { %6233 = vrot.lane.b32.xlu0 %v13364_v28, %s10634_s21 }
0x20ab   :  { %v5929_v55 = vpop.xlane.xlu0 %5928 }
0x20af   :  { %v5932_v60 = vpop.xlane.xlu1 %5931 }
0x20b3   :  { %v12544_v12 = vpop.xlane.xlu1 %5937  ;;  %v12546_v59 = vpop.xlane.xlu0 %5934 }
0x20b7   :  { %v5896_v31 = vpop.xlane.xlu1 %5895  ;;  %v5893_v4 = vpop.xlane.xlu0 %5892 }
0x20b8   :  { %v5908_v62 = vsub.f32 %v5876_v16, %v5896_v31  ;;  %v5907_v30 = vsub.f32 %v5875_v47, %v5893_v4 }
0x20ba   :  { %v5921_v27 = vmul.f32 1.442695, %v5908_v62  ;;  %v5919_v22 = vmul.f32 1.442695, %v5907_v30 }
0x20bb   :  { %v5902_v33 = vpop.xlane.xlu1 %5901  ;;  %v5899_v16 = vpop.xlane.xlu0 %5898 }
0x20bc   :  { %10241 = vpow2.f32 %v5921_v27  ;;  %v5910_v47 = vsub.f32 %v5878_v17, %v5902_v33  ;;  %v5909_v36 = vsub.f32 %v5877_v44, %v5899_v16 }
0x20bd   :  { %10243 = vpow2.f32 %v5919_v22 }
0x20be   :  { %v5925_v52 = vmul.f32 1.442695, %v5910_v47  ;;  %v5923_v43 = vmul.f32 1.442695, %v5909_v36 }
0x20bf   :  { %v6117_v39 = vpop.permute.xlu1 %6116  ;;  %v6234_v17 = vpop.permute.xlu0 %6233 }
0x20c0   :  { %9608 = vmatprep.subr.msk.mxu0 %vm570_vm0, %v6117_v39  ;;  %10245 = vpow2.f32 %v5925_v52 }
0x20c1   :  { %9609 = vmatpush3.xpose.msk.msra.mxu0 %vm570_vm0, %v6117_v39  ;;  %10247 = vpow2.f32 %v5923_v43 }
0x20c2   :  { %10249 = vrcp.f32 %v5929_v55 }
0x20c3   :  { %10251 = vrcp.f32 %v5932_v60 }
0x20c9   :  { %v10242_v9 = vpop.eup %10241 }
0x20ca   :  { %v10244_v46 = vpop.eup %10243  ;;  %v5942_v45 = vsel %vm797_vm1, %v10242_v9, 0.0 }
0x20cb   :  { %5943 = vadd.xlane.f32.xlu1 %v5942_v45  ;;  %v5939_v58 = vsel %vm797_vm1, %v10244_v46, 0.0 }
0x20cc   :  { %5940 = vadd.xlane.f32.xlu0 %v5939_v58 }
0x20cd   :  { %v12556_v25 = vpop.eup %10245 }
0x20ce   :  { %v12558_v31 = vpop.eup %10247  ;;  %v5948_v4 = vsel %vm797_vm1, %v12556_v25, 0.0 }
0x20cf   :  { %v5945_v62 = vsel %vm797_vm1, %v12558_v31, 0.0  ;;  %v10250_v22 = vpop.eup %10249 }
0x20d0   :  { %v10252_v33 = vpop.eup %10251  ;;  %v5952_v60 = vmul.f32 %v10250_v22, %v12510_v56 }
0x20d1   :  { %v5954_v47 = vmul.f32 %v10252_v33, %v12518_v26 }
0x20dc   :  { %6114 = vrot.lane.b32.xlu1 %v10877_v63, %s10634_s21 }
0x20e2   :  { %6231 = vrot.lane.b32.xlu0 %v13366_v34, %s10634_s21 }
0x2100   :  { %5949 = vadd.xlane.f32.xlu1 %v5948_v4 }
0x2101   :  { %5946 = vadd.xlane.f32.xlu0 %v5945_v62 }
0x2111   :  { %6112 = vrot.lane.b32.xlu1 %v10873_v61, %s10634_s21 }
0x2115   :  { %6223 = vrot.lane.b32.xlu1 %v12058_v1, %s10634_s21 }
0x2117   :  { %6229 = vrot.lane.b32.xlu0 %v13367_v0, %s10634_s21 }
0x2119   :  { %6106 = vrot.lane.b32.xlu1 %v11918_v49, %s10634_s21 }
0x211b   :  { %6221 = vrot.lane.b32.xlu0 %v12042_v20, %s10634_s21 }
0x211d   :  { %6227 = vrot.lane.b32.xlu1 %v12068_v42, %s10634_s21 }
0x211f   :  { %6104 = vrot.lane.b32.xlu0 %v11902_v7, %s10634_s21 }
0x2121   :  { %6110 = vrot.lane.b32.xlu1 %v11930_v35, %s10634_s21 }
0x2123   :  { %6225 = vrot.lane.b32.xlu0 %v12061_v24, %s10634_s21 }
0x2127   :  { %6108 = vrot.lane.b32.xlu0 %v11922_v54, %s10634_s21 }
0x2154   :  { %v5944_v44 = vpop.xlane.xlu1 %5943 }
0x2155   :  { %10253 = vrcp.f32 %v5944_v44  ;;  %v5941_v30 = vpop.xlane.xlu0 %5940 }
0x2156   :  { %10255 = vrcp.f32 %v5941_v30 }
0x2157   :  { %10257 = vrcp.f32 %v12544_v12 }
0x2158   :  { %v6115_v27 = vpop.permute.xlu1 %6114  ;;  %10259 = vrcp.f32 %v12546_v59 }
0x2159   :  { %9610 = vmatprep.subr.msk.mxu0 %vm570_vm0, %v6115_v27 }
0x215a   :  { %9611 = vmatpush3.xpose.msk.msra.mxu0 %vm570_vm0, %v6115_v27 }
0x2162   :  { %v10254_v39 = vpop.eup %10253 }
0x2163   :  { %v10256_v45 = vpop.eup %10255  ;;  %v5962_v58 = vmul.f32 %v10254_v39, %v10242_v9  ;;  %v6232_v9 = vpop.permute.xlu0 %6231 }
0x2164   :  { %v5960_v16 = vmul.f32 %v10256_v45, %v10244_v46 }
0x2165   :  { %v5968_v55 = vmul.f32 %v5962_v58, %v11000_v21 }
0x2166   :  { %v5967_v36 = vmul.f32 %v5960_v16, %v11000_v21 }
0x2167   :  { %v5972_v52 = vsub.f32 %v5954_v47, %v5968_v55 }
0x2168   :  { %v5971_v43 = vsub.f32 %v5952_v60, %v5967_v36 }
0x216a   :  { %9600 = vmatprep.mubr.msk.f32.mxu1 %vm797_vm1, %v5971_v43 }
0x216b   :  { %9601 = vmatmul.mubr.msk.f32.vlgmr.msra.gmra.mxu1 %vm797_vm1, %v5972_v52 }
0x216c   :  { %9621 = vmatpush3.xpose.msk.msra.mxu1 %vm570_vm0, %v12514_v41 }
0x216d   :  { %9622 = vmatprep.subr.msk.mxu1 %vm570_vm0, %v6234_v17 }
0x2170   :  { %9623 = vmatpush3.xpose.msk.msra.mxu1 %vm570_vm0, %v6234_v17  ;;  %v10258_v17 = vpop.eup %10257 }
0x2171   :  { %9624 = vmatprep.subr.msk.mxu1 %vm570_vm0, %v6232_v9  ;;  %v10260_v44 = vpop.eup %10259  ;;  %v5958_v58 = vmul.f32 %v10258_v17, %v12523_v40 }
0x2172   :  { %v5956_v47 = vmul.f32 %v10260_v44, %v12526_v11 }
0x2174   :  { %9625 = vmatpush3.xpose.msk.msra.mxu1 %vm570_vm0, %v6232_v9  ;;  %v12623_v9 = vld [vmem:[#allocation13 + $0x8] sm:$0xff] }
0x2189   :  { %v5950_v56 = vpop.xlane.xlu1 %5949 }
0x218a   :  { %10261 = vrcp.f32 %v5950_v56  ;;  %v5947_v26 = vpop.xlane.xlu0 %5946 }
0x218b   :  { %10263 = vrcp.f32 %v5947_v26 }
0x218d   :  { %v6113_v46 = vpop.permute.xlu1 %6112 }
0x218e   :  { %v6230_v4 = vpop.permute.xlu0 %6229  ;;  %9612 = vmatprep.subr.msk.mxu0 %vm570_vm0, %v6113_v46 }
0x218f   :  { %9626 = vmatprep.subr.msk.mxu1 %vm570_vm0, %v6230_v4  ;;  %9613 = vmatpush3.xpose.msk.msra.mxu0 %vm570_vm0, %v6113_v46 }
0x2190   :  { %9627 = vmatpush3.xpose.msk.msra.mxu1 %vm570_vm0, %v6230_v4  ;;  %v12627_v4 = vld [vmem:[#allocation13 + $0x18] sm:$0xff] }
0x2191   :  { %v6224_v41 = vpop.permute.xlu1 %6223 }
0x2192   :  { %v6222_v62 = vpop.permute.xlu0 %6221 }
0x2195   :  { %v6107_v12 = vpop.permute.xlu1 %6106 }
0x2196   :  { %v6105_v59 = vpop.permute.xlu0 %6104 }
0x2197   :  { %v10262_v30 = vpop.eup %10261  ;;  %9614 = vmatprep.mubr.msk.f32.mxu0 %vm570_vm0, %v6105_v59 }
0x2198   :  { %v10264_v27 = vpop.eup %10263  ;;  %9615 = vmatmul.mubr.msk.f32.vlgmr.msra.gmra.mxu0 %vm570_vm0, %v6107_v12  ;;  %v5966_v22 = vmul.f32 %v10262_v30, %v12556_v25  ;;  %v12620_v25 = vld [vmem:[#allocation13] sm:$0xff]  ;;  %v12631_v12 = vld [vmem:[#allocation13 + $0x10] sm:$0xff] }
0x2199   :  { %v6228_v33 = vpop.permute.xlu1 %6227  ;;  %v5964_v39 = vmul.f32 %v10264_v27, %v12558_v31 }
0x219a   :  { %v6226_v45 = vpop.permute.xlu0 %6225  ;;  %v5970_v16 = vmul.f32 %v5966_v22, %v11000_v21 }
0x219b   :  { %v5969_v55 = vmul.f32 %v5964_v39, %v11000_v21 }
0x219c   :  { %v5974_v60 = vsub.f32 %v5958_v58, %v5970_v16 }
0x219d   :  { %v6111_v36 = vpop.permute.xlu1 %6110  ;;  %v5973_v52 = vsub.f32 %v5956_v47, %v5969_v55 }
0x219e   :  { %v6109_v43 = vpop.permute.xlu0 %6108 }
0x219f   :  { %9603 = vmatprep.mubr.msk.f32.mxu1 %vm797_vm1, %v5973_v52  ;;  %9617 = vmatprep.mubr.msk.f32.mxu0 %vm570_vm0, %v6109_v43 }
0x21a0   :  { %9604 = vmatmul.mubr.msk.f32.gmra.mxu1 %vm797_vm1, %v5974_v60  ;;  %9618 = vmatmul.mubr.msk.f32.gmra.mxu0 %vm570_vm0, %v6111_v36 }
0x21a1   :  { %9628 = vmatprep.mubr.msk.f32.mxu1 %vm570_vm0, %v6222_v62 }
0x21a4   :  { %9629 = vmatmul.mubr.msk.f32.vlgmr.msra.gmra.mxu1 %vm570_vm0, %v6224_v41 }
0x21a5   :  { %9631 = vmatprep.mubr.msk.f32.mxu1 %vm570_vm0, %v6226_v45 }
0x21a8   :  { %9632 = vmatmul.mubr.msk.f32.gmra.mxu1 %vm570_vm0, %v6228_v33 }
0x222b   :  { %v12648_v33 = vpop.f32.mrf.mxu1 }
0x222c   :  { %13380 = vst [vmem:[#allocation48_spill] sm:$0xff] %v12648_v33 }
0x222d   :  { %v12650_v16 = vpop.f32.mrf.mxu1 }
0x222e   :  { %13381 = vst [vmem:[#allocation49_spill] sm:$0xff] %v12650_v16 }
0x2258   :  { %v9616_v40 = vpop.f32.mrf.mxu0 }
0x2259   :  { %v6339_v56 = vadd.f32 %v12623_v9, %v9616_v40 }
0x225a   :  { %v6202_v11 = vpop.f32.mrf.mxu0 }
0x225b   :  { %v6338_v31 = vadd.f32 %v12620_v25, %v6202_v11  ;;  %v6349_v62 = vsel %vm797_vm1, %v6339_v56, -inf }
0x225d   :  { %v6346_v26 = vsel %vm797_vm1, %v6338_v31, -inf }
0x225e   :  { %6347 = vmax.xlane.f32.xlu0 %v6346_v26 }
0x2260   :  { %v9619_v46 = vpop.f32.mrf.mxu0  ;;  %v12652_v36 = vpop.f32.mrf.mxu1 }
0x2261   :  { %v6341_v41 = vadd.f32 %v12627_v4, %v9619_v46  ;;  %13382 = vst [vmem:[#allocation50_spill] sm:$0xff] %v12652_v36 }
0x2262   :  { %6350 = vmax.xlane.f32.xlu0 %v6349_v62  ;;  %v6212_v17 = vpop.f32.mrf.mxu0  ;;  %v12654_v26 = vpop.f32.mrf.mxu1 }
0x2263   :  { %v6340_v44 = vadd.f32 %v12631_v12, %v6212_v17  ;;  %v6355_v59 = vsel %vm797_vm1, %v6341_v41, -inf  ;;  %13383 = vst [vmem:[#allocation51_spill] sm:$0xff] %v12654_v26 }
0x2264   :  { %6356 = vmax.xlane.f32.xlu1 %v6355_v59  ;;  %v9630_v62 = vpop.f32.mrf.mxu1 }
0x2265   :  { %v6352_v30 = vsel %vm797_vm1, %v6340_v44, -inf }
0x2266   :  { %6353 = vmax.xlane.f32.xlu0 %v6352_v30  ;;  %v6319_v59 = vpop.f32.mrf.mxu1 }
0x2275   :  { %6446 = vrot.lane.b32.xlu1 %v13358_v15, %s10634_s21 }
0x2279   :  { %6444 = vrot.lane.b32.xlu1 %v13359_v51, %s10634_s21 }
0x227c   :  { %6448 = vrot.lane.b32.xlu0 %v10893_v8, %s10634_s21 }
0x227d   :  { %6442 = vrot.lane.b32.xlu1 %v13360_v53, %s10634_s21 }
0x2280   :  { %6702 = vrot.lane.b32.xlu0 %v13363_v57, %s10635_s22 }
0x2281   :  { %6585 = vrot.lane.b32.xlu1 %v10887_v5, %s10635_s22 }
0x22e7   :  { %v6348_v27 = vpop.xlane.xlu0 %6347 }
0x22e8   :  { %v6370_v22 = vsub.f32 %v6338_v31, %v6348_v27 }
0x22ea   :  { %v6378_v39 = vmul.f32 1.442695, %v6370_v22 }
0x22eb   :  { %v6351_v45 = vpop.xlane.xlu0 %6350 }
0x22ec   :  { %10265 = vpow2.f32 %v6378_v39  ;;  %v6371_v58 = vsub.f32 %v6339_v56, %v6351_v45 }
0x22ed   :  { %v6357_v47 = vpop.xlane.xlu1 %6356 }
0x22ee   :  { %v6380_v55 = vmul.f32 1.442695, %v6371_v58  ;;  %v6373_v60 = vsub.f32 %v6341_v41, %v6357_v47  ;;  %v9633_v58 = vpop.f32.mrf.mxu1 }
0x22ef   :  { %v6354_v52 = vpop.xlane.xlu0 %6353 }
0x22f0   :  { %10267 = vpow2.f32 %v6380_v55  ;;  %v6384_v43 = vmul.f32 1.442695, %v6373_v60  ;;  %v6372_v40 = vsub.f32 %v6340_v44, %v6354_v52  ;;  %v12674_v55 = vld [vmem:[#allocation13 + $0x28] sm:$0xff]  ;;  %v12677_v52 = vld [vmem:[#allocation13 + $0x20] sm:$0xff] }
0x22f1   :  { %v6447_v11 = vpop.permute.xlu1 %6446  ;;  %v6343_v60 = vadd.f32 %v12674_v55, %v9630_v62 }
0x22f2   :  { %10269 = vpow2.f32 %v6384_v43  ;;  %v6382_v31 = vmul.f32 1.442695, %v6372_v40  ;;  %v6342_v43 = vadd.f32 %v12677_v52, %v6319_v59 }
0x22f3   :  { %v6449_v46 = vpop.permute.xlu0 %6448 }
0x22f4   :  { %10271 = vpow2.f32 %v6382_v31  ;;  %9634 = vmatprep.subr.mxu0 %v6449_v46  ;;  %v6329_v31 = vpop.f32.mrf.mxu1  ;;  %v6358_v59 = vsel %vm797_vm1, %v6342_v43, -inf }
0x22f5   :  { %v6445_v56 = vpop.permute.xlu1 %6444  ;;  %9635 = vmatpush3.msra.mxu0 %v6449_v46  ;;  %v12684_v46 = vld [vmem:[#allocation13 + $0x38] sm:$0xff] }
0x22f6   :  { %9636 = vmatprep.subr.mxu0 %v6447_v11 }
0x22f7   :  { %9637 = vmatpush3.msra.mxu0 %v6447_v11  ;;  %v12660_v30 = vpop.permute.xlu0 %6702 }
0x22f8   :  { %9638 = vmatprep.subr.mxu0 %v6445_v56 }
0x22f9   :  { %v12656_v41 = vpop.eup %10265  ;;  %v6443_v17 = vpop.permute.xlu1 %6442  ;;  %9639 = vmatpush3.msra.mxu0 %v6445_v56  ;;  %v6345_v56 = vadd.f32 %v12684_v46, %v9633_v58 }
0x22fa   :  { %9640 = vmatprep.subr.mxu0 %v6443_v17  ;;  %v6394_v44 = vsel %vm797_vm1, %v12656_v41, 0.0 }
0x22fb   :  { %6395 = vadd.xlane.f32.xlu0 %v6394_v44  ;;  %9641 = vmatpush3.msra.mxu0 %v6443_v17  ;;  %v12687_v17 = vld [vmem:[#allocation13 + $0x30] sm:$0xff]  ;;  %v6361_v44 = vsel %vm797_vm1, %v6343_v60, -inf }
0x22fc   :  { %9662 = vmatprep.subr.msk.mxu0 %vm570_vm0, %v12660_v30  ;;  %v6344_v62 = vadd.f32 %v12687_v17, %v6329_v31 }
0x22fd   :  { %v12664_v27 = vpop.eup %10267  ;;  %v6586_v22 = vpop.permute.xlu1 %6585 }
0x22fe   :  { %9648 = vmatprep.subr.msk.mxu1 %vm570_vm0, %v6586_v22  ;;  %v6397_v39 = vsel %vm797_vm1, %v12664_v27, 0.0 }
0x22ff   :  { %v12669_v45 = vpop.eup %10269  ;;  %9649 = vmatpush3.xpose.msk.msra.mxu1 %vm570_vm0, %v6586_v22  ;;  %6398 = vadd.xlane.f32.xlu1 %v6397_v39  ;;  %v6367_v22 = vsel %vm797_vm1, %v6345_v56, -inf  ;;  %v6364_v39 = vsel %vm797_vm1, %v6344_v62, -inf }
0x2300   :  { %v6403_v40 = vsel %vm797_vm1, %v12669_v45, 0.0 }
0x2301   :  { %v12672_v47 = vpop.eup %10271 }
0x2302   :  { %v6400_v11 = vsel %vm797_vm1, %v12672_v47, 0.0 }
0x2303   :  { %6404 = vadd.xlane.f32.xlu1 %v6403_v40  ;;  %6401 = vadd.xlane.f32.xlu0 %v6400_v11 }
0x2307   :  { %6362 = vmax.xlane.f32.xlu1 %v6361_v44  ;;  %6359 = vmax.xlane.f32.xlu0 %v6358_v59 }
0x230b   :  { %6368 = vmax.xlane.f32.xlu1 %v6367_v22  ;;  %6365 = vmax.xlane.f32.xlu0 %v6364_v39 }
0x231c   :  { %6583 = vrot.lane.b32.xlu1 %v10881_v2, %s10635_s22 }
0x2321   :  { %6700 = vrot.lane.b32.xlu0 %v13364_v28, %s10635_s22 }
0x2384   :  { %v6396_v58 = vpop.xlane.xlu0 %6395 }
0x2388   :  { %v6399_v40 = vpop.xlane.xlu1 %6398 }
0x238c   :  { %v12698_v11 = vpop.xlane.xlu1 %6404  ;;  %v12700_v31 = vpop.xlane.xlu0 %6401 }
0x2390   :  { %v6363_v44 = vpop.xlane.xlu1 %6362  ;;  %v6360_v59 = vpop.xlane.xlu0 %6359 }
0x2391   :  { %v6375_v36 = vsub.f32 %v6343_v60, %v6363_v44  ;;  %v6374_v26 = vsub.f32 %v6342_v43, %v6360_v59 }
0x2393   :  { %v6388_v29 = vmul.f32 1.442695, %v6375_v36  ;;  %v6386_v3 = vmul.f32 1.442695, %v6374_v26 }
0x2394   :  { %v6369_v22 = vpop.xlane.xlu1 %6368 }
0x2395   :  { %10273 = vpow2.f32 %v6388_v29  ;;  %v6366_v29 = vpop.xlane.xlu0 %6365 }
0x2396   :  { %10275 = vpow2.f32 %v6386_v3  ;;  %v6377_v3 = vsub.f32 %v6345_v56, %v6369_v22  ;;  %v6376_v36 = vsub.f32 %v6344_v62, %v6366_v29 }
0x2398   :  { %v6584_v39 = vpop.permute.xlu1 %6583  ;;  %v6392_v26 = vmul.f32 1.442695, %v6377_v3  ;;  %v6390_v60 = vmul.f32 1.442695, %v6376_v36 }
0x2399   :  { %9650 = vmatprep.subr.msk.mxu1 %vm570_vm0, %v6584_v39  ;;  %v6701_v56 = vpop.permute.xlu0 %6700 }
0x239a   :  { %9651 = vmatpush3.xpose.msk.msra.mxu1 %vm570_vm0, %v6584_v39  ;;  %10277 = vpow2.f32 %v6392_v26 }
0x239b   :  { %10279 = vpow2.f32 %v6390_v60 }
0x239c   :  { %10281 = vrcp.f32 %v6396_v58 }
0x239d   :  { %10283 = vrcp.f32 %v6399_v40 }
0x23a2   :  { %v10274_v33 = vpop.eup %10273 }
0x23a3   :  { %v10276_v16 = vpop.eup %10275  ;;  %v6409_v23 = vsel %vm797_vm1, %v10274_v33, 0.0 }
0x23a4   :  { %6410 = vadd.xlane.f32.xlu1 %v6409_v23  ;;  %v6406_v18 = vsel %vm797_vm1, %v10276_v16, 0.0 }
0x23a5   :  { %6407 = vadd.xlane.f32.xlu0 %v6406_v18 }
0x23a7   :  { %v12710_v43 = vpop.eup %10277 }
0x23a8   :  { %v12712_v44 = vpop.eup %10279  ;;  %v6415_v23 = vsel %vm797_vm1, %v12710_v43, 0.0 }
0x23a9   :  { %v6412_v18 = vsel %vm797_vm1, %v12712_v44, 0.0  ;;  %v10282_v39 = vpop.eup %10281 }
0x23aa   :  { %v10284_v29 = vpop.eup %10283  ;;  %v6419_v40 = vmul.f32 %v10282_v39, %v12656_v41 }
0x23b5   :  { %6581 = vrot.lane.b32.xlu1 %v10877_v63, %s10635_s22 }
0x23bb   :  { %6698 = vrot.lane.b32.xlu0 %v13366_v34, %s10635_s22 }
0x23d9   :  { %6416 = vadd.xlane.f32.xlu1 %v6415_v23  ;;  %v6421_v23 = vmul.f32 %v10284_v29, %v12664_v27 }
0x23da   :  { %6413 = vadd.xlane.f32.xlu0 %v6412_v18 }
0x23ea   :  { %6579 = vrot.lane.b32.xlu1 %v10873_v61, %s10635_s22 }
0x23ee   :  { %6690 = vrot.lane.b32.xlu1 %v12058_v1, %s10635_s22 }
0x23f0   :  { %6696 = vrot.lane.b32.xlu0 %v13367_v0, %s10635_s22 }
0x23f2   :  { %6573 = vrot.lane.b32.xlu1 %v11918_v49, %s10635_s22 }
0x23f4   :  { %6688 = vrot.lane.b32.xlu0 %v12042_v20, %s10635_s22 }
0x23f6   :  { %6694 = vrot.lane.b32.xlu1 %v12068_v42, %s10635_s22 }
0x23f8   :  { %6571 = vrot.lane.b32.xlu0 %v11902_v7, %s10635_s22 }
0x23fa   :  { %6577 = vrot.lane.b32.xlu1 %v11930_v35, %s10635_s22 }
0x23fc   :  { %6692 = vrot.lane.b32.xlu0 %v12061_v24, %s10635_s22 }
0x2400   :  { %6575 = vrot.lane.b32.xlu0 %v11922_v54, %s10635_s22 }
0x242d   :  { %v6411_v62 = vpop.xlane.xlu1 %6410 }
0x242e   :  { %10285 = vrcp.f32 %v6411_v62  ;;  %v6408_v59 = vpop.xlane.xlu0 %6407 }
0x242f   :  { %10287 = vrcp.f32 %v6408_v59 }
0x2430   :  { %10289 = vrcp.f32 %v12698_v11 }
0x2431   :  { %v6582_v22 = vpop.permute.xlu1 %6581  ;;  %10291 = vrcp.f32 %v12700_v31 }
0x2432   :  { %9652 = vmatprep.subr.msk.mxu1 %vm570_vm0, %v6582_v22 }
0x2433   :  { %9653 = vmatpush3.xpose.msk.msra.mxu1 %vm570_vm0, %v6582_v22 }
0x243b   :  { %v10286_v3 = vpop.eup %10285 }
0x243c   :  { %v10288_v36 = vpop.eup %10287  ;;  %v6429_v26 = vmul.f32 %v10286_v3, %v10274_v33  ;;  %v6699_v33 = vpop.permute.xlu0 %6698 }
0x243d   :  { %v6427_v60 = vmul.f32 %v10288_v36, %v10276_v16  ;;  %v10290_v39 = vpop.eup %10289 }
0x243e   :  { %v6435_v58 = vmul.f32 %v6429_v26, %v11000_v21  ;;  %v10292_v29 = vpop.eup %10291 }
0x243f   :  { %v6434_v18 = vmul.f32 %v6427_v60, %v11000_v21 }
0x2440   :  { %v6439_v62 = vsub.f32 %v6421_v23, %v6435_v58 }
0x2441   :  { %v6438_v59 = vsub.f32 %v6419_v40, %v6434_v18  ;;  %v6425_v40 = vmul.f32 %v10290_v39, %v12669_v45 }
0x2443   :  { %9642 = vmatprep.mubr.msk.f32.mxu0 %vm797_vm1, %v6438_v59 }
0x2444   :  { %9643 = vmatmul.mubr.msk.f32.vlgmr.msra.gmra.mxu0 %vm797_vm1, %v6439_v62  ;;  %v6423_v62 = vmul.f32 %v10292_v29, %v12672_v47 }
0x2445   :  { %9663 = vmatpush3.xpose.msk.msra.mxu0 %vm570_vm0, %v12660_v30 }
0x2446   :  { %9664 = vmatprep.subr.msk.mxu0 %vm570_vm0, %v6701_v56 }
0x2449   :  { %9665 = vmatpush3.xpose.msk.msra.mxu0 %vm570_vm0, %v6701_v56 }
0x244a   :  { %9666 = vmatprep.subr.msk.mxu0 %vm570_vm0, %v6699_v33 }
0x244d   :  { %9667 = vmatpush3.xpose.msk.msra.mxu0 %vm570_vm0, %v6699_v33 }
0x2462   :  { %v6417_v16 = vpop.xlane.xlu1 %6416 }
0x2463   :  { %10293 = vrcp.f32 %v6417_v16  ;;  %v6414_v41 = vpop.xlane.xlu0 %6413 }
0x2464   :  { %10295 = vrcp.f32 %v6414_v41 }
0x2466   :  { %v6580_v27 = vpop.permute.xlu1 %6579 }
0x2467   :  { %v6697_v22 = vpop.permute.xlu0 %6696  ;;  %9654 = vmatprep.subr.msk.mxu1 %vm570_vm0, %v6580_v27 }
0x2468   :  { %9668 = vmatprep.subr.msk.mxu0 %vm570_vm0, %v6697_v22  ;;  %9655 = vmatpush3.xpose.msk.msra.mxu1 %vm570_vm0, %v6580_v27 }
0x2469   :  { %9669 = vmatpush3.xpose.msk.msra.mxu0 %vm570_vm0, %v6697_v22 }
0x246a   :  { %v6691_v30 = vpop.permute.xlu1 %6690 }
0x246b   :  { %v6689_v56 = vpop.permute.xlu0 %6688 }
0x246e   :  { %v6574_v11 = vpop.permute.xlu1 %6573 }
0x246f   :  { %v6572_v31 = vpop.permute.xlu0 %6571 }
0x2470   :  { %v10294_v3 = vpop.eup %10293  ;;  %9656 = vmatprep.mubr.msk.f32.mxu1 %vm570_vm0, %v6572_v31 }
0x2471   :  { %v10296_v36 = vpop.eup %10295  ;;  %9657 = vmatmul.mubr.msk.f32.vlgmr.msra.gmra.mxu1 %vm570_vm0, %v6574_v11  ;;  %v6433_v26 = vmul.f32 %v10294_v3, %v12710_v43 }
0x2472   :  { %v6695_v60 = vpop.permute.xlu1 %6694  ;;  %v6431_v23 = vmul.f32 %v10296_v36, %v12712_v44 }
0x2473   :  { %v6693_v58 = vpop.permute.xlu0 %6692  ;;  %v6437_v18 = vmul.f32 %v6433_v26, %v11000_v21 }
0x2474   :  { %v6436_v59 = vmul.f32 %v6431_v23, %v11000_v21 }
0x2475   :  { %v6441_v33 = vsub.f32 %v6425_v40, %v6437_v18 }
0x2476   :  { %v6578_v16 = vpop.permute.xlu1 %6577  ;;  %v6440_v41 = vsub.f32 %v6423_v62, %v6436_v59 }
0x2477   :  { %v6576_v27 = vpop.permute.xlu0 %6575 }
0x2478   :  { %9645 = vmatprep.mubr.msk.f32.mxu0 %vm797_vm1, %v6440_v41  ;;  %9659 = vmatprep.mubr.msk.f32.mxu1 %vm570_vm0, %v6576_v27 }
0x2479   :  { %9646 = vmatmul.mubr.msk.f32.gmra.mxu0 %vm797_vm1, %v6441_v33  ;;  %9660 = vmatmul.mubr.msk.f32.gmra.mxu1 %vm570_vm0, %v6578_v16 }
0x247a   :  { %9670 = vmatprep.mubr.msk.f32.mxu0 %vm570_vm0, %v6689_v56 }
0x247d   :  { %9671 = vmatmul.mubr.msk.f32.vlgmr.msra.gmra.mxu0 %vm570_vm0, %v6691_v30 }
0x247e   :  { %9673 = vmatprep.mubr.msk.f32.mxu0 %vm570_vm0, %v6693_v58 }
0x2481   :  { %9674 = vmatmul.mubr.msk.f32.gmra.mxu0 %vm570_vm0, %v6695_v60 }
0x2504   :  { %v12794_v60 = vpop.f32.mrf.mxu0 }
0x2505   :  { %13384 = vst [vmem:[#allocation52_spill] sm:$0xff] %v12794_v60 }
0x2506   :  { %v12796_v18 = vpop.f32.mrf.mxu0 }
0x2507   :  { %13385 = vst [vmem:[#allocation53_spill] sm:$0xff] %v12796_v18 }
0x2531   :  { %v9658_v45 = vpop.f32.mrf.mxu1 }
0x2532   :  { %v6806_v44 = vadd.f32 %v12623_v9, %v9658_v45 }
0x2533   :  { %v6669_v47 = vpop.f32.mrf.mxu1 }
0x2534   :  { %v6805_v43 = vadd.f32 %v12620_v25, %v6669_v47  ;;  %v6816_v56 = vsel %vm797_vm1, %v6806_v44, -inf }
0x2536   :  { %v6813_v22 = vsel %vm797_vm1, %v6805_v43, -inf }
0x2537   :  { %6814 = vmax.xlane.f32.xlu0 %v6813_v22 }
0x2539   :  { %v9661_v39 = vpop.f32.mrf.mxu1  ;;  %v12798_v16 = vpop.f32.mrf.mxu0 }
0x253a   :  { %v6808_v11 = vadd.f32 %v12627_v4, %v9661_v39  ;;  %13386 = vst [vmem:[#allocation54_spill] sm:$0xff] %v12798_v16 }
0x253b   :  { %6817 = vmax.xlane.f32.xlu0 %v6816_v56  ;;  %v6679_v30 = vpop.f32.mrf.mxu1  ;;  %v12800_v22 = vpop.f32.mrf.mxu0 }
0x253c   :  { %v6807_v29 = vadd.f32 %v12631_v12, %v6679_v30  ;;  %v6822_v31 = vsel %vm797_vm1, %v6808_v11, -inf  ;;  %13387 = vst [vmem:[#allocation55_spill] sm:$0xff] %v12800_v22 }
0x253d   :  { %6823 = vmax.xlane.f32.xlu1 %v6822_v31  ;;  %v9672_v56 = vpop.f32.mrf.mxu0 }
0x253e   :  { %v6819_v3 = vsel %vm797_vm1, %v6807_v29, -inf }
0x253f   :  { %6820 = vmax.xlane.f32.xlu0 %v6819_v3  ;;  %v6786_v31 = vpop.f32.mrf.mxu0 }
0x254e   :  { %6913 = vrot.lane.b32.xlu1 %v13358_v15, %s10635_s22 }
0x2552   :  { %6911 = vrot.lane.b32.xlu1 %v13359_v51, %s10635_s22 }
0x2555   :  { %6915 = vrot.lane.b32.xlu0 %v10893_v8, %s10635_s22 }
0x2556   :  { %6909 = vrot.lane.b32.xlu1 %v13360_v53, %s10635_s22 }
0x2559   :  { %7169 = vrot.lane.b32.xlu0 %v13363_v57, %s10636_s23 }
0x255a   :  { %7052 = vrot.lane.b32.xlu1 %v10887_v5, %s10636_s23 }
0x25c0   :  { %v6815_v36 = vpop.xlane.xlu0 %6814 }
0x25c1   :  { %v6837_v26 = vsub.f32 %v6805_v43, %v6815_v36 }
0x25c3   :  { %v6845_v23 = vmul.f32 1.442695, %v6837_v26 }
0x25c4   :  { %v6818_v58 = vpop.xlane.xlu0 %6817 }
0x25c5   :  { %10297 = vpow2.f32 %v6845_v23  ;;  %v6838_v40 = vsub.f32 %v6806_v44, %v6818_v58 }
0x25c6   :  { %v6824_v62 = vpop.xlane.xlu1 %6823 }
0x25c7   :  { %v6847_v59 = vmul.f32 1.442695, %v6838_v40  ;;  %v6840_v33 = vsub.f32 %v6808_v11, %v6824_v62  ;;  %v9675_v40 = vpop.f32.mrf.mxu0 }
0x25c8   :  { %v6821_v41 = vpop.xlane.xlu0 %6820 }
0x25c9   :  { %10299 = vpow2.f32 %v6847_v59  ;;  %v6851_v27 = vmul.f32 1.442695, %v6840_v33  ;;  %v6839_v45 = vsub.f32 %v6807_v29, %v6821_v41  ;;  %v6810_v59 = vadd.f32 %v12674_v55, %v9672_v56 }
0x25ca   :  { %v6914_v47 = vpop.permute.xlu1 %6913  ;;  %v6809_v33 = vadd.f32 %v12677_v52, %v6786_v31 }
0x25cb   :  { %10301 = vpow2.f32 %v6851_v27  ;;  %v6849_v43 = vmul.f32 1.442695, %v6839_v45  ;;  %v6796_v45 = vpop.f32.mrf.mxu0 }
0x25cc   :  { %v6916_v39 = vpop.permute.xlu0 %6915 }
0x25cd   :  { %10303 = vpow2.f32 %v6849_v43  ;;  %9676 = vmatprep.subr.mxu1 %v6916_v39  ;;  %v6811_v43 = vadd.f32 %v12687_v17, %v6796_v45 }
0x25ce   :  { %v6912_v44 = vpop.permute.xlu1 %6911  ;;  %9677 = vmatpush3.msra.mxu1 %v6916_v39  ;;  %v6828_v39 = vsel %vm797_vm1, %v6810_v59, -inf }
0x25cf   :  { %9678 = vmatprep.subr.mxu1 %v6914_v47 }
0x25d0   :  { %9679 = vmatpush3.msra.mxu1 %v6914_v47  ;;  %v12806_v3 = vpop.permute.xlu0 %7169  ;;  %v6812_v47 = vadd.f32 %v12684_v46, %v9675_v40 }
0x25d1   :  { %9680 = vmatprep.subr.mxu1 %v6912_v44 }
0x25d2   :  { %v12802_v11 = vpop.eup %10297  ;;  %v6910_v30 = vpop.permute.xlu1 %6909  ;;  %9681 = vmatpush3.msra.mxu1 %v6912_v44  ;;  %v6825_v44 = vsel %vm797_vm1, %v6809_v33, -inf  ;;  %v6834_v56 = vsel %vm797_vm1, %v6812_v47, -inf }
0x25d3   :  { %9682 = vmatprep.subr.mxu1 %v6910_v30  ;;  %v6861_v29 = vsel %vm797_vm1, %v12802_v11, 0.0 }
0x25d4   :  { %6862 = vadd.xlane.f32.xlu0 %v6861_v29  ;;  %9683 = vmatpush3.msra.mxu1 %v6910_v30  ;;  %v6831_v30 = vsel %vm797_vm1, %v6811_v43, -inf }
0x25d5   :  { %9704 = vmatprep.subr.msk.mxu1 %vm570_vm0, %v12806_v3 }
0x25d6   :  { %v12810_v36 = vpop.eup %10299  ;;  %v7053_v26 = vpop.permute.xlu1 %7052 }
0x25d7   :  { %9690 = vmatprep.subr.msk.mxu0 %vm570_vm0, %v7053_v26  ;;  %v6864_v23 = vsel %vm797_vm1, %v12810_v36, 0.0 }
0x25d8   :  { %v12815_v58 = vpop.eup %10301  ;;  %9691 = vmatpush3.xpose.msk.msra.mxu0 %vm570_vm0, %v7053_v26  ;;  %6865 = vadd.xlane.f32.xlu1 %v6864_v23 }
0x25d9   :  { %v6870_v41 = vsel %vm797_vm1, %v12815_v58, 0.0 }
0x25da   :  { %v12818_v62 = vpop.eup %10303 }
0x25db   :  { %v6867_v27 = vsel %vm797_vm1, %v12818_v62, 0.0 }
0x25dc   :  { %6871 = vadd.xlane.f32.xlu1 %v6870_v41  ;;  %6868 = vadd.xlane.f32.xlu0 %v6867_v27 }
0x25e0   :  { %6829 = vmax.xlane.f32.xlu1 %v6828_v39  ;;  %6826 = vmax.xlane.f32.xlu0 %v6825_v44 }
0x25e4   :  { %6835 = vmax.xlane.f32.xlu1 %v6834_v56  ;;  %6832 = vmax.xlane.f32.xlu0 %v6831_v30 }
0x25f5   :  { %7050 = vrot.lane.b32.xlu1 %v10881_v2, %s10636_s23 }
0x25fa   :  { %7167 = vrot.lane.b32.xlu0 %v13364_v28, %s10636_s23 }
0x265d   :  { %v6863_v29 = vpop.xlane.xlu0 %6862 }
0x2661   :  { %v6866_v31 = vpop.xlane.xlu1 %6865 }
0x2665   :  { %v12836_v26 = vpop.xlane.xlu1 %6871  ;;  %v12838_v23 = vpop.xlane.xlu0 %6868 }
0x2669   :  { %v6830_v40 = vpop.xlane.xlu1 %6829  ;;  %v6827_v41 = vpop.xlane.xlu0 %6826 }
0x266a   :  { %v6842_v27 = vsub.f32 %v6810_v59, %v6830_v40  ;;  %v6841_v45 = vsub.f32 %v6809_v33, %v6827_v41 }
0x266c   :  { %v6855_v39 = vmul.f32 1.442695, %v6842_v27  ;;  %v6853_v44 = vmul.f32 1.442695, %v6841_v45 }
0x266d   :  { %v6836_v56 = vpop.xlane.xlu1 %6835  ;;  %v6833_v59 = vpop.xlane.xlu0 %6832 }
0x266e   :  { %10305 = vpow2.f32 %v6855_v39  ;;  %v6844_v33 = vsub.f32 %v6812_v47, %v6836_v56  ;;  %v6843_v40 = vsub.f32 %v6811_v43, %v6833_v59 }
0x266f   :  { %10307 = vpow2.f32 %v6853_v44 }
0x2670   :  { %v6859_v41 = vmul.f32 1.442695, %v6844_v33  ;;  %v6857_v27 = vmul.f32 1.442695, %v6843_v40 }
0x2671   :  { %v7051_v30 = vpop.permute.xlu1 %7050  ;;  %v7168_v47 = vpop.permute.xlu0 %7167 }
0x2672   :  { %9692 = vmatprep.subr.msk.mxu0 %vm570_vm0, %v7051_v30  ;;  %10309 = vpow2.f32 %v6859_v41 }
0x2673   :  { %9693 = vmatpush3.xpose.msk.msra.mxu0 %vm570_vm0, %v7051_v30  ;;  %10311 = vpow2.f32 %v6857_v27 }
0x2674   :  { %10313 = vrcp.f32 %v6863_v29 }
0x2675   :  { %10315 = vrcp.f32 %v6866_v31 }
0x267b   :  { %v10306_v16 = vpop.eup %10305 }
0x267c   :  { %v10308_v22 = vpop.eup %10307  ;;  %v6876_v60 = vsel %vm797_vm1, %v10306_v16, 0.0 }
0x267d   :  { %6877 = vadd.xlane.f32.xlu1 %v6876_v60  ;;  %v6873_v18 = vsel %vm797_vm1, %v10308_v22, 0.0 }
0x267e   :  { %6874 = vadd.xlane.f32.xlu0 %v6873_v18 }
0x267f   :  { %v12848_v45 = vpop.eup %10309 }
0x2680   :  { %v12850_v39 = vpop.eup %10311  ;;  %v6882_v60 = vsel %vm797_vm1, %v12848_v45, 0.0 }
0x2681   :  { %v6879_v18 = vsel %vm797_vm1, %v12850_v39, 0.0  ;;  %v10314_v30 = vpop.eup %10313 }
0x2682   :  { %v10316_v59 = vpop.eup %10315  ;;  %v6886_v31 = vmul.f32 %v10314_v30, %v12802_v11 }
0x268e   :  { %7048 = vrot.lane.b32.xlu1 %v10877_v63, %s10636_s23 }
0x2694   :  { %7165 = vrot.lane.b32.xlu0 %v13366_v34, %s10636_s23 }
0x26b2   :  { %6883 = vadd.xlane.f32.xlu1 %v6882_v60  ;;  %v6888_v60 = vmul.f32 %v10316_v59, %v12810_v36 }
0x26b3   :  { %6880 = vadd.xlane.f32.xlu0 %v6879_v18 }
0x26c3   :  { %7046 = vrot.lane.b32.xlu1 %v10873_v61, %s10636_s23 }
0x26c7   :  { %7157 = vrot.lane.b32.xlu1 %v12058_v1, %s10636_s23 }
0x26c9   :  { %7163 = vrot.lane.b32.xlu0 %v13367_v0, %s10636_s23 }
0x26cb   :  { %7040 = vrot.lane.b32.xlu1 %v11918_v49, %s10636_s23 }
0x26cd   :  { %7155 = vrot.lane.b32.xlu0 %v12042_v20, %s10636_s23 }
0x26cf   :  { %7161 = vrot.lane.b32.xlu1 %v12068_v42, %s10636_s23 }
0x26d1   :  { %7038 = vrot.lane.b32.xlu0 %v11902_v7, %s10636_s23 }
0x26d3   :  { %7044 = vrot.lane.b32.xlu1 %v11930_v35, %s10636_s23 }
0x26d5   :  { %7159 = vrot.lane.b32.xlu0 %v12061_v24, %s10636_s23 }
0x26d9   :  { %7042 = vrot.lane.b32.xlu0 %v11922_v54, %s10636_s23 }
0x2706   :  { %v6878_v43 = vpop.xlane.xlu1 %6877 }
0x2707   :  { %10317 = vrcp.f32 %v6878_v43  ;;  %v6875_v44 = vpop.xlane.xlu0 %6874 }
0x2708   :  { %10319 = vrcp.f32 %v6875_v44 }
0x2709   :  { %10321 = vrcp.f32 %v12836_v26 }
0x270a   :  { %v7049_v56 = vpop.permute.xlu1 %7048  ;;  %10323 = vrcp.f32 %v12838_v23 }
0x270b   :  { %9694 = vmatprep.subr.msk.mxu0 %vm570_vm0, %v7049_v56 }
0x270c   :  { %9695 = vmatpush3.xpose.msk.msra.mxu0 %vm570_vm0, %v7049_v56 }
0x2714   :  { %v10318_v33 = vpop.eup %10317 }
0x2715   :  { %v10320_v40 = vpop.eup %10319  ;;  %v6896_v41 = vmul.f32 %v10318_v33, %v10306_v16  ;;  %v7166_v16 = vpop.permute.xlu0 %7165 }
0x2716   :  { %v6894_v27 = vmul.f32 %v10320_v40, %v10308_v22  ;;  %v10322_v30 = vpop.eup %10321 }
0x2717   :  { %v6902_v29 = vmul.f32 %v6896_v41, %v11000_v21  ;;  %v10324_v59 = vpop.eup %10323 }
0x2718   :  { %v6901_v18 = vmul.f32 %v6894_v27, %v11000_v21 }
0x2719   :  { %v6906_v43 = vsub.f32 %v6888_v60, %v6902_v29 }
0x271a   :  { %v6905_v44 = vsub.f32 %v6886_v31, %v6901_v18  ;;  %v6892_v31 = vmul.f32 %v10322_v30, %v12815_v58 }
0x271c   :  { %9684 = vmatprep.mubr.msk.f32.mxu1 %vm797_vm1, %v6905_v44 }
0x271d   :  { %9685 = vmatmul.mubr.msk.f32.vlgmr.msra.gmra.mxu1 %vm797_vm1, %v6906_v43  ;;  %v6890_v43 = vmul.f32 %v10324_v59, %v12818_v62 }
0x271e   :  { %9705 = vmatpush3.xpose.msk.msra.mxu1 %vm570_vm0, %v12806_v3 }
0x271f   :  { %9706 = vmatprep.subr.msk.mxu1 %vm570_vm0, %v7168_v47 }
0x2722   :  { %9707 = vmatpush3.xpose.msk.msra.mxu1 %vm570_vm0, %v7168_v47 }
0x2723   :  { %9708 = vmatprep.subr.msk.mxu1 %vm570_vm0, %v7166_v16 }
0x2726   :  { %9709 = vmatpush3.xpose.msk.msra.mxu1 %vm570_vm0, %v7166_v16 }
0x273b   :  { %v6884_v22 = vpop.xlane.xlu1 %6883 }
0x273c   :  { %10325 = vrcp.f32 %v6884_v22  ;;  %v6881_v11 = vpop.xlane.xlu0 %6880 }
0x273d   :  { %10327 = vrcp.f32 %v6881_v11 }
0x273f   :  { %v7047_v36 = vpop.permute.xlu1 %7046 }
0x2740   :  { %v7164_v56 = vpop.permute.xlu0 %7163  ;;  %9696 = vmatprep.subr.msk.mxu0 %vm570_vm0, %v7047_v36 }
0x2741   :  { %9710 = vmatprep.subr.msk.mxu1 %vm570_vm0, %v7164_v56  ;;  %9697 = vmatpush3.xpose.msk.msra.mxu0 %vm570_vm0, %v7047_v36 }
0x2742   :  { %9711 = vmatpush3.xpose.msk.msra.mxu1 %vm570_vm0, %v7164_v56 }
0x2743   :  { %v7158_v3 = vpop.permute.xlu1 %7157 }
0x2744   :  { %v7156_v47 = vpop.permute.xlu0 %7155 }
0x2747   :  { %v7041_v26 = vpop.permute.xlu1 %7040 }
0x2748   :  { %v7039_v23 = vpop.permute.xlu0 %7038 }
0x2749   :  { %v10326_v33 = vpop.eup %10325  ;;  %9698 = vmatprep.mubr.msk.f32.mxu0 %vm570_vm0, %v7039_v23 }
0x274a   :  { %v10328_v40 = vpop.eup %10327  ;;  %9699 = vmatmul.mubr.msk.f32.vlgmr.msra.gmra.mxu0 %vm570_vm0, %v7041_v26  ;;  %v6900_v41 = vmul.f32 %v10326_v33, %v12848_v45 }
0x274b   :  { %v7162_v27 = vpop.permute.xlu1 %7161  ;;  %v6898_v60 = vmul.f32 %v10328_v40, %v12850_v39 }
0x274c   :  { %v7160_v29 = vpop.permute.xlu0 %7159  ;;  %v6904_v18 = vmul.f32 %v6900_v41, %v11000_v21 }
0x274d   :  { %v6903_v44 = vmul.f32 %v6898_v60, %v11000_v21 }
0x274e   :  { %v6908_v16 = vsub.f32 %v6892_v31, %v6904_v18 }
0x274f   :  { %v7045_v22 = vpop.permute.xlu1 %7044  ;;  %v6907_v11 = vsub.f32 %v6890_v43, %v6903_v44 }
0x2750   :  { %v7043_v36 = vpop.permute.xlu0 %7042 }
0x2751   :  { %9687 = vmatprep.mubr.msk.f32.mxu1 %vm797_vm1, %v6907_v11  ;;  %9701 = vmatprep.mubr.msk.f32.mxu0 %vm570_vm0, %v7043_v36 }
0x2752   :  { %9688 = vmatmul.mubr.msk.f32.gmra.mxu1 %vm797_vm1, %v6908_v16  ;;  %9702 = vmatmul.mubr.msk.f32.gmra.mxu0 %vm570_vm0, %v7045_v22 }
0x2753   :  { %9712 = vmatprep.mubr.msk.f32.mxu1 %vm570_vm0, %v7156_v47 }
0x2756   :  { %9713 = vmatmul.mubr.msk.f32.vlgmr.msra.gmra.mxu1 %vm570_vm0, %v7158_v3 }
0x2757   :  { %9715 = vmatprep.mubr.msk.f32.mxu1 %vm570_vm0, %v7160_v29 }
0x275a   :  { %9716 = vmatmul.mubr.msk.f32.gmra.mxu1 %vm570_vm0, %v7162_v27 }
0x280a   :  { %v9700_v58 = vpop.f32.mrf.mxu0 }
0x280b   :  { %v7273_v39 = vadd.f32 %v12623_v9, %v9700_v58 }
0x280c   :  { %v7136_v62 = vpop.f32.mrf.mxu0 }
0x280d   :  { %v7272_v45 = vadd.f32 %v12620_v25, %v7136_v62  ;;  %v7283_v47 = vsel %vm797_vm1, %v7273_v39, -inf }
0x280f   :  { %v7280_v56 = vsel %vm797_vm1, %v7272_v45, -inf }
0x2810   :  { %7281 = vmax.xlane.f32.xlu0 %v7280_v56 }
0x2812   :  { %v9703_v30 = vpop.f32.mrf.mxu0 }
0x2813   :  { %v7275_v26 = vadd.f32 %v12627_v4, %v9703_v30  ;;  %v12936_v4 = vpop.f32.mrf.mxu1 }
0x2814   :  { %7284 = vmax.xlane.f32.xlu0 %v7283_v47  ;;  %v7146_v3 = vpop.f32.mrf.mxu0 }
0x2815   :  { %v7274_v59 = vadd.f32 %v12631_v12, %v7146_v3  ;;  %v7289_v23 = vsel %vm797_vm1, %v7275_v26, -inf  ;;  %v12938_v60 = vpop.f32.mrf.mxu1 }
0x2816   :  { %7290 = vmax.xlane.f32.xlu1 %v7289_v23 }
0x2817   :  { %v7286_v33 = vsel %vm797_vm1, %v7274_v59, -inf  ;;  %v12940_v31 = vpop.f32.mrf.mxu1 }
0x2818   :  { %7287 = vmax.xlane.f32.xlu0 %v7286_v33 }
0x2819   :  { %v12942_v16 = vpop.f32.mrf.mxu1 }
0x281b   :  { %v9714_v11 = vpop.f32.mrf.mxu1 }
0x281c   :  { %v7277_v33 = vadd.f32 %v12674_v55, %v9714_v11 }
0x2827   :  { %7380 = vrot.lane.b32.xlu1 %v13358_v15, %s10636_s23 }
0x282b   :  { %7378 = vrot.lane.b32.xlu1 %v13359_v51, %s10636_s23 }
0x282e   :  { %7382 = vrot.lane.b32.xlu0 %v10893_v8, %s10636_s23 }
0x282f   :  { %7376 = vrot.lane.b32.xlu1 %v13360_v53, %s10636_s23 }
0x2832   :  { %7636 = vrot.lane.b32.xlu0 %v13363_v57, %s10621_s9 }
0x2833   :  { %7519 = vrot.lane.b32.xlu1 %v10887_v5, %s10621_s9 }
0x2836   :  { %7634 = vrot.lane.b32.xlu0 %v13364_v28, %s10621_s9 }
0x2837   :  { %7517 = vrot.lane.b32.xlu1 %v10881_v2, %s10621_s9 }
0x2899   :  { %v7282_v25 = vpop.xlane.xlu0 %7281 }
0x289a   :  { %v7304_v9 = vsub.f32 %v7272_v45, %v7282_v25 }
0x289c   :  { %v7312_v12 = vmul.f32 1.442695, %v7304_v9 }
0x289d   :  { %v7285_v40 = vpop.xlane.xlu0 %7284 }
0x289e   :  { %10329 = vpow2.f32 %v7312_v12  ;;  %v7305_v41 = vsub.f32 %v7273_v39, %v7285_v40  ;;  %v7253_v39 = vpop.f32.mrf.mxu1 }
0x289f   :  { %v7291_v27 = vpop.xlane.xlu1 %7290  ;;  %v7276_v12 = vadd.f32 %v12677_v52, %v7253_v39 }
0x28a0   :  { %v7314_v57 = vmul.f32 1.442695, %v7305_v41  ;;  %v7307_v29 = vsub.f32 %v7275_v26, %v7291_v27  ;;  %v9717_v3 = vpop.f32.mrf.mxu1  ;;  %v7295_v27 = vsel %vm797_vm1, %v7277_v33, -inf }
0x28a1   :  { %v7288_v5 = vpop.xlane.xlu0 %7287  ;;  %v7279_v41 = vadd.f32 %v12684_v46, %v9717_v3 }
0x28a2   :  { %10331 = vpow2.f32 %v7314_v57  ;;  %v7318_v28 = vmul.f32 1.442695, %v7307_v29  ;;  %v7306_v18 = vsub.f32 %v7274_v59, %v7288_v5  ;;  %v7263_v40 = vpop.f32.mrf.mxu1  ;;  %v7292_v57 = vsel %vm797_vm1, %v7276_v12, -inf }
0x28a3   :  { %v7381_v2 = vpop.permute.xlu1 %7380  ;;  %v7278_v55 = vadd.f32 %v12687_v17, %v7263_v40  ;;  %v7301_v29 = vsel %vm797_vm1, %v7279_v41, -inf }
0x28a4   :  { %10333 = vpow2.f32 %v7318_v28  ;;  %v7316_v43 = vmul.f32 1.442695, %v7306_v18 }
0x28a5   :  { %v7383_v44 = vpop.permute.xlu0 %7382  ;;  %v7298_v52 = vsel %vm797_vm1, %v7278_v55, -inf }
0x28a6   :  { %10335 = vpow2.f32 %v7316_v43  ;;  %9718 = vmatprep.subr.mxu0 %v7383_v44 }
0x28a7   :  { %v7379_v22 = vpop.permute.xlu1 %7378  ;;  %9719 = vmatpush3.msra.mxu0 %v7383_v44 }
0x28a8   :  { %9720 = vmatprep.subr.mxu0 %v7381_v2 }
0x28a9   :  { %9721 = vmatpush3.msra.mxu0 %v7381_v2  ;;  %v12948_v45 = vpop.permute.xlu0 %7636 }
0x28aa   :  { %9722 = vmatprep.subr.mxu0 %v7379_v22 }
0x28ab   :  { %v12944_v36 = vpop.eup %10329  ;;  %v7377_v58 = vpop.permute.xlu1 %7376  ;;  %9723 = vmatpush3.msra.mxu0 %v7379_v22 }
0x28ac   :  { %9724 = vmatprep.subr.mxu0 %v7377_v58  ;;  %v7328_v62 = vsel %vm797_vm1, %v12944_v36, 0.0 }
0x28ad   :  { %7329 = vadd.xlane.f32.xlu0 %v7328_v62  ;;  %9725 = vmatpush3.msra.mxu0 %v7377_v58  ;;  %v12980_v46 = vpop.permute.xlu0 %7634 }
0x28ae   :  { %9746 = vmatprep.subr.msk.mxu0 %vm570_vm0, %v12948_v45 }
0x28af   :  { %v12952_v56 = vpop.eup %10331  ;;  %v7520_v30 = vpop.permute.xlu1 %7519 }
0x28b0   :  { %9732 = vmatprep.subr.msk.mxu1 %vm570_vm0, %v7520_v30  ;;  %v7331_v26 = vsel %vm797_vm1, %v12952_v56, 0.0 }
0x28b1   :  { %v12957_v47 = vpop.eup %10333  ;;  %9733 = vmatpush3.xpose.msk.msra.mxu1 %vm570_vm0, %v7520_v30  ;;  %7332 = vadd.xlane.f32.xlu1 %v7331_v26 }
0x28b2   :  { %v7337_v25 = vsel %vm797_vm1, %v12957_v47, 0.0 }
0x28b3   :  { %v12960_v59 = vpop.eup %10335  ;;  %v7518_v23 = vpop.permute.xlu1 %7517 }
0x28b4   :  { %9734 = vmatprep.subr.msk.mxu1 %vm570_vm0, %v7518_v23  ;;  %v7334_v9 = vsel %vm797_vm1, %v12960_v59, 0.0 }
0x28b5   :  { %9735 = vmatpush3.xpose.msk.msra.mxu1 %vm570_vm0, %v7518_v23  ;;  %7338 = vadd.xlane.f32.xlu1 %v7337_v25 }
0x28b6   :  { %7335 = vadd.xlane.f32.xlu0 %v7334_v9 }
0x28b9   :  { %7296 = vmax.xlane.f32.xlu1 %v7295_v27 }
0x28ba   :  { %7293 = vmax.xlane.f32.xlu0 %v7292_v57 }
0x28bd   :  { %7302 = vmax.xlane.f32.xlu1 %v7301_v29 }
0x28be   :  { %7299 = vmax.xlane.f32.xlu0 %v7298_v52 }
0x28ce   :  { %7515 = vrot.lane.b32.xlu1 %v10877_v63, %s10621_s9 }
0x28d4   :  { %7632 = vrot.lane.b32.xlu0 %v13366_v34, %s10621_s9 }
0x2936   :  { %v7330_v17 = vpop.xlane.xlu0 %7329 }
0x293a   :  { %v7333_v5 = vpop.xlane.xlu1 %7332 }
0x293e   :  { %v12982_v28 = vpop.xlane.xlu1 %7338 }
0x293f   :  { %v12984_v18 = vpop.xlane.xlu0 %7335 }
0x2942   :  { %v7297_v2 = vpop.xlane.xlu1 %7296 }
0x2943   :  { %v7309_v43 = vsub.f32 %v7277_v33, %v7297_v2  ;;  %v7294_v44 = vpop.xlane.xlu0 %7293 }
0x2944   :  { %v7308_v22 = vsub.f32 %v7276_v12, %v7294_v44 }
0x2945   :  { %v7322_v11 = vmul.f32 1.442695, %v7309_v43 }
0x2946   :  { %v7320_v58 = vmul.f32 1.442695, %v7308_v22  ;;  %v7303_v62 = vpop.xlane.xlu1 %7302 }
0x2947   :  { %10337 = vpow2.f32 %v7322_v11  ;;  %v7300_v3 = vpop.xlane.xlu0 %7299  ;;  %v7311_v23 = vsub.f32 %v7279_v41, %v7303_v62 }
0x2948   :  { %10339 = vpow2.f32 %v7320_v58  ;;  %v7310_v33 = vsub.f32 %v7278_v55, %v7300_v3 }
0x2949   :  { %v7326_v25 = vmul.f32 1.442695, %v7311_v23 }
0x294a   :  { %v7516_v63 = vpop.permute.xlu1 %7515  ;;  %v7324_v9 = vmul.f32 1.442695, %v7310_v33 }
0x294b   :  { %9736 = vmatprep.subr.msk.mxu1 %vm570_vm0, %v7516_v63  ;;  %10341 = vpow2.f32 %v7326_v25 }
0x294c   :  { %9737 = vmatpush3.xpose.msk.msra.mxu1 %vm570_vm0, %v7516_v63  ;;  %10343 = vpow2.f32 %v7324_v9 }
0x294d   :  { %10345 = vrcp.f32 %v7330_v17 }
0x294e   :  { %10347 = vrcp.f32 %v7333_v5 }
0x2954   :  { %v10338_v34 = vpop.eup %10337 }
0x2955   :  { %v10340_v39 = vpop.eup %10339  ;;  %v7343_v30 = vsel %vm797_vm1, %v10338_v34, 0.0 }
0x2956   :  { %7344 = vadd.xlane.f32.xlu1 %v7343_v30  ;;  %v7340_v26 = vsel %vm797_vm1, %v10340_v39, 0.0 }
0x2957   :  { %7341 = vadd.xlane.f32.xlu0 %v7340_v26 }
0x2958   :  { %v12994_v12 = vpop.eup %10341 }
0x2959   :  { %v12996_v40 = vpop.eup %10343  ;;  %v7349_v27 = vsel %vm797_vm1, %v12994_v12, 0.0 }
0x2967   :  { %7513 = vrot.lane.b32.xlu1 %v10873_v61, %s10621_s9  ;;  %v7346_v61 = vsel %vm797_vm1, %v12996_v40, 0.0 }
0x296d   :  { %7630 = vrot.lane.b32.xlu0 %v13367_v0, %s10621_s9  ;;  %v7633_v0 = vpop.permute.xlu0 %7632 }
0x298b   :  { %7350 = vadd.xlane.f32.xlu1 %v7349_v27  ;;  %v10442_v27 = vld [vmem:[#allocation13 + $0x8] sm:$0xff] }
0x298c   :  { %7347 = vadd.xlane.f32.xlu0 %v7346_v61 }
0x299c   :  { %7624 = vrot.lane.b32.xlu1 %v12058_v1, %s10621_s9 }
0x29a0   :  { %7507 = vrot.lane.b32.xlu1 %v11918_v49, %s10621_s9 }
0x29a2   :  { %7622 = vrot.lane.b32.xlu0 %v12042_v20, %s10621_s9 }
0x29a4   :  { %7628 = vrot.lane.b32.xlu1 %v12068_v42, %s10621_s9 }
0x29a6   :  { %7505 = vrot.lane.b32.xlu0 %v11902_v7, %s10621_s9  ;;  %v10346_v7 = vpop.eup %10345 }
0x29a7   :  { %v7353_v29 = vmul.f32 %v10346_v7, %v12944_v36 }
0x29a8   :  { %7511 = vrot.lane.b32.xlu1 %v11930_v35, %s10621_s9  ;;  %v10348_v35 = vpop.eup %10347 }
0x29aa   :  { %7626 = vrot.lane.b32.xlu0 %v12061_v24, %s10621_s9 }
0x29ae   :  { %7509 = vrot.lane.b32.xlu0 %v11922_v54, %s10621_s9  ;;  %v7355_v54 = vmul.f32 %v10348_v35, %v12952_v56 }
0x29df   :  { %v7345_v49 = vpop.xlane.xlu1 %7344 }
0x29e0   :  { %10349 = vrcp.f32 %v7345_v49  ;;  %v7342_v20 = vpop.xlane.xlu0 %7341 }
0x29e1   :  { %10351 = vrcp.f32 %v7342_v20 }
0x29e2   :  { %10353 = vrcp.f32 %v12982_v28 }
0x29e3   :  { %v7514_v1 = vpop.permute.xlu1 %7513  ;;  %10355 = vrcp.f32 %v12984_v18 }
0x29e4   :  { %9738 = vmatprep.subr.msk.mxu1 %vm570_vm0, %v7514_v1  ;;  %v7631_v36 = vpop.permute.xlu0 %7630 }
0x29e5   :  { %9739 = vmatpush3.xpose.msk.msra.mxu1 %vm570_vm0, %v7514_v1 }
0x29ed   :  { %v10350_v42 = vpop.eup %10349 }
0x29ee   :  { %v10352_v41 = vpop.eup %10351  ;;  %v7363_v24 = vmul.f32 %v10350_v42, %v10338_v34 }
0x29ef   :  { %v7361_v55 = vmul.f32 %v10352_v41, %v10340_v39  ;;  %v10354_v22 = vpop.eup %10353  ;;  %v10443_v41 = vld [vmem:[#allocation13 + $0x28] sm:$0xff] }
0x29f0   :  { %v7369_v57 = vmul.f32 %v7363_v24, %v11000_v21  ;;  %v10356_v58 = vpop.eup %10355  ;;  %v7359_v26 = vmul.f32 %v10354_v22, %v12957_v47 }
0x29f1   :  { %v7368_v52 = vmul.f32 %v7361_v55, %v11000_v21  ;;  %v7357_v23 = vmul.f32 %v10356_v58, %v12960_v59  ;;  %v10448_v58 = vld [vmem:[#allocation13 + $0x10] sm:$0xff] }
0x29f2   :  { %v7373_v5 = vsub.f32 %v7355_v54, %v7369_v57  ;;  %v10444_v57 = vld [vmem:[#allocation13 + $0x20] sm:$0xff] }
0x29f3   :  { %v7372_v17 = vsub.f32 %v7353_v29, %v7368_v52 }
0x29f5   :  { %9726 = vmatprep.mubr.msk.f32.mxu0 %vm797_vm1, %v7372_v17  ;;  %v10445_v17 = vld [vmem:[#allocation13 + $0x38] sm:$0xff] }
0x29f6   :  { %9727 = vmatmul.mubr.msk.f32.vlgmr.msra.gmra.mxu0 %vm797_vm1, %v7373_v5 }
0x29f7   :  { %9747 = vmatpush3.xpose.msk.msra.mxu0 %vm570_vm0, %v12948_v45 }
0x29f8   :  { %9748 = vmatprep.subr.msk.mxu0 %vm570_vm0, %v12980_v46 }
0x29fb   :  { %9749 = vmatpush3.xpose.msk.msra.mxu0 %vm570_vm0, %v12980_v46 }
0x29fc   :  { %9750 = vmatprep.subr.msk.mxu0 %vm570_vm0, %v7633_v0 }
0x29ff   :  { %9751 = vmatpush3.xpose.msk.msra.mxu0 %vm570_vm0, %v7633_v0 }
0x2a00   :  { %9752 = vmatprep.subr.msk.mxu0 %vm570_vm0, %v7631_v36 }
0x2a03   :  { %9753 = vmatpush3.xpose.msk.msra.mxu0 %vm570_vm0, %v7631_v36 }
0x2a14   :  { %v7351_v45 = vpop.xlane.xlu1 %7350 }
0x2a15   :  { %10357 = vrcp.f32 %v7351_v45  ;;  %v7348_v56 = vpop.xlane.xlu0 %7347 }
0x2a16   :  { %10359 = vrcp.f32 %v7348_v56 }
0x2a18   :  { %v7625_v2 = vpop.permute.xlu1 %7624 }
0x2a19   :  { %v7623_v43 = vpop.permute.xlu0 %7622 }
0x2a1c   :  { %v7508_v46 = vpop.permute.xlu1 %7507 }
0x2a1d   :  { %v7506_v44 = vpop.permute.xlu0 %7505 }
0x2a1e   :  { %9740 = vmatprep.mubr.msk.f32.mxu1 %vm570_vm0, %v7506_v44  ;;  %v10447_v44 = vld [vmem:[#allocation13 + $0x30] sm:$0xff] }
0x2a1f   :  { %9741 = vmatmul.mubr.msk.f32.vlgmr.msra.gmra.mxu1 %vm570_vm0, %v7508_v46 }
0x2a20   :  { %v7629_v11 = vpop.permute.xlu1 %7628 }
0x2a21   :  { %v7627_v62 = vpop.permute.xlu0 %7626 }
0x2a22   :  { %v10358_v63 = vpop.eup %10357 }
0x2a23   :  { %v10360_v28 = vpop.eup %10359  ;;  %v7367_v18 = vmul.f32 %v10358_v63, %v12994_v12  ;;  %v10441_v12 = vld [vmem:[#allocation13] sm:$0xff] }
0x2a24   :  { %v7512_v34 = vpop.permute.xlu1 %7511  ;;  %v7365_v39 = vmul.f32 %v10360_v28, %v12996_v40 }
0x2a25   :  { %v7510_v30 = vpop.permute.xlu0 %7509  ;;  %v7371_v3 = vmul.f32 %v7367_v18, %v11000_v21 }
0x2a26   :  { %9743 = vmatprep.mubr.msk.f32.mxu1 %vm570_vm0, %v7510_v30  ;;  %v7370_v33 = vmul.f32 %v7365_v39, %v11000_v21 }
0x2a27   :  { %9744 = vmatmul.mubr.msk.f32.gmra.mxu1 %vm570_vm0, %v7512_v34  ;;  %v7375_v25 = vsub.f32 %v7359_v26, %v7371_v3 }
0x2a28   :  { %v7374_v9 = vsub.f32 %v7357_v23, %v7370_v33 }
0x2a2a   :  { %9729 = vmatprep.mubr.msk.f32.mxu0 %vm797_vm1, %v7374_v9 }
0x2a2b   :  { %9730 = vmatmul.mubr.msk.f32.gmra.mxu0 %vm797_vm1, %v7375_v25 }
0x2a2c   :  { %9754 = vmatprep.mubr.msk.f32.mxu0 %vm570_vm0, %v7623_v43  ;;  %v10446_v43 = vld [vmem:[#allocation13 + $0x18] sm:$0xff] }
0x2a2f   :  { %9755 = vmatmul.mubr.msk.f32.vlgmr.msra.gmra.mxu0 %vm570_vm0, %v7625_v2 }
0x2a30   :  { %9757 = vmatprep.mubr.msk.f32.mxu0 %vm570_vm0, %v7627_v62 }
0x2a33   :  { %9758 = vmatmul.mubr.msk.f32.gmra.mxu0 %vm570_vm0, %v7629_v11 }
0x2ab6   :  { %v13055_v49 = vpop.f32.mrf.mxu0 }
0x2ab8   :  { %v13058_v1 = vpop.f32.mrf.mxu0 }
0x2adf   :  { %v9742_v47 = vpop.f32.mrf.mxu1 }
0x2ae0   :  { %v7740_v61 = vadd.f32 %v10442_v27, %v9742_v47 }
0x2ae1   :  { %v7603_v59 = vpop.f32.mrf.mxu1 }
0x2ae2   :  { %v7739_v40 = vadd.f32 %v10441_v12, %v7603_v59  ;;  %v7750_v20 = vsel %vm797_vm1, %v7740_v61, -inf }
0x2ae4   :  { %v7747_v0 = vsel %vm797_vm1, %v7739_v40, -inf }
0x2ae5   :  { %7748 = vmax.xlane.f32.xlu0 %v7747_v0 }
0x2ae7   :  { %v9745_v55 = vpop.f32.mrf.mxu1 }
0x2ae8   :  { %v7742_v46 = vadd.f32 %v10446_v43, %v9745_v55 }
0x2ae9   :  { %7751 = vmax.xlane.f32.xlu0 %v7750_v20  ;;  %v7613_v56 = vpop.f32.mrf.mxu1 }
0x2aea   :  { %v7741_v62 = vadd.f32 %v10448_v58, %v7613_v56  ;;  %v7756_v28 = vsel %vm797_vm1, %v7742_v46, -inf }
0x2aeb   :  { %v13060_v7 = vpop.f32.mrf.mxu0 }
0x2aec   :  { %v7753_v18 = vsel %vm797_vm1, %v7741_v62, -inf }
0x2aed   :  { %v13062_v35 = vpop.f32.mrf.mxu0 }
0x2aef   :  { %v9756_v42 = vpop.f32.mrf.mxu0 }
0x2af0   :  { %v7744_v24 = vadd.f32 %v10443_v41, %v9756_v42 }
0x2af1   :  { %v7720_v54 = vpop.f32.mrf.mxu0 }
0x2af2   :  { %v7743_v29 = vadd.f32 %v10444_v57, %v7720_v54  ;;  %v7762_v52 = vsel %vm797_vm1, %v7744_v24, -inf }
0x2af3   :  { %7763 = vmax.xlane.f32.xlu1 %v7762_v52  ;;  %v9759_v5 = vpop.f32.mrf.mxu0 }
0x2af4   :  { %v7746_v36 = vadd.f32 %v10445_v17, %v9759_v5  ;;  %v7759_v45 = vsel %vm797_vm1, %v7743_v29, -inf }
0x2af5   :  { %7760 = vmax.xlane.f32.xlu0 %v7759_v45  ;;  %v7730_v2 = vpop.f32.mrf.mxu0 }
0x2af6   :  { %v7745_v22 = vadd.f32 %v10447_v44, %v7730_v2  ;;  %v7768_v11 = vsel %vm797_vm1, %v7746_v36, -inf }
0x2af7   :  { %7769 = vmax.xlane.f32.xlu1 %v7768_v11 }
0x2af8   :  { %v7765_v63 = vsel %vm797_vm1, %v7745_v22, -inf }
0x2af9   :  { %7766 = vmax.xlane.f32.xlu0 %v7765_v63 }
0x2afb   :  { %7757 = vmax.xlane.f32.xlu1 %v7756_v28 }
0x2afd   :  { %7754 = vmax.xlane.f32.xlu0 %v7753_v18  ;;  %v13388_v18 = vld [vmem:[#allocation33_spill] sm:$0xff] }
0x2b6e   :  { %v7749_v34 = vpop.xlane.xlu0 %7748 }
0x2b6f   :  { %v7771_v39 = vsub.f32 %v7739_v40, %v7749_v34  ;;  %v13389_v34 = vld [vmem:[#allocation37_spill] sm:$0xff] }
0x2b71   :  { %v7779_v30 = vmul.f32 1.442695, %v7771_v39  ;;  %v8003_v39 = vld [vmem:[#allocation15 + $0x78] sm:$0xff] }
0x2b72   :  { %v7752_v26 = vpop.xlane.xlu0 %7751  ;;  %9774 = vmatprep.subr.mxu0 %v8003_v39 }
0x2b73   :  { %10361 = vpow2.f32 %v7779_v30  ;;  %v7772_v3 = vsub.f32 %v7740_v61, %v7752_v26  ;;  %9775 = vmatpush3.msra.mxu0 %v8003_v39  ;;  %v8001_v30 = vld [vmem:[#allocation15 + $0x68] sm:$0xff]  ;;  %v8000_v26 = vld [vmem:[#allocation15 + $0x60] sm:$0xff] }
0x2b75   :  { %v7781_v23 = vmul.f32 1.442695, %v7772_v3  ;;  %v13394_v3 = vld [vmem:[#allocation34_spill] sm:$0xff] }
0x2b77   :  { %10363 = vpow2.f32 %v7781_v23  ;;  %v7998_v23 = vld [vmem:[#allocation15 + $0x50] sm:$0xff] }
0x2b7c   :  { %v7764_v33 = vpop.xlane.xlu1 %7763 }
0x2b7d   :  { %v7776_v12 = vsub.f32 %v7744_v24, %v7764_v33  ;;  %v13395_v33 = vld [vmem:[#allocation39_spill] sm:$0xff] }
0x2b7e   :  { %v7761_v25 = vpop.xlane.xlu0 %7760 }
0x2b7f   :  { %v7775_v20 = vsub.f32 %v7743_v29, %v7761_v25  ;;  %v7789_v41 = vmul.f32 1.442695, %v7776_v12  ;;  %v7995_v25 = vld [vmem:[#allocation15 + $0x38] sm:$0xff]  ;;  %v13397_v12 = vld [vmem:[#allocation43_spill] sm:$0xff] }
0x2b80   :  { %v13070_v9 = vpop.eup %10361  ;;  %v7770_v47 = vpop.xlane.xlu1 %7769 }
0x2b81   :  { %v7795_v59 = vsel %vm797_vm1, %v13070_v9, 0.0  ;;  %v7778_v54 = vsub.f32 %v7746_v36, %v7770_v47  ;;  %v7787_v5 = vmul.f32 1.442695, %v7775_v20  ;;  %v13396_v47 = vld [vmem:[#allocation38_spill] sm:$0xff]  ;;  %v7990_v20 = vld [vmem:[#allocation15 + $0x10] sm:$0xff] }
0x2b82   :  { %7796 = vadd.xlane.f32.xlu0 %v7795_v59  ;;  %v7767_v27 = vpop.xlane.xlu0 %7766  ;;  %v7994_v59 = vld [vmem:[#allocation15 + $0x30] sm:$0xff] }
0x2b83   :  { %v7777_v17 = vsub.f32 %v7745_v22, %v7767_v27  ;;  %v7793_v45 = vmul.f32 1.442695, %v7778_v54  ;;  %v7991_v27 = vld [vmem:[#allocation15 + $0x18] sm:$0xff] }
0x2b84   :  { %v13074_v0 = vpop.eup %10363  ;;  %v7758_v40 = vpop.xlane.xlu1 %7757  ;;  %v13403_v54 = vld [vmem:[#allocation29_spill] sm:$0xff] }
0x2b85   :  { %v7774_v42 = vsub.f32 %v7742_v46, %v7758_v40  ;;  %v7798_v61 = vsel %vm797_vm1, %v13074_v0, 0.0  ;;  %v7791_v56 = vmul.f32 1.442695, %v7777_v17  ;;  %v13398_v40 = vld [vmem:[#allocation42_spill] sm:$0xff]  ;;  %v13409_v17 = vld [vmem:[#allocation49_spill] sm:$0xff] }
0x2b86   :  { %7799 = vadd.xlane.f32.xlu1 %v7798_v61  ;;  %v7755_v55 = vpop.xlane.xlu0 %7754  ;;  %v13400_v61 = vld [vmem:[#allocation44_spill] sm:$0xff] }
0x2b87   :  { %v7785_v57 = vmul.f32 1.442695, %v7774_v42  ;;  %v7773_v52 = vsub.f32 %v7741_v62, %v7755_v55  ;;  %v13399_v42 = vld [vmem:[#allocation45_spill] sm:$0xff]  ;;  %v13402_v55 = vld [vmem:[#allocation46_spill] sm:$0xff] }
0x2b89   :  { %10365 = vpow2.f32 %v7785_v57  ;;  %v7783_v24 = vmul.f32 1.442695, %v7773_v52  ;;  %v13405_v57 = vld [vmem:[#allocation23_spill] sm:$0xff]  ;;  %v13406_v52 = vld [vmem:[#allocation32_spill] sm:$0xff] }
0x2b8a   :  { %10367 = vpow2.f32 %v7789_v41  ;;  %v13401_v41 = vld [vmem:[#allocation47_spill] sm:$0xff] }
0x2b8b   :  { %10369 = vpow2.f32 %v7783_v24  ;;  %v13410_v24 = vld [vmem:[#allocation30_spill] sm:$0xff] }
0x2b8c   :  { %10371 = vpow2.f32 %v7787_v5  ;;  %v13407_v5 = vld [vmem:[#allocation31_spill] sm:$0xff] }
0x2b8d   :  { %10373 = vpow2.f32 %v7793_v45  ;;  %v13411_v45 = vld [vmem:[#allocation48_spill] sm:$0xff] }
0x2b8e   :  { %10375 = vpow2.f32 %v7791_v56  ;;  %v13412_v56 = vld [vmem:[#allocation53_spill] sm:$0xff] }
0x2b96   :  { %v13078_v29 = vpop.eup %10365 }
0x2b97   :  { %v13080_v2 = vpop.eup %10367  ;;  %v7804_v36 = vsel %vm797_vm1, %v13078_v29, 0.0 }
0x2b98   :  { %v13084_v43 = vpop.eup %10369  ;;  %7805 = vadd.xlane.f32.xlu1 %v7804_v36  ;;  %v7810_v22 = vsel %vm797_vm1, %v13080_v2, 0.0  ;;  %v13413_v36 = vld [vmem:[#allocation27_spill] sm:$0xff] }
0x2b99   :  { %v7801_v46 = vsel %vm797_vm1, %v13084_v43, 0.0  ;;  %v13088_v44 = vpop.eup %10371 }
0x2b9a   :  { %7802 = vadd.xlane.f32.xlu0 %v7801_v46  ;;  %v13092_v11 = vpop.eup %10373  ;;  %v7807_v58 = vsel %vm797_vm1, %v13088_v44, 0.0  ;;  %v13414_v46 = vld [vmem:[#allocation52_spill] sm:$0xff] }
0x2b9b   :  { %v13096_v62 = vpop.eup %10375  ;;  %v7816_v63 = vsel %vm797_vm1, %v13092_v11, 0.0 }
0x2b9c   :  { %7811 = vadd.xlane.f32.xlu1 %v7810_v22  ;;  %v7813_v28 = vsel %vm797_vm1, %v13096_v62, 0.0  ;;  %v13415_v22 = vld [vmem:[#allocation22_spill] sm:$0xff] }
0x2b9e   :  { %7808 = vadd.xlane.f32.xlu0 %v7807_v58  ;;  %v13416_v58 = vld [vmem:[#allocation25_spill] sm:$0xff] }
0x2ba0   :  { %7817 = vadd.xlane.f32.xlu1 %v7816_v63  ;;  %v13417_v63 = vld [vmem:[#allocation24_spill] sm:$0xff] }
0x2ba2   :  { %7814 = vadd.xlane.f32.xlu0 %v7813_v28  ;;  %v13418_v28 = vld [vmem:[#allocation51_spill] sm:$0xff] }
0x2bb1   :  { %7847 = vrot.lane.b32.xlu1 %v13358_v15, %s10621_s9  ;;  %v13390_v15 = vld [vmem:[#allocation36_spill] sm:$0xff] }
0x2bb5   :  { %7845 = vrot.lane.b32.xlu1 %v13359_v51, %s10621_s9  ;;  %v13391_v51 = vld [vmem:[#allocation41_spill] sm:$0xff] }
0x2bb8   :  { %7849 = vrot.lane.b32.xlu0 %v10893_v8, %s10621_s9  ;;  %v13392_v8 = vld [vmem:[#allocation40_spill] sm:$0xff] }
0x2bb9   :  { %7843 = vrot.lane.b32.xlu1 %v13360_v53, %s10621_s9  ;;  %v13393_v53 = vld [vmem:[#allocation35_spill] sm:$0xff] }
0x2bbc   :  { %1451 = vrot.lane.b32.xlu0 %v11206_v14, %s10621_s9  ;;  %v8002_v14 = vld [vmem:[#allocation15 + $0x70] sm:$0xff] }
0x2bbd   :  { %1453 = vrot.lane.b32.xlu1 %v13388_v18, %s10621_s9  ;;  %9776 = vmatprep.subr.mxu0 %v8002_v14  ;;  %v13420_v18 = vld [vmem:[#allocation50_spill] sm:$0xff] }
0x2bbe   :  { %9777 = vmatpush3.msra.mxu0 %v8002_v14 }
0x2bbf   :  { %9778 = vmatprep.subr.mxu0 %v8001_v30 }
0x2bc0   :  { %1919 = vrot.lane.b32.xlu0 %v13389_v34, %s10636_s23  ;;  %9779 = vmatpush3.msra.mxu0 %v8001_v30 }
0x2bc1   :  { %1921 = vrot.lane.b32.xlu1 %v13390_v15, %s10636_s23  ;;  %9780 = vmatprep.subr.mxu0 %v8000_v26 }
0x2bc2   :  { %9781 = vmatpush3.msra.mxu0 %v8000_v26 }
0x2bc4   :  { %2387 = vrot.lane.b32.xlu0 %v13391_v51, %s10635_s22 }
0x2bc5   :  { %2389 = vrot.lane.b32.xlu1 %v13392_v8, %s10635_s22 }
0x2bc8   :  { %2855 = vrot.lane.b32.xlu0 %v11626_v13, %s10634_s21  ;;  %v7999_v13 = vld [vmem:[#allocation15 + $0x58] sm:$0xff] }
0x2bc9   :  { %1455 = vrot.lane.b32.xlu1 %v13393_v53, %s10621_s9  ;;  %9782 = vmatprep.subr.mxu0 %v7999_v13 }
0x2bca   :  { %9783 = vmatpush3.msra.mxu0 %v7999_v13 }
0x2bcb   :  { %9784 = vmatprep.subr.mxu0 %v7998_v23 }
0x2bcc   :  { %2857 = vrot.lane.b32.xlu0 %v11624_v6, %s10634_s21  ;;  %9785 = vmatpush3.msra.mxu0 %v7998_v23  ;;  %v7997_v6 = vld [vmem:[#allocation15 + $0x48] sm:$0xff] }
0x2bcd   :  { %3323 = vrot.lane.b32.xlu1 %v11772_v19, %s10633_s2  ;;  %9786 = vmatprep.subr.mxu0 %v7997_v6  ;;  %v7996_v19 = vld [vmem:[#allocation15 + $0x40] sm:$0xff] }
0x2bce   :  { %9787 = vmatpush3.msra.mxu0 %v7997_v6 }
0x2bcf   :  { %9788 = vmatprep.subr.mxu0 %v7996_v19 }
0x2bd0   :  { %1457 = vrot.lane.b32.xlu0 %v13394_v3, %s10621_s9  ;;  %9789 = vmatpush3.msra.mxu0 %v7996_v19 }
0x2bd1   :  { %1923 = vrot.lane.b32.xlu1 %v13395_v33, %s10636_s23  ;;  %9790 = vmatprep.subr.mxu0 %v7995_v25 }
0x2bd2   :  { %9791 = vmatpush3.msra.mxu0 %v7995_v25 }
0x2bd3   :  { %9792 = vmatprep.subr.mxu0 %v7994_v59 }
0x2bd4   :  { %3325 = vrot.lane.b32.xlu0 %v11770_v10, %s10633_s2  ;;  %9793 = vmatpush3.msra.mxu0 %v7994_v59  ;;  %v7993_v10 = vld [vmem:[#allocation15 + $0x28] sm:$0xff] }
0x2bd5   :  { %3791 = vrot.lane.b32.xlu1 %v11944_v50, %s10632_s0  ;;  %9794 = vmatprep.subr.mxu0 %v7993_v10  ;;  %v7992_v50 = vld [vmem:[#allocation15 + $0x20] sm:$0xff] }
0x2bd6   :  { %9795 = vmatpush3.msra.mxu0 %v7993_v10 }
0x2bd7   :  { %9796 = vmatprep.subr.mxu0 %v7992_v50 }
0x2bd8   :  { %1925 = vrot.lane.b32.xlu0 %v13396_v47, %s10636_s23  ;;  %9797 = vmatpush3.msra.mxu0 %v7992_v50 }
0x2bd9   :  { %2391 = vrot.lane.b32.xlu1 %v13397_v12, %s10635_s22  ;;  %9798 = vmatprep.subr.mxu0 %v7991_v27 }
0x2bda   :  { %9799 = vmatpush3.msra.mxu0 %v7991_v27 }
0x2bdb   :  { %9800 = vmatprep.subr.mxu0 %v7990_v20 }
0x2bdc   :  { %3793 = vrot.lane.b32.xlu0 %v11940_v48, %s10632_s0  ;;  %9801 = vmatpush3.msra.mxu0 %v7990_v20  ;;  %v7989_v48 = vld [vmem:[#allocation15 + $0x8] sm:$0xff] }
0x2bdd   :  { %4259 = vrot.lane.b32.xlu1 %v12094_v37, %s10631_s5  ;;  %9802 = vmatprep.subr.mxu0 %v7989_v48  ;;  %v7988_v37 = vld [vmem:[#allocation15] sm:$0xff] }
0x2bde   :  { %9803 = vmatpush3.msra.mxu0 %v7989_v48 }
0x2bdf   :  { %9804 = vmatprep.subr.mxu0 %v7988_v37 }
0x2be0   :  { %2393 = vrot.lane.b32.xlu0 %v13398_v40, %s10635_s22  ;;  %9805 = vmatpush3.msra.mxu0 %v7988_v37 }
0x2be1   :  { %2859 = vrot.lane.b32.xlu1 %v13399_v42, %s10634_s21 }
0x2be4   :  { %4261 = vrot.lane.b32.xlu0 %v12092_v38, %s10631_s5  ;;  %v13404_v38 = vld [vmem:[#allocation28_spill] sm:$0xff] }
0x2be5   :  { %2861 = vrot.lane.b32.xlu1 %v13400_v61, %s10634_s21 }
0x2be8   :  { %3327 = vrot.lane.b32.xlu0 %v13401_v41, %s10633_s2 }
0x2be9   :  { %5154 = vrot.lane.b32.xlu1 %v12366_v32, %s10621_s9  ;;  %v13408_v32 = vld [vmem:[#allocation26_spill] sm:$0xff] }
0x2bec   :  { %3329 = vrot.lane.b32.xlu0 %v13402_v55, %s10633_s2 }
0x2bed   :  { %3795 = vrot.lane.b32.xlu1 %v13403_v54, %s10632_s0 }
0x2bf0   :  { %5156 = vrot.lane.b32.xlu0 %v13404_v38, %s10621_s9 }
0x2bf1   :  { %5621 = vrot.lane.b32.xlu1 %v13405_v57, %s10636_s23 }
0x2bf4   :  { %3797 = vrot.lane.b32.xlu0 %v13406_v52, %s10632_s0 }
0x2bf5   :  { %4263 = vrot.lane.b32.xlu1 %v13407_v5, %s10631_s5 }
0x2bf8   :  { %5623 = vrot.lane.b32.xlu0 %v13408_v32, %s10636_s23 }
0x2bf9   :  { %6088 = vrot.lane.b32.xlu1 %v13409_v17, %s10635_s22 }
0x2bfc   :  { %4265 = vrot.lane.b32.xlu0 %v13410_v24, %s10631_s5 }
0x2bfd   :  { %6090 = vrot.lane.b32.xlu1 %v13411_v45, %s10635_s22 }
0x2c00   :  { %6555 = vrot.lane.b32.xlu0 %v13412_v56, %s10634_s21 }
0x2c01   :  { %5158 = vrot.lane.b32.xlu1 %v13413_v36, %s10621_s9 }
0x2c04   :  { %6557 = vrot.lane.b32.xlu0 %v13414_v46, %s10634_s21 }
0x2c05   :  { %7022 = vrot.lane.b32.xlu1 %v12938_v60, %s10633_s2  ;;  %v13419_v60 = vld [vmem:[#allocation55_spill] sm:$0xff] }
0x2c08   :  { %5160 = vrot.lane.b32.xlu0 %v13415_v22, %s10621_s9  ;;  %s10637_s9 = smov [#allocation16]  }
0x2c09   :  { %5625 = vrot.lane.b32.xlu1 %v13416_v58, %s10636_s23  ;;  %s8267_s24 = sshll.u32 %s10637_s9, 4  ;;  %s8268_s24 = int_to_ptr.vmem [resolvable:$true] %s8267_s24 }
0x2c0a   :  { %s10589_s25 = scalar_lea.vmem %s8268_s24, 1024  ;;  %p10594_p8 = scmp.lt.s32.totalorder %s8268_s24, %s8268_s24 }
0x2c0b   :  { %v7797_v34 = vpop.xlane.xlu0 %7796  ;;  %p10590_p7 = scmp.ne.s32.totalorder %s8268_s24, %s10589_s25  ;;  %p10595_p9 = scmp.lt.s32.totalorder %s10589_s25, %s10589_s25 }
0x2c0c   :  { %7024 = vrot.lane.b32.xlu0 %v12936_v4, %s10633_s2  ;;  %v13421_v4 = vld [vmem:[#allocation54_spill] sm:$0xff] }
0x2c0d   :  { %7489 = vrot.lane.b32.xlu1 %v13058_v1, %s10632_s0  ;;  %p10596_p10 = por %p10595_p9, %p10594_p8 }
0x2c0f   :  { %v7800_v1 = vpop.xlane.xlu1 %7799  ;;  %p10597_p11 = pnand %p10596_p10, %p10590_p7 }
0x2c10   :  { %5627 = vrot.lane.b32.xlu0 %v13417_v63, %s10636_s23 }
0x2c11   :  { %6092 = vrot.lane.b32.xlu1 %v13418_v28, %s10635_s22 }
0x2c14   :  { %7491 = vrot.lane.b32.xlu0 %v13055_v49, %s10632_s0 }
0x2c15   :  { %6559 = vrot.lane.b32.xlu1 %v13419_v60, %s10634_s21 }
0x2c18   :  { %6094 = vrot.lane.b32.xlu0 %v13420_v18, %s10635_s22 }
0x2c19   :  { %6561 = vrot.lane.b32.xlu1 %v13421_v4, %s10634_s21 }
0x2c1c   :  { %7026 = vrot.lane.b32.xlu0 %v12942_v16, %s10633_s2 }
0x2c1d   :  { %7028 = vrot.lane.b32.xlu1 %v12940_v31, %s10633_s2 }
0x2c20   :  { %7493 = vrot.lane.b32.xlu0 %v13062_v35, %s10632_s0 }
0x2c21   :  { %v7806_v49 = vpop.xlane.xlu1 %7805 }
0x2c23   :  { %v7803_v15 = vpop.xlane.xlu0 %7802 }
0x2c25   :  { %v7812_v51 = vpop.xlane.xlu1 %7811 }
0x2c26   :  { %10377 = vrcp.f32 %v7812_v51 }
0x2c27   :  { %10379 = vrcp.f32 %v7797_v34  ;;  %v7809_v8 = vpop.xlane.xlu0 %7808 }
0x2c28   :  { %10381 = vrcp.f32 %v7809_v8 }
0x2c29   :  { %10383 = vrcp.f32 %v7800_v1  ;;  %v7818_v39 = vpop.xlane.xlu1 %7817 }
0x2c2a   :  { %10385 = vrcp.f32 %v7818_v39 }
0x2c2b   :  { %10387 = vrcp.f32 %v7803_v15  ;;  %v7815_v16 = vpop.xlane.xlu0 %7814 }
0x2c2c   :  { %10389 = vrcp.f32 %v7815_v16 }
0x2c2d   :  { %10391 = vrcp.f32 %v7806_v49  ;;  %v7848_v14 = vpop.permute.xlu1 %7847 }
0x2c2f   :  { %v7850_v31 = vpop.permute.xlu0 %7849 }
0x2c30   :  { %9760 = vmatprep.subr.mxu1 %v7850_v31 }
0x2c31   :  { %v7846_v53 = vpop.permute.xlu1 %7845  ;;  %9761 = vmatpush3.msra.mxu1 %v7850_v31 }
0x2c32   :  { %9762 = vmatprep.subr.mxu1 %v7848_v14 }
0x2c33   :  { %v10378_v35 = vpop.eup %10377  ;;  %9763 = vmatpush3.msra.mxu1 %v7848_v14  ;;  %v1452_v30 = vpop.permute.xlu0 %1451 }
0x2c34   :  { %v10380_v26 = vpop.eup %10379  ;;  %v7830_v13 = vmul.f32 %v10378_v35, %v13080_v2  ;;  %1464 = vst.msk [vmem:[#allocation2] sm:$0xff] %vm1463_vm2, %v1452_v30  ;;  %9764 = vmatprep.subr.mxu1 %v7846_v53 }
0x2c35   :  { %v10382_v3 = vpop.eup %10381  ;;  %v7844_v23 = vpop.permute.xlu1 %7843  ;;  %9765 = vmatpush3.msra.mxu1 %v7846_v53  ;;  %v7820_v2 = vmul.f32 %v10380_v26, %v13070_v9 }
0x2c36   :  { %v10384_v33 = vpop.eup %10383  ;;  %9766 = vmatprep.subr.mxu1 %v7844_v23  ;;  %v7828_v6 = vmul.f32 %v10382_v3, %v13088_v44  ;;  %v7836_v25 = vmul.f32 %v7830_v13, %v11000_v21 }
0x2c37   :  { %v10386_v19 = vpop.eup %10385  ;;  %9767 = vmatpush3.msra.mxu1 %v7844_v23  ;;  %v1920_v47 = vpop.permute.xlu0 %1919  ;;  %v7822_v27 = vmul.f32 %v10384_v33, %v13074_v0 }
0x2c38   :  { %v10388_v59 = vpop.eup %10387  ;;  %v7834_v12 = vmul.f32 %v10386_v19, %v13092_v11  ;;  %1932 = vst.msk [vmem:[#allocation2] sm:$0xff] %vm1931_vm3, %v1920_v47  ;;  %v7835_v10 = vmul.f32 %v7828_v6, %v11000_v21 }
0x2c39   :  { %v10390_v50 = vpop.eup %10389  ;;  %v1454_v40 = vpop.permute.xlu1 %1453  ;;  %v7840_v48 = vsub.f32 %v7822_v27, %v7836_v25  ;;  %v7824_v9 = vmul.f32 %v10388_v59, %v13084_v43 }
0x2c3a   :  { %v10392_v44 = vpop.eup %10391  ;;  %1465 = vst.msk [vmem:[#allocation2 + $0x8] sm:$0xff] %vm1463_vm2, %v1454_v40  ;;  %v7839_v20 = vsub.f32 %v7820_v2, %v7835_v10  ;;  %v7832_v42 = vmul.f32 %v10390_v50, %v13096_v62  ;;  %v7838_v11 = vmul.f32 %v7834_v12, %v11000_v21  ;;  %v8148_v12 = vld [vmem:[#allocation12 + $0x78] sm:$0xff]  ;;  %v8147_v2 = vld [vmem:[#allocation12 + $0x70] sm:$0xff]  ;;  %v8146_v50 = vld [vmem:[#allocation12 + $0x68] sm:$0xff] }
0x2c3b   :  { %v2388_v37 = vpop.permute.xlu0 %2387  ;;  %v7826_v41 = vmul.f32 %v10392_v44, %v13078_v29  ;;  %9818 = vmatprep.subr.mxu1 %v8148_v12  ;;  %v8145_v40 = vld [vmem:[#allocation12 + $0x60] sm:$0xff] }
0x2c3c   :  { %2400 = vst.msk [vmem:[#allocation2] sm:$0xff] %vm2399_vm4, %v2388_v37  ;;  %9768 = vmatprep.mubr.msk.f32.mxu1 %vm797_vm1, %v7839_v20  ;;  %v7837_v0 = vmul.f32 %v7832_v42, %v11000_v21 }
0x2c3d   :  { %v1922_v61 = vpop.permute.xlu1 %1921  ;;  %9769 = vmatmul.mubr.msk.f32.vlgmr.msra.gmra.mxu1 %vm797_vm1, %v7840_v48  ;;  %v7842_v54 = vsub.f32 %v7826_v41, %v7838_v11  ;;  %v8142_v41 = vld [vmem:[#allocation12 + $0x48] sm:$0xff] }
0x2c3e   :  { %1933 = vst.msk [vmem:[#allocation2 + $0x8] sm:$0xff] %vm1931_vm3, %v1922_v61  ;;  %v7841_v62 = vsub.f32 %v7824_v9, %v7837_v0  ;;  %9819 = vmatpush3.msra.mxu1 %v8148_v12  ;;  %v8144_v0 = vld [vmem:[#allocation12 + $0x58] sm:$0xff]  ;;  %v8143_v61 = vld [vmem:[#allocation12 + $0x50] sm:$0xff] }
0x2c3f   :  { %v2856_v55 = vpop.permute.xlu0 %2855  ;;  %9820 = vmatprep.subr.mxu1 %v8147_v2 }
0x2c40   :  { %2868 = vst.msk [vmem:[#allocation2] sm:$0xff] %vm2867_vm5, %v2856_v55  ;;  %9771 = vmatprep.mubr.msk.f32.mxu1 %vm797_vm1, %v7841_v62  ;;  %9821 = vmatpush3.msra.mxu1 %v8147_v2  ;;  %v8141_v62 = vld [vmem:[#allocation12 + $0x40] sm:$0xff]  ;;  %v8140_v55 = vld [vmem:[#allocation12 + $0x38] sm:$0xff] }
0x2c41   :  { %v2390_v38 = vpop.permute.xlu1 %2389  ;;  %9772 = vmatmul.mubr.msk.f32.gmra.mxu1 %vm797_vm1, %v7842_v54  ;;  %9822 = vmatprep.subr.mxu1 %v8146_v50  ;;  %v8139_v54 = vld [vmem:[#allocation12 + $0x30] sm:$0xff] }
0x2c42   :  { %2401 = vst.msk [vmem:[#allocation2 + $0x8] sm:$0xff] %vm2399_vm4, %v2390_v38  ;;  %9823 = vmatpush3.msra.mxu1 %v8146_v50  ;;  %v8138_v38 = vld [vmem:[#allocation12 + $0x28] sm:$0xff] }
0x2c43   :  { %v2858_v21 = vpop.permute.xlu0 %2857  ;;  %9824 = vmatprep.subr.mxu1 %v8145_v40 }
0x2c44   :  { %2869 = vst.msk [vmem:[#allocation2 + $0x8] sm:$0xff] %vm2867_vm5, %v2858_v21  ;;  %9825 = vmatpush3.msra.mxu1 %v8145_v40  ;;  %v8137_v21 = vld [vmem:[#allocation12 + $0x20] sm:$0xff] }
0x2c45   :  { %v1456_v43 = vpop.permute.xlu1 %1455  ;;  %9826 = vmatprep.subr.mxu1 %v8144_v0 }
0x2c46   :  { %1466 = vst.msk [vmem:[#allocation2 + $0x10] sm:$0xff] %vm1463_vm2, %v1456_v43  ;;  %9827 = vmatpush3.msra.mxu1 %v8144_v0  ;;  %v8136_v43 = vld [vmem:[#allocation12 + $0x18] sm:$0xff] }
0x2c47   :  { %v1458_v29 = vpop.permute.xlu0 %1457  ;;  %9828 = vmatprep.subr.mxu1 %v8143_v61 }
0x2c48   :  { %1467 = vst.msk [vmem:[#allocation2 + $0x18] sm:$0xff] %vm1463_vm2, %v1458_v29  ;;  %9829 = vmatpush3.msra.mxu1 %v8143_v61  ;;  %v8135_v29 = vld [vmem:[#allocation12 + $0x10] sm:$0xff] }
0x2c49   :  { %v3324_v57 = vpop.permute.xlu1 %3323  ;;  %9830 = vmatprep.subr.mxu1 %v8142_v41 }
0x2c4a   :  { %3336 = vst.msk [vmem:[#allocation2] sm:$0xff] %vm3335_vm6, %v3324_v57  ;;  %9831 = vmatpush3.msra.mxu1 %v8142_v41  ;;  %v8134_v57 = vld [vmem:[#allocation12 + $0x8] sm:$0xff] }
0x2c4b   :  { %v3326_v52 = vpop.permute.xlu0 %3325  ;;  %9832 = vmatprep.subr.mxu1 %v8141_v62 }
0x2c4c   :  { %3337 = vst.msk [vmem:[#allocation2 + $0x8] sm:$0xff] %vm3335_vm6, %v3326_v52  ;;  %9833 = vmatpush3.msra.mxu1 %v8141_v62  ;;  %v8133_v52 = vld [vmem:[#allocation12] sm:$0xff] }
0x2c4d   :  { %v1924_v5 = vpop.permute.xlu1 %1923  ;;  %9834 = vmatprep.subr.mxu1 %v8140_v55 }
0x2c4e   :  { %1934 = vst.msk [vmem:[#allocation2 + $0x10] sm:$0xff] %vm1931_vm3, %v1924_v5  ;;  %9835 = vmatpush3.msra.mxu1 %v8140_v55 }
0x2c4f   :  { %v1926_v32 = vpop.permute.xlu0 %1925  ;;  %9836 = vmatprep.subr.mxu1 %v8139_v54 }
0x2c50   :  { %1935 = vst.msk [vmem:[#allocation2 + $0x18] sm:$0xff] %vm1931_vm3, %v1926_v32  ;;  %9837 = vmatpush3.msra.mxu1 %v8139_v54 }
0x2c51   :  { %v3792_v17 = vpop.permute.xlu1 %3791  ;;  %9838 = vmatprep.subr.mxu1 %v8138_v38 }
0x2c52   :  { %3804 = vst.msk [vmem:[#allocation2] sm:$0xff] %vm3803_vm7, %v3792_v17  ;;  %9839 = vmatpush3.msra.mxu1 %v8138_v38 }
0x2c53   :  { %v3794_v24 = vpop.permute.xlu0 %3793  ;;  %9840 = vmatprep.subr.mxu1 %v8137_v21 }
0x2c54   :  { %3805 = vst.msk [vmem:[#allocation2 + $0x8] sm:$0xff] %vm3803_vm7, %v3794_v24  ;;  %9841 = vmatpush3.msra.mxu1 %v8137_v21 }
0x2c55   :  { %v2392_v45 = vpop.permute.xlu1 %2391  ;;  %9842 = vmatprep.subr.mxu1 %v8136_v43 }
0x2c56   :  { %2402 = vst.msk [vmem:[#allocation2 + $0x10] sm:$0xff] %vm2399_vm4, %v2392_v45  ;;  %9843 = vmatpush3.msra.mxu1 %v8136_v43 }
0x2c57   :  { %v2394_v56 = vpop.permute.xlu0 %2393  ;;  %9844 = vmatprep.subr.mxu1 %v8135_v29 }
0x2c58   :  { %2403 = vst.msk [vmem:[#allocation2 + $0x18] sm:$0xff] %vm2399_vm4, %v2394_v56  ;;  %9845 = vmatpush3.msra.mxu1 %v8135_v29 }
0x2c59   :  { %v4260_v36 = vpop.permute.xlu1 %4259  ;;  %9846 = vmatprep.subr.mxu1 %v8134_v57 }
0x2c5a   :  { %4272 = vst.msk [vmem:[#allocation2] sm:$0xff] %vm4271_vm8, %v4260_v36  ;;  %9847 = vmatpush3.msra.mxu1 %v8134_v57 }
0x2c5b   :  { %v4262_v46 = vpop.permute.xlu0 %4261  ;;  %9848 = vmatprep.subr.mxu1 %v8133_v52 }
0x2c5c   :  { %4273 = vst.msk [vmem:[#allocation2 + $0x8] sm:$0xff] %vm4271_vm8, %v4262_v46  ;;  %9849 = vmatpush3.msra.mxu1 %v8133_v52 }
0x2c5d   :  { %v2860_v22 = vpop.permute.xlu1 %2859 }
0x2c5e   :  { %2870 = vst.msk [vmem:[#allocation2 + $0x10] sm:$0xff] %vm2867_vm5, %v2860_v22 }
0x2c5f   :  { %v3328_v58 = vpop.permute.xlu0 %3327 }
0x2c60   :  { %3338 = vst.msk [vmem:[#allocation2 + $0x10] sm:$0xff] %vm3335_vm6, %v3328_v58 }
0x2c61   :  { %v2862_v63 = vpop.permute.xlu1 %2861  ;;  %v13250_v28 = vld [vmem:[#allocation2] sm:$0xff] }
0x2c62   :  { %2871 = vst.msk [vmem:[#allocation2 + $0x18] sm:$0xff] %vm2867_vm5, %v2862_v63  ;;  %v7980_v60 = vmul.f32 %v13250_v28, %v13250_v28 }
0x2c63   :  { %v3330_v18 = vpop.permute.xlu0 %3329  ;;  %v13255_v4 = vld [vmem:[#allocation2 + $0x8] sm:$0xff] }
0x2c64   :  { %3339 = vst.msk [vmem:[#allocation2 + $0x18] sm:$0xff] %vm3335_vm6, %v3330_v18  ;;  %9806 = vmatprep.mubr.f32.mxu0 %v7980_v60  ;;  %v7981_v1 = vmul.f32 %v13255_v4, %v13255_v4 }
0x2c65   :  { %v5155_v34 = vpop.permute.xlu1 %5154 }
0x2c66   :  { %5166 = vst.msk [vmem:[#allocation2 + $0x20] sm:$0xff] %vm1463_vm2, %v5155_v34  ;;  %9807 = vmatmul.mubr.f32.vlgmr.msra.gmra.mxu0 %v7981_v1 }
0x2c67   :  { %v5157_v49 = vpop.permute.xlu0 %5156 }
0x2c68   :  { %5167 = vst.msk [vmem:[#allocation2 + $0x28] sm:$0xff] %vm1463_vm2, %v5157_v49 }
0x2c69   :  { %v3796_v15 = vpop.permute.xlu1 %3795 }
0x2c6a   :  { %3806 = vst.msk [vmem:[#allocation2 + $0x10] sm:$0xff] %vm3803_vm7, %v3796_v15 }
0x2c6b   :  { %v3798_v51 = vpop.permute.xlu0 %3797 }
0x2c6c   :  { %3807 = vst.msk [vmem:[#allocation2 + $0x18] sm:$0xff] %vm3803_vm7, %v3798_v51 }
0x2c6d   :  { %v5622_v8 = vpop.permute.xlu1 %5621 }
0x2c6e   :  { %5633 = vst.msk [vmem:[#allocation2 + $0x20] sm:$0xff] %vm1931_vm3, %v5622_v8 }
0x2c6f   :  { %v5624_v39 = vpop.permute.xlu0 %5623 }
0x2c70   :  { %5634 = vst.msk [vmem:[#allocation2 + $0x28] sm:$0xff] %vm1931_vm3, %v5624_v39 }
0x2c71   :  { %v4264_v16 = vpop.permute.xlu1 %4263 }
0x2c72   :  { %4274 = vst.msk [vmem:[#allocation2 + $0x10] sm:$0xff] %vm4271_vm8, %v4264_v16 }
0x2c73   :  { %v4266_v14 = vpop.permute.xlu0 %4265 }
0x2c74   :  { %4275 = vst.msk [vmem:[#allocation2 + $0x18] sm:$0xff] %vm4271_vm8, %v4266_v14 }
0x2c75   :  { %v6089_v31 = vpop.permute.xlu1 %6088 }
0x2c76   :  { %6100 = vst.msk [vmem:[#allocation2 + $0x20] sm:$0xff] %vm2399_vm4, %v6089_v31 }
0x2c77   :  { %v6556_v53 = vpop.permute.xlu0 %6555 }
0x2c78   :  { %6567 = vst.msk [vmem:[#allocation2 + $0x20] sm:$0xff] %vm2867_vm5, %v6556_v53 }
0x2c79   :  { %v6091_v35 = vpop.permute.xlu1 %6090  ;;  %v13270_v30 = vld [vmem:[#allocation2 + $0x10] sm:$0xff] }
0x2c7a   :  { %6101 = vst.msk [vmem:[#allocation2 + $0x28] sm:$0xff] %vm2399_vm4, %v6091_v35  ;;  %v7982_v26 = vmul.f32 %v13270_v30, %v13270_v30 }
0x2c7b   :  { %v6558_v13 = vpop.permute.xlu0 %6557  ;;  %v13275_v3 = vld [vmem:[#allocation2 + $0x18] sm:$0xff] }
0x2c7c   :  { %6568 = vst.msk [vmem:[#allocation2 + $0x28] sm:$0xff] %vm2867_vm5, %v6558_v13  ;;  %9809 = vmatprep.mubr.f32.mxu0 %v7982_v26  ;;  %v7983_v23 = vmul.f32 %v13275_v3, %v13275_v3 }
0x2c7d   :  { %v5159_v33 = vpop.permute.xlu1 %5158 }
0x2c7e   :  { %5168 = vst.msk [vmem:[#allocation2 + $0x30] sm:$0xff] %vm1463_vm2, %v5159_v33  ;;  %9810 = vmatmul.mubr.f32.gmra.mxu0 %v7983_v23 }
0x2c7f   :  { %v5161_v6 = vpop.permute.xlu0 %5160 }
0x2c80   :  { %5169 = vst.msk [vmem:[#allocation2 + $0x38] sm:$0xff] %vm1463_vm2, %v5161_v6 }
0x2c81   :  { %v7023_v19 = vpop.permute.xlu1 %7022 }
0x2c82   :  { %7034 = vst.msk [vmem:[#allocation2 + $0x20] sm:$0xff] %vm3335_vm6, %v7023_v19 }
0x2c83   :  { %v7025_v25 = vpop.permute.xlu0 %7024 }
0x2c84   :  { %7035 = vst.msk [vmem:[#allocation2 + $0x28] sm:$0xff] %vm3335_vm6, %v7025_v25 }
0x2c85   :  { %v5626_v47 = vpop.permute.xlu1 %5625 }
0x2c86   :  { %5635 = vst.msk [vmem:[#allocation2 + $0x30] sm:$0xff] %vm1931_vm3, %v5626_v47 }
0x2c87   :  { %v5628_v59 = vpop.permute.xlu0 %5627 }
0x2c88   :  { %5636 = vst.msk [vmem:[#allocation2 + $0x38] sm:$0xff] %vm1931_vm3, %v5628_v59 }
0x2c89   :  { %v7490_v10 = vpop.permute.xlu1 %7489 }
0x2c8a   :  { %7501 = vst.msk [vmem:[#allocation2 + $0x20] sm:$0xff] %vm3803_vm7, %v7490_v10 }
0x2c8b   :  { %v7492_v27 = vpop.permute.xlu0 %7491 }
0x2c8c   :  { %7502 = vst.msk [vmem:[#allocation2 + $0x28] sm:$0xff] %vm3803_vm7, %v7492_v27 }
0x2c8d   :  { %v6093_v44 = vpop.permute.xlu1 %6092 }
0x2c8e   :  { %6102 = vst.msk [vmem:[#allocation2 + $0x30] sm:$0xff] %vm2399_vm4, %v6093_v44 }
0x2c8f   :  { %v6095_v20 = vpop.permute.xlu0 %6094 }
0x2c90   :  { %6103 = vst.msk [vmem:[#allocation2 + $0x38] sm:$0xff] %vm2399_vm4, %v6095_v20 }
0x2c91   :  { %v6560_v42 = vpop.permute.xlu1 %6559 }
0x2c92   :  { %6569 = vst.msk [vmem:[#allocation2 + $0x30] sm:$0xff] %vm2867_vm5, %v6560_v42 }
0x2c93   :  { %v7027_v48 = vpop.permute.xlu0 %7026 }
0x2c94   :  { %7036 = vst.msk [vmem:[#allocation2 + $0x30] sm:$0xff] %vm3335_vm6, %v7027_v48 }
0x2c95   :  { %v6562_v37 = vpop.permute.xlu1 %6561 }
0x2c96   :  { %6570 = vst.msk [vmem:[#allocation2 + $0x38] sm:$0xff] %vm2867_vm5, %v6562_v37 }
0x2c97   :  { %v7494_v11 = vpop.permute.xlu0 %7493 }
0x2c98   :  { %7503 = vst.msk [vmem:[#allocation2 + $0x30] sm:$0xff] %vm3803_vm7, %v7494_v11 }
0x2c99   :  { %v7029_v9 = vpop.permute.xlu1 %7028 }
0x2c9a   :  { %7037 = vst.msk [vmem:[#allocation2 + $0x38] sm:$0xff] %vm3335_vm6, %v7029_v9 }
0x2cfd   :  { %v9770_v5 = vpop.f32.mrf.mxu1 }
0x2cfe   :  { %7958 = vrot.lane.b32.xlu0 %v9770_v5, %s10631_s5 }
0x2cff   :  { %v7933_v32 = vpop.f32.mrf.mxu1 }
0x2d00   :  { %7956 = vrot.lane.b32.xlu1 %v7933_v32, %s10631_s5 }
0x2d01   :  { %v9773_v17 = vpop.f32.mrf.mxu1 }
0x2d03   :  { %v7943_v24 = vpop.f32.mrf.mxu1 }
0x2d04   :  { %7495 = vrot.lane.b32.xlu1 %v13060_v7, %s10632_s0  ;;  %7960 = vrot.lane.b32.xlu0 %v7943_v24, %s10631_s5 }
0x2d08   :  { %7962 = vrot.lane.b32.xlu1 %v9773_v17, %s10631_s5 }
0x2d26   :  { %v9808_v45 = vpop.f32.mrf.mxu0 }
0x2d27   :  { %v8076_v56 = vadd.f32 1e-06, %v9808_v45 }
0x2d28   :  { %v8070_v36 = vpop.f32.mrf.mxu0 }
0x2d29   :  { %10393 = vrsqrt.f32 %v8076_v56  ;;  %v8071_v46 = vadd.f32 1e-06, %v8070_v36 }
0x2d2b   :  { %10395 = vrsqrt.f32 %v8071_v46 }
0x2d36   :  { %v10394_v22 = vpop.eup %10393 }
0x2d37   :  { %v8118_v63 = vmul.f32 %v10394_v22, %v13255_v4 }
0x2d38   :  { %v10396_v58 = vpop.eup %10395 }
0x2d39   :  { %v8117_v60 = vmul.f32 %v10396_v58, %v13250_v28  ;;  %v8126_v1 = vmul.f32 0.64449096, %v8118_v63 }
0x2d3b   :  { %v8125_v18 = vmul.f32 0.64449096, %v8117_v60 }
0x2d3d   :  { %9850 = vmatprep.mubr.f32.mxu1 %v8125_v18 }
0x2d3e   :  { %v9811_v7 = vpop.f32.mrf.mxu0  ;;  %9851 = vmatmul.mubr.f32.vlgmr.msra.gmra.mxu1 %v8126_v1 }
0x2d3f   :  { %v8086_v34 = vadd.f32 1e-06, %v9811_v7 }
0x2d40   :  { %v8080_v49 = vpop.f32.mrf.mxu0 }
0x2d41   :  { %10397 = vrsqrt.f32 %v8086_v34  ;;  %v8081_v15 = vadd.f32 1e-06, %v8080_v49 }
0x2d43   :  { %10399 = vrsqrt.f32 %v8081_v15 }
0x2d4e   :  { %v10398_v51 = vpop.eup %10397 }
0x2d4f   :  { %v8120_v39 = vmul.f32 %v10398_v51, %v13275_v3 }
0x2d50   :  { %v10400_v8 = vpop.eup %10399 }
0x2d51   :  { %v8119_v16 = vmul.f32 %v10400_v8, %v13270_v30  ;;  %v8128_v4 = vmul.f32 0.64449096, %v8120_v39 }
0x2d53   :  { %v8127_v14 = vmul.f32 0.64449096, %v8119_v16 }
0x2d55   :  { %9853 = vmatprep.mubr.f32.mxu1 %v8127_v14 }
0x2d56   :  { %9854 = vmatmul.mubr.f32.gmra.mxu1 %v8128_v4 }
0x2d70   :  { %v7959_v28 = vpop.permute.xlu0 %7958 }
0x2d71   :  { %7969 = vst.msk [vmem:[#allocation2 + $0x28] sm:$0xff] %vm4271_vm8, %v7959_v28 }
0x2d72   :  { %v7957_v31 = vpop.permute.xlu1 %7956 }
0x2d73   :  { %7968 = vst.msk [vmem:[#allocation2 + $0x20] sm:$0xff] %vm4271_vm8, %v7957_v31 }
0x2d76   :  { %v7496_v53 = vpop.permute.xlu1 %7495  ;;  %v7961_v35 = vpop.permute.xlu0 %7960 }
0x2d77   :  { %7504 = vst.msk [vmem:[#allocation2 + $0x38] sm:$0xff] %vm3803_vm7, %v7496_v53 }
0x2d78   :  { %7970 = vst.msk [vmem:[#allocation2 + $0x30] sm:$0xff] %vm4271_vm8, %v7961_v35  ;;  %v7977_v26 = vld [vmem:[#allocation2 + $0x28] sm:$0xff] }
0x2d79   :  { %v7985_v23 = vmul.f32 %v7977_v26, %v7977_v26 }
0x2d7a   :  { %v7963_v13 = vpop.permute.xlu1 %7962  ;;  %v7976_v3 = vld [vmem:[#allocation2 + $0x20] sm:$0xff] }
0x2d7b   :  { %7971 = vst.msk [vmem:[#allocation2 + $0x38] sm:$0xff] %vm4271_vm8, %v7963_v13  ;;  %v7984_v30 = vmul.f32 %v7976_v3, %v7976_v3 }
0x2d7d   :  { %9812 = vmatprep.mubr.f32.mxu0 %v7984_v30 }
0x2d7e   :  { %9813 = vmatmul.mubr.f32.gmra.mxu0 %v7985_v23 }
0x2d7f   :  { %v7978_v33 = vld [vmem:[#allocation2 + $0x30] sm:$0xff] }
0x2d80   :  { %v7986_v6 = vmul.f32 %v7978_v33, %v7978_v33 }
0x2d82   :  { %9815 = vmatprep.mubr.f32.mxu0 %v7986_v6  ;;  %v7979_v19 = vld [vmem:[#allocation2 + $0x38] sm:$0xff] }
0x2d83   :  { %v7987_v25 = vmul.f32 %v7979_v19, %v7979_v19 }
0x2d85   :  { %9816 = vmatmul.mubr.f32.gmra.mxu0 %v7987_v25 }
0x2dfe   :  { %v9852_v47 = vpop.f32.mrf.mxu1 }
0x2dff   :  { %8255 = vst [vmem:[#allocation16 + $0x8] sm:$0xff] %v9852_v47 }
0x2e00   :  { %v8215_v59 = vpop.f32.mrf.mxu1 }
0x2e01   :  { %8254 = vst [vmem:[#allocation16] sm:$0xff] %v8215_v59 }
0x2e16   :  { %v9855_v12 = vpop.f32.mrf.mxu1 }
0x2e17   :  { %8257 = vst [vmem:[#allocation16 + $0x18] sm:$0xff] %v9855_v12 }
0x2e18   :  { %v8225_v2 = vpop.f32.mrf.mxu1 }
0x2e19   :  { %8256 = vst [vmem:[#allocation16 + $0x10] sm:$0xff] %v8225_v2 }
0x2e3e   :  { %v9814_v10 = vpop.f32.mrf.mxu0 }
0x2e3f   :  { %v8096_v50 = vadd.f32 1e-06, %v9814_v10 }
0x2e40   :  { %v8090_v27 = vpop.f32.mrf.mxu0 }
0x2e41   :  { %10401 = vrsqrt.f32 %v8096_v50  ;;  %v8091_v40 = vadd.f32 1e-06, %v8090_v27 }
0x2e43   :  { %10403 = vrsqrt.f32 %v8091_v40 }
0x2e45   :  { %v9817_v44 = vpop.f32.mrf.mxu0 }
0x2e46   :  { %v8106_v20 = vadd.f32 1e-06, %v9817_v44 }
0x2e47   :  { %v8100_v42 = vpop.f32.mrf.mxu0 }
0x2e48   :  { %10405 = vrsqrt.f32 %v8106_v20  ;;  %v8101_v48 = vadd.f32 1e-06, %v8100_v42 }
0x2e4a   :  { %10407 = vrsqrt.f32 %v8101_v48 }
0x2e4e   :  { %v10402_v37 = vpop.eup %10401 }
0x2e4f   :  { %v8122_v9 = vmul.f32 %v10402_v37, %v7977_v26 }
0x2e50   :  { %v10404_v11 = vpop.eup %10403 }
0x2e51   :  { %v8121_v0 = vmul.f32 %v10404_v11, %v7976_v3  ;;  %v8130_v41 = vmul.f32 0.64449096, %v8122_v9 }
0x2e53   :  { %v8129_v61 = vmul.f32 0.64449096, %v8121_v0 }
0x2e55   :  { %v10406_v62 = vpop.eup %10405  ;;  %9856 = vmatprep.mubr.f32.mxu1 %v8129_v61 }
0x2e56   :  { %9857 = vmatmul.mubr.f32.gmra.mxu1 %v8130_v41  ;;  %v8124_v54 = vmul.f32 %v10406_v62, %v7979_v19 }
0x2e57   :  { %v10408_v55 = vpop.eup %10407 }
0x2e58   :  { %v8123_v38 = vmul.f32 %v10408_v55, %v7978_v33  ;;  %v8132_v43 = vmul.f32 0.64449096, %v8124_v54 }
0x2e5a   :  { %v8131_v21 = vmul.f32 0.64449096, %v8123_v38 }
0x2e5c   :  { %9859 = vmatprep.mubr.f32.mxu1 %v8131_v21 }
0x2e5d   :  { %9860 = vmatmul.mubr.f32.gmra.mxu1 %v8132_v43 }
0x2f16   :  { %v9858_v29 = vpop.f32.mrf.mxu1 }
0x2f17   :  { %8259 = vst [vmem:[#allocation16 + $0x28] sm:$0xff] %v9858_v29 }
0x2f18   :  { %v8235_v57 = vpop.f32.mrf.mxu1 }
0x2f19   :  { %8258 = vst [vmem:[#allocation16 + $0x20] sm:$0xff] %v8235_v57 }
0x2f1d   :  { %v9861_v52 = vpop.f32.mrf.mxu1 }
0x2f1e   :  { %8261 = vst [vmem:[#allocation16 + $0x38] sm:$0xff] %v9861_v52 }
0x2f1f   :  { %v8245_v5 = vpop.f32.mrf.mxu1 }
0x2f20   :  { %8260 = vst [vmem:[#allocation16 + $0x30] sm:$0xff] %v8245_v5 }
0x2f21   :  { %10600 = shalt.err (!%p10597_p11)
}
0x2f22   :  { %8273 = dma.vmem_to_hbm [thread:$0]  %s8268_s24, 1024, %s13324_s8, [#allocation6], %s10624_s17, %s10624_s17, %s10625_s18  }
0x2f23   :  { %10617 = dma.done.wait [#allocation6], 1024  }
0x2f24   :  { %10618 = vsyncadd [#allocation6], 4294966272 }
0x2f25   :  { %8277 = vsyncpa [#allocation5], 1 }
0x2f26   :  { %8278 = vsyncpa [#allocation8], 1 }
0x2f27   :  { %8279 = vsyncpa [#allocation11], 1 }
0x2f28   :  { %8280 = vsyncpa [#allocation14], 1 }
0x2f29   :  { %8281 = vsyncpa [#allocation6], 1 }

</bundles_post_ra>
